<compile_context>
chip_gen: v5e
topology: v5e:2x2
jax: 0.10.0
libtpu: 0.0.40
codegen_flags: <defaults>
</compile_context>

<pallas_src>
import functools

import jax
import jax.numpy as jnp
import numpy as np
from jax.experimental import pallas as pl
from jax.experimental.pallas import tpu as pltpu

MXU_DTYPE = jnp.bfloat16      # jnp.float32 => exact f32 math everywhere (parity mode)


# ---------------------------------------------------------------------------
# helpers
# ---------------------------------------------------------------------------
def _nbytes(*arrs):
    return int(sum(a.size * a.dtype.itemsize for a in arrs))


def _rep_spec(a):
    zeros = (0,) * a.ndim
    return pl.BlockSpec(a.shape, lambda i, _z=zeros: _z)


def _band_weight(w_torch, di, n_in, n_out, stride, pad, dtype):
    # One H-tap of a conv as a dense matrix acting on a whole image row.
    # w_torch: (Cout, Cin, KH, KW).  Returns (n_in*Cin, n_out*Cout) with
    # entry[(wi*Cin+ci), (wo*Cout+co)] = w_torch[co, ci, di, wi - stride*wo + pad]
    # (zero when the tap is out of range, i.e. W-padding folded into the weight).
    co_n, ci_n, kh, kw = w_torch.shape
    wi = np.arange(n_in)[:, None]
    wo = np.arange(n_out)[None, :]
    dj = wi - stride * wo + pad
    valid = (dj >= 0) & (dj < kw)
    djc = np.clip(dj, 0, kw - 1)
    wt = jnp.transpose(w_torch[:, :, di, :], (2, 1, 0))              # (KW, Cin, Cout)
    g = wt[jnp.asarray(djc)]                                          # (n_in, n_out, Cin, Cout)
    g = g * jnp.asarray(valid, dtype=w_torch.dtype)[:, :, None, None]
    g = jnp.transpose(g, (0, 2, 1, 3))                                # (n_in, Cin, n_out, Cout)
    return g.reshape(n_in * ci_n, n_out * co_n).astype(dtype)


def _conv1_pair_weights(w1, dtype):
    # conv1 (5x5 pad 2) as 3 "row-pair" taps on a pair-major padded input.
    # input lanes : p_in*96 + w_in*3 + c      (input pair q = padded rows 2q, 2q+1; H-pad 3)
    # output lanes: p_out*512 + w_out*16 + co (output pair s, parity p_out = conv1 row 2s-1+p_out)
    # tap dq uses input pair (s+dq); nonzero iff di = 2*dq + p_in - p_out in [0,5).
    taps = []
    for dq in range(3):
        cols = []
        for p_out in range(2):
            rows = []
            for p_in in range(2):
                di = 2 * dq + p_in - p_out
                if 0 <= di <= 4:
                    rows.append(_band_weight(w1, di, 32, 32, 1, 2, dtype))
                else:
                    rows.append(jnp.zeros((96, 512), dtype))
            cols.append(jnp.concatenate(rows, axis=0))               # (192, 512)
        taps.append(jnp.concatenate(cols, axis=1))                   # (192, 1024)
    return jnp.stack(taps, axis=0)                                   # (3, 192, 1024)


def _conv_s2_weights(w, n_in, n_out, dtype):
    # 3x3 / stride-2 / pad-1 conv on a pair-major input (pair s holds rows 2s-1, 2s):
    # term A: current pair, both parities (di = 0, 1); term B: next pair, parity 0 (di = 2).
    wa = jnp.concatenate([_band_weight(w, 0, n_in, n_out, 2, 1, dtype),
                          _band_weight(w, 1, n_in, n_out, 2, 1, dtype)], axis=0)
    wb = _band_weight(w, 2, n_in, n_out, 2, 1, dtype)
    return wa, wb


def _fc1_weight_hwc(w, dtype):
    # fc1 consumes torch's NCHW flatten (c*64 + h*8 + w); the kernel feeds rows grouped as
    # h*32 + w*4 + c.  Permute fc1's weight rows once at trace time.
    p = np.arange(256)
    h, rem = p // 32, p % 32
    wcol, c = rem // 4, rem % 4
    src = c * 64 + h * 8 + wcol
    return w[jnp.asarray(src), :].astype(dtype)


# ---------------------------------------------------------------------------
# Kernel A: conv1 + conv2 + conv3   (input (tb,19,192) -> output (tb,18,512))
# ---------------------------------------------------------------------------
def _stage_a_kernel(x_ref, w1_ref, b1_ref, w2a_ref, w2b_ref, b2_ref, w3_ref, b3_ref,
                    o_ref, acc1_ref, c1s_ref, c2s_ref, acc3_ref):
    tb = x_ref.shape[0]

    # ---- conv1: 3 pair-tap dots, K=192, N=1024 (accumulate in f32 scratch) ----
    for dq in range(3):
        xs = x_ref[:, dq:dq + 17, :].reshape(tb * 17, 192)
        t = jnp.dot(xs, w1_ref[dq], preferred_element_type=jnp.float32)
        if dq == 0:
            acc1_ref[...] = t
        else:
            acc1_ref[...] += t
    c1 = jnp.maximum(acc1_ref[...] + b1_ref[...], 0.0)
    c1s_ref[...] = c1.reshape(tb, 17, 1024).astype(c1s_ref.dtype)
    # conv2's zero-padding rows (conv1 rows -1 and 32) -> zero those two half-rows.
    c1s_ref[:, 0:1, 0:512] = jnp.zeros((tb, 1, 512), c1s_ref.dtype)
    c1s_ref[:, 16:17, 512:1024] = jnp.zeros((tb, 1, 512), c1s_ref.dtype)

    # ---- conv2 (3x3, stride 2, pad 1): 2 dots, K=1024 / 512 ----
    a2 = c1s_ref[:, 0:16, :].reshape(tb * 16, 1024)          # pair oy     (rows 2oy-1, 2oy)
    b2in = c1s_ref[:, 1:17, 0:512].reshape(tb * 16, 512)     # pair oy+1, parity 0 (row 2oy+1)
    c2 = jnp.dot(a2, w2a_ref[...], preferred_element_type=jnp.float32)
    c2 = c2 + jnp.dot(b2in, w2b_ref[...], preferred_element_type=jnp.float32)
    c2 = jnp.maximum(c2 + b2_ref[...], 0.0)

    # ---- conv3 (5x5, pad 2): stage conv2 output in a VMEM scratch with a 2-row H halo.
    # Only the 4 halo rows are (re)zeroed each step (cheap and safe under megacore grid split).
    c2s_ref[:, 0:2, :] = jnp.zeros((tb, 2, 256), c2s_ref.dtype)
    c2s_ref[:, 18:20, :] = jnp.zeros((tb, 2, 256), c2s_ref.dtype)
    c2s_ref[:, 2:18, :] = c2.reshape(tb, 16, 256).astype(c2s_ref.dtype)
    for di in range(5):
        xs = c2s_ref[:, di:di + 16, :].reshape(tb * 16, 256)
        t = jnp.dot(xs, w3_ref[di], preferred_element_type=jnp.float32)
        if di == 0:
            acc3_ref[...] = t
        else:
            acc3_ref[...] += t
    c3 = jnp.maximum(acc3_ref[...] + b3_ref[...], 0.0).astype(o_ref.dtype)

    # output (tb,18,512): rows 0 and 17 are conv4's zero-padding rows; 1..16 = conv3 rows 0..15.
    o_ref[:, 0:1, :] = jnp.zeros((tb, 1, 512), o_ref.dtype)
    o_ref[:, 17:18, :] = jnp.zeros((tb, 1, 512), o_ref.dtype)
    o_ref[:, 1:17, :] = c3.reshape(tb, 16, 512)


# ---------------------------------------------------------------------------
# Kernel B: conv4 + conv5 + conv6 + fc1 + fc2 + features + simclr + shift heads
#           (input (tb,9,1024) pair-major -> output (tb,1, d_feat+d_sim+128))
# ---------------------------------------------------------------------------
def _stage_b_kernel(x_ref, w4a_ref, w4b_ref, b4_ref, w5_ref, b5_ref, w6_ref, b6_ref,
                    wfc1_ref, bfc1_ref, wfc2_ref, bfc2_ref, wft_ref, bft_ref,
                    wcb_ref, bcb_ref, ws2_ref, bs2_ref, o_ref, c6s_ref):
    tb = x_ref.shape[0]
    mdt = w4a_ref.dtype

    # ---- conv4 (3x3, stride 2, pad 1): 2 dots, K=1024 / 512, N=256 ----
    a4 = x_ref[:, 0:8, :].reshape(tb * 8, 1024)
    b4in = x_ref[:, 1:9, 0:512].reshape(tb * 8, 512)
    c4 = jnp.dot(a4, w4a_ref[...], preferred_element_type=jnp.float32)
    c4 = c4 + jnp.dot(b4in, w4b_ref[...], preferred_element_type=jnp.float32)
    c4 = jnp.maximum(c4 + b4_ref[...], 0.0).astype(mdt)

    # ---- conv5 / conv6 (1x1 convs) as block-diagonal matmuls (keep 256 lanes) ----
    c5 = jnp.maximum(jnp.dot(c4, w5_ref[...], preferred_element_type=jnp.float32)
                     + b5_ref[...], 0.0).astype(mdt)
    c6 = jnp.maximum(jnp.dot(c5, w6_ref[...], preferred_element_type=jnp.float32)
                     + b6_ref[...], 0.0)
    c6s_ref[...] = c6.reshape(tb, 8, 32).astype(mdt)

    # ---- fc1: torch's NCHW flatten is folded into wfc1's row order; sum 8 per-image-row dots ----
    s = None
    for h in range(8):
        xh = c6s_ref[:, h:h + 1, :].reshape(tb, 32)
        t = jnp.dot(xh, wfc1_ref[h * 32:(h + 1) * 32, :], preferred_element_type=jnp.float32)
        s = t if s is None else s + t
    h1 = jnp.maximum(s + bfc1_ref[...], 0.0).astype(mdt)
    h2 = jnp.maximum(jnp.dot(h1, wfc2_ref[...], preferred_element_type=jnp.float32)
                     + bfc2_ref[...], 0.0).astype(mdt)
    feat = jnp.dot(h2, wft_ref[...], preferred_element_type=jnp.float32) + bft_ref[...]

    # ---- heads: simclr-hidden and shift share `feat` -> one wide (N=256) dot, then split ----
    df = wft_ref.shape[1]            # features dim
    ds1 = ws2_ref.shape[0]           # simclr hidden dim (= out_dim)
    dsim = ws2_ref.shape[1]          # simclr output dim
    dsh = wcb_ref.shape[1] - ds1     # shift head, zero-padded to 128 lanes
    cmb = jnp.dot(feat.astype(mdt), wcb_ref[...], preferred_element_type=jnp.float32) + bcb_ref[...]
    simh = jnp.maximum(cmb[:, 0:ds1], 0.0).astype(mdt)
    simo = jnp.dot(simh, ws2_ref[...], preferred_element_type=jnp.float32) + bs2_ref[...]

    o_ref[:, :, 0:df] = feat.reshape(tb, 1, df).astype(o_ref.dtype)
    o_ref[:, :, df:df + dsim] = simo.reshape(tb, 1, dsim).astype(o_ref.dtype)
    o_ref[:, :, df + dsim:df + dsim + dsh] = cmb[:, ds1:ds1 + dsh].reshape(tb, 1, dsh).astype(o_ref.dtype)


# ---------------------------------------------------------------------------
# pallas_call wrappers (batch-gridded, "parallel")
# ---------------------------------------------------------------------------
def _mosaic_params():
    return pltpu.CompilerParams(dimension_semantics=("parallel",),
                                vmem_limit_bytes=32 * 1024 * 1024)


def _call_stage_a(xpp, weights, tb, act_dtype):
    bp = xpp.shape[0]
    flops = 2 * bp * (17 * 3 * 192 * 1024 + 16 * (1024 + 512) * 256 + 16 * 5 * 256 * 512)
    out_bytes = bp * 18 * 512 * jnp.dtype(act_dtype).itemsize
    return pl.pallas_call(
        _stage_a_kernel,
        out_shape=jax.ShapeDtypeStruct((bp, 18, 512), act_dtype),
        grid=(bp // tb,),
        in_specs=[pl.BlockSpec((tb, 19, 192), lambda i: (i, 0, 0))]
                 + [_rep_spec(w) for w in weights],
        out_specs=pl.BlockSpec((tb, 18, 512), lambda i: (i, 0, 0)),
        scratch_shapes=[pltpu.VMEM((tb * 17, 1024), jnp.float32),   # conv1 accumulator
                        pltpu.VMEM((tb, 17, 1024), act_dtype),      # relu(conv1), pair-major
                        pltpu.VMEM((tb, 20, 256), act_dtype),       # relu(conv2) + conv3 H halo
                        pltpu.VMEM((tb * 16, 512), jnp.float32)],   # conv3 accumulator
        compiler_params=_mosaic_params(),
        cost_estimate=pl.CostEstimate(flops=flops, transcendentals=0,
                                      bytes_accessed=_nbytes(xpp, *weights) + out_bytes),
    )(xpp, *weights)


def _call_stage_b(c3p, weights, tb, dout):
    bp = c3p.shape[0]
    flops = 2 * bp * (8 * (1024 + 512) * 256 + 8 * 256 * 256 + 8 * 256 * 32
                      + 256 * 128 + 128 * 64 + 64 * 128 + 128 * 256 + 128 * 128)
    return pl.pallas_call(
        _stage_b_kernel,
        out_shape=jax.ShapeDtypeStruct((bp, 1, dout), jnp.float32),
        grid=(bp // tb,),
        in_specs=[pl.BlockSpec((tb, 9, 1024), lambda i: (i, 0, 0))]
                 + [_rep_spec(w) for w in weights],
        out_specs=pl.BlockSpec((tb, 1, dout), lambda i: (i, 0, 0)),
        scratch_shapes=[pltpu.VMEM((tb, 8, 32), weights[0].dtype)],  # conv6 output (per-row)
        compiler_params=_mosaic_params(),
        cost_estimate=pl.CostEstimate(flops=flops, transcendentals=0,
                                      bytes_accessed=_nbytes(c3p, *weights) + bp * dout * 4),
    )(c3p, *weights)


# ---------------------------------------------------------------------------
# Deterministic synthetic parameters (shapes from Net_CSI.__init__, torch layouts).
# ---------------------------------------------------------------------------
def init_params(key, out_dim=128, hid_dim_full=128, simclr_dim=128, num_classes=2, shift=4):
    def nrm(k, shape, fan_in):
        return jax.random.normal(k, shape, dtype=jnp.float32) / jnp.sqrt(jnp.float32(fan_in))

    ks = iter(jax.random.split(key, 32))
    p = {}
    conv_defs = [("conv1", 16, 3, 5), ("conv2", 16, 16, 3), ("conv3", 32, 16, 5),
                 ("conv4", 32, 32, 3), ("conv5", 32, 32, 1), ("conv6", 4, 32, 1)]
    for name, cout, cin, k in conv_defs:
        fan = cin * k * k
        p[name + "_w"] = nrm(next(ks), (cout, cin, k, k), fan)     # torch (Cout, Cin, KH, KW)
        p[name + "_b"] = nrm(next(ks), (cout,), fan)

    lin_defs = [("fc1", 8 * 8 * 4, hid_dim_full),
                ("fc2", hid_dim_full, hid_dim_full // 2),
                ("features", hid_dim_full // 2, out_dim),
                ("sim1", out_dim, out_dim),
                ("sim2", out_dim, simclr_dim),
                ("shift_cls", out_dim, shift),
                ("linear", out_dim, num_classes),          # defined but unused in forward()
                ("joint", out_dim, shift * num_classes)]   # defined but unused in forward()
    for name, fin, fout in lin_defs:
        p[name + "_w"] = nrm(next(ks), (fin, fout), fin)   # stored (in, out)
        p[name + "_b"] = nrm(next(ks), (fout,), fin)
    return p


# ---------------------------------------------------------------------------
# Forward pass (bn=False branch).
# ---------------------------------------------------------------------------
def net_csi_forward(params, x_nchw, penultimate=True, simclr=True, shift=True):
    f32 = jnp.float32
    mdt = MXU_DTYPE
    act = MXU_DTYPE                      # inter-kernel activation dtype (halves HBM traffic)
    B = x_nchw.shape[0]
    tb = max(1, min(8, B // 2))          # tb <= B//2 keeps grid >= 2 (both v7x TensorCores busy)
    bp = ((B + tb - 1) // tb) * tb

    # ---- input: NCHW -> padded pair-major (bp, 19, 192); lanes = p*96 + w*3 + c ----
    x = jnp.transpose(x_nchw, (0, 2, 3, 1)).astype(f32)              # (B, 32, 32, 3)
    if bp != B:
        x = jnp.pad(x, ((0, bp - B), (0, 0), (0, 0), (0, 0)))
    x = jnp.pad(x, ((0, 0), (3, 3), (0, 0), (0, 0)))                 # H pad 3 -> (bp, 38, 32, 3)
    xpp = x.reshape(bp, 19, 192).astype(act)

    # ---- expanded "band" weights (trace-time; hoist/prepare once for repeated inference) ----
    w1 = _conv1_pair_weights(params["conv1_w"], mdt)                       # (3, 192, 1024)
    b1t = jnp.tile(params["conv1_b"], 64).reshape(1, 1024).astype(f32)
    w2a, w2b = _conv_s2_weights(params["conv2_w"], 32, 16, mdt)            # (1024,256),(512,256)
    b2t = jnp.tile(params["conv2_b"], 16).reshape(1, 256).astype(f32)
    w3 = jnp.stack([_band_weight(params["conv3_w"], d, 16, 16, 1, 2, mdt) for d in range(5)])
    b3t = jnp.tile(params["conv3_b"], 16).reshape(1, 512).astype(f32)
    w4a, w4b = _conv_s2_weights(params["conv4_w"], 16, 8, mdt)             # (1024,256),(512,256)
    b4t = jnp.tile(params["conv4_b"], 8).reshape(1, 256).astype(f32)
    w5bd = jnp.kron(jnp.eye(8, dtype=f32), params["conv5_w"][:, :, 0, 0].T).astype(mdt)
    b5t = jnp.tile(params["conv5_b"], 8).reshape(1, 256).astype(f32)
    w6bd = jnp.kron(jnp.eye(8, dtype=f32), params["conv6_w"][:, :, 0, 0].T).astype(mdt)
    b6t = jnp.tile(params["conv6_b"], 8).reshape(1, 32).astype(f32)

    wfc1 = _fc1_weight_hwc(params["fc1_w"], mdt)
    bfc1 = params["fc1_b"].reshape(1, -1).astype(f32)
    wfc2 = params["fc2_w"].astype(mdt)
    bfc2 = params["fc2_b"].reshape(1, -1).astype(f32)
    wft = params["features_w"].astype(mdt)
    bft = params["features_b"].reshape(1, -1).astype(f32)

    d_feat = params["features_w"].shape[1]
    d_sim = params["sim2_w"].shape[1]
    n_shift = params["shift_cls_w"].shape[1]
    wsh = jnp.zeros((params["shift_cls_w"].shape[0], 128), f32)
    wsh = wsh.at[:, :n_shift].set(params["shift_cls_w"])
    wcb = jnp.concatenate([params["sim1_w"], wsh], axis=1).astype(mdt)     # (128, 256)
    bcb = jnp.zeros((1, params["sim1_w"].shape[1] + 128), f32)
    bcb = bcb.at[0, 0:params["sim1_b"].shape[0]].set(params["sim1_b"])
    bcb = bcb.at[0, params["sim1_w"].shape[1]:params["sim1_w"].shape[1] + n_shift].set(
        params["shift_cls_b"])
    ws2 = params["sim2_w"].astype(mdt)
    bs2 = params["sim2_b"].reshape(1, -1).astype(f32)

    # ---- kernel A: conv1 + conv2 + conv3 ----
    c3 = _call_stage_a(xpp, [w1, b1t, w2a, w2b, b2t, w3, b3t], tb, act)    # (bp, 18, 512)
    # free row-major re-view: pair s holds conv3 rows (2s-1, 2s) with zero padding rows.
    c3p = c3.reshape(bp, 9, 1024)

    # ---- kernel B: conv4..conv6 + full FC tail, heads in one lane-dense slab ----
    dout = d_feat + d_sim + 128
    heads = _call_stage_b(c3p, [w4a, w4b, b4t, w5bd, b5t, w6bd, b6t,
                                wfc1, bfc1, wfc2, bfc2, wft, bft,
                                wcb, bcb, ws2, bs2], tb, dout)             # (bp, 1, dout) f32
    heads = heads[:B, 0, :]

    res = {}
    if penultimate:
        res["penultimate"] = heads[:, :d_feat]
    if simclr:
        res["simclr"] = heads[:, d_feat:d_feat + d_sim]
    if shift:
        res["shift"] = heads[:, d_feat + d_sim:d_feat + d_sim + n_shift]
    return res


if __name__ == "__main__":
    key = jax.random.PRNGKey(0)
    pkey, xkey = jax.random.split(key)
    params = init_params(pkey)

    # NCHW input as in PyTorch: batch=2, 3 channels, 32x32 spatial (implied by conv_to_fc = 8*8*4).
    x = jax.random.normal(xkey, (2, 3, 32, 32), dtype=jnp.float32)

    fwd = jax.jit(functools.partial(net_csi_forward, penultimate=True, simclr=True, shift=True))
    out = jax.block_until_ready(fwd(params, x))

    assert out["penultimate"].shape == (2, 128)
    assert out["simclr"].shape == (2, 128)
    assert out["shift"].shape == (2, 4)
    assert all(bool(jnp.all(jnp.isfinite(v))) for v in out.values())
    print("KERNEL_OK")
</pallas_src>

<mosaic_0001>
module attributes {stable_mosaic.version = 11 : i64} {
  func.func @_stage_a_kernel(%arg0: i32, %arg1: memref<1x19x192xbf16, #tpu.memory_space<vmem>>, %arg2: memref<3x192x1024xbf16, #tpu.memory_space<vmem>>, %arg3: memref<1x1024xf32, #tpu.memory_space<vmem>>, %arg4: memref<1024x256xbf16, #tpu.memory_space<vmem>>, %arg5: memref<512x256xbf16, #tpu.memory_space<vmem>>, %arg6: memref<1x256xf32, #tpu.memory_space<vmem>>, %arg7: memref<5x256x512xbf16, #tpu.memory_space<vmem>>, %arg8: memref<1x512xf32, #tpu.memory_space<vmem>>, %arg9: memref<1x18x512xbf16, #tpu.memory_space<vmem>>, %arg10: memref<17x1024xf32, #tpu.memory_space<vmem>>, %arg11: memref<1x17x1024xbf16, #tpu.memory_space<vmem>>, %arg12: memref<1x20x256xbf16, #tpu.memory_space<vmem>>, %arg13: memref<16x512xf32, #tpu.memory_space<vmem>>) attributes {dimension_semantics = [#tpu.dimension_semantics<parallel>], iteration_bounds = array<i64: 2>, scalar_prefetch = 0 : i64, scratch_operands = 4 : i64, tpu.core_type = #tpu.core_type<tc>, window_params = [{transform_indices = @transform_0, window_bounds = array<i64: 1, 19, 192>}, {pipeline_mode = #tpu.pipeline_mode<synchronous>, transform_indices = @transform_1, window_bounds = array<i64: 3, 192, 1024>}, {pipeline_mode = #tpu.pipeline_mode<synchronous>, transform_indices = @transform_2, window_bounds = array<i64: 1, 1024>}, {pipeline_mode = #tpu.pipeline_mode<synchronous>, transform_indices = @transform_3, window_bounds = array<i64: 1024, 256>}, {pipeline_mode = #tpu.pipeline_mode<synchronous>, transform_indices = @transform_4, window_bounds = array<i64: 512, 256>}, {pipeline_mode = #tpu.pipeline_mode<synchronous>, transform_indices = @transform_5, window_bounds = array<i64: 1, 256>}, {pipeline_mode = #tpu.pipeline_mode<synchronous>, transform_indices = @transform_6, window_bounds = array<i64: 5, 256, 512>}, {pipeline_mode = #tpu.pipeline_mode<synchronous>, transform_indices = @transform_7, window_bounds = array<i64: 1, 512>}, {transform_indices = @transform_8, window_bounds = array<i64: 1, 18, 512>}]} {
    %c0 = arith.constant 0 : index
    %c0_0 = arith.constant 0 : index
    %c0_1 = arith.constant 0 : index
    %0 = vector.load %arg1[%c0, %c0_0, %c0_1] : memref<1x19x192xbf16, #tpu.memory_space<vmem>>, vector<1x17x192xbf16>
    %1 = vector.shape_cast %0 : vector<1x17x192xbf16> to vector<17x192xbf16>
    %c0_2 = arith.constant 0 : index
    %c0_3 = arith.constant 0 : index
    %c0_4 = arith.constant 0 : index
    %2 = vector.load %arg2[%c0_2, %c0_3, %c0_4] : memref<3x192x1024xbf16, #tpu.memory_space<vmem>>, vector<1x192x1024xbf16>
    %3 = vector.shape_cast %2 : vector<1x192x1024xbf16> to vector<192x1024xbf16>
    %cst = arith.constant dense<0.000000e+00> : vector<17x1024xf32>
    %4 = tpu.matmul %1, %3, %cst {dimension_numbers = #tpu.dot_dimension_numbers<[1], [0], [0], [1], [0, 0, 1, 1], [], []>} : vector<17x192xbf16>, vector<192x1024xbf16>, vector<17x1024xf32> -> vector<17x1024xf32>
    %c0_5 = arith.constant 0 : index
    %c0_6 = arith.constant 0 : index
    %5 = vector.load %arg10[%c0_5, %c0_6] : memref<17x1024xf32, #tpu.memory_space<vmem>>, vector<17x1024xf32>
    tpu.vector_store %arg10[%c0_5, %c0_6], %4 {strides = array<i32>} : memref<17x1024xf32, #tpu.memory_space<vmem>>, vector<17x1024xf32>,
    %c0_7 = arith.constant 0 : index
    %c1 = arith.constant 1 : index
    %c0_8 = arith.constant 0 : index
    %6 = vector.load %arg1[%c0_7, %c1, %c0_8] : memref<1x19x192xbf16, #tpu.memory_space<vmem>>, vector<1x17x192xbf16>
    %7 = vector.shape_cast %6 : vector<1x17x192xbf16> to vector<17x192xbf16>
    %c1_9 = arith.constant 1 : index
    %c0_10 = arith.constant 0 : index
    %c0_11 = arith.constant 0 : index
    %8 = vector.load %arg2[%c1_9, %c0_10, %c0_11] : memref<3x192x1024xbf16, #tpu.memory_space<vmem>>, vector<1x192x1024xbf16>
    %9 = vector.shape_cast %8 : vector<1x192x1024xbf16> to vector<192x1024xbf16>
    %cst_12 = arith.constant dense<0.000000e+00> : vector<17x1024xf32>
    %10 = tpu.matmul %7, %9, %cst_12 {dimension_numbers = #tpu.dot_dimension_numbers<[1], [0], [0], [1], [0, 0, 1, 1], [], []>} : vector<17x192xbf16>, vector<192x1024xbf16>, vector<17x1024xf32> -> vector<17x1024xf32>
    %c0_13 = arith.constant 0 : index
    %c0_14 = arith.constant 0 : index
    %11 = vector.load %arg10[%c0_13, %c0_14] : memref<17x1024xf32, #tpu.memory_space<vmem>>, vector<17x1024xf32>
    %12 = arith.addf %11, %10 : vector<17x1024xf32>
    %c0_15 = arith.constant 0 : index
    %c0_16 = arith.constant 0 : index
    %13 = vector.load %arg10[%c0_15, %c0_16] : memref<17x1024xf32, #tpu.memory_space<vmem>>, vector<17x1024xf32>
    tpu.vector_store %arg10[%c0_15, %c0_16], %12 {strides = array<i32>} : memref<17x1024xf32, #tpu.memory_space<vmem>>, vector<17x1024xf32>,
    %c0_17 = arith.constant 0 : index
    %c2 = arith.constant 2 : index
    %c0_18 = arith.constant 0 : index
    %14 = vector.load %arg1[%c0_17, %c2, %c0_18] : memref<1x19x192xbf16, #tpu.memory_space<vmem>>, vector<1x17x192xbf16>
    %15 = vector.shape_cast %14 : vector<1x17x192xbf16> to vector<17x192xbf16>
    %c2_19 = arith.constant 2 : index
    %c0_20 = arith.constant 0 : index
    %c0_21 = arith.constant 0 : index
    %16 = vector.load %arg2[%c2_19, %c0_20, %c0_21] : memref<3x192x1024xbf16, #tpu.memory_space<vmem>>, vector<1x192x1024xbf16>
    %17 = vector.shape_cast %16 : vector<1x192x1024xbf16> to vector<192x1024xbf16>
    %cst_22 = arith.constant dense<0.000000e+00> : vector<17x1024xf32>
    %18 = tpu.matmul %15, %17, %cst_22 {dimension_numbers = #tpu.dot_dimension_numbers<[1], [0], [0], [1], [0, 0, 1, 1], [], []>} : vector<17x192xbf16>, vector<192x1024xbf16>, vector<17x1024xf32> -> vector<17x1024xf32>
    %c0_23 = arith.constant 0 : index
    %c0_24 = arith.constant 0 : index
    %19 = vector.load %arg10[%c0_23, %c0_24] : memref<17x1024xf32, #tpu.memory_space<vmem>>, vector<17x1024xf32>
    %20 = arith.addf %19, %18 : vector<17x1024xf32>
    %c0_25 = arith.constant 0 : index
    %c0_26 = arith.constant 0 : index
    %21 = vector.load %arg10[%c0_25, %c0_26] : memref<17x1024xf32, #tpu.memory_space<vmem>>, vector<17x1024xf32>
    tpu.vector_store %arg10[%c0_25, %c0_26], %20 {strides = array<i32>} : memref<17x1024xf32, #tpu.memory_space<vmem>>, vector<17x1024xf32>,
    %c0_27 = arith.constant 0 : index
    %c0_28 = arith.constant 0 : index
    %22 = vector.load %arg10[%c0_27, %c0_28] : memref<17x1024xf32, #tpu.memory_space<vmem>>, vector<17x1024xf32>
    %c0_29 = arith.constant 0 : index
    %c0_30 = arith.constant 0 : index
    %23 = vector.load %arg3[%c0_29, %c0_30] : memref<1x1024xf32, #tpu.memory_space<vmem>>, vector<1x1024xf32>
    %24 = vector.broadcast %23 : vector<1x1024xf32> to vector<17x1024xf32>
    %25 = arith.addf %22, %24 : vector<17x1024xf32>
    %cst_31 = arith.constant 0.000000e+00 : f32
    %26 = vector.broadcast %cst_31 : f32 to vector<17x1024xf32>
    %27 = arith.maximumf %25, %26 : vector<17x1024xf32>
    %28 = vector.shape_cast %27 : vector<17x1024xf32> to vector<1x17x1024xf32>
    %29 = arith.truncf %28 : vector<1x17x1024xf32> to vector<1x17x1024xbf16>
    %c0_32 = arith.constant 0 : index
    %c0_33 = arith.constant 0 : index
    %c0_34 = arith.constant 0 : index
    %30 = vector.load %arg11[%c0_32, %c0_33, %c0_34] : memref<1x17x1024xbf16, #tpu.memory_space<vmem>>, vector<1x17x1024xbf16>
    tpu.vector_store %arg11[%c0_32, %c0_33, %c0_34], %29 {strides = array<i32>} : memref<1x17x1024xbf16, #tpu.memory_space<vmem>>, vector<1x17x1024xbf16>,
    %cst_35 = arith.constant 0.000000e+00 : bf16
    %31 = vector.broadcast %cst_35 : bf16 to vector<1x1x512xbf16>
    %c0_36 = arith.constant 0 : index
    %c0_37 = arith.constant 0 : index
    %c0_38 = arith.constant 0 : index
    %32 = vector.load %arg11[%c0_36, %c0_37, %c0_38] : memref<1x17x1024xbf16, #tpu.memory_space<vmem>>, vector<1x1x512xbf16>
    tpu.vector_store %arg11[%c0_36, %c0_37, %c0_38], %31 {strides = array<i32>} : memref<1x17x1024xbf16, #tpu.memory_space<vmem>>, vector<1x1x512xbf16>,
    %cst_39 = arith.constant 0.000000e+00 : bf16
    %33 = vector.broadcast %cst_39 : bf16 to vector<1x1x512xbf16>
    %c0_40 = arith.constant 0 : index
    %c16 = arith.constant 16 : index
    %c512 = arith.constant 512 : index
    %34 = vector.load %arg11[%c0_40, %c16, %c512] : memref<1x17x1024xbf16, #tpu.memory_space<vmem>>, vector<1x1x512xbf16>
    tpu.vector_store %arg11[%c0_40, %c16, %c512], %33 {strides = array<i32>} : memref<1x17x1024xbf16, #tpu.memory_space<vmem>>, vector<1x1x512xbf16>,
    %c0_41 = arith.constant 0 : index
    %c0_42 = arith.constant 0 : index
    %c0_43 = arith.constant 0 : index
    %35 = vector.load %arg11[%c0_41, %c0_42, %c0_43] : memref<1x17x1024xbf16, #tpu.memory_space<vmem>>, vector<1x16x1024xbf16>
    %36 = vector.shape_cast %35 : vector<1x16x1024xbf16> to vector<16x1024xbf16>
    %c0_44 = arith.constant 0 : index
    %c1_45 = arith.constant 1 : index
    %c0_46 = arith.constant 0 : index
    %37 = vector.load %arg11[%c0_44, %c1_45, %c0_46] : memref<1x17x1024xbf16, #tpu.memory_space<vmem>>, vector<1x16x512xbf16>
    %38 = vector.shape_cast %37 : vector<1x16x512xbf16> to vector<16x512xbf16>
    %c0_47 = arith.constant 0 : index
    %c0_48 = arith.constant 0 : index
    %39 = vector.load %arg4[%c0_47, %c0_48] : memref<1024x256xbf16, #tpu.memory_space<vmem>>, vector<1024x256xbf16>
    %cst_49 = arith.constant dense<0.000000e+00> : vector<16x256xf32>
    %40 = tpu.matmul %36, %39, %cst_49 {dimension_numbers = #tpu.dot_dimension_numbers<[1], [0], [0], [1], [0, 0, 1, 1], [], []>} : vector<16x1024xbf16>, vector<1024x256xbf16>, vector<16x256xf32> -> vector<16x256xf32>
    %c0_50 = arith.constant 0 : index
    %c0_51 = arith.constant 0 : index
    %41 = vector.load %arg5[%c0_50, %c0_51] : memref<512x256xbf16, #tpu.memory_space<vmem>>, vector<512x256xbf16>
    %cst_52 = arith.constant dense<0.000000e+00> : vector<16x256xf32>
    %42 = tpu.matmul %38, %41, %cst_52 {dimension_numbers = #tpu.dot_dimension_numbers<[1], [0], [0], [1], [0, 0, 1, 1], [], []>} : vector<16x512xbf16>, vector<512x256xbf16>, vector<16x256xf32> -> vector<16x256xf32>
    %43 = arith.addf %40, %42 : vector<16x256xf32>
    %c0_53 = arith.constant 0 : index
    %c0_54 = arith.constant 0 : index
    %44 = vector.load %arg6[%c0_53, %c0_54] : memref<1x256xf32, #tpu.memory_space<vmem>>, vector<1x256xf32>
    %45 = vector.broadcast %44 : vector<1x256xf32> to vector<16x256xf32>
    %46 = arith.addf %43, %45 : vector<16x256xf32>
    %cst_55 = arith.constant 0.000000e+00 : f32
    %47 = vector.broadcast %cst_55 : f32 to vector<16x256xf32>
    %48 = arith.maximumf %46, %47 : vector<16x256xf32>
    %cst_56 = arith.constant 0.000000e+00 : bf16
    %49 = vector.broadcast %cst_56 : bf16 to vector<1x2x256xbf16>
    %c0_57 = arith.constant 0 : index
    %c0_58 = arith.constant 0 : index
    %c0_59 = arith.constant 0 : index
    %50 = vector.load %arg12[%c0_57, %c0_58, %c0_59] : memref<1x20x256xbf16, #tpu.memory_space<vmem>>, vector<1x2x256xbf16>
    tpu.vector_store %arg12[%c0_57, %c0_58, %c0_59], %49 {strides = array<i32>} : memref<1x20x256xbf16, #tpu.memory_space<vmem>>, vector<1x2x256xbf16>,
    %cst_60 = arith.constant 0.000000e+00 : bf16
    %51 = vector.broadcast %cst_60 : bf16 to vector<1x2x256xbf16>
    %c0_61 = arith.constant 0 : index
    %c18 = arith.constant 18 : index
    %c0_62 = arith.constant 0 : index
    %52 = vector.load %arg12[%c0_61, %c18, %c0_62] : memref<1x20x256xbf16, #tpu.memory_space<vmem>>, vector<1x2x256xbf16>
    tpu.vector_store %arg12[%c0_61, %c18, %c0_62], %51 {strides = array<i32>} : memref<1x20x256xbf16, #tpu.memory_space<vmem>>, vector<1x2x256xbf16>,
    %53 = vector.shape_cast %48 : vector<16x256xf32> to vector<1x16x256xf32>
    %54 = arith.truncf %53 : vector<1x16x256xf32> to vector<1x16x256xbf16>
    %c0_63 = arith.constant 0 : index
    %c2_64 = arith.constant 2 : index
    %c0_65 = arith.constant 0 : index
    %55 = vector.load %arg12[%c0_63, %c2_64, %c0_65] : memref<1x20x256xbf16, #tpu.memory_space<vmem>>, vector<1x16x256xbf16>
    tpu.vector_store %arg12[%c0_63, %c2_64, %c0_65], %54 {strides = array<i32>} : memref<1x20x256xbf16, #tpu.memory_space<vmem>>, vector<1x16x256xbf16>,
    %c0_66 = arith.constant 0 : index
    %c0_67 = arith.constant 0 : index
    %c0_68 = arith.constant 0 : index
    %56 = vector.load %arg12[%c0_66, %c0_67, %c0_68] : memref<1x20x256xbf16, #tpu.memory_space<vmem>>, vector<1x16x256xbf16>
    %57 = vector.shape_cast %56 : vector<1x16x256xbf16> to vector<16x256xbf16>
    %c0_69 = arith.constant 0 : index
    %c0_70 = arith.constant 0 : index
    %c0_71 = arith.constant 0 : index
    %58 = vector.load %arg7[%c0_69, %c0_70, %c0_71] : memref<5x256x512xbf16, #tpu.memory_space<vmem>>, vector<1x256x512xbf16>
    %59 = vector.shape_cast %58 : vector<1x256x512xbf16> to vector<256x512xbf16>
    %cst_72 = arith.constant dense<0.000000e+00> : vector<16x512xf32>
    %60 = tpu.matmul %57, %59, %cst_72 {dimension_numbers = #tpu.dot_dimension_numbers<[1], [0], [0], [1], [0, 0, 1, 1], [], []>} : vector<16x256xbf16>, vector<256x512xbf16>, vector<16x512xf32> -> vector<16x512xf32>
    %c0_73 = arith.constant 0 : index
    %c0_74 = arith.constant 0 : index
    %61 = vector.load %arg13[%c0_73, %c0_74] : memref<16x512xf32, #tpu.memory_space<vmem>>, vector<16x512xf32>
    tpu.vector_store %arg13[%c0_73, %c0_74], %60 {strides = array<i32>} : memref<16x512xf32, #tpu.memory_space<vmem>>, vector<16x512xf32>,
    %c0_75 = arith.constant 0 : index
    %c1_76 = arith.constant 1 : index
    %c0_77 = arith.constant 0 : index
    %62 = vector.load %arg12[%c0_75, %c1_76, %c0_77] : memref<1x20x256xbf16, #tpu.memory_space<vmem>>, vector<1x16x256xbf16>
    %63 = vector.shape_cast %62 : vector<1x16x256xbf16> to vector<16x256xbf16>
    %c1_78 = arith.constant 1 : index
    %c0_79 = arith.constant 0 : index
    %c0_80 = arith.constant 0 : index
    %64 = vector.load %arg7[%c1_78, %c0_79, %c0_80] : memref<5x256x512xbf16, #tpu.memory_space<vmem>>, vector<1x256x512xbf16>
    %65 = vector.shape_cast %64 : vector<1x256x512xbf16> to vector<256x512xbf16>
    %cst_81 = arith.constant dense<0.000000e+00> : vector<16x512xf32>
    %66 = tpu.matmul %63, %65, %cst_81 {dimension_numbers = #tpu.dot_dimension_numbers<[1], [0], [0], [1], [0, 0, 1, 1], [], []>} : vector<16x256xbf16>, vector<256x512xbf16>, vector<16x512xf32> -> vector<16x512xf32>
    %c0_82 = arith.constant 0 : index
    %c0_83 = arith.constant 0 : index
    %67 = vector.load %arg13[%c0_82, %c0_83] : memref<16x512xf32, #tpu.memory_space<vmem>>, vector<16x512xf32>
    %68 = arith.addf %67, %66 : vector<16x512xf32>
    %c0_84 = arith.constant 0 : index
    %c0_85 = arith.constant 0 : index
    %69 = vector.load %arg13[%c0_84, %c0_85] : memref<16x512xf32, #tpu.memory_space<vmem>>, vector<16x512xf32>
    tpu.vector_store %arg13[%c0_84, %c0_85], %68 {strides = array<i32>} : memref<16x512xf32, #tpu.memory_space<vmem>>, vector<16x512xf32>,
    %c0_86 = arith.constant 0 : index
    %c2_87 = arith.constant 2 : index
    %c0_88 = arith.constant 0 : index
    %70 = vector.load %arg12[%c0_86, %c2_87, %c0_88] : memref<1x20x256xbf16, #tpu.memory_space<vmem>>, vector<1x16x256xbf16>
    %71 = vector.shape_cast %70 : vector<1x16x256xbf16> to vector<16x256xbf16>
    %c2_89 = arith.constant 2 : index
    %c0_90 = arith.constant 0 : index
    %c0_91 = arith.constant 0 : index
    %72 = vector.load %arg7[%c2_89, %c0_90, %c0_91] : memref<5x256x512xbf16, #tpu.memory_space<vmem>>, vector<1x256x512xbf16>
    %73 = vector.shape_cast %72 : vector<1x256x512xbf16> to vector<256x512xbf16>
    %cst_92 = arith.constant dense<0.000000e+00> : vector<16x512xf32>
    %74 = tpu.matmul %71, %73, %cst_92 {dimension_numbers = #tpu.dot_dimension_numbers<[1], [0], [0], [1], [0, 0, 1, 1], [], []>} : vector<16x256xbf16>, vector<256x512xbf16>, vector<16x512xf32> -> vector<16x512xf32>
    %c0_93 = arith.constant 0 : index
    %c0_94 = arith.constant 0 : index
    %75 = vector.load %arg13[%c0_93, %c0_94] : memref<16x512xf32, #tpu.memory_space<vmem>>, vector<16x512xf32>
    %76 = arith.addf %75, %74 : vector<16x512xf32>
    %c0_95 = arith.constant 0 : index
    %c0_96 = arith.constant 0 : index
    %77 = vector.load %arg13[%c0_95, %c0_96] : memref<16x512xf32, #tpu.memory_space<vmem>>, vector<16x512xf32>
    tpu.vector_store %arg13[%c0_95, %c0_96], %76 {strides = array<i32>} : memref<16x512xf32, #tpu.memory_space<vmem>>, vector<16x512xf32>,
    %c0_97 = arith.constant 0 : index
    %c3 = arith.constant 3 : index
    %c0_98 = arith.constant 0 : index
    %78 = vector.load %arg12[%c0_97, %c3, %c0_98] : memref<1x20x256xbf16, #tpu.memory_space<vmem>>, vector<1x16x256xbf16>
    %79 = vector.shape_cast %78 : vector<1x16x256xbf16> to vector<16x256xbf16>
    %c3_99 = arith.constant 3 : index
    %c0_100 = arith.constant 0 : index
    %c0_101 = arith.constant 0 : index
    %80 = vector.load %arg7[%c3_99, %c0_100, %c0_101] : memref<5x256x512xbf16, #tpu.memory_space<vmem>>, vector<1x256x512xbf16>
    %81 = vector.shape_cast %80 : vector<1x256x512xbf16> to vector<256x512xbf16>
    %cst_102 = arith.constant dense<0.000000e+00> : vector<16x512xf32>
    %82 = tpu.matmul %79, %81, %cst_102 {dimension_numbers = #tpu.dot_dimension_numbers<[1], [0], [0], [1], [0, 0, 1, 1], [], []>} : vector<16x256xbf16>, vector<256x512xbf16>, vector<16x512xf32> -> vector<16x512xf32>
    %c0_103 = arith.constant 0 : index
    %c0_104 = arith.constant 0 : index
    %83 = vector.load %arg13[%c0_103, %c0_104] : memref<16x512xf32, #tpu.memory_space<vmem>>, vector<16x512xf32>
    %84 = arith.addf %83, %82 : vector<16x512xf32>
    %c0_105 = arith.constant 0 : index
    %c0_106 = arith.constant 0 : index
    %85 = vector.load %arg13[%c0_105, %c0_106] : memref<16x512xf32, #tpu.memory_space<vmem>>, vector<16x512xf32>
    tpu.vector_store %arg13[%c0_105, %c0_106], %84 {strides = array<i32>} : memref<16x512xf32, #tpu.memory_space<vmem>>, vector<16x512xf32>,
    %c0_107 = arith.constant 0 : index
    %c4 = arith.constant 4 : index
    %c0_108 = arith.constant 0 : index
    %86 = vector.load %arg12[%c0_107, %c4, %c0_108] : memref<1x20x256xbf16, #tpu.memory_space<vmem>>, vector<1x16x256xbf16>
    %87 = vector.shape_cast %86 : vector<1x16x256xbf16> to vector<16x256xbf16>
    %c4_109 = arith.constant 4 : index
    %c0_110 = arith.constant 0 : index
    %c0_111 = arith.constant 0 : index
    %88 = vector.load %arg7[%c4_109, %c0_110, %c0_111] : memref<5x256x512xbf16, #tpu.memory_space<vmem>>, vector<1x256x512xbf16>
    %89 = vector.shape_cast %88 : vector<1x256x512xbf16> to vector<256x512xbf16>
    %cst_112 = arith.constant dense<0.000000e+00> : vector<16x512xf32>
    %90 = tpu.matmul %87, %89, %cst_112 {dimension_numbers = #tpu.dot_dimension_numbers<[1], [0], [0], [1], [0, 0, 1, 1], [], []>} : vector<16x256xbf16>, vector<256x512xbf16>, vector<16x512xf32> -> vector<16x512xf32>
    %c0_113 = arith.constant 0 : index
    %c0_114 = arith.constant 0 : index
    %91 = vector.load %arg13[%c0_113, %c0_114] : memref<16x512xf32, #tpu.memory_space<vmem>>, vector<16x512xf32>
    %92 = arith.addf %91, %90 : vector<16x512xf32>
    %c0_115 = arith.constant 0 : index
    %c0_116 = arith.constant 0 : index
    %93 = vector.load %arg13[%c0_115, %c0_116] : memref<16x512xf32, #tpu.memory_space<vmem>>, vector<16x512xf32>
    tpu.vector_store %arg13[%c0_115, %c0_116], %92 {strides = array<i32>} : memref<16x512xf32, #tpu.memory_space<vmem>>, vector<16x512xf32>,
    %c0_117 = arith.constant 0 : index
    %c0_118 = arith.constant 0 : index
    %94 = vector.load %arg13[%c0_117, %c0_118] : memref<16x512xf32, #tpu.memory_space<vmem>>, vector<16x512xf32>
    %c0_119 = arith.constant 0 : index
    %c0_120 = arith.constant 0 : index
    %95 = vector.load %arg8[%c0_119, %c0_120] : memref<1x512xf32, #tpu.memory_space<vmem>>, vector<1x512xf32>
    %96 = vector.broadcast %95 : vector<1x512xf32> to vector<16x512xf32>
    %97 = arith.addf %94, %96 : vector<16x512xf32>
    %cst_121 = arith.constant 0.000000e+00 : f32
    %98 = vector.broadcast %cst_121 : f32 to vector<16x512xf32>
    %99 = arith.maximumf %97, %98 : vector<16x512xf32>
    %100 = arith.truncf %99 : vector<16x512xf32> to vector<16x512xbf16>
    %cst_122 = arith.constant 0.000000e+00 : bf16
    %101 = vector.broadcast %cst_122 : bf16 to vector<1x1x512xbf16>
    %c0_123 = arith.constant 0 : index
    %c0_124 = arith.constant 0 : index
    %c0_125 = arith.constant 0 : index
    %102 = vector.load %arg9[%c0_123, %c0_124, %c0_125] : memref<1x18x512xbf16, #tpu.memory_space<vmem>>, vector<1x1x512xbf16>
    tpu.vector_store %arg9[%c0_123, %c0_124, %c0_125], %101 {strides = array<i32>} : memref<1x18x512xbf16, #tpu.memory_space<vmem>>, vector<1x1x512xbf16>,
    %cst_126 = arith.constant 0.000000e+00 : bf16
    %103 = vector.broadcast %cst_126 : bf16 to vector<1x1x512xbf16>
    %c0_127 = arith.constant 0 : index
    %c17 = arith.constant 17 : index
    %c0_128 = arith.constant 0 : index
    %104 = vector.load %arg9[%c0_127, %c17, %c0_128] : memref<1x18x512xbf16, #tpu.memory_space<vmem>>, vector<1x1x512xbf16>
    tpu.vector_store %arg9[%c0_127, %c17, %c0_128], %103 {strides = array<i32>} : memref<1x18x512xbf16, #tpu.memory_space<vmem>>, vector<1x1x512xbf16>,
    %105 = vector.shape_cast %100 : vector<16x512xbf16> to vector<1x16x512xbf16>
    %c0_129 = arith.constant 0 : index
    %c1_130 = arith.constant 1 : index
    %c0_131 = arith.constant 0 : index
    %106 = vector.load %arg9[%c0_129, %c1_130, %c0_131] : memref<1x18x512xbf16, #tpu.memory_space<vmem>>, vector<1x16x512xbf16>
    tpu.vector_store %arg9[%c0_129, %c1_130, %c0_131], %105 {strides = array<i32>} : memref<1x18x512xbf16, #tpu.memory_space<vmem>>, vector<1x16x512xbf16>,
    return
  }
  func.func @transform_0(%arg0: i32) -> (i32, i32, i32) {
    %c0_i32 = arith.constant 0 : i32
    %c0_i32_0 = arith.constant 0 : i32
    %c0_i32_1 = arith.constant 0 : i32
    return %arg0, %c0_i32, %c0_i32_0 : i32, i32, i32
  }
  func.func @transform_1(%arg0: i32) -> (i32, i32, i32) {
    %c0_i32 = arith.constant 0 : i32
    %c0_i32_0 = arith.constant 0 : i32
    %c0_i32_1 = arith.constant 0 : i32
    %c0_i32_2 = arith.constant 0 : i32
    return %c0_i32, %c0_i32_0, %c0_i32_1 : i32, i32, i32
  }
  func.func @transform_2(%arg0: i32) -> (i32, i32) {
    %c0_i32 = arith.constant 0 : i32
    %c0_i32_0 = arith.constant 0 : i32
    %c0_i32_1 = arith.constant 0 : i32
    return %c0_i32, %c0_i32_0 : i32, i32
  }
  func.func @transform_3(%arg0: i32) -> (i32, i32) {
    %c0_i32 = arith.constant 0 : i32
    %c0_i32_0 = arith.constant 0 : i32
    %c0_i32_1 = arith.constant 0 : i32
    return %c0_i32, %c0_i32_0 : i32, i32
  }
  func.func @transform_4(%arg0: i32) -> (i32, i32) {
    %c0_i32 = arith.constant 0 : i32
    %c0_i32_0 = arith.constant 0 : i32
    %c0_i32_1 = arith.constant 0 : i32
    return %c0_i32, %c0_i32_0 : i32, i32
  }
  func.func @transform_5(%arg0: i32) -> (i32, i32) {
    %c0_i32 = arith.constant 0 : i32
    %c0_i32_0 = arith.constant 0 : i32
    %c0_i32_1 = arith.constant 0 : i32
    return %c0_i32, %c0_i32_0 : i32, i32
  }
  func.func @transform_6(%arg0: i32) -> (i32, i32, i32) {
    %c0_i32 = arith.constant 0 : i32
    %c0_i32_0 = arith.constant 0 : i32
    %c0_i32_1 = arith.constant 0 : i32
    %c0_i32_2 = arith.constant 0 : i32
    return %c0_i32, %c0_i32_0, %c0_i32_1 : i32, i32, i32
  }
  func.func @transform_7(%arg0: i32) -> (i32, i32) {
    %c0_i32 = arith.constant 0 : i32
    %c0_i32_0 = arith.constant 0 : i32
    %c0_i32_1 = arith.constant 0 : i32
    return %c0_i32, %c0_i32_0 : i32, i32
  }
  func.func @transform_8(%arg0: i32) -> (i32, i32, i32) {
    %c0_i32 = arith.constant 0 : i32
    %c0_i32_0 = arith.constant 0 : i32
    %c0_i32_1 = arith.constant 0 : i32
    return %arg0, %c0_i32, %c0_i32_0 : i32, i32, i32
  }
}

module attributes {stable_mosaic.version = 11 : i64} {
  func.func @_stage_b_kernel(%arg0: i32, %arg1: memref<1x9x1024xbf16, #tpu.memory_space<vmem>>, %arg2: memref<1024x256xbf16, #tpu.memory_space<vmem>>, %arg3: memref<512x256xbf16, #tpu.memory_space<vmem>>, %arg4: memref<1x256xf32, #tpu.memory_space<vmem>>, %arg5: memref<256x256xbf16, #tpu.memory_space<vmem>>, %arg6: memref<1x256xf32, #tpu.memory_space<vmem>>, %arg7: memref<256x32xbf16, #tpu.memory_space<vmem>>, %arg8: memref<1x32xf32, #tpu.memory_space<vmem>>, %arg9: memref<256x128xbf16, #tpu.memory_space<vmem>>, %arg10: memref<1x128xf32, #tpu.memory_space<vmem>>, %arg11: memref<128x64xbf16, #tpu.memory_space<vmem>>, %arg12: memref<1x64xf32, #tpu.memory_space<vmem>>, %arg13: memref<64x128xbf16, #tpu.memory_space<vmem>>, %arg14: memref<1x128xf32, #tpu.memory_space<vmem>>, %arg15: memref<128x256xbf16, #tpu.memory_space<vmem>>, %arg16: memref<1x256xf32, #tpu.memory_space<vmem>>, %arg17: memref<128x128xbf16, #tpu.memory_space<vmem>>, %arg18: memref<1x128xf32, #tpu.memory_space<vmem>>, %arg19: memref<1x1x384xf32, #tpu.memory_space<vmem>>, %arg20: memref<1x8x32xbf16, #tpu.memory_space<vmem>>) attributes {dimension_semantics = [#tpu.dimension_semantics<parallel>], iteration_bounds = array<i64: 2>, scalar_prefetch = 0 : i64, scratch_operands = 1 : i64, tpu.core_type = #tpu.core_type<tc>, window_params = [{transform_indices = @transform_0, window_bounds = array<i64: 1, 9, 1024>}, {pipeline_mode = #tpu.pipeline_mode<synchronous>, transform_indices = @transform_1, window_bounds = array<i64: 1024, 256>}, {pipeline_mode = #tpu.pipeline_mode<synchronous>, transform_indices = @transform_2, window_bounds = array<i64: 512, 256>}, {pipeline_mode = #tpu.pipeline_mode<synchronous>, transform_indices = @transform_3, window_bounds = array<i64: 1, 256>}, {pipeline_mode = #tpu.pipeline_mode<synchronous>, transform_indices = @transform_4, window_bounds = array<i64: 256, 256>}, {pipeline_mode = #tpu.pipeline_mode<synchronous>, transform_indices = @transform_5, window_bounds = array<i64: 1, 256>}, {pipeline_mode = #tpu.pipeline_mode<synchronous>, transform_indices = @transform_6, window_bounds = array<i64: 256, 32>}, {pipeline_mode = #tpu.pipeline_mode<synchronous>, transform_indices = @transform_7, window_bounds = array<i64: 1, 32>}, {pipeline_mode = #tpu.pipeline_mode<synchronous>, transform_indices = @transform_8, window_bounds = array<i64: 256, 128>}, {pipeline_mode = #tpu.pipeline_mode<synchronous>, transform_indices = @transform_9, window_bounds = array<i64: 1, 128>}, {pipeline_mode = #tpu.pipeline_mode<synchronous>, transform_indices = @transform_10, window_bounds = array<i64: 128, 64>}, {pipeline_mode = #tpu.pipeline_mode<synchronous>, transform_indices = @transform_11, window_bounds = array<i64: 1, 64>}, {pipeline_mode = #tpu.pipeline_mode<synchronous>, transform_indices = @transform_12, window_bounds = array<i64: 64, 128>}, {pipeline_mode = #tpu.pipeline_mode<synchronous>, transform_indices = @transform_13, window_bounds = array<i64: 1, 128>}, {pipeline_mode = #tpu.pipeline_mode<synchronous>, transform_indices = @transform_14, window_bounds = array<i64: 128, 256>}, {pipeline_mode = #tpu.pipeline_mode<synchronous>, transform_indices = @transform_15, window_bounds = array<i64: 1, 256>}, {pipeline_mode = #tpu.pipeline_mode<synchronous>, transform_indices = @transform_16, window_bounds = array<i64: 128, 128>}, {pipeline_mode = #tpu.pipeline_mode<synchronous>, transform_indices = @transform_17, window_bounds = array<i64: 1, 128>}, {transform_indices = @transform_18, window_bounds = array<i64: 1, 1, 384>}]} {
    %c0 = arith.constant 0 : index
    %c0_0 = arith.constant 0 : index
    %c0_1 = arith.constant 0 : index
    %0 = vector.load %arg1[%c0, %c0_0, %c0_1] : memref<1x9x1024xbf16, #tpu.memory_space<vmem>>, vector<1x8x1024xbf16>
    %1 = vector.shape_cast %0 : vector<1x8x1024xbf16> to vector<8x1024xbf16>
    %c0_2 = arith.constant 0 : index
    %c1 = arith.constant 1 : index
    %c0_3 = arith.constant 0 : index
    %2 = vector.load %arg1[%c0_2, %c1, %c0_3] : memref<1x9x1024xbf16, #tpu.memory_space<vmem>>, vector<1x8x512xbf16>
    %3 = vector.shape_cast %2 : vector<1x8x512xbf16> to vector<8x512xbf16>
    %c0_4 = arith.constant 0 : index
    %c0_5 = arith.constant 0 : index
    %4 = vector.load %arg2[%c0_4, %c0_5] : memref<1024x256xbf16, #tpu.memory_space<vmem>>, vector<1024x256xbf16>
    %cst = arith.constant dense<0.000000e+00> : vector<8x256xf32>
    %5 = tpu.matmul %1, %4, %cst {dimension_numbers = #tpu.dot_dimension_numbers<[1], [0], [0], [1], [0, 0, 1, 1], [], []>} : vector<8x1024xbf16>, vector<1024x256xbf16>, vector<8x256xf32> -> vector<8x256xf32>
    %c0_6 = arith.constant 0 : index
    %c0_7 = arith.constant 0 : index
    %6 = vector.load %arg3[%c0_6, %c0_7] : memref<512x256xbf16, #tpu.memory_space<vmem>>, vector<512x256xbf16>
    %cst_8 = arith.constant dense<0.000000e+00> : vector<8x256xf32>
    %7 = tpu.matmul %3, %6, %cst_8 {dimension_numbers = #tpu.dot_dimension_numbers<[1], [0], [0], [1], [0, 0, 1, 1], [], []>} : vector<8x512xbf16>, vector<512x256xbf16>, vector<8x256xf32> -> vector<8x256xf32>
    %8 = arith.addf %5, %7 : vector<8x256xf32>
    %c0_9 = arith.constant 0 : index
    %c0_10 = arith.constant 0 : index
    %9 = vector.load %arg4[%c0_9, %c0_10] : memref<1x256xf32, #tpu.memory_space<vmem>>, vector<1x256xf32>
    %10 = vector.broadcast %9 : vector<1x256xf32> to vector<8x256xf32>
    %11 = arith.addf %8, %10 : vector<8x256xf32>
    %cst_11 = arith.constant 0.000000e+00 : f32
    %12 = vector.broadcast %cst_11 : f32 to vector<8x256xf32>
    %13 = arith.maximumf %11, %12 : vector<8x256xf32>
    %14 = arith.truncf %13 : vector<8x256xf32> to vector<8x256xbf16>
    %c0_12 = arith.constant 0 : index
    %c0_13 = arith.constant 0 : index
    %15 = vector.load %arg5[%c0_12, %c0_13] : memref<256x256xbf16, #tpu.memory_space<vmem>>, vector<256x256xbf16>
    %cst_14 = arith.constant dense<0.000000e+00> : vector<8x256xf32>
    %16 = tpu.matmul %14, %15, %cst_14 {dimension_numbers = #tpu.dot_dimension_numbers<[1], [0], [0], [1], [0, 0, 1, 1], [], []>} : vector<8x256xbf16>, vector<256x256xbf16>, vector<8x256xf32> -> vector<8x256xf32>
    %c0_15 = arith.constant 0 : index
    %c0_16 = arith.constant 0 : index
    %17 = vector.load %arg6[%c0_15, %c0_16] : memref<1x256xf32, #tpu.memory_space<vmem>>, vector<1x256xf32>
    %18 = vector.broadcast %17 : vector<1x256xf32> to vector<8x256xf32>
    %19 = arith.addf %16, %18 : vector<8x256xf32>
    %cst_17 = arith.constant 0.000000e+00 : f32
    %20 = vector.broadcast %cst_17 : f32 to vector<8x256xf32>
    %21 = arith.maximumf %19, %20 : vector<8x256xf32>
    %22 = arith.truncf %21 : vector<8x256xf32> to vector<8x256xbf16>
    %c0_18 = arith.constant 0 : index
    %c0_19 = arith.constant 0 : index
    %23 = vector.load %arg7[%c0_18, %c0_19] : memref<256x32xbf16, #tpu.memory_space<vmem>>, vector<256x32xbf16>
    %cst_20 = arith.constant dense<0.000000e+00> : vector<8x32xf32>
    %24 = tpu.matmul %22, %23, %cst_20 {dimension_numbers = #tpu.dot_dimension_numbers<[1], [0], [0], [1], [0, 0, 1, 1], [], []>} : vector<8x256xbf16>, vector<256x32xbf16>, vector<8x32xf32> -> vector<8x32xf32>
    %c0_21 = arith.constant 0 : index
    %c0_22 = arith.constant 0 : index
    %25 = vector.load %arg8[%c0_21, %c0_22] : memref<1x32xf32, #tpu.memory_space<vmem>>, vector<1x32xf32>
    %26 = vector.broadcast %25 : vector<1x32xf32> to vector<8x32xf32>
    %27 = arith.addf %24, %26 : vector<8x32xf32>
    %cst_23 = arith.constant 0.000000e+00 : f32
    %28 = vector.broadcast %cst_23 : f32 to vector<8x32xf32>
    %29 = arith.maximumf %27, %28 : vector<8x32xf32>
    %30 = vector.shape_cast %29 : vector<8x32xf32> to vector<1x8x32xf32>
    %31 = arith.truncf %30 : vector<1x8x32xf32> to vector<1x8x32xbf16>
    %c0_24 = arith.constant 0 : index
    %c0_25 = arith.constant 0 : index
    %c0_26 = arith.constant 0 : index
    %32 = vector.load %arg20[%c0_24, %c0_25, %c0_26] : memref<1x8x32xbf16, #tpu.memory_space<vmem>>, vector<1x8x32xbf16>
    tpu.vector_store %arg20[%c0_24, %c0_25, %c0_26], %31 {strides = array<i32>} : memref<1x8x32xbf16, #tpu.memory_space<vmem>>, vector<1x8x32xbf16>,
    %c0_27 = arith.constant 0 : index
    %c0_28 = arith.constant 0 : index
    %c0_29 = arith.constant 0 : index
    %33 = vector.load %arg20[%c0_27, %c0_28, %c0_29] : memref<1x8x32xbf16, #tpu.memory_space<vmem>>, vector<1x1x32xbf16>
    %34 = vector.shape_cast %33 : vector<1x1x32xbf16> to vector<1x32xbf16>
    %c0_30 = arith.constant 0 : index
    %c0_31 = arith.constant 0 : index
    %35 = vector.load %arg9[%c0_30, %c0_31] : memref<256x128xbf16, #tpu.memory_space<vmem>>, vector<32x128xbf16>
    %cst_32 = arith.constant dense<0.000000e+00> : vector<1x128xf32>
    %36 = tpu.matmul %34, %35, %cst_32 {dimension_numbers = #tpu.dot_dimension_numbers<[1], [0], [0], [1], [0, 0, 1, 1], [], []>} : vector<1x32xbf16>, vector<32x128xbf16>, vector<1x128xf32> -> vector<1x128xf32>
    %c0_33 = arith.constant 0 : index
    %c1_34 = arith.constant 1 : index
    %c0_35 = arith.constant 0 : index
    %37 = vector.load %arg20[%c0_33, %c1_34, %c0_35] : memref<1x8x32xbf16, #tpu.memory_space<vmem>>, vector<1x1x32xbf16>
    %38 = vector.shape_cast %37 : vector<1x1x32xbf16> to vector<1x32xbf16>
    %c32 = arith.constant 32 : index
    %c0_36 = arith.constant 0 : index
    %39 = vector.load %arg9[%c32, %c0_36] : memref<256x128xbf16, #tpu.memory_space<vmem>>, vector<32x128xbf16>
    %cst_37 = arith.constant dense<0.000000e+00> : vector<1x128xf32>
    %40 = tpu.matmul %38, %39, %cst_37 {dimension_numbers = #tpu.dot_dimension_numbers<[1], [0], [0], [1], [0, 0, 1, 1], [], []>} : vector<1x32xbf16>, vector<32x128xbf16>, vector<1x128xf32> -> vector<1x128xf32>
    %41 = arith.addf %36, %40 : vector<1x128xf32>
    %c0_38 = arith.constant 0 : index
    %c2 = arith.constant 2 : index
    %c0_39 = arith.constant 0 : index
    %42 = vector.load %arg20[%c0_38, %c2, %c0_39] : memref<1x8x32xbf16, #tpu.memory_space<vmem>>, vector<1x1x32xbf16>
    %43 = vector.shape_cast %42 : vector<1x1x32xbf16> to vector<1x32xbf16>
    %c64 = arith.constant 64 : index
    %c0_40 = arith.constant 0 : index
    %44 = vector.load %arg9[%c64, %c0_40] : memref<256x128xbf16, #tpu.memory_space<vmem>>, vector<32x128xbf16>
    %cst_41 = arith.constant dense<0.000000e+00> : vector<1x128xf32>
    %45 = tpu.matmul %43, %44, %cst_41 {dimension_numbers = #tpu.dot_dimension_numbers<[1], [0], [0], [1], [0, 0, 1, 1], [], []>} : vector<1x32xbf16>, vector<32x128xbf16>, vector<1x128xf32> -> vector<1x128xf32>
    %46 = arith.addf %41, %45 : vector<1x128xf32>
    %c0_42 = arith.constant 0 : index
    %c3 = arith.constant 3 : index
    %c0_43 = arith.constant 0 : index
    %47 = vector.load %arg20[%c0_42, %c3, %c0_43] : memref<1x8x32xbf16, #tpu.memory_space<vmem>>, vector<1x1x32xbf16>
    %48 = vector.shape_cast %47 : vector<1x1x32xbf16> to vector<1x32xbf16>
    %c96 = arith.constant 96 : index
    %c0_44 = arith.constant 0 : index
    %49 = vector.load %arg9[%c96, %c0_44] : memref<256x128xbf16, #tpu.memory_space<vmem>>, vector<32x128xbf16>
    %cst_45 = arith.constant dense<0.000000e+00> : vector<1x128xf32>
    %50 = tpu.matmul %48, %49, %cst_45 {dimension_numbers = #tpu.dot_dimension_numbers<[1], [0], [0], [1], [0, 0, 1, 1], [], []>} : vector<1x32xbf16>, vector<32x128xbf16>, vector<1x128xf32> -> vector<1x128xf32>
    %51 = arith.addf %46, %50 : vector<1x128xf32>
    %c0_46 = arith.constant 0 : index
    %c4 = arith.constant 4 : index
    %c0_47 = arith.constant 0 : index
    %52 = vector.load %arg20[%c0_46, %c4, %c0_47] : memref<1x8x32xbf16, #tpu.memory_space<vmem>>, vector<1x1x32xbf16>
    %53 = vector.shape_cast %52 : vector<1x1x32xbf16> to vector<1x32xbf16>
    %c128 = arith.constant 128 : index
    %c0_48 = arith.constant 0 : index
    %54 = vector.load %arg9[%c128, %c0_48] : memref<256x128xbf16, #tpu.memory_space<vmem>>, vector<32x128xbf16>
    %cst_49 = arith.constant dense<0.000000e+00> : vector<1x128xf32>
    %55 = tpu.matmul %53, %54, %cst_49 {dimension_numbers = #tpu.dot_dimension_numbers<[1], [0], [0], [1], [0, 0, 1, 1], [], []>} : vector<1x32xbf16>, vector<32x128xbf16>, vector<1x128xf32> -> vector<1x128xf32>
    %56 = arith.addf %51, %55 : vector<1x128xf32>
    %c0_50 = arith.constant 0 : index
    %c5 = arith.constant 5 : index
    %c0_51 = arith.constant 0 : index
    %57 = vector.load %arg20[%c0_50, %c5, %c0_51] : memref<1x8x32xbf16, #tpu.memory_space<vmem>>, vector<1x1x32xbf16>
    %58 = vector.shape_cast %57 : vector<1x1x32xbf16> to vector<1x32xbf16>
    %c160 = arith.constant 160 : index
    %c0_52 = arith.constant 0 : index
    %59 = vector.load %arg9[%c160, %c0_52] : memref<256x128xbf16, #tpu.memory_space<vmem>>, vector<32x128xbf16>
    %cst_53 = arith.constant dense<0.000000e+00> : vector<1x128xf32>
    %60 = tpu.matmul %58, %59, %cst_53 {dimension_numbers = #tpu.dot_dimension_numbers<[1], [0], [0], [1], [0, 0, 1, 1], [], []>} : vector<1x32xbf16>, vector<32x128xbf16>, vector<1x128xf32> -> vector<1x128xf32>
    %61 = arith.addf %56, %60 : vector<1x128xf32>
    %c0_54 = arith.constant 0 : index
    %c6 = arith.constant 6 : index
    %c0_55 = arith.constant 0 : index
    %62 = vector.load %arg20[%c0_54, %c6, %c0_55] : memref<1x8x32xbf16, #tpu.memory_space<vmem>>, vector<1x1x32xbf16>
    %63 = vector.shape_cast %62 : vector<1x1x32xbf16> to vector<1x32xbf16>
    %c192 = arith.constant 192 : index
    %c0_56 = arith.constant 0 : index
    %64 = vector.load %arg9[%c192, %c0_56] : memref<256x128xbf16, #tpu.memory_space<vmem>>, vector<32x128xbf16>
    %cst_57 = arith.constant dense<0.000000e+00> : vector<1x128xf32>
    %65 = tpu.matmul %63, %64, %cst_57 {dimension_numbers = #tpu.dot_dimension_numbers<[1], [0], [0], [1], [0, 0, 1, 1], [], []>} : vector<1x32xbf16>, vector<32x128xbf16>, vector<1x128xf32> -> vector<1x128xf32>
    %66 = arith.addf %61, %65 : vector<1x128xf32>
    %c0_58 = arith.constant 0 : index
    %c7 = arith.constant 7 : index
    %c0_59 = arith.constant 0 : index
    %67 = vector.load %arg20[%c0_58, %c7, %c0_59] : memref<1x8x32xbf16, #tpu.memory_space<vmem>>, vector<1x1x32xbf16>
    %68 = vector.shape_cast %67 : vector<1x1x32xbf16> to vector<1x32xbf16>
    %c224 = arith.constant 224 : index
    %c0_60 = arith.constant 0 : index
    %69 = vector.load %arg9[%c224, %c0_60] : memref<256x128xbf16, #tpu.memory_space<vmem>>, vector<32x128xbf16>
    %cst_61 = arith.constant dense<0.000000e+00> : vector<1x128xf32>
    %70 = tpu.matmul %68, %69, %cst_61 {dimension_numbers = #tpu.dot_dimension_numbers<[1], [0], [0], [1], [0, 0, 1, 1], [], []>} : vector<1x32xbf16>, vector<32x128xbf16>, vector<1x128xf32> -> vector<1x128xf32>
    %71 = arith.addf %66, %70 : vector<1x128xf32>
    %c0_62 = arith.constant 0 : index
    %c0_63 = arith.constant 0 : index
    %72 = vector.load %arg10[%c0_62, %c0_63] : memref<1x128xf32, #tpu.memory_space<vmem>>, vector<1x128xf32>
    %73 = arith.addf %71, %72 : vector<1x128xf32>
    %cst_64 = arith.constant 0.000000e+00 : f32
    %74 = vector.broadcast %cst_64 : f32 to vector<1x128xf32>
    %75 = arith.maximumf %73, %74 : vector<1x128xf32>
    %76 = arith.truncf %75 : vector<1x128xf32> to vector<1x128xbf16>
    %c0_65 = arith.constant 0 : index
    %c0_66 = arith.constant 0 : index
    %77 = vector.load %arg11[%c0_65, %c0_66] : memref<128x64xbf16, #tpu.memory_space<vmem>>, vector<128x64xbf16>
    %cst_67 = arith.constant dense<0.000000e+00> : vector<1x64xf32>
    %78 = tpu.matmul %76, %77, %cst_67 {dimension_numbers = #tpu.dot_dimension_numbers<[1], [0], [0], [1], [0, 0, 1, 1], [], []>} : vector<1x128xbf16>, vector<128x64xbf16>, vector<1x64xf32> -> vector<1x64xf32>
    %c0_68 = arith.constant 0 : index
    %c0_69 = arith.constant 0 : index
    %79 = vector.load %arg12[%c0_68, %c0_69] : memref<1x64xf32, #tpu.memory_space<vmem>>, vector<1x64xf32>
    %80 = arith.addf %78, %79 : vector<1x64xf32>
    %cst_70 = arith.constant 0.000000e+00 : f32
    %81 = vector.broadcast %cst_70 : f32 to vector<1x64xf32>
    %82 = arith.maximumf %80, %81 : vector<1x64xf32>
    %83 = arith.truncf %82 : vector<1x64xf32> to vector<1x64xbf16>
    %c0_71 = arith.constant 0 : index
    %c0_72 = arith.constant 0 : index
    %84 = vector.load %arg13[%c0_71, %c0_72] : memref<64x128xbf16, #tpu.memory_space<vmem>>, vector<64x128xbf16>
    %cst_73 = arith.constant dense<0.000000e+00> : vector<1x128xf32>
    %85 = tpu.matmul %83, %84, %cst_73 {dimension_numbers = #tpu.dot_dimension_numbers<[1], [0], [0], [1], [0, 0, 1, 1], [], []>} : vector<1x64xbf16>, vector<64x128xbf16>, vector<1x128xf32> -> vector<1x128xf32>
    %c0_74 = arith.constant 0 : index
    %c0_75 = arith.constant 0 : index
    %86 = vector.load %arg14[%c0_74, %c0_75] : memref<1x128xf32, #tpu.memory_space<vmem>>, vector<1x128xf32>
    %87 = arith.addf %85, %86 : vector<1x128xf32>
    %88 = arith.truncf %87 : vector<1x128xf32> to vector<1x128xbf16>
    %c0_76 = arith.constant 0 : index
    %c0_77 = arith.constant 0 : index
    %89 = vector.load %arg15[%c0_76, %c0_77] : memref<128x256xbf16, #tpu.memory_space<vmem>>, vector<128x256xbf16>
    %cst_78 = arith.constant dense<0.000000e+00> : vector<1x256xf32>
    %90 = tpu.matmul %88, %89, %cst_78 {dimension_numbers = #tpu.dot_dimension_numbers<[1], [0], [0], [1], [0, 0, 1, 1], [], []>} : vector<1x128xbf16>, vector<128x256xbf16>, vector<1x256xf32> -> vector<1x256xf32>
    %c0_79 = arith.constant 0 : index
    %c0_80 = arith.constant 0 : index
    %91 = vector.load %arg16[%c0_79, %c0_80] : memref<1x256xf32, #tpu.memory_space<vmem>>, vector<1x256xf32>
    %92 = arith.addf %90, %91 : vector<1x256xf32>
    %93 = vector.extract_strided_slice %92 {offsets = [0, 0], sizes = [1, 128], strides = [1, 1]} : vector<1x256xf32> to vector<1x128xf32>
    %cst_81 = arith.constant 0.000000e+00 : f32
    %94 = vector.broadcast %cst_81 : f32 to vector<1x128xf32>
    %95 = arith.maximumf %93, %94 : vector<1x128xf32>
    %96 = arith.truncf %95 : vector<1x128xf32> to vector<1x128xbf16>
    %c0_82 = arith.constant 0 : index
    %c0_83 = arith.constant 0 : index
    %97 = vector.load %arg17[%c0_82, %c0_83] : memref<128x128xbf16, #tpu.memory_space<vmem>>, vector<128x128xbf16>
    %cst_84 = arith.constant dense<0.000000e+00> : vector<1x128xf32>
    %98 = tpu.matmul %96, %97, %cst_84 {dimension_numbers = #tpu.dot_dimension_numbers<[1], [0], [0], [1], [0, 0, 1, 1], [], []>} : vector<1x128xbf16>, vector<128x128xbf16>, vector<1x128xf32> -> vector<1x128xf32>
    %c0_85 = arith.constant 0 : index
    %c0_86 = arith.constant 0 : index
    %99 = vector.load %arg18[%c0_85, %c0_86] : memref<1x128xf32, #tpu.memory_space<vmem>>, vector<1x128xf32>
    %100 = arith.addf %98, %99 : vector<1x128xf32>
    %101 = vector.shape_cast %87 : vector<1x128xf32> to vector<1x1x128xf32>
    %c0_87 = arith.constant 0 : index
    %c0_88 = arith.constant 0 : index
    %c0_89 = arith.constant 0 : index
    %102 = vector.load %arg19[%c0_87, %c0_88, %c0_89] : memref<1x1x384xf32, #tpu.memory_space<vmem>>, vector<1x1x128xf32>
    tpu.vector_store %arg19[%c0_87, %c0_88, %c0_89], %101 {strides = array<i32>} : memref<1x1x384xf32, #tpu.memory_space<vmem>>, vector<1x1x128xf32>,
    %103 = vector.shape_cast %100 : vector<1x128xf32> to vector<1x1x128xf32>
    %c0_90 = arith.constant 0 : index
    %c0_91 = arith.constant 0 : index
    %c128_92 = arith.constant 128 : index
    %104 = vector.load %arg19[%c0_90, %c0_91, %c128_92] : memref<1x1x384xf32, #tpu.memory_space<vmem>>, vector<1x1x128xf32>
    tpu.vector_store %arg19[%c0_90, %c0_91, %c128_92], %103 {strides = array<i32>} : memref<1x1x384xf32, #tpu.memory_space<vmem>>, vector<1x1x128xf32>,
    %105 = vector.extract_strided_slice %92 {offsets = [0, 128], sizes = [1, 128], strides = [1, 1]} : vector<1x256xf32> to vector<1x128xf32>
    %106 = vector.shape_cast %105 : vector<1x128xf32> to vector<1x1x128xf32>
    %c0_93 = arith.constant 0 : index
    %c0_94 = arith.constant 0 : index
    %c256 = arith.constant 256 : index
    %107 = vector.load %arg19[%c0_93, %c0_94, %c256] : memref<1x1x384xf32, #tpu.memory_space<vmem>>, vector<1x1x128xf32>
    tpu.vector_store %arg19[%c0_93, %c0_94, %c256], %106 {strides = array<i32>} : memref<1x1x384xf32, #tpu.memory_space<vmem>>, vector<1x1x128xf32>,
    return
  }
  func.func @transform_0(%arg0: i32) -> (i32, i32, i32) {
    %c0_i32 = arith.constant 0 : i32
    %c0_i32_0 = arith.constant 0 : i32
    %c0_i32_1 = arith.constant 0 : i32
    return %arg0, %c0_i32, %c0_i32_0 : i32, i32, i32
  }
  func.func @transform_1(%arg0: i32) -> (i32, i32) {
    %c0_i32 = arith.constant 0 : i32
    %c0_i32_0 = arith.constant 0 : i32
    %c0_i32_1 = arith.constant 0 : i32
    return %c0_i32, %c0_i32_0 : i32, i32
  }
  func.func @transform_2(%arg0: i32) -> (i32, i32) {
    %c0_i32 = arith.constant 0 : i32
    %c0_i32_0 = arith.constant 0 : i32
    %c0_i32_1 = arith.constant 0 : i32
    return %c0_i32, %c0_i32_0 : i32, i32
  }
  func.func @transform_3(%arg0: i32) -> (i32, i32) {
    %c0_i32 = arith.constant 0 : i32
    %c0_i32_0 = arith.constant 0 : i32
    %c0_i32_1 = arith.constant 0 : i32
    return %c0_i32, %c0_i32_0 : i32, i32
  }
  func.func @transform_4(%arg0: i32) -> (i32, i32) {
    %c0_i32 = arith.constant 0 : i32
    %c0_i32_0 = arith.constant 0 : i32
    %c0_i32_1 = arith.constant 0 : i32
    return %c0_i32, %c0_i32_0 : i32, i32
  }
  func.func @transform_5(%arg0: i32) -> (i32, i32) {
    %c0_i32 = arith.constant 0 : i32
    %c0_i32_0 = arith.constant 0 : i32
    %c0_i32_1 = arith.constant 0 : i32
    return %c0_i32, %c0_i32_0 : i32, i32
  }
  func.func @transform_6(%arg0: i32) -> (i32, i32) {
    %c0_i32 = arith.constant 0 : i32
    %c0_i32_0 = arith.constant 0 : i32
    %c0_i32_1 = arith.constant 0 : i32
    return %c0_i32, %c0_i32_0 : i32, i32
  }
  func.func @transform_7(%arg0: i32) -> (i32, i32) {
    %c0_i32 = arith.constant 0 : i32
    %c0_i32_0 = arith.constant 0 : i32
    %c0_i32_1 = arith.constant 0 : i32
    return %c0_i32, %c0_i32_0 : i32, i32
  }
  func.func @transform_8(%arg0: i32) -> (i32, i32) {
    %c0_i32 = arith.constant 0 : i32
    %c0_i32_0 = arith.constant 0 : i32
    %c0_i32_1 = arith.constant 0 : i32
    return %c0_i32, %c0_i32_0 : i32, i32
  }
  func.func @transform_9(%arg0: i32) -> (i32, i32) {
    %c0_i32 = arith.constant 0 : i32
    %c0_i32_0 = arith.constant 0 : i32
    %c0_i32_1 = arith.constant 0 : i32
    return %c0_i32, %c0_i32_0 : i32, i32
  }
  func.func @transform_10(%arg0: i32) -> (i32, i32) {
    %c0_i32 = arith.constant 0 : i32
    %c0_i32_0 = arith.constant 0 : i32
    %c0_i32_1 = arith.constant 0 : i32
    return %c0_i32, %c0_i32_0 : i32, i32
  }
  func.func @transform_11(%arg0: i32) -> (i32, i32) {
    %c0_i32 = arith.constant 0 : i32
    %c0_i32_0 = arith.constant 0 : i32
    %c0_i32_1 = arith.constant 0 : i32
    return %c0_i32, %c0_i32_0 : i32, i32
  }
  func.func @transform_12(%arg0: i32) -> (i32, i32) {
    %c0_i32 = arith.constant 0 : i32
    %c0_i32_0 = arith.constant 0 : i32
    %c0_i32_1 = arith.constant 0 : i32
    return %c0_i32, %c0_i32_0 : i32, i32
  }
  func.func @transform_13(%arg0: i32) -> (i32, i32) {
    %c0_i32 = arith.constant 0 : i32
    %c0_i32_0 = arith.constant 0 : i32
    %c0_i32_1 = arith.constant 0 : i32
    return %c0_i32, %c0_i32_0 : i32, i32
  }
  func.func @transform_14(%arg0: i32) -> (i32, i32) {
    %c0_i32 = arith.constant 0 : i32
    %c0_i32_0 = arith.constant 0 : i32
    %c0_i32_1 = arith.constant 0 : i32
    return %c0_i32, %c0_i32_0 : i32, i32
  }
  func.func @transform_15(%arg0: i32) -> (i32, i32) {
    %c0_i32 = arith.constant 0 : i32
    %c0_i32_0 = arith.constant 0 : i32
    %c0_i32_1 = arith.constant 0 : i32
    return %c0_i32, %c0_i32_0 : i32, i32
  }
  func.func @transform_16(%arg0: i32) -> (i32, i32) {
    %c0_i32 = arith.constant 0 : i32
    %c0_i32_0 = arith.constant 0 : i32
    %c0_i32_1 = arith.constant 0 : i32
    return %c0_i32, %c0_i32_0 : i32, i32
  }
  func.func @transform_17(%arg0: i32) -> (i32, i32) {
    %c0_i32 = arith.constant 0 : i32
    %c0_i32_0 = arith.constant 0 : i32
    %c0_i32_1 = arith.constant 0 : i32
    return %c0_i32, %c0_i32_0 : i32, i32
  }
  func.func @transform_18(%arg0: i32) -> (i32, i32, i32) {
    %c0_i32 = arith.constant 0 : i32
    %c0_i32_0 = arith.constant 0 : i32
    %c0_i32_1 = arith.constant 0 : i32
    return %arg0, %c0_i32, %c0_i32_0 : i32, i32, i32
  }
}

</mosaic_0001>

<bundles_post_ra>
// kernel: tile.33
= control target key start
LH: loop header
LB: loop body
LE: loop exit
PB: predicated region body
PF: predicated region fallthrough
CT: control target
= control target key end

     0   :  { %s64_s0 = inlined_call_operand.vmem [shape: f32[16], index: 0, kind: input, shape index: {}]   ;;  %s65_s1 = inlined_call_operand.vmem [shape: f32[64,16], index: 1, kind: output, shape index: {}]  }
   0x1   :  { %v4_v0 = vld [vmem:[%s64_s0] ss:$0 sm:$0xff] }
   0x2   :  { %5 = vst [vmem:[%s65_s1] sm:$0xff] %v4_v0 }
   0x3   :  { %20 = vst [vmem:[%s65_s1 + $0x8] sm:$0xff] %v4_v0 }
   0x4   :  { %21 = vst [vmem:[%s65_s1 + $0x10] sm:$0xff] %v4_v0 }
   0x5   :  { %22 = vst [vmem:[%s65_s1 + $0x18] sm:$0xff] %v4_v0 }
   0x6   :  { %23 = vst [vmem:[%s65_s1 + $0x20] sm:$0xff] %v4_v0 }
   0x7   :  { %24 = vst [vmem:[%s65_s1 + $0x28] sm:$0xff] %v4_v0 }
   0x8   :  { %25 = vst [vmem:[%s65_s1 + $0x30] sm:$0xff] %v4_v0 }
   0x9   :  { %26 = vst [vmem:[%s65_s1 + $0x38] sm:$0xff] %v4_v0 }

// kernel: tile.34
= control target key start
LH: loop header
LB: loop body
LE: loop exit
PB: predicated region body
PF: predicated region fallthrough
CT: control target
= control target key end

     0   :  { %vm4_vm0 = vcmask 1047556   ;;  %s162_s14 = smov 112   ;;  %s163_s15 = smov 80   ;;  %vm6_vm1 = vcmask 130048   ;;  %vm17_vm2 = vcmask 1048448   ;;  %vm28_vm3 = vcmask 917248   ;;  %s259_s0 = inlined_call_operand.vmem [shape: f32[64,16], index: 0, kind: input, shape index: {}]   ;;  %s260_s1 = inlined_call_operand.vmem [shape: f32[1,1024], index: 1, kind: output, shape index: {}]  }
   0x1   :  { %v134_v0 = vld [vmem:[%s259_s0 + $0x7] ss:$8 sm:$0xf]   ;;  %v138_v2 = vld [vmem:[%s259_s0 + $0x5] ss:$8 sm:$0xf]  }
   0x2   :  { %v135_v1 = vld [vmem:[%s259_s0 + $0x7] ss:$8 sm:$0xf0]   ;;  %v139_v4 = vld [vmem:[%s259_s0 + $0x5] ss:$8 sm:$0xf0]  }
   0x3   :  { %v14_v3 = vsel %vm4_vm0, %v135_v1, %v134_v0  ;;  %v36_v5 = vsel %vm4_vm0, %v139_v4, %v138_v2  ;;  %v136_v6 = vld [vmem:[%s259_s0 + $0x6] ss:$8 sm:$0xf]   ;;  %v140_v8 = vld [vmem:[%s259_s0 + $0x4] ss:$8 sm:$0xf]  }
   0x4   :  { %15 = vrot.lane.b32.xlu0 %v14_v3, %s162_s14  ;;  %37 = vrot.lane.b32.xlu1 %v36_v5, %s163_s15  ;;  %v137_v7 = vld [vmem:[%s259_s0 + $0x6] ss:$8 sm:$0xf0]   ;;  %v141_v9 = vld [vmem:[%s259_s0 + $0x4] ss:$8 sm:$0xf0]  }
   0x5   :  { %v142_v10 = vld [vmem:[%s259_s0 + $0x3] ss:$8 sm:$0xf]   ;;  %v25_v12 = vsel %vm4_vm0, %v137_v7, %v136_v6  ;;  %v47_v14 = vsel %vm4_vm0, %v141_v9, %v140_v8  ;;  %s164_s28 = smov 48   ;;  %s165_s29 = smov 96   ;;  %vm39_vm4 = vcmask 786048  }
   0x6   :  { %v143_v11 = vld [vmem:[%s259_s0 + $0x3] ss:$8 sm:$0xf0]   ;;  %v144_v15 = vld [vmem:[%s259_s0 + $0x2] ss:$8 sm:$0xf]  }
   0x7   :  { %v58_v13 = vsel %vm4_vm0, %v143_v11, %v142_v10  ;;  %v145_v16 = vld [vmem:[%s259_s0 + $0x2] ss:$8 sm:$0xf0]   ;;  %s166_s5 = smov 64   ;;  %s167_s10 = smov 32   ;;  %vm50_vm5 = vcmask 654848  }
   0x8   :  { %59 = vrot.lane.b32.xlu2 %v58_v13, %s164_s28  ;;  %v146_v17 = vld [vmem:[%s259_s0 + $0x1] ss:$8 sm:$0xf]   ;;  %v69_v19 = vsel %vm4_vm0, %v145_v16, %v144_v15  ;;  %s168_s11 = smov 16   ;;  %vm61_vm6 = vcmask 523648   ;;  %vm72_vm7 = vcmask 392448  }
   0x9   :  { %v147_v18 = vld [vmem:[%s259_s0 + $0x1] ss:$8 sm:$0xf0]   ;;  %v2_v21 = vld [vmem:[%s259_s0] ss:$8 sm:$0xf]  }
   0xa   :  { %v80_v20 = vsel %vm4_vm0, %v147_v18, %v146_v17  ;;  %v3_v22 = vld [vmem:[%s259_s0] ss:$8 sm:$0xf0]   ;;  %vm83_vm8 = vcmask 261248  }
   0xb   :  { %v5_v23 = vsel %vm4_vm0, %v3_v22, %v2_v21 }
   0xc   :  { %26 = vrot.lane.b32.xlu0 %v25_v12, %s165_s29  ;;  %48 = vrot.lane.b32.xlu1 %v47_v14, %s166_s5  ;;  %7 = vst.msk [vmem:[#allocation0] ss:$8 sm:$0xf] %vm6_vm1, %v5_v23  }
   0xd   :  { %8 = vst.msk [vmem:[#allocation0] ss:$8 sm:$0xf0] %vm6_vm1, %v5_v23  }
  0x10   :  { %70 = vrot.lane.b32.xlu2 %v69_v19, %s167_s10 }
  0x14   :  { %81 = vrot.lane.b32.xlu0 %v80_v20, %s168_s11 }
  0x62   :  { %v60_v24 = vpop.permute.xlu2 %59  }
  0x6a   :  { %v71_v25 = vpop.permute.xlu2 %70  }
  0x76   :  { %v16_v26 = vpop.permute.xlu0 %15   ;;  %v38_v27 = vpop.permute.xlu1 %37  }
  0x77   :  { %18 = vst.msk [vmem:[#allocation0] ss:$8 sm:$0xf] %vm17_vm2, %v16_v26  }
  0x78   :  { %19 = vst.msk [vmem:[#allocation0] ss:$8 sm:$0xf0] %vm17_vm2, %v16_v26  }
  0x7e   :  { %v27_v28 = vpop.permute.xlu0 %26   ;;  %v49_v29 = vpop.permute.xlu1 %48  }
  0x7f   :  { %29 = vst.msk [vmem:[#allocation0] ss:$8 sm:$0xf] %vm28_vm3, %v27_v28  }
  0x80   :  { %30 = vst.msk [vmem:[#allocation0] ss:$8 sm:$0xf0] %vm28_vm3, %v27_v28  }
  0x81   :  { %40 = vst.msk [vmem:[#allocation0] ss:$8 sm:$0xf] %vm39_vm4, %v38_v27  }
  0x82   :  { %41 = vst.msk [vmem:[#allocation0] ss:$8 sm:$0xf0] %vm39_vm4, %v38_v27  }
  0x83   :  { %51 = vst.msk [vmem:[#allocation0] ss:$8 sm:$0xf] %vm50_vm5, %v49_v29  }
  0x84   :  { %52 = vst.msk [vmem:[#allocation0] ss:$8 sm:$0xf0] %vm50_vm5, %v49_v29  }
  0x85   :  { %62 = vst.msk [vmem:[#allocation0] ss:$8 sm:$0xf] %vm61_vm6, %v60_v24  }
  0x86   :  { %63 = vst.msk [vmem:[#allocation0] ss:$8 sm:$0xf0] %vm61_vm6, %v60_v24   ;;  %v82_v30 = vpop.permute.xlu0 %81  }
  0x87   :  { %73 = vst.msk [vmem:[#allocation0] ss:$8 sm:$0xf] %vm72_vm7, %v71_v25  }
  0x88   :  { %74 = vst.msk [vmem:[#allocation0] ss:$8 sm:$0xf0] %vm72_vm7, %v71_v25  }
  0x89   :  { %84 = vst.msk [vmem:[#allocation0] ss:$8 sm:$0xf] %vm83_vm8, %v82_v30  }
  0x8a   :  { %85 = vst.msk [vmem:[#allocation0] ss:$8 sm:$0xf0] %vm83_vm8, %v82_v30  }
  0x90   :  { %v88_v31 = vld [vmem:[#allocation0] sm:$0x1]  ;;  %v93_v32 = vld [vmem:[#allocation0 + $0x8] sm:$0x1]  ;;  %v99_v33 = vld [vmem:[#allocation0 + $0x10] sm:$0x1] }
  0x91   :  { %91 = vst [vmem:[%s260_s1] sm:$0x1] %v88_v31  ;;  %v105_v34 = vld [vmem:[#allocation0 + $0x18] sm:$0x1]  ;;  %v111_v35 = vld [vmem:[#allocation0 + $0x20] sm:$0x1] }
  0x92   :  { %148 = vst [vmem:[%s260_s1 + $0x1] sm:$0x1] %v93_v32  ;;  %v117_v36 = vld [vmem:[#allocation0 + $0x28] sm:$0x1]  ;;  %v123_v37 = vld [vmem:[#allocation0 + $0x30] sm:$0x1] }
  0x93   :  { %149 = vst [vmem:[%s260_s1 + $0x2] sm:$0x1] %v99_v33  ;;  %v129_v38 = vld [vmem:[#allocation0 + $0x38] sm:$0x1] }
  0x94   :  { %150 = vst [vmem:[%s260_s1 + $0x3] sm:$0x1] %v105_v34 }
  0x95   :  { %151 = vst [vmem:[%s260_s1 + $0x4] sm:$0x1] %v111_v35 }
  0x96   :  { %152 = vst [vmem:[%s260_s1 + $0x5] sm:$0x1] %v117_v36 }
  0x97   :  { %153 = vst [vmem:[%s260_s1 + $0x6] sm:$0x1] %v123_v37 }
  0x98   :  { %154 = vst [vmem:[%s260_s1 + $0x7] sm:$0x1] %v129_v38 }

// kernel: tile.38
= control target key start
LH: loop header
LB: loop body
LE: loop exit
PB: predicated region body
PF: predicated region fallthrough
CT: control target
= control target key end

     0   :  { %s28_s0 = inlined_call_operand.vmem [shape: f32[16], index: 0, kind: input, shape index: {}]   ;;  %s29_s1 = inlined_call_operand.vmem [shape: f32[16,16], index: 1, kind: output, shape index: {}]  }
   0x1   :  { %v4_v0 = vld [vmem:[%s28_s0] ss:$0 sm:$0xff] }
   0x2   :  { %5 = vst [vmem:[%s29_s1] sm:$0xff] %v4_v0 }
   0x3   :  { %8 = vst [vmem:[%s29_s1 + $0x8] sm:$0xff] %v4_v0 }

// kernel: tile.39
= control target key start
LH: loop header
LB: loop body
LE: loop exit
PB: predicated region body
PF: predicated region fallthrough
CT: control target
= control target key end

     0   :  { %s7_s6 = smov 3  ;;  %s21_s9 = smov 3  ;;  %vm4_vm0 = vcmask 130048   ;;  %vm11_vm1 = vcmask 1048448   ;;  %vm18_vm2 = vcmask 917248   ;;  %vm25_vm3 = vcmask 786048   ;;  %s129_s0 = inlined_call_operand.vmem [shape: f32[16,16], index: 0, kind: input, shape index: {}]   ;;  %s130_s1 = inlined_call_operand.vmem [shape: f32[1,256], index: 1, kind: output, shape index: {}]  }
   0x1   :  { %v67_v0 = vld [vmem:[%s129_s0 + $0x7] ss:$8 sm:%s7_s6]   ;;  %s82_s10 = smov 112   ;;  %v69_v1 = vld [vmem:[%s129_s0 + $0x5] ss:$8 sm:%s21_s9]   ;;  %s83_s13 = smov 80  }
   0x2   :  { %9 = vrot.lane.b32.xlu0 %v67_v0, %s82_s10  ;;  %23 = vrot.lane.b32.xlu1 %v69_v1, %s83_s13  ;;  %s14_s14 = smov 3  ;;  %s28_s15 = smov 3  ;;  %vm32_vm4 = vcmask 654848   ;;  %vm39_vm5 = vcmask 523648   ;;  %vm46_vm6 = vcmask 392448   ;;  %vm53_vm7 = vcmask 261248  }
   0x3   :  { %s35_s16 = smov 3  ;;  %v68_v3 = vld [vmem:[%s129_s0 + $0x6] ss:$8 sm:%s14_s14]   ;;  %s84_s21 = smov 48   ;;  %v70_v4 = vld [vmem:[%s129_s0 + $0x4] ss:$8 sm:%s28_s15]  }
   0x4   :  { %v71_v2 = vld [vmem:[%s129_s0 + $0x3] ss:$8 sm:%s35_s16]   ;;  %s42_s24 = smov 3  ;;  %s85_s25 = smov 96  }
   0x5   :  { %37 = vrot.lane.b32.xlu2 %v71_v2, %s84_s21  ;;  %s86_s26 = smov 64   ;;  %s49_s27 = smov 3  ;;  %v72_v5 = vld [vmem:[%s129_s0 + $0x2] ss:$8 sm:%s42_s24]  }
   0x6   :  { %v73_v6 = vld [vmem:[%s129_s0 + $0x1] ss:$8 sm:%s49_s27]   ;;  %s87_s3 = smov 32   ;;  %s88_s4 = smov 16  }
   0x7   :  { %s2_s5 = smov 3 }
   0x8   :  { %v3_v7 = vld [vmem:[%s129_s0] ss:$8 sm:%s2_s5]  }
   0x9   :  { %5 = vst.msk [vmem:[#allocation0] ss:$8 sm:$0x3] %vm4_vm0, %v3_v7  }
   0xa   :  { %16 = vrot.lane.b32.xlu0 %v68_v3, %s85_s25  ;;  %30 = vrot.lane.b32.xlu1 %v70_v4, %s86_s26 }
   0xd   :  { %44 = vrot.lane.b32.xlu2 %v72_v5, %s87_s3 }
  0x12   :  { %51 = vrot.lane.b32.xlu0 %v73_v6, %s88_s4 }
  0x5f   :  { %v38_v8 = vpop.permute.xlu2 %37  }
  0x67   :  { %v45_v9 = vpop.permute.xlu2 %44  }
  0x74   :  { %v10_v10 = vpop.permute.xlu0 %9   ;;  %v24_v11 = vpop.permute.xlu1 %23  }
  0x75   :  { %12 = vst.msk [vmem:[#allocation0] ss:$8 sm:$0x3] %vm11_vm1, %v10_v10  }
  0x7c   :  { %v17_v12 = vpop.permute.xlu0 %16   ;;  %v31_v13 = vpop.permute.xlu1 %30  }
  0x7d   :  { %19 = vst.msk [vmem:[#allocation0] ss:$8 sm:$0x3] %vm18_vm2, %v17_v12  }
  0x7e   :  { %26 = vst.msk [vmem:[#allocation0] ss:$8 sm:$0x3] %vm25_vm3, %v24_v11  }
  0x7f   :  { %33 = vst.msk [vmem:[#allocation0] ss:$8 sm:$0x3] %vm32_vm4, %v31_v13  }
  0x80   :  { %40 = vst.msk [vmem:[#allocation0] ss:$8 sm:$0x3] %vm39_vm5, %v38_v8  }
  0x81   :  { %47 = vst.msk [vmem:[#allocation0] ss:$8 sm:$0x3] %vm46_vm6, %v45_v9  }
  0x84   :  { %v52_v14 = vpop.permute.xlu0 %51  }
  0x85   :  { %54 = vst.msk [vmem:[#allocation0] ss:$8 sm:$0x3] %vm53_vm7, %v52_v14  }
  0x8c   :  { %v57_v15 = vld [vmem:[#allocation0] sm:$0x1]  ;;  %v62_v16 = vld [vmem:[#allocation0 + $0x8] sm:$0x1] }
  0x8d   :  { %60 = vst [vmem:[%s130_s1] sm:$0x1] %v57_v15 }
  0x8e   :  { %74 = vst [vmem:[%s130_s1 + $0x1] sm:$0x1] %v62_v16 }

// kernel: tile.43
= control target key start
LH: loop header
LB: loop body
LE: loop exit
PB: predicated region body
PF: predicated region fallthrough
CT: control target
= control target key end

     0   :  { %s28_s0 = inlined_call_operand.vmem [shape: f32[32], index: 0, kind: input, shape index: {}]   ;;  %s29_s1 = inlined_call_operand.vmem [shape: f32[16,32], index: 1, kind: output, shape index: {}]  }
   0x1   :  { %v4_v0 = vld [vmem:[%s28_s0] ss:$0 sm:$0xff] }
   0x2   :  { %5 = vst [vmem:[%s29_s1] sm:$0xff] %v4_v0 }
   0x3   :  { %8 = vst [vmem:[%s29_s1 + $0x8] sm:$0xff] %v4_v0 }

// kernel: tile.44
= control target key start
LH: loop header
LB: loop body
LE: loop exit
PB: predicated region body
PF: predicated region fallthrough
CT: control target
= control target key end

     0   :  { %s56_s8 = smov 96   ;;  %s57_s11 = smov 32   ;;  %vm3_vm0 = vcmask 261120   ;;  %vm9_vm1 = vcmask 1048320   ;;  %vm15_vm2 = vcmask 785920   ;;  %vm21_vm3 = vcmask 523520   ;;  %s93_s0 = inlined_call_operand.vmem [shape: f32[16,32], index: 0, kind: input, shape index: {}]   ;;  %s94_s1 = inlined_call_operand.vmem [shape: f32[1,512], index: 1, kind: output, shape index: {}]  }
   0x1   :  { %v47_v0 = vld [vmem:[%s93_s0 + $0x3] ss:$4 sm:$0xf]   ;;  %v49_v1 = vld [vmem:[%s93_s0 + $0x1] ss:$4 sm:$0xf]  }
   0x2   :  { %7 = vrot.lane.b32.xlu0 %v47_v0, %s56_s8  ;;  %19 = vrot.lane.b32.xlu1 %v49_v1, %s57_s11  ;;  %v48_v2 = vld [vmem:[%s93_s0 + $0x2] ss:$4 sm:$0xf]   ;;  %s58_s14 = smov 64  }
   0x3   :  { %v2_v3 = vld [vmem:[%s93_s0] ss:$4 sm:$0xf]  }
   0x4   :  { %4 = vst.msk [vmem:[#allocation0] ss:$8 sm:$0xf] %vm3_vm0, %v2_v3  }
   0xa   :  { %13 = vrot.lane.b32.xlu0 %v48_v2, %s58_s14 }
  0x74   :  { %v8_v4 = vpop.permute.xlu0 %7   ;;  %v20_v5 = vpop.permute.xlu1 %19  }
  0x75   :  { %10 = vst.msk [vmem:[#allocation0] ss:$8 sm:$0xf] %vm9_vm1, %v8_v4  }
  0x7c   :  { %v14_v6 = vpop.permute.xlu0 %13  }
  0x7d   :  { %16 = vst.msk [vmem:[#allocation0] ss:$8 sm:$0xf] %vm15_vm2, %v14_v6  }
  0x7e   :  { %22 = vst.msk [vmem:[#allocation0] ss:$8 sm:$0xf] %vm21_vm3, %v20_v5  }
  0x85   :  { %v25_v7 = vld [vmem:[#allocation0] sm:$0x1]  ;;  %v30_v8 = vld [vmem:[#allocation0 + $0x8] sm:$0x1]  ;;  %v36_v9 = vld [vmem:[#allocation0 + $0x10] sm:$0x1] }
  0x86   :  { %28 = vst [vmem:[%s94_s1] sm:$0x1] %v25_v7  ;;  %v42_v10 = vld [vmem:[#allocation0 + $0x18] sm:$0x1] }
  0x87   :  { %50 = vst [vmem:[%s94_s1 + $0x1] sm:$0x1] %v30_v8 }
  0x88   :  { %51 = vst [vmem:[%s94_s1 + $0x2] sm:$0x1] %v36_v9 }
  0x89   :  { %52 = vst [vmem:[%s94_s1 + $0x3] sm:$0x1] %v42_v10 }

// kernel: net_csi_forward.2
= control target key start
LH: loop header
LB: loop body
LE: loop exit
PB: predicated region body
PF: predicated region fallthrough
CT: control target
= control target key end

     0   :  { %s12557_s27 = smov 0   ;;  %s18196_s0 = inlined_call_operand.vmem [shape: bf16[2,19,192], index: 0, kind: input, shape index: {}]   ;;  %s18197_s1 = inlined_call_operand.vmem [shape: bf16[3,192,1024], index: 1, kind: input, shape index: {}]   ;;  %s18198_s2 = inlined_call_operand.vmem [shape: f32[1,1024], index: 2, kind: input, shape index: {}]   ;;  %s18199_s3 = inlined_call_operand.vmem [shape: bf16[1024,256], index: 3, kind: input, shape index: {}]   ;;  %s18200_s4 = inlined_call_operand.vmem [shape: bf16[512,256], index: 4, kind: input, shape index: {}]   ;;  %s18201_s5 = inlined_call_operand.vmem [shape: f32[1,256], index: 5, kind: input, shape index: {}]   ;;  %s18202_s6 = inlined_call_operand.vmem [shape: bf16[5,256,512], index: 6, kind: input, shape index: {}]   ;;  %s18203_s7 = inlined_call_operand.vmem [shape: f32[1,512], index: 7, kind: input, shape index: {}]   ;;  %s18204_s8 = inlined_call_operand.vmem [shape: bf16[2,18,512], index: 8, kind: output, shape index: {}]  }
   0x1 LB: > { %s7866_s28 = sadd.s32 4294967295, %s12509_s27   ;;  %p7870_p0 = scmp.ge.s32.totalorder %s12509_s27, 1  ;;  %s12509_s27 = sphi %s12557_s27, %s18_s27  }
   0x2   : > { %p262_p1 = scmp.lt.s32.totalorder %s12509_s27, 3 }
   0x4   : > { %p263_p2 = pnand %p7870_p0, %p262_p1 }
   0x5   : > { %p296_p3 = scmp.lt.s32.totalorder (!%p263_p2), %s7866_s28, 1 }
   0x6   : > { %266 = sbr.rel (%p263_p2) target bundleno = 1232 (0x4d0), region = 52 }
   0xb   : > { %v8107_v0 = vld [vmem:[%s18197_s1 + $0x1c0] sm:$0xf]  ;;  %v11725_v2 = vld [vmem:[%s18197_s1 + $0x1c4] sm:$0xf]  ;;  %s18218_s28 = smov (!%p296_p3, %s7866_s28), 1  ;;  %vm901_vm0 = vcmask 523264  }
   0xc   : > { %v11729_v1 = vld [vmem:[%s18197_s1 + $0x1dc] sm:$0xf0]  ;;  %v8109_v4 = vld [vmem:[%s18197_s1 + $0x1e0] sm:$0xf0]  ;;  %s12491_s19 = smul.u32 24, %s18218_s28  ;;  %vm2323_vm2 = vcmask 1046528  }
   0xd   : > { %v8108_v3 = vor.u32 %v11729_v1, %v8107_v0  ;;  %v11757_v5 = vld [vmem:[%s18197_s1 + $0x2c4] sm:$0xf]  ;;  %v8112_v7 = vor.u32 %v11725_v2, %v8109_v4  ;;  %v8075_v9 = vld [vmem:[%s18197_s1 + $0x180] sm:$0xf]  ;;  %v8115_v51 = vld [vmem:[%s18197_s1 + $0x1c8] sm:$0xf] }
   0xe   : > { %v8237_v6 = vld [vmem:[%s18197_s1 + $0x2e0] sm:$0xf0]  ;;  %v11721_v10 = vld [vmem:[%s18197_s1 + $0x19c] sm:$0xf0]  ;;  %v11730_v52 = vld [vmem:[%s18197_s1 + $0x1e4] sm:$0xf0]  ;;  %s12689_s26 = scalar_lea.vmem %s18196_s0, %s12491_s19 }
   0xf   : > { %v8240_v8 = vor.u32 %v11757_v5, %v8237_v6  ;;  %v11717_v11 = vld [vmem:[%s18197_s1 + $0x184] sm:$0xf]  ;;  %908 = vmatpush.bf16.msra.mxu0 %v8108_v3  ;;  %v8076_v12 = vor.u32 %v11721_v10, %v8075_v9  ;;  %944 = vmatpush.bf16.msra.mxu2 %v8112_v7  ;;  %v8235_v18 = vld [vmem:[%s18197_s1 + $0x2c0] sm:$0xf]  ;;  %v7877_v60 = vld [vmem:[%s12689_s26 + $0x8] sm:$0xf0]  ;;  %v8116_v62 = vor.u32 %v11730_v52, %v8115_v51 }
  0x10   : > { %v8077_v13 = vld [vmem:[%s18197_s1 + $0x1a0] sm:$0xf0]  ;;  %v11761_v19 = vld [vmem:[%s18197_s1 + $0x2dc] sm:$0xf0]  ;;  %v8083_v0 = vld [vmem:[%s18197_s1 + $0x188] sm:$0xf] }
  0x11   : > { %v11749_v14 = vld [vmem:[%s18197_s1 + $0x284] sm:$0xf]  ;;  %966 = vmatpush.bf16.msra.mxu3 %v8240_v8  ;;  %v8080_v16 = vor.u32 %v11717_v11, %v8077_v13  ;;  %v8043_v20 = vld [vmem:[%s18197_s1 + $0x140] sm:$0xf]  ;;  %v8236_v21 = vor.u32 %v11761_v19, %v8235_v18  ;;  %v11722_v1 = vld [vmem:[%s18197_s1 + $0x1a4] sm:$0xf0] }
  0x12   : > { %v8205_v15 = vld [vmem:[%s18197_s1 + $0x2a0] sm:$0xf0]  ;;  %v11713_v22 = vld [vmem:[%s18197_s1 + $0x15c] sm:$0xf0]  ;;  %v8084_v8 = vor.u32 %v11722_v1, %v8083_v0  ;;  %v8243_v9 = vld [vmem:[%s18197_s1 + $0x2c8] sm:$0xf] }
  0x13   : > { %v8208_v17 = vor.u32 %v11749_v14, %v8205_v15  ;;  %v11709_v23 = vld [vmem:[%s18197_s1 + $0x144] sm:$0xf]  ;;  %v8203_v27 = vld [vmem:[%s18197_s1 + $0x280] sm:$0xf]  ;;  %909 = vmatpush.bf16.msra.mxu0 %v8076_v12  ;;  %930 = vmatpush.bf16.msra.mxu1 %v8236_v21  ;;  %v8044_v28 = vor.u32 %v11713_v22, %v8043_v20  ;;  %v11762_v10 = vld [vmem:[%s18197_s1 + $0x2e4] sm:$0xf0] }
  0x14   : > { %v8045_v24 = vld [vmem:[%s18197_s1 + $0x160] sm:$0xf0]  ;;  %v11753_v29 = vld [vmem:[%s18197_s1 + $0x29c] sm:$0xf0]  ;;  %945 = vmatpush.bf16.msra.mxu2 %v8080_v16  ;;  %v8051_v12 = vld [vmem:[%s18197_s1 + $0x148] sm:$0xf]  ;;  %v8244_v14 = vor.u32 %v11762_v10, %v8243_v9 }
  0x15   : > { %v11741_v25 = vld [vmem:[%s18197_s1 + $0x244] sm:$0xf]  ;;  %v8011_v30 = vld [vmem:[%s18197_s1 + $0x100] sm:$0xf]  ;;  %967 = vmatpush.bf16.msra.mxu3 %v8208_v17  ;;  %v8048_v32 = vor.u32 %v11709_v23, %v8045_v24  ;;  %v8204_v34 = vor.u32 %v11753_v29, %v8203_v27  ;;  %v11714_v13 = vld [vmem:[%s18197_s1 + $0x164] sm:$0xf0] }
  0x16   : > { %v8173_v26 = vld [vmem:[%s18197_s1 + $0x260] sm:$0xf0]  ;;  %v11705_v31 = vld [vmem:[%s18197_s1 + $0x11c] sm:$0xf0]  ;;  %v8211_v17 = vld [vmem:[%s18197_s1 + $0x288] sm:$0xf]  ;;  %v8052_v24 = vor.u32 %v11714_v13, %v8051_v12 }
  0x17   : > { %v8176_v33 = vor.u32 %v11741_v25, %v8173_v26  ;;  %v11701_v35 = vld [vmem:[%s18197_s1 + $0x104] sm:$0xf]  ;;  %v8171_v39 = vld [vmem:[%s18197_s1 + $0x240] sm:$0xf]  ;;  %910 = vmatpush.bf16.msra.mxu0 %v8044_v28  ;;  %931 = vmatpush.bf16.msra.mxu1 %v8204_v34  ;;  %v8012_v41 = vor.u32 %v11705_v31, %v8011_v30  ;;  %v11754_v18 = vld [vmem:[%s18197_s1 + $0x2a4] sm:$0xf0] }
  0x18   : > { %v8013_v36 = vld [vmem:[%s18197_s1 + $0x120] sm:$0xf0]  ;;  %v11745_v40 = vld [vmem:[%s18197_s1 + $0x25c] sm:$0xf0]  ;;  %946 = vmatpush.bf16.msra.mxu2 %v8048_v32  ;;  %v12760_v22 = vld [vmem:[%s12689_s26 + $0x10] sm:$0x11]  ;;  %v8212_v23 = vor.u32 %v11754_v18, %v8211_v17 }
  0x19   : > { %v11733_v37 = vld [vmem:[%s18197_s1 + $0x204] sm:$0xf]  ;;  %v8172_v42 = vor.u32 %v11745_v40, %v8171_v39  ;;  %v7979_v43 = vld [vmem:[%s18197_s1 + $0xc0] sm:$0xf]  ;;  %968 = vmatpush.bf16.msra.mxu3 %v8176_v33  ;;  %v8016_v45 = vor.u32 %v11701_v35, %v8013_v36  ;;  %v11726_v25 = vld [vmem:[%s18197_s1 + $0x1cc] sm:$0xf]  ;;  %v414_v35 = vunpack.c.h.b16 %v12760_v22 }
  0x1a   : > { %v8141_v38 = vld [vmem:[%s18197_s1 + $0x220] sm:$0xf0]  ;;  %v11697_v44 = vld [vmem:[%s18197_s1 + $0xdc] sm:$0xf0]  ;;  %v8117_v26 = vld [vmem:[%s18197_s1 + $0x1e8] sm:$0xf0] }
  0x1b   : > { %v8144_v46 = vor.u32 %v11733_v37, %v8141_v38  ;;  %v8139_v47 = vld [vmem:[%s18197_s1 + $0x200] sm:$0xf]  ;;  %v11693_v49 = vld [vmem:[%s18197_s1 + $0xc4] sm:$0xf]  ;;  %911 = vmatpush.bf16.msra.mxu0 %v8012_v41  ;;  %932 = vmatpush.bf16.msra.mxu1 %v8172_v42  ;;  %v7980_v53 = vor.u32 %v11697_v44, %v7979_v43  ;;  %v8019_v27 = vld [vmem:[%s18197_s1 + $0x108] sm:$0xf]  ;;  %v8120_v36 = vor.u32 %v11726_v25, %v8117_v26 }
  0x1c   : > { %v11737_v48 = vld [vmem:[%s18197_s1 + $0x21c] sm:$0xf0]  ;;  %v7981_v50 = vld [vmem:[%s18197_s1 + $0xe0] sm:$0xf0]  ;;  %947 = vmatpush.bf16.msra.mxu2 %v8016_v45  ;;  %v11706_v28 = vld [vmem:[%s18197_s1 + $0x124] sm:$0xf0] }
  0x1d   : > { %v8140_v54 = vor.u32 %v11737_v48, %v8139_v47  ;;  %969 = vmatpush.bf16.msra.mxu3 %v8144_v46  ;;  %v7984_v55 = vor.u32 %v11693_v49, %v7981_v50  ;;  %v7947_v56 = vld [vmem:[%s18197_s1 + $0x80] sm:$0xf]  ;;  %v11685_v58 = vld [vmem:[%s18197_s1 + $0x84] sm:$0xf]  ;;  %v8179_v29 = vld [vmem:[%s18197_s1 + $0x248] sm:$0xf]  ;;  %v8020_v39 = vor.u32 %v11706_v28, %v8019_v27  ;;  %v12812_v50 = vpack.c.b16 %v414_v35, %v414_v35 }
  0x1e   : > { %v11689_v57 = vld [vmem:[%s18197_s1 + $0x9c] sm:$0xf0]  ;;  %v11667_v59 = vld [vmem:[%s12689_s26 + $0x4] sm:$0xf]  ;;  %v11746_v30 = vld [vmem:[%s18197_s1 + $0x264] sm:$0xf0] }
  0x1f   : > { %v7949_v61 = vld [vmem:[%s18197_s1 + $0xa0] sm:$0xf0]  ;;  %v12705_v63 = vor.u32 %v11667_v59, %v7877_v60  ;;  %912 = vmatpush.bf16.msra.mxu0 %v7980_v53  ;;  %933 = vmatpush.bf16.msra.mxu1 %v8140_v54  ;;  %v7948_v2 = vor.u32 %v11689_v57, %v7947_v56  ;;  %v7915_v4 = vld [vmem:[%s18197_s1 + $0x40] sm:$0xf]  ;;  %v11668_v33 = vld [vmem:[%s12689_s26 + $0x4] sm:$0xf0]  ;;  %v8180_v42 = vor.u32 %v11746_v30, %v8179_v29 }
  0x20   : > { %948 = vmatpush.bf16.msra.mxu2 %v7984_v55  ;;  %v7952_v3 = vor.u32 %v11685_v58, %v7949_v61  ;;  %v11681_v5 = vld [vmem:[%s18197_s1 + $0x5c] sm:$0xf0]  ;;  %v11677_v6 = vld [vmem:[%s18197_s1 + $0x44] sm:$0xf]  ;;  %v11718_v37 = vld [vmem:[%s18197_s1 + $0x18c] sm:$0xf] }
  0x21   : > { %8267 = vmatmul.msk.bf16.vlgmr.msra.gmra.mxu3 %vm901_vm0, %v12705_v63  ;;  %v7917_v7 = vld [vmem:[%s18197_s1 + $0x60] sm:$0xf0]  ;;  %v7883_v11 = vld [vmem:[%s18197_s1] sm:$0xf]  ;;  %v7916_v15 = vor.u32 %v11681_v5, %v7915_v4  ;;  %v8085_v38 = vld [vmem:[%s18197_s1 + $0x1a8] sm:$0xf0] }
  0x22   : > { %8265 = vmatmul.msk.bf16.vlgmr.msra.gmra.mxu1 %vm901_vm0, %v12705_v63  ;;  %v11673_v16 = vld [vmem:[%s18197_s1 + $0x1c] sm:$0xf0]  ;;  %v7920_v19 = vor.u32 %v11677_v6, %v7917_v7  ;;  %v11669_v20 = vld [vmem:[%s18197_s1 + $0x4] sm:$0xf]  ;;  %1002 = vmatpush.bf16.msrb.mxu3 %v8244_v14  ;;  %v7987_v40 = vld [vmem:[%s18197_s1 + $0xc8] sm:$0xf]  ;;  %v8088_v51 = vor.u32 %v11718_v37, %v8085_v38 }
  0x23   : > { %980 = vmatpush.bf16.msrb.mxu1 %v8116_v62  ;;  %913 = vmatpush.bf16.msra.mxu0 %v7948_v2  ;;  %v7885_v21 = vld [vmem:[%s18197_s1 + $0x20] sm:$0xf0]  ;;  %v7884_v31 = vor.u32 %v11673_v16, %v7883_v11  ;;  %v7875_v32 = vld [vmem:[%s12689_s26] sm:$0xf]  ;;  %v11698_v41 = vld [vmem:[%s18197_s1 + $0xe4] sm:$0xf0] }
  0x24   : > { %949 = vmatpush.bf16.msra.mxu2 %v7952_v3  ;;  %v7888_v34 = vor.u32 %v11669_v20, %v7885_v21  ;;  %v11758_v43 = vld [vmem:[%s18197_s1 + $0x2cc] sm:$0xf]  ;;  %v12798_v44 = vor.u32 %v11668_v33, %v7875_v32  ;;  %v8147_v45 = vld [vmem:[%s18197_s1 + $0x208] sm:$0xf]  ;;  %v7988_v53 = vor.u32 %v11698_v41, %v7987_v40  ;;  %v8251_v3 = vld [vmem:[%s18197_s1 + $0x2d0] sm:$0xf]  ;;  %v413_v20 = vunpack.c.l.b16 %v12760_v22 }
  0x25   : > { %v11738_v46 = vld [vmem:[%s18197_s1 + $0x224] sm:$0xf0]  ;;  %v8245_v47 = vld [vmem:[%s18197_s1 + $0x2e8] sm:$0xf0]  ;;  %v11763_v4 = vld [vmem:[%s18197_s1 + $0x2ec] sm:$0xf0] }
  0x26   : > { %1003 = vmatpush.bf16.msrb.mxu3 %v8212_v23  ;;  %v8248_v48 = vor.u32 %v11758_v43, %v8245_v47  ;;  %v11750_v49 = vld [vmem:[%s18197_s1 + $0x28c] sm:$0xf]  ;;  %v8148_v56 = vor.u32 %v11738_v46, %v8147_v45  ;;  %v7955_v57 = vld [vmem:[%s18197_s1 + $0x88] sm:$0xf]  ;;  %v8252_v9 = vor.u32 %v11763_v4, %v8251_v3  ;;  %v8219_v11 = vld [vmem:[%s18197_s1 + $0x290] sm:$0xf] }
  0x27   : > { %981 = vmatpush.bf16.msrb.mxu1 %v8084_v8  ;;  %914 = vmatpush.bf16.msra.mxu0 %v7916_v15  ;;  %v8213_v52 = vld [vmem:[%s18197_s1 + $0x2a8] sm:$0xf0]  ;;  %v11690_v58 = vld [vmem:[%s18197_s1 + $0xa4] sm:$0xf0]  ;;  %v11755_v12 = vld [vmem:[%s18197_s1 + $0x2ac] sm:$0xf0] }
  0x28   : > { %950 = vmatpush.bf16.msra.mxu2 %v7920_v19  ;;  %v11710_v54 = vld [vmem:[%s18197_s1 + $0x14c] sm:$0xf]  ;;  %v8216_v59 = vor.u32 %v11750_v49, %v8213_v52  ;;  %v7956_v1 = vor.u32 %v11690_v58, %v7955_v57  ;;  %v7923_v5 = vld [vmem:[%s18197_s1 + $0x48] sm:$0xf]  ;;  %v8220_v15 = vor.u32 %v11755_v12, %v8219_v11  ;;  %v8187_v18 = vld [vmem:[%s18197_s1 + $0x250] sm:$0xf] }
  0x29   : > { %v8053_v55 = vld [vmem:[%s18197_s1 + $0x168] sm:$0xf0]  ;;  %v11682_v6 = vld [vmem:[%s18197_s1 + $0x64] sm:$0xf0]  ;;  %v11747_v19 = vld [vmem:[%s18197_s1 + $0x26c] sm:$0xf0] }
  0x2a   : > { %1004 = vmatpush.bf16.msrb.mxu3 %v8180_v42  ;;  %v11742_v60 = vld [vmem:[%s18197_s1 + $0x24c] sm:$0xf]  ;;  %v8056_v62 = vor.u32 %v11710_v54, %v8053_v55  ;;  %v7924_v16 = vor.u32 %v11682_v6, %v7923_v5  ;;  %v7891_v21 = vld [vmem:[%s18197_s1 + $0x8] sm:$0xf]  ;;  %v8123_v25 = vld [vmem:[%s18197_s1 + $0x1d0] sm:$0xf]  ;;  %v8188_v27 = vor.u32 %v11747_v19, %v8187_v18 }
  0x2b   : > { %982 = vmatpush.bf16.msrb.mxu1 %v8052_v24  ;;  %915 = vmatpush.bf16.msra.mxu0 %v7884_v31  ;;  %v8181_v61 = vld [vmem:[%s18197_s1 + $0x268] sm:$0xf0]  ;;  %v11674_v23 = vld [vmem:[%s18197_s1 + $0x24] sm:$0xf0]  ;;  %v11731_v26 = vld [vmem:[%s18197_s1 + $0x1ec] sm:$0xf0]  ;;  %v12902_v31 = vpack.c.b16 %v413_v20, %v413_v20 }
  0x2c   : > { %951 = vmatpush.bf16.msra.mxu2 %v7888_v34  ;;  %v11702_v0 = vld [vmem:[%s18197_s1 + $0x10c] sm:$0xf]  ;;  %v8184_v7 = vor.u32 %v11742_v60, %v8181_v61  ;;  %v7892_v28 = vor.u32 %v11674_v23, %v7891_v21  ;;  %v8124_v32 = vor.u32 %v11731_v26, %v8123_v25  ;;  %v8155_v33 = vld [vmem:[%s18197_s1 + $0x210] sm:$0xf]  ;;  %v11759_v41 = vld [vmem:[%s18197_s1 + $0x2d4] sm:$0xf] }
  0x2d   : > { %v8021_v2 = vld [vmem:[%s18197_s1 + $0x128] sm:$0xf0]  ;;  %v11739_v34 = vld [vmem:[%s18197_s1 + $0x22c] sm:$0xf0]  ;;  %v8253_v43 = vld [vmem:[%s18197_s1 + $0x2f0] sm:$0xf0] }
  0x2e   : > { %916 = vmatmul.bf16.vlgmr.msra.gmra.mxu0 %v12798_v44  ;;  %1005 = vmatpush.bf16.msrb.mxu3 %v8148_v56  ;;  %v11734_v8 = vld [vmem:[%s18197_s1 + $0x20c] sm:$0xf]  ;;  %v8024_v13 = vor.u32 %v11702_v0, %v8021_v2  ;;  %v11723_v37 = vld [vmem:[%s18197_s1 + $0x1ac] sm:$0xf0]  ;;  %v8156_v40 = vor.u32 %v11739_v34, %v8155_v33  ;;  %v8256_v49 = vor.u32 %v11759_v41, %v8253_v43  ;;  %v11751_v52 = vld [vmem:[%s18197_s1 + $0x294] sm:$0xf] }
  0x2f   : > { %1016 = vmatpush.bf16.msrb.mxu0 %v8120_v36  ;;  %983 = vmatpush.bf16.msrb.mxu1 %v8020_v39  ;;  %v8149_v10 = vld [vmem:[%s18197_s1 + $0x228] sm:$0xf0]  ;;  %v8091_v36 = vld [vmem:[%s18197_s1 + $0x190] sm:$0xf]  ;;  %v11727_v54 = vld [vmem:[%s18197_s1 + $0x1d4] sm:$0xf] }
  0x30   : > { %1038 = vmatpush.bf16.msrb.mxu2 %v8248_v48  ;;  %v11694_v14 = vld [vmem:[%s18197_s1 + $0xcc] sm:$0xf]  ;;  %v8152_v24 = vor.u32 %v11734_v8, %v8149_v10  ;;  %v8092_v42 = vor.u32 %v11723_v37, %v8091_v36  ;;  %v8059_v47 = vld [vmem:[%s18197_s1 + $0x150] sm:$0xf]  ;;  %v8125_v55 = vld [vmem:[%s18197_s1 + $0x1f0] sm:$0xf0] }
  0x31   : > { %952 = vmatmul.bf16.vlgmr.msra.gmra.mxu2 %v12798_v44  ;;  %8268 = vmatmul.msk.bf16.gmra.mxu3 %vm901_vm0, %v12812_v50  ;;  %v7989_v17 = vld [vmem:[%s18197_s1 + $0xe8] sm:$0xf0]  ;;  %v11715_v48 = vld [vmem:[%s18197_s1 + $0x16c] sm:$0xf0]  ;;  %v11743_v58 = vld [vmem:[%s18197_s1 + $0x254] sm:$0xf]  ;;  %v8128_v0 = vor.u32 %v11727_v54, %v8125_v55 }
  0x32   : > { %8266 = vmatmul.msk.bf16.gmra.mxu1 %vm901_vm0, %v12812_v50  ;;  %1074 = vmatpush.bf16.msra.mxu3 %v8252_v9  ;;  %v7992_v22 = vor.u32 %v11694_v14, %v7989_v17  ;;  %v11686_v29 = vld [vmem:[%s18197_s1 + $0x8c] sm:$0xf]  ;;  %v8060_v57 = vor.u32 %v11715_v48, %v8059_v47  ;;  %v8027_v61 = vld [vmem:[%s18197_s1 + $0x110] sm:$0xf]  ;;  %v8093_v2 = vld [vmem:[%s18197_s1 + $0x1b0] sm:$0xf0] }
  0x33   : > { %1017 = vmatpush.bf16.msrb.mxu0 %v8088_v51  ;;  %984 = vmatpush.bf16.msrb.mxu1 %v7988_v53  ;;  %v7957_v30 = vld [vmem:[%s18197_s1 + $0xa8] sm:$0xf0]  ;;  %v8221_v53 = vld [vmem:[%s18197_s1 + $0x2b0] sm:$0xf0]  ;;  %v11699_v8 = vld [vmem:[%s18197_s1 + $0xec] sm:$0xf0] }
  0x34   : > { %1039 = vmatpush.bf16.msrb.mxu2 %v8216_v59  ;;  %v7960_v35 = vor.u32 %v11686_v29, %v7957_v30  ;;  %v11678_v38 = vld [vmem:[%s18197_s1 + $0x4c] sm:$0xf]  ;;  %v8224_v56 = vor.u32 %v11751_v52, %v8221_v53  ;;  %v8189_v59 = vld [vmem:[%s18197_s1 + $0x270] sm:$0xf0]  ;;  %v7963_v14 = vld [vmem:[%s18197_s1 + $0x90] sm:$0xf] }
  0x35   : > { %v7925_v39 = vld [vmem:[%s18197_s1 + $0x68] sm:$0xf0]  ;;  %v8192_v3 = vor.u32 %v11743_v58, %v8189_v59  ;;  %v11735_v5 = vld [vmem:[%s18197_s1 + $0x214] sm:$0xf]  ;;  %v8259_v19 = vld [vmem:[%s18197_s1 + $0x2d8] sm:$0xf] }
  0x36   : > { %1075 = vmatpush.bf16.msra.mxu3 %v8220_v15  ;;  %v7928_v45 = vor.u32 %v11678_v38, %v7925_v39  ;;  %v11670_v46 = vld [vmem:[%s18197_s1 + $0xc] sm:$0xf]  ;;  %v8157_v6 = vld [vmem:[%s18197_s1 + $0x230] sm:$0xf0]  ;;  %v11691_v15 = vld [vmem:[%s18197_s1 + $0xac] sm:$0xf0] }
  0x37   : > { %1018 = vmatpush.bf16.msrb.mxu0 %v8056_v62  ;;  %985 = vmatpush.bf16.msrb.mxu1 %v7956_v1  ;;  %v7893_v51 = vld [vmem:[%s18197_s1 + $0x28] sm:$0xf0]  ;;  %v11707_v62 = vld [vmem:[%s18197_s1 + $0x12c] sm:$0xf0]  ;;  %v11719_v1 = vld [vmem:[%s18197_s1 + $0x194] sm:$0xf]  ;;  %v8160_v12 = vor.u32 %v11735_v5, %v8157_v6  ;;  %v7964_v21 = vor.u32 %v11691_v15, %v7963_v14 }
  0x38   : > { %1040 = vmatpush.bf16.msrb.mxu2 %v8184_v7  ;;  %v7896_v60 = vor.u32 %v11670_v46, %v7893_v51  ;;  %v8028_v4 = vor.u32 %v11707_v62, %v8027_v61  ;;  %v7995_v7 = vld [vmem:[%s18197_s1 + $0xd0] sm:$0xf]  ;;  %v8096_v9 = vor.u32 %v11719_v1, %v8093_v2  ;;  %v11711_v10 = vld [vmem:[%s18197_s1 + $0x154] sm:$0xf]  ;;  %v11764_v20 = vld [vmem:[%s18197_s1 + $0x2f4] sm:$0xf0] }
  0x39   : > { %v8061_v11 = vld [vmem:[%s18197_s1 + $0x170] sm:$0xf0]  ;;  %v8260_v23 = vor.u32 %v11764_v20, %v8259_v19  ;;  %v11683_v25 = vld [vmem:[%s18197_s1 + $0x6c] sm:$0xf0]  ;;  %v8227_v26 = vld [vmem:[%s18197_s1 + $0x298] sm:$0xf] }
  0x3a   : > { %1076 = vmatpush.bf16.msra.mxu3 %v8188_v27  ;;  %v11703_v17 = vld [vmem:[%s18197_s1 + $0x114] sm:$0xf]  ;;  %v11756_v27 = vld [vmem:[%s18197_s1 + $0x2b4] sm:$0xf0]  ;;  %v11675_v36 = vld [vmem:[%s18197_s1 + $0x2c] sm:$0xf0] }
  0x3b   : > { %1019 = vmatpush.bf16.msrb.mxu0 %v8024_v13  ;;  %986 = vmatpush.bf16.msrb.mxu1 %v7924_v16  ;;  %v7996_v13 = vor.u32 %v11699_v8, %v7995_v7  ;;  %v8064_v16 = vor.u32 %v11711_v10, %v8061_v11  ;;  %v8029_v18 = vld [vmem:[%s18197_s1 + $0x130] sm:$0xf0]  ;;  %v8228_v30 = vor.u32 %v11756_v27, %v8227_v26  ;;  %v11748_v34 = vld [vmem:[%s18197_s1 + $0x274] sm:$0xf0]  ;;  %v11760_v61 = vld [vmem:[%s18197_s1 + $0x2dc] sm:$0xf] }
  0x3c   : > { %1041 = vmatpush.bf16.msrb.mxu2 %v8152_v24  ;;  %v7931_v24 = vld [vmem:[%s18197_s1 + $0x50] sm:$0xf]  ;;  %v7997_v29 = vld [vmem:[%s18197_s1 + $0xf0] sm:$0xf0]  ;;  %v8131_v39 = vld [vmem:[%s18197_s1 + $0x1d8] sm:$0xf] }
  0x3d   : > { %v7932_v33 = vor.u32 %v11683_v25, %v7931_v24  ;;  %v11687_v38 = vld [vmem:[%s18197_s1 + $0x94] sm:$0xf]  ;;  %v8163_v43 = vld [vmem:[%s18197_s1 + $0x218] sm:$0xf]  ;;  %v11728_v62 = vld [vmem:[%s18197_s1 + $0x1dc] sm:$0xf] }
  0x3e   : > { %921 = vmatmul.bf16.gmra.mxu0 %v12902_v31  ;;  %1077 = vmatpush.bf16.msra.mxu3 %v8156_v40  ;;  %v11732_v40 = vld [vmem:[%s18197_s1 + $0x1f4] sm:$0xf0]  ;;  %v11679_v53 = vld [vmem:[%s18197_s1 + $0x54] sm:$0xf]  ;;  %v8261_v1 = vld [vmem:[%s18197_s1 + $0x2f8] sm:$0xf0] }
  0x3f   : > { %1020 = vmatpush.bf16.msrb.mxu0 %v7992_v22  ;;  %987 = vmatpush.bf16.msrb.mxu1 %v7892_v28  ;;  %v8032_v22 = vor.u32 %v11703_v17, %v8029_v18  ;;  %v11695_v28 = vld [vmem:[%s18197_s1 + $0xd4] sm:$0xf]  ;;  %v8132_v47 = vor.u32 %v11732_v40, %v8131_v39  ;;  %v11724_v51 = vld [vmem:[%s18197_s1 + $0x1b4] sm:$0xf0]  ;;  %v11752_v7 = vld [vmem:[%s18197_s1 + $0x29c] sm:$0xf] }
  0x40   : > { %1110 = vmatpush.bf16.msra.mxu2 %v8256_v49  ;;  %v8000_v37 = vor.u32 %v11695_v28, %v7997_v29  ;;  %v8099_v49 = vld [vmem:[%s18197_s1 + $0x198] sm:$0xf]  ;;  %v7933_v54 = vld [vmem:[%s18197_s1 + $0x70] sm:$0xf0]  ;;  %v8229_v8 = vld [vmem:[%s18197_s1 + $0x2b8] sm:$0xf0] }
  0x41   : > { %957 = vmatmul.bf16.gmra.mxu2 %v12902_v31  ;;  %8269 = vmatmul.msk.bf16.vlgmr.msrb.gmra.mxu3 %vm901_vm0, %v12705_v63  ;;  %v8100_v55 = vor.u32 %v11724_v51, %v8099_v49  ;;  %v11716_v58 = vld [vmem:[%s18197_s1 + $0x174] sm:$0xf0]  ;;  %v11671_v59 = vld [vmem:[%s18197_s1 + $0x14] sm:$0xf]  ;;  %v11720_v10 = vld [vmem:[%s18197_s1 + $0x19c] sm:$0xf]  ;;  %v8232_v11 = vor.u32 %v11752_v7, %v8229_v8 }
  0x42   : > { %988 = vmatmul.bf16.vlgmr.msrb.gmra.mxu1 %v12798_v44  ;;  %1146 = vmatpush.bf16.msrb.mxu3 %v8260_v23  ;;  %v11708_v6 = vld [vmem:[%s18197_s1 + $0x134] sm:$0xf0]  ;;  %v8197_v14 = vld [vmem:[%s18197_s1 + $0x278] sm:$0xf0]  ;;  %v8675_v51 = vld [vmem:[%s18197_s1 + $0x540] sm:$0xf] }
  0x43   : > { %1052 = vmatpush.bf16.msra.mxu1 %v8124_v32  ;;  %1021 = vmatpush.bf16.msrb.mxu0 %v7960_v35  ;;  %v8195_v32 = vld [vmem:[%s18197_s1 + $0x258] sm:$0xf]  ;;  %v7899_v35 = vld [vmem:[%s18197_s1 + $0x10] sm:$0xf]  ;;  %v11736_v20 = vld [vmem:[%s18197_s1 + $0x21c] sm:$0xf] }
  0x44   : > { %1111 = vmatpush.bf16.msra.mxu2 %v8224_v56  ;;  %v8196_v41 = vor.u32 %v11748_v34, %v8195_v32  ;;  %v7900_v46 = vor.u32 %v11675_v36, %v7899_v35  ;;  %v7936_v56 = vor.u32 %v11679_v53, %v7933_v54  ;;  %v11700_v17 = vld [vmem:[%s18197_s1 + $0xf4] sm:$0xf0]  ;;  %v11712_v24 = vld [vmem:[%s18197_s1 + $0x15c] sm:$0xf]  ;;  %v8739_v35 = vld [vmem:[%s18197_s1 + $0x5c0] sm:$0xf] }
  0x45   : > { %v8069_v25 = vld [vmem:[%s18197_s1 + $0x178] sm:$0xf0]  ;;  %v7971_v26 = vld [vmem:[%s18197_s1 + $0x98] sm:$0xf]  ;;  %v11859_v36 = vld [vmem:[%s18197_s1 + $0x5dc] sm:$0xf0] }
  0x46   : > { %1147 = vmatpush.bf16.msrb.mxu3 %v8228_v30  ;;  %v8072_v28 = vor.u32 %v11712_v24, %v8069_v25  ;;  %v11704_v30 = vld [vmem:[%s18197_s1 + $0x11c] sm:$0xf]  ;;  %v11684_v34 = vld [vmem:[%s18197_s1 + $0x74] sm:$0xf0]  ;;  %v11843_v53 = vld [vmem:[%s18197_s1 + $0x55c] sm:$0xf0] }
  0x47   : > { %1053 = vmatpush.bf16.msra.mxu1 %v8092_v42  ;;  %1022 = vmatpush.bf16.msrb.mxu0 %v7928_v45  ;;  %v7965_v42 = vld [vmem:[%s18197_s1 + $0xb0] sm:$0xf0]  ;;  %v11740_v45 = vld [vmem:[%s18197_s1 + $0x234] sm:$0xf0]  ;;  %v8037_v32 = vld [vmem:[%s18197_s1 + $0x138] sm:$0xf0] }
  0x48   : > { %1112 = vmatpush.bf16.msra.mxu2 %v8192_v3  ;;  %v7968_v48 = vor.u32 %v11687_v38, %v7965_v42  ;;  %v8164_v52 = vor.u32 %v11740_v45, %v8163_v43  ;;  %v8035_v3 = vld [vmem:[%s18197_s1 + $0x118] sm:$0xf]  ;;  %v8740_v38 = vor.u32 %v11859_v36, %v8739_v35  ;;  %v11696_v40 = vld [vmem:[%s18197_s1 + $0xdc] sm:$0xf]  ;;  %v8707_v42 = vld [vmem:[%s18197_s1 + $0x580] sm:$0xf] }
  0x49   : > { %v8036_v15 = vor.u32 %v11708_v6, %v8035_v3  ;;  %v7907_v43 = vld [vmem:[%s18197_s1 + $0x18] sm:$0xf]  ;;  %v11811_v6 = vld [vmem:[%s18197_s1 + $0x45c] sm:$0xf0]  ;;  %v11672_v8 = vld [vmem:[%s18197_s1 + $0x1c] sm:$0xf] }
  0x4a   : > { %1148 = vmatpush.bf16.msrb.mxu3 %v8196_v41  ;;  %v8005_v41 = vld [vmem:[%s18197_s1 + $0xf8] sm:$0xf0]  ;;  %v11676_v45 = vld [vmem:[%s18197_s1 + $0x34] sm:$0xf0]  ;;  %v8483_v24 = vld [vmem:[%s18197_s1 + $0x3c0] sm:$0xf] }
  0x4b   : > { %1054 = vmatpush.bf16.msra.mxu1 %v8060_v57  ;;  %1023 = vmatpush.bf16.msrb.mxu0 %v7896_v60  ;;  %v8067_v57 = vld [vmem:[%s18197_s1 + $0x158] sm:$0xf]  ;;  %v7901_v60 = vld [vmem:[%s18197_s1 + $0x30] sm:$0xf0]  ;;  %v7908_v54 = vor.u32 %v11676_v45, %v7907_v43  ;;  %v11795_v25 = vld [vmem:[%s18197_s1 + $0x3dc] sm:$0xf0] }
  0x4c   : > { %1113 = vmatpush.bf16.msra.mxu2 %v8160_v12  ;;  %v8068_v2 = vor.u32 %v11716_v58, %v8067_v57  ;;  %v7904_v5 = vor.u32 %v11671_v59, %v7901_v60  ;;  %v8101_v12 = vld [vmem:[%s18197_s1 + $0x1b8] sm:$0xf0]  ;;  %v8579_v58 = vld [vmem:[%s18197_s1 + $0x480] sm:$0xf]  ;;  %v8676_v59 = vor.u32 %v11843_v53, %v8675_v51  ;;  %v8381_v43 = vld [vmem:[%s12689_s26 + $0x8] sm:$0xf0] }
  0x4d   : > { %v8104_v18 = vor.u32 %v11720_v10, %v8101_v12  ;;  %v11819_v60 = vld [vmem:[%s18197_s1 + $0x49c] sm:$0xf0]  ;;  %v8613_v12 = vld [vmem:[%s18197_s1 + $0x4e0] sm:$0xf0]  ;;  %v1222_v45 = vld [vmem:[%s12689_s26 + $0x10] sm:$0x11] }
  0x4e   : > { %1024 = vmatmul.bf16.vlgmr.msrb.gmra.mxu0 %v12798_v44  ;;  %1149 = vmatpush.bf16.msrb.mxu3 %v8164_v52  ;;  %v8008_v52 = vor.u32 %v11696_v40, %v8005_v41  ;;  %v8580_v3 = vor.u32 %v11819_v60, %v8579_v58  ;;  %v8451_v35 = vld [vmem:[%s18197_s1 + $0x380] sm:$0xf]  ;;  %v8517_v40 = vld [vmem:[%s18197_s1 + $0x420] sm:$0xf0]  ;;  %vm1333_vm1 = vsmask.f32 7424 }
  0x4f   : > { %1088 = vmatpush.bf16.msra.mxu0 %v8128_v0  ;;  %1055 = vmatpush.bf16.msra.mxu1 %v8028_v4  ;;  %v8133_v0 = vld [vmem:[%s18197_s1 + $0x1f8] sm:$0xf0]  ;;  %v8264_v4 = vor.u32 %v11760_v61, %v8261_v1  ;;  %v8643_v61 = vld [vmem:[%s18197_s1 + $0x500] sm:$0xf]  ;;  %v8485_v58 = vld [vmem:[%s18197_s1 + $0x3e0] sm:$0xf0] }
  0x50   : > { %v11680_v1 = vld [vmem:[%s18197_s1 + $0x5c] sm:$0xf]  ;;  %v11787_v36 = vld [vmem:[%s18197_s1 + $0x39c] sm:$0xf0]  ;;  %vm3288_vm3 = vcmask 1040384   ;;  %vm3291_vm5 = vcmask 1044484  }
  0x51   : > { %8271 = vmatmul.msk.bf16.vlgmr.msrb.gmra.mxu2 %vm901_vm0, %v12705_v63  ;;  %8270 = vmatmul.msk.bf16.gmra.mxu3 %vm901_vm0, %v12812_v50  ;;  %v8452_v41 = vor.u32 %v11787_v36, %v8451_v35  ;;  %vm3289_vm4 = vsmask.f32 256  ;;  %vm3292_vm6 = vsmask.f32 4352  ;;  %vm4939_vm10 = vmor %vm3288_vm3, %vm3291_vm5  ;;  %vm6656_vm11 = vsmask.f32 6400 }
  0x52   : > { %993 = vmatmul.bf16.gmra.mxu1 %v12902_v31  ;;  %1182 = vmatpush.bf16.msrb.mxu2 %v8264_v4  ;;  %vm14793_vm7 = vmand %vm3288_vm3, %vm3289_vm4  ;;  %vm7230_vm12 = vcmask 1045504   ;;  %s12492_s19 = smul.u32 48, %s18218_s28  ;;  %vm7739_vm13 = vsmask.f32 7938  ;;  %vm7741_vm14 = vsmask.f32 7954 }
  0x53   : > { %1089 = vmatpush.bf16.msra.mxu0 %v8096_v9  ;;  %1056 = vmatpush.bf16.msra.mxu1 %v7996_v13  ;;  %v8136_v9 = vor.u32 %v11728_v62, %v8133_v0  ;;  %v11744_v13 = vld [vmem:[%s18197_s1 + $0x25c] sm:$0xf]  ;;  %v11835_v62 = vld [vmem:[%s18197_s1 + $0x51c] sm:$0xf0]  ;;  %vm14799_vm8 = vmand %vm3291_vm5, %vm3292_vm6 }
  0x54   : > { %v8200_v19 = vor.u32 %v11744_v13, %v8197_v14  ;;  %v8644_v4 = vor.u32 %v11835_v62, %v8643_v61  ;;  %v8515_v13 = vld [vmem:[%s18197_s1 + $0x400] sm:$0xf]  ;;  %v8747_v62 = vld [vmem:[%s18197_s1 + $0x5c8] sm:$0xf]  ;;  %vm14826_vm9 = vmor %vm14799_vm8, %vm14793_vm7  ;;  %s18080_s22 = scalar_lea.vmem %s18204_s8, %s12492_s19  ;;  %vm7750_vm8 = vsmask.f32 4368 }
  0x55   : > { %v11803_v14 = vld [vmem:[%s18197_s1 + $0x41c] sm:$0xf0]  ;;  %vm7740_vm15 = vmand %vm3288_vm3, %vm7739_vm13  ;;  %vm7794_vm3 = vcmask 1047556  }
  0x56   : > { %1183 = vmatpush.bf16.msrb.mxu2 %v8232_v11  ;;  %v11823_v11 = vld [vmem:[%s18197_s1 + $0x4c4] sm:$0xf]  ;;  %v11771_v61 = vld [vmem:[%s18197_s1 + $0x31c] sm:$0xf0]  ;;  %vm18138_vm6 = vmand %vm7794_vm3, %vm7741_vm14 }
  0x57   : > { %1090 = vmatpush.bf16.msra.mxu0 %v8064_v16  ;;  %1057 = vmatpush.bf16.msra.mxu1 %v7964_v21  ;;  %v8003_v16 = vld [vmem:[%s18197_s1 + $0xd8] sm:$0xf]  ;;  %v8165_v21 = vld [vmem:[%s18197_s1 + $0x238] sm:$0xf0] }
  0x58   : > { %v8004_v23 = vor.u32 %v11700_v17, %v8003_v16  ;;  %v8168_v27 = vor.u32 %v11736_v20, %v8165_v21  ;;  %v11855_v16 = vld [vmem:[%s18197_s1 + $0x5c4] sm:$0xf]  ;;  %v8616_v17 = vor.u32 %v11823_v11, %v8613_v12  ;;  %v8715_v11 = vld [vmem:[%s18197_s1 + $0x588] sm:$0xf] }
  0x59   : > { %v11815_v20 = vld [vmem:[%s18197_s1 + $0x484] sm:$0xf]  ;;  %v11852_v12 = vld [vmem:[%s18197_s1 + $0x5a4] sm:$0xf0] }
  0x5a   : > { %1184 = vmatpush.bf16.msrb.mxu2 %v8200_v19  ;;  %v8516_v19 = vor.u32 %v11803_v14, %v8515_v13  ;;  %v8581_v21 = vld [vmem:[%s18197_s1 + $0x4a0] sm:$0xf0] }
  0x5b   : > { %1091 = vmatpush.bf16.msra.mxu0 %v8032_v22  ;;  %1058 = vmatpush.bf16.msra.mxu1 %v7932_v33  ;;  %v11692_v22 = vld [vmem:[%s18197_s1 + $0xb4] sm:$0xf0] }
  0x5c   : > { %v7972_v29 = vor.u32 %v11692_v22, %v7971_v26  ;;  %v7939_v33 = vld [vmem:[%s18197_s1 + $0x58] sm:$0xf]  ;;  %v11847_v26 = vld [vmem:[%s18197_s1 + $0x584] sm:$0xf] }
  0x5d   : > { %v7940_v39 = vor.u32 %v11684_v34, %v7939_v33  ;;  %v8709_v22 = vld [vmem:[%s18197_s1 + $0x5a0] sm:$0xf0] }
  0x5e   : > { %1029 = vmatmul.bf16.gmra.mxu0 %v12902_v31  ;;  %1185 = vmatpush.bf16.msrb.mxu2 %v8168_v27  ;;  %v8584_v27 = vor.u32 %v11815_v20, %v8581_v21  ;;  %v11839_v33 = vld [vmem:[%s18197_s1 + $0x544] sm:$0xf] }
  0x5f   : > { %1092 = vmatpush.bf16.msra.mxu0 %v8000_v37  ;;  %1059 = vmatpush.bf16.msra.mxu1 %v7900_v46  ;;  %v8040_v37 = vor.u32 %v11704_v30, %v8037_v32  ;;  %v11851_v46 = vld [vmem:[%s18197_s1 + $0x59c] sm:$0xf0]  ;;  %v8484_v30 = vor.u32 %v11795_v25, %v8483_v24  ;;  %v8549_v32 = vld [vmem:[%s18197_s1 + $0x460] sm:$0xf0]  ;;  %v8683_v25 = vld [vmem:[%s18197_s1 + $0x548] sm:$0xf] }
  0x60   : > { %v8708_v49 = vor.u32 %v11851_v46, %v8707_v42  ;;  %v8677_v34 = vld [vmem:[%s18197_s1 + $0x560] sm:$0xf0]  ;;  %v8419_v46 = vld [vmem:[%s18197_s1 + $0x340] sm:$0xf] }
  0x61   : > { %8272 = vmatmul.msk.bf16.gmra.mxu2 %vm901_vm0, %v12812_v50  ;;  %8273 = vmatmul.msk.bf16.vlgmr.msra.gmra.mxu3 %vm901_vm0, %v12705_v63  ;;  %v11765_v42 = vld [vmem:[%s12689_s26 + $0x4] sm:$0xf] }
  0x62   : > { %1060 = vmatmul.bf16.vlgmr.msra.gmra.mxu1 %v12798_v44  ;;  %1872 = vmatpush.bf16.msra.mxu3 %v8740_v38  ;;  %v13326_v53 = vor.u32 %v11765_v42, %v8381_v43  ;;  %v8421_v24 = vld [vmem:[%s18197_s1 + $0x360] sm:$0xf0]  ;;  %v8651_v42 = vld [vmem:[%s18197_s1 + $0x508] sm:$0xf] }
  0x63   : > { %1124 = vmatpush.bf16.msrb.mxu1 %v8132_v47  ;;  %1093 = vmatpush.bf16.msra.mxu0 %v7968_v48  ;;  %v8611_v47 = vld [vmem:[%s18197_s1 + $0x4c0] sm:$0xf]  ;;  %v11836_v43 = vld [vmem:[%s18197_s1 + $0x524] sm:$0xf0] }
  0x64   : > { %v11827_v48 = vld [vmem:[%s18197_s1 + $0x4dc] sm:$0xf0] }
  0x65   : > { %v8612_v57 = vor.u32 %v11827_v48, %v8611_v47  ;;  %v11779_v47 = vld [vmem:[%s18197_s1 + $0x35c] sm:$0xf0]  ;;  %v11831_v48 = vld [vmem:[%s18197_s1 + $0x504] sm:$0xf] }
  0x66   : > { %1873 = vmatpush.bf16.msra.mxu3 %v8708_v49  ;;  %v8645_v49 = vld [vmem:[%s18197_s1 + $0x520] sm:$0xf0] }
  0x67   : > { %1125 = vmatpush.bf16.msrb.mxu1 %v8100_v55  ;;  %1094 = vmatpush.bf16.msra.mxu0 %v7936_v56  ;;  %v11688_v55 = vld [vmem:[%s18197_s1 + $0x9c] sm:$0xf]  ;;  %v8648_v60 = vor.u32 %v11831_v48, %v8645_v49  ;;  %v8523_v49 = vld [vmem:[%s18197_s1 + $0x408] sm:$0xf] }
  0x68   : > { %v7973_v56 = vld [vmem:[%s18197_s1 + $0xb8] sm:$0xf0] }
  0x69   : > { %v7976_v0 = vor.u32 %v11688_v55, %v7973_v56  ;;  %v11766_v55 = vld [vmem:[%s12689_s26 + $0x4] sm:$0xf0]  ;;  %v8420_v56 = vor.u32 %v11779_v47, %v8419_v46  ;;  %v8652_v47 = vor.u32 %v11836_v43, %v8651_v42 }
  0x6a   : > { %1874 = vmatpush.bf16.msra.mxu3 %v8676_v59  ;;  %v8387_v59 = vld [vmem:[%s18197_s1 + $0x300] sm:$0xf] }
  0x6b   : > { %1126 = vmatpush.bf16.msrb.mxu1 %v8068_v2  ;;  %1095 = vmatpush.bf16.msra.mxu0 %v7904_v5  ;;  %v7941_v2 = vld [vmem:[%s18197_s1 + $0x78] sm:$0xf0]  ;;  %v8547_v5 = vld [vmem:[%s18197_s1 + $0x440] sm:$0xf] }
  0x6c   : > { %v7944_v7 = vor.u32 %v11680_v1, %v7941_v2  ;;  %v8548_v10 = vor.u32 %v11811_v6, %v8547_v5  ;;  %v1327_v1 = vunpack.c.l.b16 %v1222_v45  ;;  %v1349_v6 = vshll.u32 %v13326_v53, 16 }
  0x6e   : > { %1096 = vmatmul.bf16.vlgmr.msra.gmra.mxu0 %v12798_v44  ;;  %1875 = vmatpush.bf16.msra.mxu3 %v8644_v4  ;;  %v13375_v13 = vpack.c.b16 %v1327_v1, %v1327_v1  ;;  %v8557_v1 = vld [vmem:[%s18197_s1 + $0x468] sm:$0xf0] }
  0x6f   : > { %1160 = vmatpush.bf16.msrb.mxu0 %v8136_v9  ;;  %1127 = vmatpush.bf16.msrb.mxu1 %v8036_v15  ;;  %v7909_v9 = vld [vmem:[%s18197_s1 + $0x38] sm:$0xf0] }
  0x70   : > { %v7912_v15 = vor.u32 %v11672_v8, %v7909_v9  ;;  %v11783_v8 = vld [vmem:[%s18197_s1 + $0x384] sm:$0xf] }
  0x71   : > { %8275 = vmatmul.msk.bf16.vlgmr.msra.gmra.mxu2 %vm901_vm0, %v12705_v63  ;;  %8274 = vmatmul.msk.bf16.gmra.mxu3 %vm901_vm0, %v12812_v50  ;;  %v8453_v9 = vld [vmem:[%s18197_s1 + $0x3a0] sm:$0xf0] }
  0x72   : > { %1065 = vmatmul.bf16.gmra.mxu1 %v12902_v31  ;;  %v8456_v21 = vor.u32 %v11783_v8, %v8453_v9  ;;  %v11800_v9 = vld [vmem:[%s18197_s1 + $0x40c] sm:$0xf] }
  0x73   : > { %1161 = vmatpush.bf16.msrb.mxu0 %v8104_v18  ;;  %1128 = vmatpush.bf16.msrb.mxu1 %v8004_v23  ;;  %v8741_v18 = vld [vmem:[%s18197_s1 + $0x5e0] sm:$0xf0] }
  0x74   : > { %v8744_v23 = vor.u32 %v11855_v16, %v8741_v18  ;;  %v11820_v16 = vld [vmem:[%s18197_s1 + $0x4a4] sm:$0xf0]  ;;  %v1347_v18 = vshrl.u32 %v13326_v53, 16 }
  0x76   : > { %1908 = vmatpush.bf16.msra.mxu2 %v8744_v23  ;;  %v11775_v23 = vld [vmem:[%s18197_s1 + $0x344] sm:$0xf] }
  0x77   : > { %1162 = vmatpush.bf16.msrb.mxu0 %v8072_v28  ;;  %1129 = vmatpush.bf16.msrb.mxu1 %v7972_v29  ;;  %v11807_v28 = vld [vmem:[%s18197_s1 + $0x444] sm:$0xf]  ;;  %v8712_v29 = vor.u32 %v11847_v26, %v8709_v22  ;;  %v11844_v26 = vld [vmem:[%s18197_s1 + $0x564] sm:$0xf0]  ;;  %v8424_v35 = vor.u32 %v11775_v23, %v8421_v24  ;;  %v11832_v23 = vld [vmem:[%s18197_s1 + $0x50c] sm:$0xf] }
  0x78   : > { %v8552_v38 = vor.u32 %v11807_v28, %v8549_v32  ;;  %v8684_v28 = vor.u32 %v11844_v26, %v8683_v25  ;;  %v8555_v32 = vld [vmem:[%s18197_s1 + $0x448] sm:$0xf] }
  0x7a   : > { %1909 = vmatpush.bf16.msra.mxu2 %v8712_v29 }
  0x7b   : > { %1163 = vmatpush.bf16.msrb.mxu0 %v8040_v37  ;;  %1130 = vmatpush.bf16.msrb.mxu1 %v7940_v39  ;;  %v8680_v37 = vor.u32 %v11839_v33, %v8677_v34  ;;  %v11799_v39 = vld [vmem:[%s18197_s1 + $0x404] sm:$0xf]  ;;  %v11812_v33 = vld [vmem:[%s18197_s1 + $0x464] sm:$0xf0] }
  0x7c   : > { %v8520_v51 = vor.u32 %v11799_v39, %v8517_v40  ;;  %v11824_v39 = vld [vmem:[%s18197_s1 + $0x4cc] sm:$0xf]  ;;  %v8556_v40 = vor.u32 %v11812_v33, %v8555_v32  ;;  %v11772_v32 = vld [vmem:[%s18197_s1 + $0x324] sm:$0xf0] }
  0x7e   : > { %1101 = vmatmul.bf16.gmra.mxu0 %v12902_v31  ;;  %1910 = vmatpush.bf16.msra.mxu2 %v8680_v37  ;;  %v11767_v37 = vld [vmem:[%s18197_s1 + $0x304] sm:$0xf] }
  0x7f   : > { %1164 = vmatpush.bf16.msrb.mxu0 %v8008_v52  ;;  %1131 = vmatpush.bf16.msrb.mxu1 %v7908_v54  ;;  %v1328_v52 = vunpack.c.h.b16 %v1222_v45  ;;  %v8379_v54 = vld [vmem:[%s12689_s26] sm:$0xf] }
  0x80   : > { %v8380_v2 = vor.u32 %v11766_v55, %v8379_v54  ;;  %v11816_v54 = vld [vmem:[%s18197_s1 + $0x48c] sm:$0xf] }
  0x81   : > { %8276 = vmatmul.msk.bf16.gmra.mxu2 %vm901_vm0, %v12812_v50  ;;  %8277 = vmatmul.msk.bf16.vlgmr.msrb.gmra.mxu3 %vm901_vm0, %v12705_v63  ;;  %v13359_v5 = vpack.c.b16 %v1328_v52, %v1328_v52  ;;  %v8589_v55 = vld [vmem:[%s18197_s1 + $0x4a8] sm:$0xf0] }
  0x82   : > { %1132 = vmatmul.bf16.vlgmr.msrb.gmra.mxu1 %v12798_v44  ;;  %1911 = vmatpush.bf16.msra.mxu2 %v8648_v60  ;;  %v1337_v14 = vshll.u32 %v8380_v2, 16  ;;  %v1335_v22 = vshrl.u32 %v8380_v2, 16  ;;  %v8491_v60 = vld [vmem:[%s18197_s1 + $0x3c8] sm:$0xf]  ;;  %v11848_v2 = vld [vmem:[%s18197_s1 + $0x58c] sm:$0xf] }
  0x83   : > { %1850 = vmatpush.bf16.msra.mxu1 %v8612_v57  ;;  %1165 = vmatpush.bf16.msrb.mxu0 %v7976_v0  ;;  %v11791_v57 = vld [vmem:[%s18197_s1 + $0x3c4] sm:$0xf]  ;;  %v11860_v0 = vld [vmem:[%s18197_s1 + $0x5e4] sm:$0xf0]  ;;  %v1354_v20 = vshll.u32 %v13359_v5, 16 }
  0x84   : > { %v8748_v4 = vor.u32 %v11860_v0, %v8747_v62  ;;  %v1339_v29 = vrot.slane %v1337_v14, 1  ;;  %v8592_v62 = vor.u32 %v11816_v54, %v8589_v55  ;;  %v11808_v0 = vld [vmem:[%s18197_s1 + $0x44c] sm:$0xf] }
  0x85   : > { %v1356_v34 = vrot.slane %v1354_v20, 1  ;;  %v8560_v8 = vor.u32 %v11808_v0, %v8557_v1  ;;  %v11792_v20 = vld [vmem:[%s18197_s1 + $0x3cc] sm:$0xf]  ;;  %v8691_v1 = vld [vmem:[%s18197_s1 + $0x550] sm:$0xf] }
  0x86   : > { %1944 = vmatpush.bf16.msrb.mxu3 %v8748_v4  ;;  %v1340_v45 = vor.u32 %v1339_v29, %v1335_v22  ;;  %v8717_v4 = vld [vmem:[%s18197_s1 + $0x5a8] sm:$0xf0] }
  0x87   : > { %1851 = vmatpush.bf16.msra.mxu1 %v8580_v3  ;;  %1166 = vmatpush.bf16.msrb.mxu0 %v7944_v7  ;;  %v11828_v3 = vld [vmem:[%s18197_s1 + $0x4e4] sm:$0xf0]  ;;  %v8388_v7 = vor.u32 %v11771_v61, %v8387_v59  ;;  %v8749_v59 = vld [vmem:[%s18197_s1 + $0x5e8] sm:$0xf0] }
  0x88   : > { %v8653_v22 = vld [vmem:[%s18197_s1 + $0x528] sm:$0xf0] }
  0x89   : > { %v8656_v33 = vor.u32 %v11832_v23, %v8653_v22  ;;  %v8397_v0 = vld [vmem:[%s18197_s1 + $0x328] sm:$0xf0]  ;;  %v8597_v23 = vld [vmem:[%s18197_s1 + $0x4b0] sm:$0xf0] }
  0x8b   : > { %1852 = vmatpush.bf16.msra.mxu1 %v8548_v10  ;;  %1167 = vmatpush.bf16.msrb.mxu0 %v7912_v15  ;;  %v8587_v15 = vld [vmem:[%s18197_s1 + $0x488] sm:$0xf] }
  0x8e   : > { %1168 = vmatmul.bf16.vlgmr.msrb.gmra.mxu0 %v12798_v44  ;;  %v8619_v44 = vld [vmem:[%s18197_s1 + $0x4c8] sm:$0xf] }
  0x8f   : > { %1886 = vmatpush.bf16.msra.mxu0 %v8616_v17  ;;  %1853 = vmatpush.bf16.msra.mxu1 %v8516_v19  ;;  %v8620_v10 = vor.u32 %v11828_v3, %v8619_v44  ;;  %v8716_v17 = vor.u32 %v11852_v12, %v8715_v11  ;;  %v1351_v19 = vrot.slane %v1349_v6, 1  ;;  %v8459_v6 = vld [vmem:[%s18197_s1 + $0x388] sm:$0xf]  ;;  %v11840_v11 = vld [vmem:[%s18197_s1 + $0x54c] sm:$0xf] }
  0x91   : > { %8279 = vmatmul.msk.bf16.vlgmr.msrb.gmra.mxu2 %vm901_vm0, %v12705_v63  ;;  %8278 = vmatmul.msk.bf16.gmra.mxu3 %vm901_vm0, %v12812_v50  ;;  %v8488_v63 = vor.u32 %v11791_v57, %v8485_v58  ;;  %v1352_v36 = vor.u32 %v1351_v19, %v1347_v18 }
  0x92   : > { %1137 = vmatmul.bf16.gmra.mxu1 %v12902_v31  ;;  %1945 = vmatpush.bf16.msrb.mxu3 %v8716_v17  ;;  %v11780_v17 = vld [vmem:[%s18197_s1 + $0x364] sm:$0xf0] }
  0x93   : > { %1887 = vmatpush.bf16.msra.mxu0 %v8584_v27  ;;  %1854 = vmatpush.bf16.msra.mxu1 %v8484_v30  ;;  %v8588_v27 = vor.u32 %v11820_v16, %v8587_v15  ;;  %v1342_v30 = vshll.u32 %v13375_v13, 16  ;;  %v13429_v52 = vsel %vm1333_vm1, %v1352_v36, %v1356_v34  ;;  %v8685_v15 = vld [vmem:[%s18197_s1 + $0x568] sm:$0xf0]  ;;  %v8427_v16 = vld [vmem:[%s18197_s1 + $0x348] sm:$0xf] }
  0x94   : > { %v8688_v18 = vor.u32 %v11840_v11, %v8685_v15  ;;  %v8428_v26 = vor.u32 %v11780_v17, %v8427_v16  ;;  %v8461_v36 = vld [vmem:[%s18197_s1 + $0x3a8] sm:$0xf0]  ;;  %v8659_v11 = vld [vmem:[%s18197_s1 + $0x510] sm:$0xf] }
  0x95   : > { %v1344_v46 = vrot.slane %v1342_v30, 1  ;;  %v8395_v30 = vld [vmem:[%s18197_s1 + $0x308] sm:$0xf] }
  0x96   : > { %1946 = vmatpush.bf16.msrb.mxu3 %v8684_v28  ;;  %v13514_v28 = vshrl.u32 %v13375_v13, 16  ;;  %v8627_v13 = vld [vmem:[%s18197_s1 + $0x4d0] sm:$0xf] }
  0x97   : > { %1888 = vmatpush.bf16.msra.mxu0 %v8552_v38  ;;  %1855 = vmatpush.bf16.msra.mxu1 %v8452_v41  ;;  %v8389_v38 = vld [vmem:[%s18197_s1 + $0x320] sm:$0xf0]  ;;  %v8621_v41 = vld [vmem:[%s18197_s1 + $0x4e8] sm:$0xf0]  ;;  %v13444_v58 = vsel %vm1333_vm1, %v1340_v45, %v1344_v46  ;;  %v8595_v46 = vld [vmem:[%s18197_s1 + $0x490] sm:$0xf] }
  0x98   : > { %v8392_v48 = vor.u32 %v11767_v37, %v8389_v38  ;;  %v8624_v53 = vor.u32 %v11824_v39, %v8621_v41  ;;  %v8755_v37 = vld [vmem:[%s18197_s1 + $0x5d0] sm:$0xf]  ;;  %v11776_v45 = vld [vmem:[%s18197_s1 + $0x34c] sm:$0xf] }
  0x99   : > { %v11861_v38 = vld [vmem:[%s18197_s1 + $0x5ec] sm:$0xf0] }
  0x9a   : > { %1947 = vmatpush.bf16.msrb.mxu3 %v8652_v47  ;;  %v8756_v41 = vor.u32 %v11861_v38, %v8755_v37  ;;  %v11821_v47 = vld [vmem:[%s18197_s1 + $0x4ac] sm:$0xf0]  ;;  %v11849_v38 = vld [vmem:[%s18197_s1 + $0x594] sm:$0xf] }
  0x9b   : > { %1889 = vmatpush.bf16.msra.mxu0 %v8520_v51  ;;  %1856 = vmatpush.bf16.msra.mxu1 %v8420_v56  ;;  %v11804_v51 = vld [vmem:[%s18197_s1 + $0x424] sm:$0xf0]  ;;  %v11856_v56 = vld [vmem:[%s18197_s1 + $0x5cc] sm:$0xf] }
  0x9c   : > { %v8752_v61 = vor.u32 %v11856_v56, %v8749_v59  ;;  %v8596_v59 = vor.u32 %v11821_v47, %v8595_v46  ;;  %v11801_v47 = vld [vmem:[%s18197_s1 + $0x414] sm:$0xf] }
  0x9e   : > { %1173 = vmatmul.bf16.gmra.mxu0 %v12902_v31  ;;  %v8524_v31 = vor.u32 %v11804_v51, %v8523_v49  ;;  %1980 = vmatpush.bf16.msrb.mxu2 %v8752_v61  ;;  %v8429_v49 = vld [vmem:[%s18197_s1 + $0x368] sm:$0xf0]  ;;  %v8723_v51 = vld [vmem:[%s18197_s1 + $0x590] sm:$0xf] }
  0x9f   : > { %1890 = vmatpush.bf16.msra.mxu0 %v8488_v63  ;;  %1857 = vmatpush.bf16.msra.mxu1 %v8388_v7  ;;  %v935_v57 = vpop.f32.mrf.mxu1  ;;  %v11788_v63 = vld [vmem:[%s18197_s1 + $0x3a4] sm:$0xf0]  ;;  %v8720_v7 = vor.u32 %v11848_v2, %v8717_v4  ;;  %v8563_v61 = vld [vmem:[%s18197_s1 + $0x450] sm:$0xf] }
  0xa0   : > { %v8460_v14 = vor.u32 %v11788_v63, %v8459_v6  ;;  %v11845_v2 = vld [vmem:[%s18197_s1 + $0x56c] sm:$0xf0]  ;;  %v11825_v6 = vld [vmem:[%s18197_s1 + $0x4d4] sm:$0xf] }
  0xa1   : > { %8280 = vmatmul.msk.bf16.gmra.mxu2 %vm901_vm0, %v12812_v50  ;;  %8769 = vmatmul.msk.bf16.vlgmr.msra.gmra.mxu3 %vm901_vm0, %v13429_v52  ;;  %v11796_v50 = vld [vmem:[%s18197_s1 + $0x3e4] sm:$0xf0]  ;;  %v8629_v63 = vld [vmem:[%s18197_s1 + $0x4f0] sm:$0xf0] }
  0xa2   : > { %1858 = vmatmul.bf16.vlgmr.msra.gmra.mxu1 %v13444_v58  ;;  %v8492_v3 = vor.u32 %v11796_v50, %v8491_v60  ;;  %1981 = vmatpush.bf16.msrb.mxu2 %v8720_v7  ;;  %v11768_v60 = vld [vmem:[%s18197_s1 + $0x30c] sm:$0xf]  ;;  %v8432_v50 = vor.u32 %v11776_v45, %v8429_v49  ;;  %v8632_v17 = vor.u32 %v11825_v6, %v8629_v63 }
  0xa3   : > { %1922 = vmatpush.bf16.msrb.mxu1 %v8620_v10  ;;  %1891 = vmatpush.bf16.msra.mxu0 %v8456_v21  ;;  %v8525_v10 = vld [vmem:[%s18197_s1 + $0x428] sm:$0xf0]  ;;  %v8400_v7 = vor.u32 %v11768_v60, %v8397_v0  ;;  %v11793_v60 = vld [vmem:[%s18197_s1 + $0x3d4] sm:$0xf]  ;;  %v11773_v0 = vld [vmem:[%s18197_s1 + $0x32c] sm:$0xf0] }
  0xa4   : > { %v13467_v44 = vpop.f32.mrf.mxu3  ;;  %v8528_v19 = vor.u32 %v11800_v9, %v8525_v10  ;;  %v8493_v21 = vld [vmem:[%s18197_s1 + $0x3e8] sm:$0xf0]  ;;  %2016 = vmatpush.bf16.msra.mxu3 %v8756_v41  ;;  %v11805_v9 = vld [vmem:[%s18197_s1 + $0x42c] sm:$0xf0] }
  0xa5   : > { %v8496_v34 = vor.u32 %v11792_v20, %v8493_v21  ;;  %v11817_v21 = vld [vmem:[%s18197_s1 + $0x494] sm:$0xf] }
  0xa6   : > { %1982 = vmatpush.bf16.msrb.mxu2 %v8688_v18  ;;  %v8600_v22 = vor.u32 %v11817_v21, %v8597_v23  ;;  %v11777_v23 = vld [vmem:[%s18197_s1 + $0x354] sm:$0xf] }
  0xa7   : > { %1923 = vmatpush.bf16.msrb.mxu1 %v8588_v27  ;;  %1892 = vmatpush.bf16.msra.mxu0 %v8424_v35  ;;  %v937_v12 = vpop.f32.mrf.mxu1  ;;  %v13511_v27 = vshrl.u32 %v13359_v5, 16  ;;  %v11784_v5 = vld [vmem:[%s18197_s1 + $0x38c] sm:$0xf]  ;;  %v11829_v35 = vld [vmem:[%s18197_s1 + $0x4ec] sm:$0xf0] }
  0xa8   : > { %v8628_v42 = vor.u32 %v11829_v35, %v8627_v13  ;;  %v8464_v43 = vor.u32 %v11784_v5, %v8461_v36  ;;  %v8565_v5 = vld [vmem:[%s18197_s1 + $0x470] sm:$0xf0]  ;;  %v8467_v35 = vld [vmem:[%s18197_s1 + $0x390] sm:$0xf] }
  0xa9   : > { %v11789_v36 = vld [vmem:[%s18197_s1 + $0x3ac] sm:$0xf0] }
  0xaa   : > { %1983 = vmatpush.bf16.msrb.mxu2 %v8656_v33  ;;  %v8468_v46 = vor.u32 %v11789_v36, %v8467_v35  ;;  %v11769_v36 = vld [vmem:[%s18197_s1 + $0x314] sm:$0xf] }
  0xab   : > { %1924 = vmatpush.bf16.msrb.mxu1 %v8556_v40  ;;  %1893 = vmatpush.bf16.msra.mxu0 %v8392_v48  ;;  %v917_v25 = vpop.f32.mrf.mxu0  ;;  %v8396_v40 = vor.u32 %v11772_v32, %v8395_v30  ;;  %v11857_v30 = vld [vmem:[%s18197_s1 + $0x5d4] sm:$0xf] }
  0xac   : > { %v13505_v24 = vpop.f32.mrf.mxu3  ;;  %v13516_v29 = vadd.f32 %v935_v57, %v917_v25  ;;  %v11797_v25 = vld [vmem:[%s18197_s1 + $0x3ec] sm:$0xf0]  ;;  %v8757_v32 = vld [vmem:[%s18197_s1 + $0x5f0] sm:$0xf0] }
  0xad   : > { %v8760_v13 = vor.u32 %v11857_v30, %v8757_v32  ;;  %v11814_v30 = vld [vmem:[%s18197_s1 + $0x474] sm:$0xf0] }
  0xae   : > { %1894 = vmatmul.bf16.vlgmr.msra.gmra.mxu0 %v13444_v58  ;;  %v8731_v32 = vld [vmem:[%s18197_s1 + $0x598] sm:$0xf] }
  0xaf   : > { %1958 = vmatpush.bf16.msrb.mxu0 %v8624_v53  ;;  %1925 = vmatpush.bf16.msrb.mxu1 %v8524_v31  ;;  %v940_v39 = vpop.f32.mrf.mxu1  ;;  %v11853_v53 = vld [vmem:[%s18197_s1 + $0x5ac] sm:$0xf0] }
  0xb0   : > { %v8724_v57 = vor.u32 %v11853_v53, %v8723_v51  ;;  %v8435_v51 = vld [vmem:[%s18197_s1 + $0x350] sm:$0xf] }
  0xb1   : > { %8771 = vmatmul.msk.bf16.vlgmr.msra.gmra.mxu2 %vm901_vm0, %v13429_v52  ;;  %8770 = vmatmul.msk.bf16.gmra.mxu3 %vm901_vm0, %v13511_v27  ;;  %v11781_v53 = vld [vmem:[%s18197_s1 + $0x36c] sm:$0xf0] }
  0xb2   : > { %1863 = vmatmul.bf16.gmra.mxu1 %v13514_v28  ;;  %2017 = vmatpush.bf16.msra.mxu3 %v8724_v57  ;;  %v8693_v57 = vld [vmem:[%s18197_s1 + $0x570] sm:$0xf0] }
  0xb3   : > { %1959 = vmatpush.bf16.msrb.mxu0 %v8592_v62  ;;  %1926 = vmatpush.bf16.msrb.mxu1 %v8492_v3  ;;  %v919_v56 = vpop.f32.mrf.mxu0  ;;  %v11813_v62 = vld [vmem:[%s18197_s1 + $0x46c] sm:$0xf0]  ;;  %v8692_v3 = vor.u32 %v11845_v2, %v8691_v1  ;;  %v8635_v2 = vld [vmem:[%s18197_s1 + $0x4d8] sm:$0xf] }
  0xb4   : > { %v953_v48 = vpop.f32.mrf.mxu2  ;;  %v13567_v55 = vpop.f32.mrf.mxu3  ;;  %v13569_v31 = vadd.f32 %v937_v12, %v919_v56  ;;  %v8564_v4 = vor.u32 %v11813_v62, %v8563_v61  ;;  %v11837_v12 = vld [vmem:[%s18197_s1 + $0x52c] sm:$0xf0]  ;;  %2052 = vmatpush.bf16.msra.mxu2 %v8760_v13  ;;  %v11841_v56 = vld [vmem:[%s18197_s1 + $0x554] sm:$0xf] }
  0xb5   : > { %v972_v54 = vadd.f32 %v13467_v44, %v953_v48  ;;  %v8660_v18 = vor.u32 %v11837_v12, %v8659_v11  ;;  %v8533_v48 = vld [vmem:[%s18197_s1 + $0x430] sm:$0xf0]  ;;  %v8696_v61 = vor.u32 %v11841_v56, %v8693_v57  ;;  %v8403_v62 = vld [vmem:[%s18197_s1 + $0x310] sm:$0xf]  ;;  %v8605_v56 = vld [vmem:[%s18197_s1 + $0x4b8] sm:$0xf0] }
  0xb6   : > { %2018 = vmatpush.bf16.msra.mxu3 %v8692_v3  ;;  %v11833_v3 = vld [vmem:[%s18197_s1 + $0x514] sm:$0xf]  ;;  %v8507_v57 = vld [vmem:[%s18197_s1 + $0x3d8] sm:$0xf] }
  0xb7   : > { %1960 = vmatpush.bf16.msrb.mxu0 %v8560_v8  ;;  %1927 = vmatpush.bf16.msrb.mxu1 %v8460_v14  ;;  %1197 = vst [vmem:[#allocation2] sm:$0xff] %v972_v54  ;;  %v942_v44 = vpop.f32.mrf.mxu1  ;;  %v8531_v8 = vld [vmem:[%s18197_s1 + $0x410] sm:$0xf]  ;;  %v8469_v11 = vld [vmem:[%s18197_s1 + $0x3b0] sm:$0xf0] }
  0xb8   : > { %v8532_v20 = vor.u32 %v11805_v9, %v8531_v8  ;;  %v11830_v44 = vld [vmem:[%s18197_s1 + $0x4f4] sm:$0xf0]  ;;  %v8404_v9 = vor.u32 %v11773_v0, %v8403_v62 }
  0xba   : > { %2019 = vmatpush.bf16.msra.mxu3 %v8660_v18  ;;  %v11862_v18 = vld [vmem:[%s18197_s1 + $0x5f4] sm:$0xf0] }
  0xbb   : > { %1961 = vmatpush.bf16.msrb.mxu0 %v8528_v19  ;;  %1928 = vmatpush.bf16.msrb.mxu1 %v8428_v26  ;;  %v922_v16 = vpop.f32.mrf.mxu0 }
  0xbc   : > { %v955_v10 = vpop.f32.mrf.mxu2  ;;  %v978_v15 = vpop.f32.mrf.mxu3  ;;  %v941_v19 = vadd.f32 %v940_v39, %v922_v16  ;;  %v11822_v16 = vld [vmem:[%s18197_s1 + $0x4b4] sm:$0xf0] }
  0xbd   : > { %v974_v14 = vadd.f32 %v13505_v24, %v955_v10  ;;  %v8499_v24 = vld [vmem:[%s18197_s1 + $0x3d0] sm:$0xf]  ;;  %v11785_v10 = vld [vmem:[%s18197_s1 + $0x394] sm:$0xf]  ;;  %v8603_v15 = vld [vmem:[%s18197_s1 + $0x498] sm:$0xf] }
  0xbe   : > { %1212 = vst [vmem:[#allocation2 + $0xa8] sm:$0x1] %v941_v19  ;;  %1899 = vmatmul.bf16.gmra.mxu0 %v13514_v28  ;;  %v8500_v33 = vor.u32 %v11797_v25, %v8499_v24  ;;  %v8437_v24 = vld [vmem:[%s18197_s1 + $0x370] sm:$0xf0]  ;;  %v8604_v25 = vor.u32 %v11822_v16, %v8603_v15  ;;  %v11802_v15 = vld [vmem:[%s18197_s1 + $0x41c] sm:$0xf] }
  0xbf   : > { %1962 = vmatpush.bf16.msrb.mxu0 %v8496_v34  ;;  %1929 = vmatpush.bf16.msrb.mxu1 %v8396_v40  ;;  %1205 = vst [vmem:[#allocation2 + $0x90] sm:$0xff] %v974_v14  ;;  %v989_v26 = vpop.f32.mrf.mxu1  ;;  %v11809_v34 = vld [vmem:[%s18197_s1 + $0x454] sm:$0xf]  ;;  %v8636_v14 = vor.u32 %v11830_v44, %v8635_v2  ;;  %v8440_v35 = vor.u32 %v11777_v23, %v8437_v24  ;;  %v8541_v16 = vld [vmem:[%s18197_s1 + $0x438] sm:$0xf0] }
  0xc1   : > { %8772 = vmatmul.msk.bf16.gmra.mxu2 %vm901_vm0, %v13511_v27  ;;  %8773 = vmatmul.msk.bf16.vlgmr.msrb.gmra.mxu3 %vm901_vm0, %v13429_v52 }
  0xc2   : > { %1930 = vmatmul.bf16.vlgmr.msrb.gmra.mxu1 %v13444_v58 }
  0xc3   : > { %1994 = vmatpush.bf16.msra.mxu1 %v8628_v42  ;;  %1963 = vmatpush.bf16.msrb.mxu0 %v8464_v43  ;;  %v924_v41 = vpop.f32.mrf.mxu0  ;;  %v8568_v42 = vor.u32 %v11809_v34, %v8565_v5  ;;  %v8725_v43 = vld [vmem:[%s18197_s1 + $0x5b0] sm:$0xf0] }
  0xc4   : > { %v958_v37 = vpop.f32.mrf.mxu2  ;;  %v1007_v40 = vpop.f32.mrf.mxu3  ;;  %v8728_v49 = vor.u32 %v11849_v38, %v8725_v43  ;;  %v8637_v41 = vld [vmem:[%s18197_s1 + $0x4f8] sm:$0xf0]  ;;  %v8539_v43 = vld [vmem:[%s18197_s1 + $0x418] sm:$0xf] }
  0xc5   : > { %v977_v39 = vadd.f32 %v13567_v55, %v958_v37  ;;  %v1008_v45 = vadd.f32 %v1007_v40, %v989_v26  ;;  %v8536_v55 = vor.u32 %v11801_v47, %v8533_v48  ;;  %v8571_v26 = vld [vmem:[%s18197_s1 + $0x458] sm:$0xf]  ;;  %v11826_v40 = vld [vmem:[%s18197_s1 + $0x4dc] sm:$0xf] }
  0xc6   : > { %2053 = vmatpush.bf16.msra.mxu2 %v8728_v49  ;;  %v11846_v47 = vld [vmem:[%s18197_s1 + $0x574] sm:$0xf0] }
  0xc7   : > { %1995 = vmatpush.bf16.msra.mxu1 %v8596_v59  ;;  %1964 = vmatpush.bf16.msrb.mxu0 %v8432_v50  ;;  %1213 = vst [vmem:[#allocation2 + $0x68] sm:$0x1] %v977_v39  ;;  %v991_v54 = vpop.f32.mrf.mxu1  ;;  %v8436_v59 = vor.u32 %v11781_v53, %v8435_v51  ;;  %v8501_v50 = vld [vmem:[%s18197_s1 + $0x3f0] sm:$0xf0]  ;;  %v8640_v53 = vor.u32 %v11826_v40, %v8637_v41 }
  0xc8   : > { %1198 = vst [vmem:[#allocation2 + $0x10] sm:$0xff] %v1008_v45  ;;  %v8504_v63 = vor.u32 %v11793_v60, %v8501_v50  ;;  %v8405_v39 = vld [vmem:[%s18197_s1 + $0x330] sm:$0xf0]  ;;  %v11806_v45 = vld [vmem:[%s18197_s1 + $0x434] sm:$0xf0] }
  0xc9   : > { %v8408_v49 = vor.u32 %v11769_v36, %v8405_v39  ;;  %v11798_v60 = vld [vmem:[%s18197_s1 + $0x3f4] sm:$0xf0]  ;;  %v8701_v39 = vld [vmem:[%s18197_s1 + $0x578] sm:$0xf0] }
  0xca   : > { %2054 = vmatpush.bf16.msra.mxu2 %v8696_v61  ;;  %v8667_v50 = vld [vmem:[%s18197_s1 + $0x518] sm:$0xf] }
  0xcb   : > { %1996 = vmatpush.bf16.msra.mxu1 %v8564_v4  ;;  %1965 = vmatpush.bf16.msrb.mxu0 %v8400_v7  ;;  %v1025_v6 = vpop.f32.mrf.mxu0  ;;  %v8661_v7 = vld [vmem:[%s18197_s1 + $0x530] sm:$0xf0]  ;;  %v11838_v61 = vld [vmem:[%s18197_s1 + $0x534] sm:$0xf0] }
  0xcc   : > { %v960_v1 = vpop.f32.mrf.mxu2  ;;  %v1009_v4 = vpop.f32.mrf.mxu3  ;;  %v8664_v12 = vor.u32 %v11833_v3, %v8661_v7  ;;  %v8668_v2 = vor.u32 %v11838_v61, %v8667_v50  ;;  %v8508_v3 = vor.u32 %v11798_v60, %v8507_v57  ;;  %v11790_v7 = vld [vmem:[%s18197_s1 + $0x3b4] sm:$0xf0]  ;;  %v11917_v57 = vld [vmem:[%s18197_s1 + $0x79c] sm:$0xf0]  ;;  %v8445_v60 = vld [vmem:[%s18197_s1 + $0x378] sm:$0xf0] }
  0xcd   : > { %v1010_v8 = vadd.f32 %v1009_v4, %v991_v54  ;;  %v8540_v54 = vor.u32 %v11806_v45, %v8539_v43  ;;  %v11810_v4 = vld [vmem:[%s18197_s1 + $0x45c] sm:$0xf]  ;;  %v9243_v61 = vld [vmem:[%s18197_s1 + $0x8c0] sm:$0xf] }
  0xce   : > { %1966 = vmatmul.bf16.vlgmr.msrb.gmra.mxu0 %v13444_v58  ;;  %2055 = vmatpush.bf16.msra.mxu2 %v8664_v12  ;;  %v11786_v43 = vld [vmem:[%s18197_s1 + $0x39c] sm:$0xf] }
  0xcf   : > { %2030 = vmatpush.bf16.msra.mxu0 %v8632_v17  ;;  %1997 = vmatpush.bf16.msra.mxu1 %v8532_v20  ;;  %1206 = vst [vmem:[#allocation2 + $0x18] sm:$0xff] %v1010_v8  ;;  %v8763_v17 = vld [vmem:[%s18197_s1 + $0x5d8] sm:$0xf]  ;;  %v994_v19 = vpop.f32.mrf.mxu1  ;;  %v8472_v20 = vor.u32 %v11785_v10, %v8469_v11  ;;  %v11858_v8 = vld [vmem:[%s18197_s1 + $0x5dc] sm:$0xf] }
  0xd0   : > { %v8764_v21 = vor.u32 %v11862_v18, %v8763_v17  ;;  %v8765_v10 = vld [vmem:[%s18197_s1 + $0x5f8] sm:$0xf0]  ;;  %v8443_v18 = vld [vmem:[%s18197_s1 + $0x358] sm:$0xf] }
  0xd1   : > { %8775 = vmatmul.msk.bf16.vlgmr.msrb.gmra.mxu2 %vm901_vm0, %v13429_v52  ;;  %8774 = vmatmul.msk.bf16.gmra.mxu3 %vm901_vm0, %v13511_v27  ;;  %v8768_v12 = vor.u32 %v11858_v8, %v8765_v10  ;;  %v8477_v45 = vld [vmem:[%s18197_s1 + $0x3b8] sm:$0xf0]  ;;  %v9211_v10 = vld [vmem:[%s18197_s1 + $0x880] sm:$0xf] }
  0xd2   : > { %2088 = vmatpush.bf16.msrb.mxu3 %v8764_v21  ;;  %1935 = vmatmul.bf16.gmra.mxu1 %v13514_v28 }
  0xd3   : > { %2031 = vmatpush.bf16.msra.mxu0 %v8600_v22  ;;  %1998 = vmatpush.bf16.msra.mxu1 %v8500_v33  ;;  %v11854_v33 = vld [vmem:[%s18197_s1 + $0x5b4] sm:$0xf0]  ;;  %v1027_v13 = vpop.f32.mrf.mxu0 }
  0xd4   : > { %v1043_v22 = vpop.f32.mrf.mxu2  ;;  %v1012_v34 = vpop.f32.mrf.mxu3  ;;  %v8732_v37 = vor.u32 %v11854_v33, %v8731_v32  ;;  %2124 = vmatpush.bf16.msrb.mxu2 %v8768_v12 }
  0xd5   : > { %v1044_v5 = vadd.f32 %v1043_v22, %v1025_v6  ;;  %v1013_v38 = vadd.f32 %v1012_v34, %v994_v19  ;;  %v8573_v6 = vld [vmem:[%s18197_s1 + $0x478] sm:$0xf0]  ;;  %v11782_v19 = vld [vmem:[%s18197_s1 + $0x374] sm:$0xf0]  ;;  %v8544_v22 = vor.u32 %v11802_v15, %v8541_v16 }
  0xd6   : > { %2089 = vmatpush.bf16.msrb.mxu3 %v8732_v37  ;;  %v8576_v11 = vor.u32 %v11810_v4, %v8573_v6  ;;  %v8444_v33 = vor.u32 %v11782_v19, %v8443_v18  ;;  %v8509_v34 = vld [vmem:[%s18197_s1 + $0x3f8] sm:$0xf0]  ;;  %v11925_v37 = vld [vmem:[%s18197_s1 + $0x7dc] sm:$0xf0] }
  0xd7   : > { %2032 = vmatpush.bf16.msra.mxu0 %v8568_v42  ;;  %1999 = vmatpush.bf16.msra.mxu1 %v8468_v46  ;;  %1199 = vst [vmem:[#allocation2 + $0x48] sm:$0xff] %v1044_v5  ;;  %v8572_v42 = vor.u32 %v11814_v30, %v8571_v26  ;;  %v8699_v46 = vld [vmem:[%s18197_s1 + $0x558] sm:$0xf]  ;;  %v996_v48 = vpop.f32.mrf.mxu1  ;;  %v11794_v30 = vld [vmem:[%s18197_s1 + $0x3dc] sm:$0xf] }
  0xd8   : > { %1214 = vst [vmem:[#allocation2 + $0x30] sm:$0x1] %v1013_v38  ;;  %v8700_v51 = vor.u32 %v11846_v47, %v8699_v46  ;;  %v8411_v5 = vld [vmem:[%s18197_s1 + $0x318] sm:$0xf]  ;;  %v11842_v38 = vld [vmem:[%s18197_s1 + $0x55c] sm:$0xf]  ;;  %v8512_v40 = vor.u32 %v11794_v30, %v8509_v34 }
  0xd9   : > { %v8704_v41 = vor.u32 %v11842_v38, %v8701_v39  ;;  %v11834_v48 = vld [vmem:[%s18197_s1 + $0x51c] sm:$0xf]  ;;  %v11909_v4 = vld [vmem:[%s18197_s1 + $0x75c] sm:$0xf0] }
  0xda   : > { %2090 = vmatpush.bf16.msrb.mxu3 %v8700_v51  ;;  %v11770_v6 = vld [vmem:[%s18197_s1 + $0x31c] sm:$0xf]  ;;  %v8987_v34 = vld [vmem:[%s18197_s1 + $0x6c0] sm:$0xf] }
  0xdb   : > { %2033 = vmatpush.bf16.msra.mxu0 %v8536_v55  ;;  %2000 = vmatpush.bf16.msra.mxu1 %v8436_v59  ;;  %v11818_v55 = vld [vmem:[%s18197_s1 + $0x49c] sm:$0xf]  ;;  %v1030_v1 = vpop.f32.mrf.mxu0  ;;  %v9147_v38 = vld [vmem:[%s18197_s1 + $0x800] sm:$0xf] }
  0xdc   : > { %v1045_v59 = vpop.f32.mrf.mxu2  ;;  %v1014_v62 = vpop.f32.mrf.mxu3  ;;  %v8608_v44 = vor.u32 %v11818_v55, %v8605_v56  ;;  %v8480_v55 = vor.u32 %v11786_v43, %v8477_v45  ;;  %v9083_v56 = vld [vmem:[%s18197_s1 + $0x780] sm:$0xf] }
  0xdd   : > { %v1046_v0 = vadd.f32 %v1045_v59, %v1027_v13  ;;  %v11774_v13 = vld [vmem:[%s18197_s1 + $0x334] sm:$0xf0]  ;;  %v11778_v59 = vld [vmem:[%s18197_s1 + $0x35c] sm:$0xf]  ;;  %v11957_v62 = vld [vmem:[%s18197_s1 + $0x8dc] sm:$0xf0] }
  0xde   : > { %2091 = vmatpush.bf16.msrb.mxu3 %v8668_v2  ;;  %1971 = vmatmul.bf16.gmra.mxu0 %v13514_v28  ;;  %v9244_v2 = vor.u32 %v11957_v62, %v9243_v61  ;;  %v11933_v39 = vld [vmem:[%s18197_s1 + $0x81c] sm:$0xf0]  ;;  %v11889_v62 = vld [vmem:[%s18197_s1 + $0x6c4] sm:$0xf] }
  0xdf   : > { %2034 = vmatpush.bf16.msra.mxu0 %v8504_v63  ;;  %2001 = vmatpush.bf16.msra.mxu1 %v8404_v9  ;;  %1207 = vst [vmem:[#allocation2 + $0x98] sm:$0xff] %v1046_v0  ;;  %v8475_v63 = vld [vmem:[%s18197_s1 + $0x398] sm:$0xf]  ;;  %v1061_v9 = vpop.f32.mrf.mxu1  ;;  %v9148_v45 = vor.u32 %v11933_v39, %v9147_v38 }
  0xe1   : > { %8776 = vmatmul.msk.bf16.gmra.mxu2 %vm901_vm0, %v13511_v27  ;;  %8777 = vmatmul.msk.bf16.vlgmr.msra.gmra.mxu3 %vm901_vm0, %v13429_v52 }
  0xe2   : > { %2002 = vmatmul.bf16.vlgmr.msra.gmra.mxu1 %v13444_v58  ;;  %2840 = vmatpush.bf16.msra.mxu3 %v9244_v2 }
  0xe3   : > { %2066 = vmatpush.bf16.msrb.mxu1 %v8636_v14  ;;  %2035 = vmatpush.bf16.msra.mxu0 %v8472_v20  ;;  %v8476_v14 = vor.u32 %v11790_v7, %v8475_v63  ;;  %v11850_v20 = vld [vmem:[%s18197_s1 + $0x59c] sm:$0xf]  ;;  %v1032_v24 = vpop.f32.mrf.mxu0  ;;  %v11921_v7 = vld [vmem:[%s18197_s1 + $0x7c4] sm:$0xf] }
  0xe4   : > { %v1048_v17 = vpop.f32.mrf.mxu2  ;;  %v1079_v23 = vpop.f32.mrf.mxu3  ;;  %v8413_v63 = vld [vmem:[%s18197_s1 + $0x338] sm:$0xf0]  ;;  %v11913_v24 = vld [vmem:[%s18197_s1 + $0x784] sm:$0xf] }
  0xe5   : > { %v1049_v21 = vadd.f32 %v1048_v17, %v1030_v1  ;;  %v1080_v26 = vadd.f32 %v1079_v23, %v1061_v9  ;;  %v9084_v1 = vor.u32 %v11917_v57, %v9083_v56  ;;  %v9117_v9 = vld [vmem:[%s18197_s1 + $0x7e0] sm:$0xf0]  ;;  %v8416_v19 = vor.u32 %v11770_v6, %v8413_v63  ;;  %v8923_v57 = vld [vmem:[%s18197_s1 + $0x640] sm:$0xf] }
  0xe6   : > { %v9120_v23 = vor.u32 %v11921_v7, %v9117_v9  ;;  %v9245_v56 = vld [vmem:[%s18197_s1 + $0x8e0] sm:$0xf0]  ;;  %v8891_v7 = vld [vmem:[%s18197_s1 + $0x600] sm:$0xf] }
  0xe7   : > { %2067 = vmatpush.bf16.msrb.mxu1 %v8604_v25  ;;  %2036 = vmatpush.bf16.msra.mxu0 %v8440_v35  ;;  %v8733_v25 = vld [vmem:[%s18197_s1 + $0x5b8] sm:$0xf0]  ;;  %1215 = vst [vmem:[#allocation2 + $0x58] sm:$0x1] %v1049_v21  ;;  %v9115_v35 = vld [vmem:[%s18197_s1 + $0x7c0] sm:$0xf]  ;;  %v1063_v36 = vpop.f32.mrf.mxu1 }
  0xe8   : > { %v8736_v32 = vor.u32 %v11850_v20, %v8733_v25  ;;  %1200 = vst [vmem:[#allocation2 + $0x60] sm:$0xff] %v1080_v26  ;;  %v9116_v47 = vor.u32 %v11925_v37, %v9115_v35  ;;  %v9019_v20 = vld [vmem:[%s18197_s1 + $0x700] sm:$0xf]  ;;  %v9085_v25 = vld [vmem:[%s18197_s1 + $0x7a0] sm:$0xf0] }
  0xe9   : > { %v11901_v21 = vld [vmem:[%s18197_s1 + $0x71c] sm:$0xf0]  ;;  %v11905_v35 = vld [vmem:[%s18197_s1 + $0x744] sm:$0xf] }
  0xea   : > { %2125 = vmatpush.bf16.msrb.mxu2 %v8736_v32  ;;  %v9179_v26 = vld [vmem:[%s18197_s1 + $0x840] sm:$0xf]  ;;  %v9020_v32 = vor.u32 %v11901_v21, %v9019_v20  ;;  %v9053_v37 = vld [vmem:[%s18197_s1 + $0x760] sm:$0xf0] }
  0xeb   : > { %2068 = vmatpush.bf16.msrb.mxu1 %v8572_v42  ;;  %2037 = vmatpush.bf16.msra.mxu0 %v8408_v49  ;;  %v8412_v42 = vor.u32 %v11774_v13, %v8411_v5  ;;  %v1097_v51 = vpop.f32.mrf.mxu0  ;;  %v11893_v5 = vld [vmem:[%s18197_s1 + $0x6dc] sm:$0xf0]  ;;  %v9088_v13 = vor.u32 %v11913_v24, %v9085_v25  ;;  %v9213_v6 = vld [vmem:[%s18197_s1 + $0x8a0] sm:$0xf0]  ;;  %v9091_v24 = vld [vmem:[%s18197_s1 + $0x788] sm:$0xf] }
  0xec   : > { %v1050_v46 = vpop.f32.mrf.mxu2  ;;  %v1081_v49 = vpop.f32.mrf.mxu3  ;;  %v8988_v43 = vor.u32 %v11893_v5, %v8987_v34  ;;  %v11918_v25 = vld [vmem:[%s18197_s1 + $0x7a4] sm:$0xf0]  ;;  %v9149_v5 = vld [vmem:[%s18197_s1 + $0x820] sm:$0xf0] }
  0xed   : > { %v8955_v46 = vld [vmem:[%s18197_s1 + $0x680] sm:$0xf] }
  0xee   : > { %2126 = vmatpush.bf16.msrb.mxu2 %v8704_v41  ;;  %2038 = vmatmul.bf16.vlgmr.msra.gmra.mxu0 %v13444_v58 }
  0xef   : > { %2102 = vmatpush.bf16.msrb.mxu0 %v8640_v53  ;;  %2069 = vmatpush.bf16.msrb.mxu1 %v8540_v54  ;;  %v8669_v53 = vld [vmem:[%s18197_s1 + $0x538] sm:$0xf0]  ;;  %v1082_v54 = vadd.f32 %v1081_v49, %v1063_v36  ;;  %v1066_v0 = vpop.f32.mrf.mxu1  ;;  %v11897_v49 = vld [vmem:[%s18197_s1 + $0x704] sm:$0xf] }
  0xf0   : > { %v8672_v50 = vor.u32 %v11834_v48, %v8669_v53  ;;  %v9056_v48 = vor.u32 %v11905_v35, %v9053_v37  ;;  %v2212_v35 = vld [vmem:[%s12689_s26 + $0x10] sm:$0x33]  ;;  %v11865_v37 = vld [vmem:[%s18197_s1 + $0x604] sm:$0xf] }
  0xf1   : > { %1208 = vst [vmem:[#allocation2 + $0x38] sm:$0xff] %v1082_v54  ;;  %8779 = vmatmul.msk.bf16.vlgmr.msra.gmra.mxu2 %vm901_vm0, %v13429_v52  ;;  %8778 = vmatmul.msk.bf16.gmra.mxu3 %vm901_vm0, %v13511_v27 }
  0xf2   : > { %2127 = vmatpush.bf16.msrb.mxu2 %v8672_v50  ;;  %2007 = vmatmul.bf16.gmra.mxu1 %v13514_v28 }
  0xf3   : > { %2103 = vmatpush.bf16.msrb.mxu0 %v8608_v44  ;;  %2070 = vmatpush.bf16.msrb.mxu1 %v8508_v3  ;;  %v8448_v44 = vor.u32 %v11778_v59, %v8445_v60  ;;  %v9051_v3 = vld [vmem:[%s18197_s1 + $0x740] sm:$0xf]  ;;  %v1099_v15 = vpop.f32.mrf.mxu0 }
  0xf4   : > { %v1115_v8 = vpop.f32.mrf.mxu2  ;;  %v1084_v12 = vpop.f32.mrf.mxu3  ;;  %v9052_v16 = vor.u32 %v11909_v4, %v9051_v3  ;;  %v11877_v59 = vld [vmem:[%s18197_s1 + $0x65c] sm:$0xf0] }
  0xf5   : > { %v1085_v18 = vadd.f32 %v1084_v12, %v1066_v0  ;;  %v8989_v0 = vld [vmem:[%s18197_s1 + $0x6e0] sm:$0xf0]  ;;  %v8924_v4 = vor.u32 %v11877_v59, %v8923_v57  ;;  %v11926_v12 = vld [vmem:[%s18197_s1 + $0x7e4] sm:$0xf0]  ;;  %v8885_v57 = vld [vmem:[%s12689_s26 + $0x8] sm:$0xf0]  ;;  %v2317_v59 = vunpack.c.l.b16 %v2212_v35 }
  0xf7   : > { %2104 = vmatpush.bf16.msrb.mxu0 %v8576_v11  ;;  %2071 = vmatpush.bf16.msrb.mxu1 %v8476_v14  ;;  %v11949_v11 = vld [vmem:[%s18197_s1 + $0x89c] sm:$0xf0]  ;;  %v1116_v14 = vadd.f32 %v1115_v8, %v1097_v51  ;;  %1216 = vst [vmem:[#allocation2 + $0x80] sm:$0x1] %v1085_v18  ;;  %v1068_v30 = vpop.f32.mrf.mxu1  ;;  %v9021_v51 = vld [vmem:[%s18197_s1 + $0x720] sm:$0xf0] }
  0xf8   : > { %v9212_v17 = vor.u32 %v11949_v11, %v9211_v10  ;;  %v9024_v50 = vor.u32 %v11897_v49, %v9021_v51  ;;  %v11869_v8 = vld [vmem:[%s18197_s1 + $0x61c] sm:$0xf0]  ;;  %v8992_v10 = vor.u32 %v11889_v62, %v8989_v0  ;;  %v9123_v11 = vld [vmem:[%s18197_s1 + $0x7c8] sm:$0xf]  ;;  %v11937_v18 = vld [vmem:[%s18197_s1 + $0x844] sm:$0xf] }
  0xf9   : > { %1201 = vst [vmem:[#allocation2 + $0x28] sm:$0xff] %v1116_v14  ;;  %v11881_v14 = vld [vmem:[%s18197_s1 + $0x684] sm:$0xf]  ;;  %v9124_v20 = vor.u32 %v11926_v12, %v9123_v11  ;;  %v11894_v11 = vld [vmem:[%s18197_s1 + $0x6e4] sm:$0xf0]  ;;  %v2321_v12 = vpack.c.b16 %v2317_v59, %v2317_v59 }
  0xfa   : > { %2841 = vmatpush.bf16.msra.mxu3 %v9212_v17  ;;  %v8892_v17 = vor.u32 %v11869_v8, %v8891_v7  ;;  %v8925_v30 = vld [vmem:[%s18197_s1 + $0x660] sm:$0xf0] }
  0xfb   : > { %2105 = vmatpush.bf16.msrb.mxu0 %v8544_v22  ;;  %2072 = vmatpush.bf16.msrb.mxu1 %v8444_v33  ;;  %v11941_v22 = vld [vmem:[%s18197_s1 + $0x85c] sm:$0xf0]  ;;  %v11863_v51 = vld [vmem:[%s12689_s26 + $0x4] sm:$0xe] }
  0xfc   : > { %v9180_v33 = vor.u32 %v11941_v22, %v9179_v26  ;;  %v1117_v36 = vpop.f32.mrf.mxu2  ;;  %v11873_v22 = vld [vmem:[%s18197_s1 + $0x644] sm:$0xf]  ;;  %v8888_v8 = vor.u32 %v11863_v51, %v8885_v57  ;;  %v8997_v51 = vld [vmem:[%s18197_s1 + $0x6e8] sm:$0xf0] }
  0xfd   : > { %v1118_v41 = vadd.f32 %v1117_v36, %v1099_v15  ;;  %v8957_v15 = vld [vmem:[%s18197_s1 + $0x6a0] sm:$0xf0]  ;;  %v9092_v36 = vor.u32 %v11918_v25, %v9091_v24  ;;  %v8928_v39 = vor.u32 %v11873_v22, %v8925_v30  ;;  %v11886_v22 = vld [vmem:[%s18197_s1 + $0x6a4] sm:$0xf0] }
  0xfe   : > { %2842 = vmatpush.bf16.msra.mxu3 %v9180_v33  ;;  %2043 = vmatmul.bf16.gmra.mxu0 %v13514_v28  ;;  %v2327_v24 = vrot.slane %v8888_v8, 1 }
  0xff   : > { %2106 = vmatpush.bf16.msrb.mxu0 %v8512_v40  ;;  %2073 = vmatpush.bf16.msrb.mxu1 %v8412_v42  ;;  %v1086_v40 = vpop.f32.mrf.mxu3  ;;  %v1102_v42 = vpop.f32.mrf.mxu0  ;;  %1209 = vst [vmem:[#allocation2 + $0x50] sm:$0xff] %v1118_v41  ;;  %v9059_v41 = vld [vmem:[%s18197_s1 + $0x748] sm:$0xf] }
 0x100   : > { %v1133_v53 = vpop.f32.mrf.mxu1  ;;  %v8893_v40 = vld [vmem:[%s18197_s1 + $0x620] sm:$0xf0] }
 0x101   : > { %8780 = vmatmul.msk.bf16.gmra.mxu2 %vm901_vm0, %v13511_v27  ;;  %8781 = vmatmul.msk.bf16.vlgmr.msrb.gmra.mxu3 %vm901_vm0, %v13429_v52 }
 0x102   : > { %2843 = vmatpush.bf16.msra.mxu3 %v9148_v45  ;;  %2074 = vmatmul.bf16.vlgmr.msrb.gmra.mxu1 %v13444_v58  ;;  %v11958_v45 = vld [vmem:[%s18197_s1 + $0x8e4] sm:$0xf0] }
 0x103   : > { %2818 = vmatpush.bf16.msra.mxu1 %v9116_v47  ;;  %2107 = vmatpush.bf16.msrb.mxu0 %v8480_v55  ;;  %v11885_v47 = vld [vmem:[%s18197_s1 + $0x69c] sm:$0xf0]  ;;  %v11953_v55 = vld [vmem:[%s18197_s1 + $0x8c4] sm:$0xf] }
 0x104   : > { %v8956_v54 = vor.u32 %v11885_v47, %v8955_v46  ;;  %v9248_v60 = vor.u32 %v11953_v55, %v9245_v56  ;;  %v1120_v61 = vpop.f32.mrf.mxu2  ;;  %v11902_v55 = vld [vmem:[%s18197_s1 + $0x724] sm:$0xf0] }
 0x105   : > { %v1121_v2 = vadd.f32 %v1120_v61, %v1102_v42  ;;  %v11910_v42 = vld [vmem:[%s18197_s1 + $0x764] sm:$0xf0] }
 0x106   : > { %2876 = vmatpush.bf16.msra.mxu2 %v9248_v60  ;;  %v9060_v49 = vor.u32 %v11910_v42, %v9059_v41  ;;  %v11950_v61 = vld [vmem:[%s18197_s1 + $0x8a4] sm:$0xf0]  ;;  %v9029_v41 = vld [vmem:[%s18197_s1 + $0x728] sm:$0xf0] }
 0x107   : > { %2819 = vmatpush.bf16.msra.mxu1 %v9084_v1  ;;  %2108 = vmatpush.bf16.msrb.mxu0 %v8448_v44  ;;  %v11945_v1 = vld [vmem:[%s18197_s1 + $0x884] sm:$0xf]  ;;  %v1151_v44 = vpop.f32.mrf.mxu3  ;;  %v1104_v3 = vpop.f32.mrf.mxu0  ;;  %1217 = vst [vmem:[#allocation2 + $0xb8] sm:$0x1] %v1121_v2 }
 0x108   : > { %v1152_v63 = vadd.f32 %v1151_v44, %v1133_v53  ;;  %v9216_v9 = vor.u32 %v11945_v1, %v9213_v6  ;;  %v2318_v53 = vunpack.c.h.b16 %v2212_v35  ;;  %v11914_v44 = vld [vmem:[%s18197_s1 + $0x78c] sm:$0xf]  ;;  %v8883_v6 = vld [vmem:[%s12689_s26] sm:$0xe] }
 0x109   : > { %v9093_v3 = vld [vmem:[%s18197_s1 + $0x7a8] sm:$0xf0] }
 0x10a   : > { %1202 = vst [vmem:[#allocation2 + $0x40] sm:$0xff] %v1152_v63  ;;  %2877 = vmatpush.bf16.msra.mxu2 %v9216_v9  ;;  %v11864_v63 = vld [vmem:[%s12689_s26 + $0x4] sm:$0xf0]  ;;  %v2322_v9 = vpack.c.b16 %v2318_v53, %v2318_v53 }
 0x10b   : > { %2820 = vmatpush.bf16.msra.mxu1 %v9052_v16  ;;  %2109 = vmatpush.bf16.msrb.mxu0 %v8416_v19  ;;  %v1135_v16 = vpop.f32.mrf.mxu1  ;;  %v9181_v19 = vld [vmem:[%s18197_s1 + $0x860] sm:$0xf0] }
 0x10c   : > { %v9184_v21 = vor.u32 %v11937_v18, %v9181_v19  ;;  %v1122_v26 = vpop.f32.mrf.mxu2  ;;  %v8884_v18 = vor.u32 %v11864_v63, %v8883_v6  ;;  %v14094_v25 = vrot.slane %v2322_v9, 1 }
 0x10d   : > { %v8963_v26 = vld [vmem:[%s18197_s1 + $0x688] sm:$0xf] }
 0x10e   : > { %2878 = vmatpush.bf16.msra.mxu2 %v9184_v21  ;;  %2110 = vmatmul.bf16.vlgmr.msrb.gmra.mxu0 %v13444_v58  ;;  %v9125_v58 = vld [vmem:[%s18197_s1 + $0x7e8] sm:$0xf0]  ;;  %v14118_v42 = vsel %vm2323_vm2, %v2327_v24, %v14094_v25 }
 0x10f   : > { %2854 = vmatpush.bf16.msra.mxu0 %v9120_v23  ;;  %2821 = vmatpush.bf16.msra.mxu1 %v9020_v32  ;;  %v8960_v23 = vor.u32 %v11881_v14, %v8957_v15  ;;  %v11929_v32 = vld [vmem:[%s18197_s1 + $0x804] sm:$0xf]  ;;  %v1153_v33 = vpop.f32.mrf.mxu3  ;;  %v1169_v34 = vpop.f32.mrf.mxu0  ;;  %v9096_v14 = vor.u32 %v11914_v44, %v9093_v3  ;;  %v9187_v15 = vld [vmem:[%s18197_s1 + $0x848] sm:$0xf]  ;;  %v11906_v21 = vld [vmem:[%s18197_s1 + $0x74c] sm:$0xf] }
 0x110   : > { %v9152_v38 = vor.u32 %v11929_v32, %v9149_v5  ;;  %v14102_v32 = vrot.slane %v2321_v12, 1  ;;  %v9131_v3 = vld [vmem:[%s18197_s1 + $0x7d0] sm:$0xf]  ;;  %v9157_v24 = vld [vmem:[%s18197_s1 + $0x828] sm:$0xf0] }
 0x111   : > { %8783 = vmatmul.msk.bf16.vlgmr.msrb.gmra.mxu2 %vm901_vm0, %v13429_v52  ;;  %8782 = vmatmul.msk.bf16.gmra.mxu3 %vm901_vm0, %v13511_v27  ;;  %v8896_v52 = vor.u32 %v11865_v37, %v8893_v40  ;;  %v11898_v40 = vld [vmem:[%s18197_s1 + $0x70c] sm:$0xf] }
 0x112   : > { %2879 = vmatpush.bf16.msra.mxu2 %v9152_v38  ;;  %2079 = vmatmul.bf16.gmra.mxu1 %v13514_v28 }
 0x113   : > { %2855 = vmatpush.bf16.msra.mxu0 %v9088_v13  ;;  %2822 = vmatpush.bf16.msra.mxu1 %v8988_v43  ;;  %v1154_v13 = vadd.f32 %v1153_v33, %v1135_v16  ;;  %v9251_v43 = vld [vmem:[%s18197_s1 + $0x8c8] sm:$0xf]  ;;  %v1138_v46 = vpop.f32.mrf.mxu1 }
 0x114   : > { %v9252_v47 = vor.u32 %v11958_v45, %v9251_v43  ;;  %v1187_v56 = vpop.f32.mrf.mxu2  ;;  %v11942_v16 = vld [vmem:[%s18197_s1 + $0x864] sm:$0xf0] }
 0x115   : > { %1210 = vst [vmem:[#allocation2 + $0x70] sm:$0xff] %v1154_v13  ;;  %v1188_v0 = vadd.f32 %v1187_v56, %v1169_v34  ;;  %v9188_v19 = vor.u32 %v11942_v16, %v9187_v15  ;;  %v9155_v33 = vld [vmem:[%s18197_s1 + $0x808] sm:$0xf]  ;;  %v11946_v56 = vld [vmem:[%s18197_s1 + $0x88c] sm:$0xf] }
 0x116   : > { %2912 = vmatpush.bf16.msrb.mxu3 %v9252_v47  ;;  %v11934_v34 = vld [vmem:[%s18197_s1 + $0x824] sm:$0xf0]  ;;  %v11919_v15 = vld [vmem:[%s18197_s1 + $0x7ac] sm:$0xf0] }
 0x117   : > { %2856 = vmatpush.bf16.msra.mxu0 %v9056_v48  ;;  %2823 = vmatpush.bf16.msra.mxu1 %v8956_v54  ;;  %v11922_v48 = vld [vmem:[%s18197_s1 + $0x7cc] sm:$0xf]  ;;  %v9027_v54 = vld [vmem:[%s18197_s1 + $0x708] sm:$0xf]  ;;  %v1156_v62 = vpop.f32.mrf.mxu3  ;;  %v1171_v1 = vpop.f32.mrf.mxu0  ;;  %1203 = vst [vmem:[#allocation2 + $0x78] sm:$0xff] %v1188_v0  ;;  %v9156_v38 = vor.u32 %v11934_v34, %v9155_v33 }
 0x118   : > { %v9128_v60 = vor.u32 %v11922_v48, %v9125_v58  ;;  %v9028_v7 = vor.u32 %v11902_v55, %v9027_v54  ;;  %v8931_v43 = vld [vmem:[%s18197_s1 + $0x648] sm:$0xf]  ;;  %v9032_v58 = vor.u32 %v11898_v40, %v9029_v41  ;;  %v9067_v33 = vld [vmem:[%s18197_s1 + $0x750] sm:$0xf] }
 0x119   : > { %v11878_v45 = vld [vmem:[%s18197_s1 + $0x664] sm:$0xf0]  ;;  %v11911_v34 = vld [vmem:[%s18197_s1 + $0x76c] sm:$0xf0] }
 0x11a   : > { %v11870_v54 = vld [vmem:[%s18197_s1 + $0x624] sm:$0xf0]  ;;  %v11903_v40 = vld [vmem:[%s18197_s1 + $0x72c] sm:$0xf0] }
 0x11b   : > { %2857 = vmatpush.bf16.msra.mxu0 %v9024_v50  ;;  %2824 = vmatpush.bf16.msra.mxu1 %v8924_v4  ;;  %v9219_v50 = vld [vmem:[%s18197_s1 + $0x888] sm:$0xf]  ;;  %v1157_v4 = vadd.f32 %v1156_v62, %v1138_v46  ;;  %v11954_v46 = vld [vmem:[%s18197_s1 + $0x8cc] sm:$0xf] }
 0x11c   : > { %v9220_v2 = vor.u32 %v11950_v61, %v9219_v50  ;;  %v1189_v30 = vpop.f32.mrf.mxu2  ;;  %v11882_v61 = vld [vmem:[%s18197_s1 + $0x68c] sm:$0xf] }
 0x11d   : > { %1218 = vst [vmem:[#allocation2 + $0x20] sm:$0x1] %v1157_v4  ;;  %v1190_v13 = vadd.f32 %v1189_v30, %v1171_v1  ;;  %v9221_v62 = vld [vmem:[%s18197_s1 + $0x8a8] sm:$0xf0]  ;;  %v11927_v4 = vld [vmem:[%s18197_s1 + $0x7ec] sm:$0xf0] }
 0x11e   : > { %2913 = vmatpush.bf16.msrb.mxu3 %v9220_v2  ;;  %2115 = vmatmul.bf16.gmra.mxu0 %v13514_v28  ;;  %v8932_v28 = vor.u32 %v11878_v45, %v8931_v43  ;;  %v8965_v2 = vld [vmem:[%s18197_s1 + $0x6a8] sm:$0xf0]  ;;  %v9224_v44 = vor.u32 %v11946_v56, %v9221_v62  ;;  %v9132_v6 = vor.u32 %v11927_v4, %v9131_v3  ;;  %v9227_v45 = vld [vmem:[%s18197_s1 + $0x890] sm:$0xf]  ;;  %v9133_v56 = vld [vmem:[%s18197_s1 + $0x7f0] sm:$0xf0] }
 0x11f   : > { %2858 = vmatpush.bf16.msra.mxu0 %v8992_v10  ;;  %2825 = vmatpush.bf16.msra.mxu1 %v8892_v17  ;;  %v8995_v10 = vld [vmem:[%s18197_s1 + $0x6c8] sm:$0xf]  ;;  %v1140_v17 = vpop.f32.mrf.mxu1  ;;  %v1158_v5 = vpop.f32.mrf.mxu3  ;;  %1211 = vst [vmem:[#allocation2 + $0xa0] sm:$0xff] %v1190_v13  ;;  %v8968_v9 = vor.u32 %v11882_v61, %v8965_v2  ;;  %v9101_v3 = vld [vmem:[%s18197_s1 + $0x7b0] sm:$0xf0] }
 0x120   : > { %v1174_v35 = vpop.f32.mrf.mxu0  ;;  %v9068_v5 = vor.u32 %v11911_v34, %v9067_v33  ;;  %v9037_v33 = vld [vmem:[%s18197_s1 + $0x730] sm:$0xf0] }
 0x121   : > { %8784 = vmatmul.msk.bf16.gmra.mxu2 %vm901_vm0, %v13511_v27  ;;  %9273 = vmatmul.msk.bf16.vlgmr.msra.gmra.mxu3 %vm901_vm0, %v14118_v42  ;;  %v11890_v27 = vld [vmem:[%s18197_s1 + $0x6cc] sm:$0xf] }
 0x122   : > { %2914 = vmatpush.bf16.msrb.mxu3 %v9188_v19  ;;  %v9000_v50 = vor.u32 %v11890_v27, %v8997_v51  ;;  %v9003_v51 = vld [vmem:[%s18197_s1 + $0x6d0] sm:$0xf] }
 0x123   : > { %2890 = vmatpush.bf16.msrb.mxu1 %v9124_v20  ;;  %2859 = vmatpush.bf16.msra.mxu0 %v8960_v23  ;;  %v8996_v20 = vor.u32 %v11894_v11, %v8995_v10  ;;  %v9061_v23 = vld [vmem:[%s18197_s1 + $0x768] sm:$0xf0] }
 0x124   : > { %v9064_v37 = vor.u32 %v11906_v21, %v9061_v23  ;;  %v1192_v55 = vpop.f32.mrf.mxu2  ;;  %v11874_v10 = vld [vmem:[%s18197_s1 + $0x64c] sm:$0xf] }
 0x125   : > { %v1193_v57 = vadd.f32 %v1192_v55, %v1174_v35  ;;  %v9189_v11 = vld [vmem:[%s18197_s1 + $0x868] sm:$0xf0]  ;;  %v9259_v35 = vld [vmem:[%s18197_s1 + $0x8d0] sm:$0xf] }
 0x126   : > { %2915 = vmatpush.bf16.msrb.mxu3 %v9156_v38  ;;  %v11866_v23 = vld [vmem:[%s18197_s1 + $0x60c] sm:$0xf] }
 0x127   : > { %2891 = vmatpush.bf16.msrb.mxu1 %v9092_v36  ;;  %2860 = vmatpush.bf16.msra.mxu0 %v8928_v39  ;;  %v2324_v36 = vrot.slane %v8884_v18, 1  ;;  %v8964_v39 = vor.u32 %v11886_v22, %v8963_v26  ;;  %v1859_v47 = vpop.f32.mrf.mxu1  ;;  %v1877_v59 = vpop.f32.mrf.mxu3  ;;  %1219 = vst [vmem:[#allocation2 + $0x8] sm:$0x1] %v1193_v57  ;;  %v11930_v18 = vld [vmem:[%s18197_s1 + $0x80c] sm:$0xf] }
 0x128   : > { %v1878_v0 = vadd.f32 %v1877_v59, %v1859_v47  ;;  %v8901_v22 = vld [vmem:[%s18197_s1 + $0x628] sm:$0xf0]  ;;  %v9160_v30 = vor.u32 %v11930_v18, %v9157_v24  ;;  %v8907_v24 = vld [vmem:[%s18197_s1 + $0x610] sm:$0xf] }
 0x129   : > { %v14134_v48 = vsel %vm2323_vm2, %v2324_v36, %v14102_v32  ;;  %v11959_v36 = vld [vmem:[%s18197_s1 + $0x8ec] sm:$0xf0]  ;;  %v8904_v38 = vor.u32 %v11866_v23, %v8901_v22  ;;  %v11899_v22 = vld [vmem:[%s18197_s1 + $0x714] sm:$0xf] }
 0x12a   : > { %2826 = vmatmul.bf16.vlgmr.msra.gmra.mxu1 %v14134_v48  ;;  %v14173_v63 = vadd.f32 %v1878_v0, %v13516_v29  ;;  %v8933_v29 = vld [vmem:[%s18197_s1 + $0x668] sm:$0xf0]  ;;  %v8971_v0 = vld [vmem:[%s18197_s1 + $0x690] sm:$0xf] }
 0x12b   : > { %2892 = vmatpush.bf16.msrb.mxu1 %v9060_v49  ;;  %2861 = vmatpush.bf16.msra.mxu0 %v8896_v52  ;;  %v9253_v49 = vld [vmem:[%s18197_s1 + $0x8e8] sm:$0xf0]  ;;  %v8899_v52 = vld [vmem:[%s18197_s1 + $0x608] sm:$0xf]  ;;  %v8936_v21 = vor.u32 %v11874_v10, %v8933_v29 }
 0x12c   : > { %v9256_v53 = vor.u32 %v11954_v46, %v9253_v49  ;;  %v8900_v1 = vor.u32 %v11870_v54, %v8899_v52  ;;  %v1194_v17 = vpop.f32.mrf.mxu2  ;;  %v11951_v46 = vld [vmem:[%s18197_s1 + $0x8ac] sm:$0xf0]  ;;  %v11923_v52 = vld [vmem:[%s18197_s1 + $0x7d4] sm:$0xf]  ;;  %v2154_v54 = vld [vmem:[#allocation2 + $0xa8] sm:$0x1] }
 0x12d   : > { %v9136_v59 = vor.u32 %v11923_v52, %v9133_v56  ;;  %v9069_v17 = vld [vmem:[%s18197_s1 + $0x770] sm:$0xf0] }
 0x12e   : > { %2948 = vmatpush.bf16.msrb.mxu2 %v9256_v53  ;;  %2862 = vmatmul.bf16.vlgmr.msra.gmra.mxu0 %v14134_v48  ;;  %v11895_v53 = vld [vmem:[%s18197_s1 + $0x6ec] sm:$0xf0]  ;;  %v8973_v56 = vld [vmem:[%s18197_s1 + $0x6b0] sm:$0xf0] }
 0x12f   : > { %2926 = vmatpush.bf16.msrb.mxu0 %v9128_v60  ;;  %2893 = vmatpush.bf16.msrb.mxu1 %v9028_v7  ;;  %v1176_v60 = vpop.f32.mrf.mxu0  ;;  %v11938_v7 = vld [vmem:[%s18197_s1 + $0x84c] sm:$0xf]  ;;  %v1861_v8 = vpop.f32.mrf.mxu1  ;;  %v9004_v55 = vor.u32 %v11895_v53, %v9003_v51  ;;  %v11939_v51 = vld [vmem:[%s18197_s1 + $0x854] sm:$0xf] }
 0x130   : > { %v9192_v12 = vor.u32 %v11938_v7, %v9189_v11  ;;  %v1879_v19 = vpop.f32.mrf.mxu3  ;;  %v9195_v60 = vld [vmem:[%s18197_s1 + $0x850] sm:$0xf]  ;;  %v9197_v53 = vld [vmem:[%s18197_s1 + $0x870] sm:$0xf0] }
 0x131   : > { %v1880_v26 = vadd.f32 %v1879_v19, %v1861_v8  ;;  %9275 = vmatmul.msk.bf16.vlgmr.msra.gmra.mxu2 %vm901_vm0, %v14118_v42  ;;  %9274 = vmatmul.msk.bf16.gmra.mxu3 %vm901_vm0, %v14094_v25  ;;  %v9163_v7 = vld [vmem:[%s18197_s1 + $0x810] sm:$0xf]  ;;  %v11955_v19 = vld [vmem:[%s18197_s1 + $0x8d4] sm:$0xf] }
 0x132   : > { %2949 = vmatpush.bf16.msrb.mxu2 %v9224_v44  ;;  %v11915_v44 = vld [vmem:[%s18197_s1 + $0x794] sm:$0xf]  ;;  %v11935_v8 = vld [vmem:[%s18197_s1 + $0x82c] sm:$0xf0] }
 0x133   : > { %2927 = vmatpush.bf16.msrb.mxu0 %v9096_v14  ;;  %2894 = vmatpush.bf16.msrb.mxu1 %v8996_v20  ;;  %v9099_v14 = vld [vmem:[%s18197_s1 + $0x790] sm:$0xf]  ;;  %v14212_v13 = vadd.f32 %v1880_v26, %v13569_v31  ;;  %v9164_v29 = vor.u32 %v11935_v8, %v9163_v7  ;;  %v9075_v7 = vld [vmem:[%s18197_s1 + $0x758] sm:$0xf] }
 0x134   : > { %v9100_v16 = vor.u32 %v11919_v15, %v9099_v14  ;;  %v9035_v31 = vld [vmem:[%s18197_s1 + $0x710] sm:$0xf]  ;;  %v1913_v43 = vpop.f32.mrf.mxu2  ;;  %v11907_v15 = vld [vmem:[%s18197_s1 + $0x754] sm:$0xf] }
 0x135   : > { %v9036_v41 = vor.u32 %v11903_v40, %v9035_v31  ;;  %v11879_v14 = vld [vmem:[%s18197_s1 + $0x66c] sm:$0xf0]  ;;  %v9072_v18 = vor.u32 %v11907_v15, %v9069_v17  ;;  %v8909_v17 = vld [vmem:[%s18197_s1 + $0x630] sm:$0xf0] }
 0x136   : > { %2950 = vmatpush.bf16.msrb.mxu2 %v9192_v12  ;;  %v8939_v12 = vld [vmem:[%s18197_s1 + $0x650] sm:$0xf] }
 0x137   : > { %2928 = vmatpush.bf16.msrb.mxu0 %v9064_v37  ;;  %2895 = vmatpush.bf16.msrb.mxu1 %v8964_v39  ;;  %v1895_v20 = vpop.f32.mrf.mxu0  ;;  %v1864_v37 = vpop.f32.mrf.mxu1  ;;  %v9260_v39 = vor.u32 %v11959_v36, %v9259_v35  ;;  %v11871_v26 = vld [vmem:[%s18197_s1 + $0x62c] sm:$0xf0]  ;;  %v11947_v35 = vld [vmem:[%s18197_s1 + $0x894] sm:$0xf] }
 0x138   : > { %v1882_v47 = vpop.f32.mrf.mxu3  ;;  %v9229_v36 = vld [vmem:[%s18197_s1 + $0x8b0] sm:$0xf0] }
 0x139   : > { %2984 = vmatpush.bf16.msra.mxu3 %v9260_v39  ;;  %v1883_v27 = vadd.f32 %v1882_v47, %v1864_v37  ;;  %v9232_v40 = vor.u32 %v11947_v35, %v9229_v36  ;;  %v9011_v35 = vld [vmem:[%s18197_s1 + $0x6d8] sm:$0xf] }
 0x13a   : > { %2951 = vmatpush.bf16.msrb.mxu2 %v9160_v30  ;;  %2831 = vmatmul.bf16.gmra.mxu1 %v14102_v32  ;;  %v8908_v30 = vor.u32 %v11871_v26, %v8907_v24  ;;  %v9235_v24 = vld [vmem:[%s18197_s1 + $0x898] sm:$0xf] }
 0x13b   : > { %2929 = vmatpush.bf16.msrb.mxu0 %v9032_v58  ;;  %2896 = vmatpush.bf16.msrb.mxu1 %v8932_v28  ;;  %v14238_v58 = vadd.f32 %v1913_v43, %v1895_v20  ;;  %v9228_v28 = vor.u32 %v11951_v46, %v9227_v45  ;;  %v2178_v57 = vadd.f32 %v2154_v54, %v1883_v27  ;;  %v9261_v20 = vld [vmem:[%s18197_s1 + $0x8f0] sm:$0xf0]  ;;  %v9139_v46 = vld [vmem:[%s18197_s1 + $0x7d8] sm:$0xf] }
 0x13c   : > { %v1915_v4 = vpop.f32.mrf.mxu2  ;;  %v9264_v23 = vor.u32 %v11955_v19, %v9261_v20  ;;  %v11891_v43 = vld [vmem:[%s18197_s1 + $0x6d4] sm:$0xf]  ;;  %v9200_v54 = vor.u32 %v11939_v51, %v9197_v53  ;;  %v11904_v20 = vld [vmem:[%s18197_s1 + $0x734] sm:$0xf0]  ;;  %v11916_v53 = vld [vmem:[%s18197_s1 + $0x79c] sm:$0xf] }
 0x13d   : > { %2985 = vmatpush.bf16.msra.mxu3 %v9228_v28  ;;  %2202 = vst [vmem:[#allocation2 + $0xa8] sm:$0x1] %v2178_v57  ;;  %v9005_v45 = vld [vmem:[%s18197_s1 + $0x6f0] sm:$0xf0]  ;;  %v11928_v28 = vld [vmem:[%s18197_s1 + $0x7f4] sm:$0xf0] }
 0x13e   : > { %2867 = vmatmul.bf16.gmra.mxu0 %v14102_v32  ;;  %3020 = vmatpush.bf16.msra.mxu2 %v9264_v23  ;;  %v9140_v27 = vor.u32 %v11928_v28, %v9139_v46  ;;  %v9107_v57 = vld [vmem:[%s18197_s1 + $0x798] sm:$0xf] }
 0x13f   : > { %2930 = vmatpush.bf16.msrb.mxu0 %v9000_v50  ;;  %2897 = vmatpush.bf16.msrb.mxu1 %v8900_v1  ;;  %v1897_v49 = vpop.f32.mrf.mxu0  ;;  %v11943_v50 = vld [vmem:[%s18197_s1 + $0x86c] sm:$0xf0]  ;;  %v1866_v61 = vpop.f32.mrf.mxu1  ;;  %v11952_v26 = vld [vmem:[%s18197_s1 + $0x8b4] sm:$0xf0] }
 0x140   : > { %v9196_v62 = vor.u32 %v11943_v50, %v9195_v60  ;;  %v11887_v1 = vld [vmem:[%s18197_s1 + $0x6ac] sm:$0xf0]  ;;  %v14276_v10 = vadd.f32 %v1915_v4, %v1897_v49  ;;  %v9008_v49 = vor.u32 %v11891_v43, %v9005_v45  ;;  %v11920_v60 = vld [vmem:[%s18197_s1 + $0x7b4] sm:$0xf0]  ;;  %v11875_v4 = vld [vmem:[%s18197_s1 + $0x654] sm:$0xf] }
 0x141   : > { %v8972_v2 = vor.u32 %v11887_v1, %v8971_v0  ;;  %9276 = vmatmul.msk.bf16.gmra.mxu2 %vm901_vm0, %v14094_v25  ;;  %9277 = vmatmul.msk.bf16.vlgmr.msrb.gmra.mxu3 %vm901_vm0, %v14118_v42  ;;  %v9108_v61 = vor.u32 %v11920_v60, %v9107_v57  ;;  %v9165_v0 = vld [vmem:[%s18197_s1 + $0x830] sm:$0xf0]  ;;  %v11896_v36 = vld [vmem:[%s18197_s1 + $0x6f4] sm:$0xf0] }
 0x142   : > { %2986 = vmatpush.bf16.msra.mxu3 %v9196_v62  ;;  %3021 = vmatpush.bf16.msra.mxu2 %v9232_v40  ;;  %v11931_v62 = vld [vmem:[%s18197_s1 + $0x814] sm:$0xf]  ;;  %v9203_v45 = vld [vmem:[%s18197_s1 + $0x858] sm:$0xf] }
 0x143   : > { %2962 = vmatpush.bf16.msra.mxu1 %v9132_v6  ;;  %2931 = vmatpush.bf16.msrb.mxu0 %v8968_v9  ;;  %v9104_v6 = vor.u32 %v11915_v44, %v9101_v3  ;;  %v1884_v9 = vpop.f32.mrf.mxu3  ;;  %v9168_v44 = vor.u32 %v11931_v62, %v9165_v0  ;;  %v11944_v46 = vld [vmem:[%s18197_s1 + $0x874] sm:$0xf0] }
 0x144   : > { %v1918_v34 = vpop.f32.mrf.mxu2  ;;  %v11912_v9 = vld [vmem:[%s18197_s1 + $0x774] sm:$0xf0] }
 0x145   : > { %v8979_v28 = vld [vmem:[%s18197_s1 + $0x698] sm:$0xf] }
 0x146   : > { %2987 = vmatpush.bf16.msra.mxu3 %v9164_v29  ;;  %3022 = vmatpush.bf16.msra.mxu2 %v9200_v54  ;;  %v9267_v29 = vld [vmem:[%s18197_s1 + $0x8d8] sm:$0xf] }
 0x147   : > { %2963 = vmatpush.bf16.msra.mxu1 %v9100_v16  ;;  %2932 = vmatpush.bf16.msrb.mxu0 %v8936_v21  ;;  %v1900_v11 = vpop.f32.mrf.mxu0  ;;  %v8940_v16 = vor.u32 %v11879_v14, %v8939_v12  ;;  %v1931_v21 = vpop.f32.mrf.mxu1  ;;  %v11960_v12 = vld [vmem:[%s18197_s1 + $0x8f4] sm:$0xf0] }
 0x148   : > { %v1919_v37 = vadd.f32 %v1918_v34, %v1900_v11  ;;  %v9076_v11 = vor.u32 %v11912_v9, %v9075_v7  ;;  %v9268_v15 = vor.u32 %v11960_v12, %v9267_v29  ;;  %v9236_v34 = vor.u32 %v11952_v26, %v9235_v24  ;;  %v11936_v57 = vld [vmem:[%s18197_s1 + $0x834] sm:$0xf0]  ;;  %v9269_v9 = vld [vmem:[%s18197_s1 + $0x8f8] sm:$0xf0] }
 0x149   : > { %v8947_v0 = vld [vmem:[%s18197_s1 + $0x658] sm:$0xf] }
 0x14a   : > { %2898 = vmatmul.bf16.vlgmr.msrb.gmra.mxu1 %v14134_v48  ;;  %3023 = vmatpush.bf16.msra.mxu2 %v9168_v44  ;;  %v8915_v12 = vld [vmem:[%s18197_s1 + $0x618] sm:$0xf] }
 0x14b   : > { %2964 = vmatpush.bf16.msra.mxu1 %v9068_v5  ;;  %2933 = vmatpush.bf16.msrb.mxu0 %v8904_v38  ;;  %v9040_v5 = vor.u32 %v11899_v22, %v9037_v33  ;;  %v2155_v38 = vld [vmem:[#allocation2 + $0x68] sm:$0x1]  ;;  %v1949_v39 = vpop.f32.mrf.mxu3 }
 0x14c   : > { %v2179_v47 = vadd.f32 %v2155_v38, %v1919_v37  ;;  %v1920_v50 = vpop.f32.mrf.mxu2  ;;  %3056 = vmatpush.bf16.msrb.mxu3 %v9268_v15  ;;  %v11924_v37 = vld [vmem:[%s18197_s1 + $0x7dc] sm:$0xf]  ;;  %v2156_v38 = vld [vmem:[#allocation2 + $0x30] sm:$0x1] }
 0x14d   : > { %v2149_v50 = vld [vmem:[#allocation2 + $0x98] sm:$0xff] }
 0x14e   : > { %2203 = vst [vmem:[#allocation2 + $0x68] sm:$0x1] %v2179_v47  ;;  %2934 = vmatmul.bf16.vlgmr.msrb.gmra.mxu0 %v14134_v48  ;;  %v11900_v15 = vld [vmem:[%s18197_s1 + $0x71c] sm:$0xf] }
 0x14f   : > { %2965 = vmatpush.bf16.msra.mxu1 %v9036_v41  ;;  %2998 = vmatpush.bf16.msra.mxu0 %v9136_v59  ;;  %v1902_v31 = vpop.f32.mrf.mxu0  ;;  %v14320_v41 = vadd.f32 %v1949_v39, %v1931_v21  ;;  %v1933_v52 = vpop.f32.mrf.mxu1  ;;  %v9012_v39 = vor.u32 %v11896_v36, %v9011_v35  ;;  %v9013_v35 = vld [vmem:[%s18197_s1 + $0x6f8] sm:$0xf0] }
 0x150   : > { %3057 = vmatpush.bf16.msrb.mxu3 %v9236_v34  ;;  %v9141_v31 = vld [vmem:[%s18197_s1 + $0x7f8] sm:$0xf0] }
 0x151   : > { %9279 = vmatmul.msk.bf16.vlgmr.msrb.gmra.mxu2 %vm901_vm0, %v14118_v42  ;;  %9278 = vmatmul.msk.bf16.gmra.mxu3 %vm901_vm0, %v14094_v25  ;;  %v9144_v43 = vor.u32 %v11924_v37, %v9141_v31  ;;  %v2142_v37 = vld [vmem:[#allocation2 + $0x60] sm:$0xff]  ;;  %v11940_v31 = vld [vmem:[%s18197_s1 + $0x85c] sm:$0xf] }
 0x153   : > { %2966 = vmatpush.bf16.msra.mxu1 %v9004_v55  ;;  %2999 = vmatpush.bf16.msra.mxu0 %v9104_v6  ;;  %v11883_v55 = vld [vmem:[%s18197_s1 + $0x694] sm:$0xf]  ;;  %v1951_v1 = vpop.f32.mrf.mxu3 }
 0x154   : > { %v8976_v59 = vor.u32 %v11883_v55, %v8973_v56  ;;  %v14358_v3 = vadd.f32 %v1951_v1, %v1933_v52  ;;  %v8941_v6 = vld [vmem:[%s18197_s1 + $0x670] sm:$0xf0]  ;;  %v1985_v21 = vpop.f32.mrf.mxu2  ;;  %v9109_v52 = vld [vmem:[%s18197_s1 + $0x7b8] sm:$0xf0]  ;;  %v9171_v56 = vld [vmem:[%s18197_s1 + $0x818] sm:$0xf] }
 0x155   : > { %v8944_v8 = vor.u32 %v11875_v4, %v8941_v6  ;;  %v9112_v55 = vor.u32 %v11916_v53, %v9109_v52  ;;  %v9172_v62 = vor.u32 %v11936_v57, %v9171_v56  ;;  %v11880_v1 = vld [vmem:[%s18197_s1 + $0x674] sm:$0xf0]  ;;  %v9077_v6 = vld [vmem:[%s18197_s1 + $0x778] sm:$0xf0] }
 0x156   : > { %v8948_v4 = vor.u32 %v11880_v1, %v8947_v0  ;;  %v11876_v56 = vld [vmem:[%s18197_s1 + $0x65c] sm:$0xf] }
 0x157   : > { %2967 = vmatpush.bf16.msra.mxu1 %v8972_v2  ;;  %3000 = vmatpush.bf16.msra.mxu0 %v9072_v18  ;;  %v1967_v2 = vpop.f32.mrf.mxu0  ;;  %v1936_v14 = vpop.f32.mrf.mxu1  ;;  %v9043_v18 = vld [vmem:[%s18197_s1 + $0x718] sm:$0xf]  ;;  %v8949_v57 = vld [vmem:[%s18197_s1 + $0x678] sm:$0xf0] }
 0x158   : > { %v9044_v23 = vor.u32 %v11904_v20, %v9043_v18  ;;  %v11948_v20 = vld [vmem:[%s18197_s1 + $0x89c] sm:$0xf] }
 0x159   : > { %v8917_v0 = vld [vmem:[%s18197_s1 + $0x638] sm:$0xf0] }
 0x15a   : > { %2903 = vmatmul.bf16.gmra.mxu1 %v14102_v32 }
 0x15b   : > { %2968 = vmatpush.bf16.msra.mxu1 %v8940_v16  ;;  %3001 = vmatpush.bf16.msra.mxu0 %v9040_v5  ;;  %v11867_v16 = vld [vmem:[%s18197_s1 + $0x614] sm:$0xf]  ;;  %v1954_v22 = vpop.f32.mrf.mxu3 }
 0x15c   : > { %v8912_v19 = vor.u32 %v11867_v16, %v8909_v17  ;;  %v1955_v5 = vadd.f32 %v1954_v22, %v1936_v14  ;;  %v1987_v54 = vpop.f32.mrf.mxu2  ;;  %v11872_v14 = vld [vmem:[%s18197_s1 + $0x634] sm:$0xf0]  ;;  %v9045_v17 = vld [vmem:[%s18197_s1 + $0x738] sm:$0xf0] }
 0x15d   : > { %v8916_v16 = vor.u32 %v11872_v14, %v8915_v12 }
 0x15e   : > { %v2180_v40 = vadd.f32 %v2156_v38, %v1955_v5  ;;  %2939 = vmatmul.bf16.gmra.mxu0 %v14102_v32  ;;  %v11892_v5 = vld [vmem:[%s18197_s1 + $0x6dc] sm:$0xf] }
 0x15f   : > { %2969 = vmatpush.bf16.msra.mxu1 %v8908_v30  ;;  %3002 = vmatpush.bf16.msra.mxu0 %v9008_v49  ;;  %v14402_v30 = vadd.f32 %v1985_v21, %v1967_v2  ;;  %v1969_v33 = vpop.f32.mrf.mxu0  ;;  %v1938_v47 = vpop.f32.mrf.mxu1  ;;  %v9204_v49 = vor.u32 %v11944_v46, %v9203_v45  ;;  %v11908_v2 = vld [vmem:[%s18197_s1 + $0x75c] sm:$0xf]  ;;  %v9016_v38 = vor.u32 %v11892_v5, %v9013_v35  ;;  %v2144_v5 = vld [vmem:[#allocation2 + $0x40] sm:$0xff] }
 0x160   : > { %2204 = vst [vmem:[#allocation2 + $0x30] sm:$0x1] %v2180_v40  ;;  %v1988_v60 = vadd.f32 %v1987_v54, %v1969_v33  ;;  %v9080_v7 = vor.u32 %v11908_v2, %v9077_v6  ;;  %v9237_v21 = vld [vmem:[%s18197_s1 + $0x8b8] sm:$0xf0]  ;;  %v2157_v33 = vld [vmem:[#allocation2 + $0x58] sm:$0x1] }
 0x161   : > { %3058 = vmatpush.bf16.msrb.mxu3 %v9204_v49  ;;  %9280 = vmatmul.msk.bf16.gmra.mxu2 %vm901_vm0, %v14094_v25  ;;  %v9240_v22 = vor.u32 %v11948_v20, %v9237_v21  ;;  %v9205_v40 = vld [vmem:[%s18197_s1 + $0x878] sm:$0xf0] }
 0x162   : > { %v2173_v44 = vadd.f32 %v2149_v50, %v1988_v60  ;;  %9281 = vmatmul.msk.bf16.vlgmr.msra.gmra.mxu3 %vm901_vm0, %v14118_v42  ;;  %v9208_v45 = vor.u32 %v11940_v31, %v9205_v40  ;;  %v11884_v46 = vld [vmem:[%s18197_s1 + $0x69c] sm:$0xf]  ;;  %v8952_v60 = vor.u32 %v11876_v56, %v8949_v57  ;;  %v9363_v31 = vld [vmem:[%s18200_s4 + $0x70] sm:$0xf]  ;;  %v12112_v40 = vld [vmem:[%s18200_s4 + $0x74] sm:$0xf0] }
 0x163   : > { %3034 = vmatpush.bf16.msrb.mxu1 %v9140_v27  ;;  %3003 = vmatpush.bf16.msra.mxu0 %v8976_v59  ;;  %v11888_v27 = vld [vmem:[%s18197_s1 + $0x6b4] sm:$0xf0]  ;;  %v1956_v59 = vpop.f32.mrf.mxu3  ;;  %v8981_v47 = vld [vmem:[%s18197_s1 + $0x6b8] sm:$0xf0] }
 0x164   : > { %v8980_v51 = vor.u32 %v11888_v27, %v8979_v28  ;;  %2197 = vst [vmem:[#allocation2 + $0x98] sm:$0xff] %v2173_v44  ;;  %v1990_v18 = vpop.f32.mrf.mxu2  ;;  %v8984_v49 = vor.u32 %v11884_v46, %v8981_v47  ;;  %v11932_v27 = vld [vmem:[%s18197_s1 + $0x81c] sm:$0xf]  ;;  %v9364_v46 = vor.u32 %v12112_v40, %v9363_v31  ;;  %v12128_v47 = vld [vmem:[%s18200_s4 + $0xf4] sm:$0xf0] }
 0x165   : > { %3059 = vmatpush.bf16.msrb.mxu3 %v9172_v62  ;;  %v2150_v59 = vld [vmem:[#allocation2 + $0x38] sm:$0xff] }
 0x166   : > { %v11868_v62 = vld [vmem:[%s18197_s1 + $0x61c] sm:$0xf] }
 0x167   : > { %3035 = vmatpush.bf16.msrb.mxu1 %v9108_v61  ;;  %3004 = vmatpush.bf16.msra.mxu0 %v8944_v8  ;;  %v1972_v61 = vpop.f32.mrf.mxu0  ;;  %v11956_v8 = vld [vmem:[%s18197_s1 + $0x8dc] sm:$0xf]  ;;  %v8920_v1 = vor.u32 %v11868_v62, %v8917_v0  ;;  %v9411_v62 = vld [vmem:[%s18200_s4 + $0xd0] sm:$0xf] }
 0x168   : > { %v9272_v29 = vor.u32 %v11956_v8, %v9269_v9  ;;  %v2143_v8 = vld [vmem:[#allocation2 + $0x28] sm:$0xff]  ;;  %v2158_v9 = vld [vmem:[#allocation2 + $0x80] sm:$0x1] }
 0x16a   : > { %3092 = vmatpush.bf16.msrb.mxu2 %v9272_v29  ;;  %2970 = vmatmul.bf16.vlgmr.msra.gmra.mxu1 %v14134_v48 }
 0x16b   : > { %3036 = vmatpush.bf16.msrb.mxu1 %v9076_v11  ;;  %3005 = vmatpush.bf16.msra.mxu0 %v8912_v19  ;;  %v2003_v11 = vpop.f32.mrf.mxu1  ;;  %v9048_v19 = vor.u32 %v11900_v15, %v9045_v17  ;;  %v2021_v24 = vpop.f32.mrf.mxu3 }
 0x16c   : > { %v2022_v34 = vadd.f32 %v2021_v24, %v2003_v11  ;;  %v1992_v28 = vpop.f32.mrf.mxu2 }
 0x16e   : > { %3093 = vmatpush.bf16.msrb.mxu2 %v9240_v22  ;;  %3006 = vmatmul.bf16.vlgmr.msra.gmra.mxu0 %v14134_v48  ;;  %v2159_v22 = vld [vmem:[#allocation2 + $0xb8] sm:$0x1] }
 0x16f   : > { %3037 = vmatpush.bf16.msrb.mxu1 %v9044_v23  ;;  %3070 = vmatpush.bf16.msrb.mxu0 %v9144_v43  ;;  %v1991_v23 = vadd.f32 %v1990_v18, %v1972_v61  ;;  %v1974_v26 = vpop.f32.mrf.mxu0  ;;  %v2151_v18 = vld [vmem:[#allocation2 + $0x50] sm:$0xff] }
 0x171   : > { %v2181_v36 = vadd.f32 %v2157_v33, %v1991_v23  ;;  %9283 = vmatmul.msk.bf16.vlgmr.msra.gmra.mxu2 %vm901_vm0, %v14118_v42 }
 0x172   : > { %3094 = vmatpush.bf16.msrb.mxu2 %v9208_v45  ;;  %9282 = vmatmul.msk.bf16.gmra.mxu3 %vm901_vm0, %v14094_v25 }
 0x173   : > { %3038 = vmatpush.bf16.msrb.mxu1 %v9012_v39  ;;  %3071 = vmatpush.bf16.msrb.mxu0 %v9112_v55  ;;  %v2166_v39 = vadd.f32 %v2142_v37, %v2022_v34  ;;  %2205 = vst [vmem:[#allocation2 + $0x58] sm:$0x1] %v2181_v36  ;;  %v2005_v43 = vpop.f32.mrf.mxu1  ;;  %v2023_v53 = vpop.f32.mrf.mxu3 }
 0x174   : > { %v2024_v55 = vadd.f32 %v2023_v53, %v2005_v43  ;;  %v2057_v2 = vpop.f32.mrf.mxu2  ;;  %v9427_v43 = vld [vmem:[%s18200_s4 + $0xf0] sm:$0xf]  ;;  %v9355_v53 = vld [vmem:[%s18200_s4 + $0x60] sm:$0xf] }
 0x175   : > { %2190 = vst [vmem:[#allocation2 + $0x60] sm:$0xff] %v2166_v39  ;;  %v9428_v28 = vor.u32 %v12128_v47, %v9427_v43  ;;  %v12100_v47 = vld [vmem:[%s18200_s4 + $0x14] sm:$0xf0] }
 0x176   : > { %v2174_v50 = vadd.f32 %v2150_v59, %v2024_v55 }
 0x177   : > { %3039 = vmatpush.bf16.msrb.mxu1 %v8980_v51  ;;  %3072 = vmatpush.bf16.msrb.mxu0 %v9080_v7  ;;  %v9173_v51 = vld [vmem:[%s18197_s1 + $0x838] sm:$0xf0]  ;;  %v2039_v52 = vpop.f32.mrf.mxu0 }
 0x178   : > { %v9176_v54 = vor.u32 %v11932_v27, %v9173_v51  ;;  %2198 = vst [vmem:[#allocation2 + $0x38] sm:$0xff] %v2174_v50  ;;  %3933 = vmatpush.bf16.msra.mxu3 %v9428_v28  ;;  %v9347_v50 = vld [vmem:[%s18200_s4 + $0x50] sm:$0xf] }
 0x17a   : > { %3095 = vmatpush.bf16.msrb.mxu2 %v9176_v54  ;;  %2975 = vmatmul.bf16.gmra.mxu1 %v14102_v32  ;;  %v9419_v54 = vld [vmem:[%s18200_s4 + $0xe0] sm:$0xf] }
 0x17b   : > { %3040 = vmatpush.bf16.msrb.mxu1 %v8948_v4  ;;  %3073 = vmatpush.bf16.msrb.mxu0 %v9048_v19  ;;  %v2008_v61 = vpop.f32.mrf.mxu1  ;;  %v2026_v44 = vpop.f32.mrf.mxu3  ;;  %v2058_v4 = vadd.f32 %v2057_v2, %v2039_v52  ;;  %v12110_v52 = vld [vmem:[%s18200_s4 + $0x64] sm:$0xf0] }
 0x17c   : > { %v2027_v7 = vadd.f32 %v2026_v44, %v2008_v61  ;;  %v2059_v14 = vpop.f32.mrf.mxu2  ;;  %v12108_v61 = vld [vmem:[%s18200_s4 + $0x54] sm:$0xf0] }
 0x17d   : > { %v2167_v11 = vadd.f32 %v2143_v8, %v2058_v4  ;;  %v9348_v2 = vor.u32 %v12108_v61, %v9347_v50  ;;  %v12124_v44 = vld [vmem:[%s18200_s4 + $0xd4] sm:$0xf0]  ;;  %v2160_v4 = vld [vmem:[#allocation2 + $0x20] sm:$0x1]  ;;  %v12111_v50 = vld [vmem:[%s18200_s4 + $0x74] sm:$0xf] }
 0x17e   : > { %v2182_v29 = vadd.f32 %v2158_v9, %v2027_v7  ;;  %3011 = vmatmul.bf16.gmra.mxu0 %v14102_v32  ;;  %v9412_v7 = vor.u32 %v12124_v44, %v9411_v62  ;;  %v9365_v61 = vld [vmem:[%s18200_s4 + $0x78] sm:$0xf0]  ;;  %v12127_v62 = vld [vmem:[%s18200_s4 + $0xf4] sm:$0xf] }
 0x17f   : > { %3041 = vmatpush.bf16.msrb.mxu1 %v8916_v16  ;;  %3074 = vmatpush.bf16.msrb.mxu0 %v9016_v38  ;;  %v2041_v6 = vpop.f32.mrf.mxu0  ;;  %2191 = vst [vmem:[#allocation2 + $0x28] sm:$0xff] %v2167_v11  ;;  %v9339_v11 = vld [vmem:[%s18200_s4 + $0x40] sm:$0xf] }
 0x180   : > { %2206 = vst [vmem:[#allocation2 + $0x80] sm:$0x1] %v2182_v29  ;;  %v2060_v16 = vadd.f32 %v2059_v14, %v2041_v6  ;;  %v12106_v29 = vld [vmem:[%s18200_s4 + $0x44] sm:$0xf0]  ;;  %v9403_v14 = vld [vmem:[%s18200_s4 + $0xc0] sm:$0xf] }
 0x181   : > { %9284 = vmatmul.msk.bf16.gmra.mxu2 %vm901_vm0, %v14094_v25 }
 0x182   : > { %v2175_v19 = vadd.f32 %v2151_v18, %v2060_v16  ;;  %9285 = vmatmul.msk.bf16.vlgmr.msrb.gmra.mxu3 %vm901_vm0, %v14118_v42 }
 0x183   : > { %3075 = vmatpush.bf16.msrb.mxu0 %v8984_v49  ;;  %v2010_v12 = vpop.f32.mrf.mxu1  ;;  %v2028_v15 = vpop.f32.mrf.mxu3  ;;  %v2152_v49 = vld [vmem:[#allocation2 + $0x70] sm:$0xff]  ;;  %3919 = vmatpush.bf16.msra.mxu1 %v9364_v46 }
 0x184   : > { %2199 = vst [vmem:[#allocation2 + $0x50] sm:$0xff] %v2175_v19  ;;  %v2062_v21 = vpop.f32.mrf.mxu2  ;;  %v9340_v12 = vor.u32 %v12106_v29, %v9339_v11  ;;  %v12122_v15 = vld [vmem:[%s18200_s4 + $0xc4] sm:$0xf0]  ;;  %v9315_v46 = vld [vmem:[%s18200_s4 + $0x10] sm:$0xf] }
 0x185   : > { %v9404_v16 = vor.u32 %v12122_v15, %v9403_v14  ;;  %v12109_v14 = vld [vmem:[%s18200_s4 + $0x64] sm:$0xf]  ;;  %v9357_v15 = vld [vmem:[%s18200_s4 + $0x68] sm:$0xf0] }
 0x187   : > { %3076 = vmatpush.bf16.msrb.mxu0 %v8952_v60  ;;  %v2044_v17 = vpop.f32.mrf.mxu0 }
 0x188   : > { %v2063_v23 = vadd.f32 %v2062_v21, %v2044_v17  ;;  %v9331_v21 = vld [vmem:[%s18200_s4 + $0x30] sm:$0xf] }
 0x18a   : > { %3042 = vmatmul.bf16.vlgmr.msrb.gmra.mxu1 %v14134_v48  ;;  %v2183_v34 = vadd.f32 %v2159_v22, %v2063_v23  ;;  %v12104_v23 = vld [vmem:[%s18200_s4 + $0x34] sm:$0xf0] }
 0x18b   : > { %3077 = vmatpush.bf16.msrb.mxu0 %v8920_v1  ;;  %v2075_v20 = vpop.f32.mrf.mxu1  ;;  %v2093_v24 = vpop.f32.mrf.mxu3  ;;  %v2145_v1 = vld [vmem:[#allocation2 + $0x78] sm:$0xff]  ;;  %v9332_v22 = vor.u32 %v12104_v23, %v9331_v21 }
 0x18c   : > { %v2094_v33 = vadd.f32 %v2093_v24, %v2075_v20  ;;  %2207 = vst [vmem:[#allocation2 + $0xb8] sm:$0x1] %v2183_v34  ;;  %v2064_v37 = vpop.f32.mrf.mxu2  ;;  %v9395_v24 = vld [vmem:[%s18200_s4 + $0xb0] sm:$0xf] }
 0x18d   : > { %v12102_v37 = vld [vmem:[%s18200_s4 + $0x24] sm:$0xf0] }
 0x18e   : > { %v2168_v35 = vadd.f32 %v2144_v5, %v2094_v33  ;;  %3078 = vmatmul.bf16.vlgmr.msrb.gmra.mxu0 %v14134_v48  ;;  %v9356_v48 = vor.u32 %v12110_v52, %v9355_v53  ;;  %v12120_v33 = vld [vmem:[%s18200_s4 + $0xb4] sm:$0xf0] }
 0x18f   : > { %v2046_v26 = vpop.f32.mrf.mxu0  ;;  %v9396_v5 = vor.u32 %v12120_v33, %v9395_v24  ;;  %v12116_v53 = vld [vmem:[%s18200_s4 + $0x94] sm:$0xf0]  ;;  %v9547_v33 = vld [vmem:[%s18200_s4 + $0x1e0] sm:$0xf] }
 0x190   : > { %2192 = vst [vmem:[#allocation2 + $0x40] sm:$0xff] %v2168_v35  ;;  %3920 = vmatpush.bf16.msra.mxu1 %v9356_v48  ;;  %v2153_v26 = vld [vmem:[#allocation2 + $0xa0] sm:$0xff] }
 0x191   : > { %9287 = vmatmul.msk.bf16.vlgmr.msrb.gmra.mxu2 %vm901_vm0, %v14118_v42  ;;  %v12126_v42 = vld [vmem:[%s18200_s4 + $0xe4] sm:$0xf0] }
 0x192   : > { %9286 = vmatmul.msk.bf16.gmra.mxu3 %vm901_vm0, %v14094_v25  ;;  %v9420_v55 = vor.u32 %v12126_v42, %v9419_v54 }
 0x193   : > { %v2077_v36 = vpop.f32.mrf.mxu1  ;;  %v2095_v38 = vpop.f32.mrf.mxu3 }
 0x194   : > { %v2096_v45 = vadd.f32 %v2095_v38, %v2077_v36  ;;  %v2129_v56 = vpop.f32.mrf.mxu2  ;;  %3934 = vmatpush.bf16.msra.mxu3 %v9420_v55  ;;  %3921 = vmatpush.bf16.msra.mxu1 %v9348_v2  ;;  %v9323_v36 = vld [vmem:[%s18200_s4 + $0x20] sm:$0xf]  ;;  %v9429_v2 = vld [vmem:[%s18200_s4 + $0xf8] sm:$0xf0] }
 0x195   : > { %v9324_v38 = vor.u32 %v12102_v37, %v9323_v36  ;;  %v9307_v55 = vld [vmem:[%s18200_s4] sm:$0xf]  ;;  %v9349_v37 = vld [vmem:[%s18200_s4 + $0x58] sm:$0xf0] }
 0x196   : > { %v2176_v27 = vadd.f32 %v2152_v49, %v2096_v45  ;;  %v2161_v49 = vld [vmem:[#allocation2 + $0x8] sm:$0x1] }
 0x197   : > { %v2111_v39 = vpop.f32.mrf.mxu0 }
 0x198   : > { %2200 = vst [vmem:[#allocation2 + $0x70] sm:$0xff] %v2176_v27  ;;  %v2130_v59 = vadd.f32 %v2129_v56, %v2111_v39  ;;  %3935 = vmatpush.bf16.msra.mxu3 %v9412_v7  ;;  %3922 = vmatpush.bf16.msra.mxu1 %v9340_v12  ;;  %v9316_v27 = vor.u32 %v12100_v47, %v9315_v46  ;;  %v12098_v56 = vld [vmem:[%s18200_s4 + $0x4] sm:$0xf0]  ;;  %v9491_v7 = vld [vmem:[%s18200_s4 + $0x170] sm:$0xf] }
 0x199   : > { %v12160_v12 = vld [vmem:[%s18200_s4 + $0x1f4] sm:$0xf0] }
 0x19a   : > { %3047 = vmatmul.bf16.gmra.mxu1 %v14102_v32  ;;  %v2169_v6 = vadd.f32 %v2145_v1, %v2130_v59  ;;  %v9371_v59 = vld [vmem:[%s18200_s4 + $0x80] sm:$0xf]  ;;  %v9368_v1 = vor.u32 %v12111_v50, %v9365_v61  ;;  %v9405_v50 = vld [vmem:[%s18200_s4 + $0xc8] sm:$0xf0] }
 0x19b   : > { %v2080_v51 = vpop.f32.mrf.mxu1  ;;  %v2098_v57 = vpop.f32.mrf.mxu3 }
 0x19c   : > { %v2099_v0 = vadd.f32 %v2098_v57, %v2080_v51  ;;  %2193 = vst [vmem:[#allocation2 + $0x78] sm:$0xff] %v2169_v6  ;;  %v2131_v17 = vpop.f32.mrf.mxu2  ;;  %3936 = vmatpush.bf16.msra.mxu3 %v9404_v16  ;;  %3923 = vmatpush.bf16.msra.mxu1 %v9332_v22  ;;  %v9379_v51 = vld [vmem:[%s18200_s4 + $0x90] sm:$0xf]  ;;  %v9308_v57 = vor.u32 %v12098_v56, %v9307_v55  ;;  %v14671_v16 = vld [vmem:[%s18198_s2] sm:$0xff]  ;;  %v12142_v22 = vld [vmem:[%s18200_s4 + $0x164] sm:$0xf0] }
 0x19d   : > { %v9380_v54 = vor.u32 %v12116_v53, %v9379_v51  ;;  %v9432_v6 = vor.u32 %v12127_v62, %v9429_v2  ;;  %v9539_v51 = vld [vmem:[%s18200_s4 + $0x1d0] sm:$0xf]  ;;  %v3122_v56 = vld [vmem:[#allocation2 + $0xa8] sm:$0x1] }
 0x19e   : > { %v2184_v8 = vadd.f32 %v2160_v4, %v2099_v0  ;;  %3083 = vmatmul.bf16.gmra.mxu0 %v14102_v32  ;;  %v9387_v32 = vld [vmem:[%s18200_s4 + $0xa0] sm:$0xf]  ;;  %v12138_v2 = vld [vmem:[%s18200_s4 + $0x144] sm:$0xf0] }
 0x19f   : > { %v2113_v60 = vpop.f32.mrf.mxu0 }
 0x1a0   : > { %2208 = vst [vmem:[#allocation2 + $0x20] sm:$0x1] %v2184_v8  ;;  %v2132_v19 = vadd.f32 %v2131_v17, %v2113_v60  ;;  %3937 = vmatpush.bf16.msra.mxu3 %v9396_v5  ;;  %3924 = vmatpush.bf16.msra.mxu1 %v9324_v38  ;;  %v12144_v8 = vld [vmem:[%s18200_s4 + $0x174] sm:$0xf0]  ;;  %v12158_v5 = vld [vmem:[%s18200_s4 + $0x1e4] sm:$0xf0] }
 0x1a1   : > { %9288 = vmatmul.msk.bf16.gmra.mxu2 %vm901_vm0, %v14094_v25  ;;  %v12118_v25 = vld [vmem:[%s18200_s4 + $0xa4] sm:$0xf0]  ;;  %v9492_v29 = vor.u32 %v12144_v8, %v9491_v7  ;;  %v9548_v36 = vor.u32 %v12158_v5, %v9547_v33  ;;  %v12123_v38 = vld [vmem:[%s18200_s4 + $0xd4] sm:$0xf]  ;;  %v9459_v33 = vld [vmem:[%s18200_s4 + $0x130] sm:$0xf] }
 0x1a2   : > { %v2177_v34 = vadd.f32 %v2153_v26, %v2132_v19  ;;  %v9388_v39 = vor.u32 %v12118_v25, %v9387_v32  ;;  %v12125_v19 = vld [vmem:[%s18200_s4 + $0xe4] sm:$0xf]  ;;  %v9483_v26 = vld [vmem:[%s18200_s4 + $0x160] sm:$0xf]  ;;  %v9413_v32 = vld [vmem:[%s18200_s4 + $0xd8] sm:$0xf0] }
 0x1a3   : > { %v2082_v9 = vpop.f32.mrf.mxu1  ;;  %v2100_v18 = vpop.f32.mrf.mxu3  ;;  %3947 = vmatpush.bf16.msra.mxu0 %v9492_v29  ;;  %v2139_v25 = vld [vmem:[#allocation2] sm:$0xff]  ;;  %v12154_v7 = vld [vmem:[%s18200_s4 + $0x1c4] sm:$0xf0]  ;;  %v12103_v29 = vld [vmem:[%s18200_s4 + $0x34] sm:$0xf] }
 0x1a4   : > { %2201 = vst [vmem:[#allocation2 + $0xa0] sm:$0xff] %v2177_v34  ;;  %v2134_v31 = vpop.f32.mrf.mxu2  ;;  %3938 = vmatpush.bf16.msra.mxu3 %v9388_v39  ;;  %3925 = vmatpush.bf16.msra.mxu1 %v9316_v27  ;;  %v9555_v9 = vld [vmem:[%s18200_s4 + $0x1f0] sm:$0xf]  ;;  %v9360_v18 = vor.u32 %v12109_v14, %v9357_v15  ;;  %v14692_v34 = vperm.slane %v14671_v16, 0  ;;  %v12140_v27 = vld [vmem:[%s18200_s4 + $0x154] sm:$0xf0]  ;;  %vm7742_vm0 = vmand %vm3291_vm5, %vm7741_vm14 }
 0x1a5   : > { %v9556_v17 = vor.u32 %v12160_v12, %v9555_v9  ;;  %v9333_v12 = vld [vmem:[%s18200_s4 + $0x38] sm:$0xf0]  ;;  %v9523_v5 = vld [vmem:[%s18200_s4 + $0x1b0] sm:$0xf] }
 0x1a6   : > { %v9336_v15 = vor.u32 %v12103_v29, %v9333_v12  ;;  %v12148_v12 = vld [vmem:[%s18200_s4 + $0x194] sm:$0xf0] }
 0x1a7   : > { %v2116_v20 = vpop.f32.mrf.mxu0  ;;  %3961 = vmatpush.bf16.msra.mxu2 %v9556_v17  ;;  %v12119_v17 = vld [vmem:[%s18200_s4 + $0xb4] sm:$0xf] }
 0x1a8   : > { %v2135_v40 = vadd.f32 %v2134_v31, %v2116_v20  ;;  %3939 = vmatpush.bf16.msra.mxu3 %v9380_v54  ;;  %3926 = vmatpush.bf16.msra.mxu1 %v9308_v57  ;;  %v9421_v20 = vld [vmem:[%s18200_s4 + $0xe8] sm:$0xf0]  ;;  %v14710_v31 = vperm.slane %v14671_v16, 1  ;;  %v12105_v54 = vld [vmem:[%s18200_s4 + $0x44] sm:$0xf] }
 0x1a9   : > { %v9424_v23 = vor.u32 %v12125_v19, %v9421_v20 }
 0x1aa   : > { %v2185_v52 = vadd.f32 %v2161_v49, %v2135_v40 }
 0x1ab   : > { %v2827_v35 = vpop.f32.mrf.mxu1  ;;  %v2845_v43 = vpop.f32.mrf.mxu3  ;;  %3962 = vmatpush.bf16.msra.mxu2 %v9548_v36  ;;  %v12152_v36 = vld [vmem:[%s18200_s4 + $0x1b4] sm:$0xf0] }
 0x1ac   : > { %v2846_v28 = vadd.f32 %v2845_v43, %v2827_v35  ;;  %2209 = vst [vmem:[#allocation2 + $0x8] sm:$0x1] %v2185_v52  ;;  %v2136_v0 = vpop.f32.mrf.mxu2  ;;  %3975 = vmatpush.bf16.msrb.mxu1 %v9368_v1  ;;  %v12107_v35 = vld [vmem:[%s18200_s4 + $0x54] sm:$0xf]  ;;  %v9416_v43 = vor.u32 %v12123_v38, %v9413_v32  ;;  %v9467_v1 = vld [vmem:[%s18200_s4 + $0x140] sm:$0xf] }
 0x1ad   : > { %v9352_v40 = vor.u32 %v12107_v35, %v9349_v37  ;;  %v12101_v37 = vld [vmem:[%s18200_s4 + $0x24] sm:$0xf]  ;;  %v9325_v38 = vld [vmem:[%s18200_s4 + $0x28] sm:$0xf0] }
 0x1ae   : > { %v14624_v48 = vadd.f32 %v2846_v28, %v14173_v63  ;;  %v12114_v63 = vld [vmem:[%s18200_s4 + $0x84] sm:$0xf0]  ;;  %v9475_v28 = vld [vmem:[%s18200_s4 + $0x150] sm:$0xf] }
 0x1af   : > { %v2118_v45 = vpop.f32.mrf.mxu0  ;;  %v9372_v60 = vor.u32 %v12114_v63, %v9371_v59  ;;  %v9476_v52 = vor.u32 %v12140_v27, %v9475_v28  ;;  %v9451_v28 = vld [vmem:[%s18200_s4 + $0x120] sm:$0xf]  ;;  %v12134_v27 = vld [vmem:[%s18200_s4 + $0x124] sm:$0xf0] }
 0x1b0   : > { %3976 = vmatpush.bf16.msrb.mxu1 %v9360_v18  ;;  %v2163_v45 = vadd.f32 %v2139_v25, %v14238_v58  ;;  %v12156_v58 = vld [vmem:[%s18200_s4 + $0x1d4] sm:$0xf0]  ;;  %v3220_v55 = vadd.f32 %v14692_v34, %v14624_v48  ;;  %v9397_v18 = vld [vmem:[%s18200_s4 + $0xb8] sm:$0xf0]  ;;  %v9524_v25 = vor.u32 %v12152_v36, %v9523_v5  ;;  %v12130_v5 = vld [vmem:[%s18200_s4 + $0x104] sm:$0xf0] }
 0x1b1   : > { %3940 = vmatpush.bf16.msra.mxu3 %v9372_v60  ;;  %v9540_v59 = vor.u32 %v12156_v58, %v9539_v51  ;;  %v12121_v60 = vld [vmem:[%s18200_s4 + $0xc4] sm:$0xf]  ;;  %v9515_v51 = vld [vmem:[%s18200_s4 + $0x1a0] sm:$0xf] }
 0x1b2   : > { %v9408_v62 = vor.u32 %v12121_v60, %v9405_v50  ;;  %v3244_v8 = vmax.f32 %v3220_v55, 0.0  ;;  %v3123_v60 = vld [vmem:[#allocation2 + $0x68] sm:$0x1] }
 0x1b3   : > { %v2829_v42 = vpop.f32.mrf.mxu1  ;;  %v2847_v44 = vpop.f32.mrf.mxu3  ;;  %3963 = vmatpush.bf16.msra.mxu2 %v9540_v59 }
 0x1b4   : > { %v2848_v11 = vadd.f32 %v2847_v44, %v2829_v42  ;;  %v2881_v39 = vpop.f32.mrf.mxu2  ;;  %3977 = vmatpush.bf16.msrb.mxu1 %v9352_v40  ;;  %v9341_v42 = vld [vmem:[%s18200_s4 + $0x48] sm:$0xf0]  ;;  %v2147_v44 = vld [vmem:[#allocation2 + $0x90] sm:$0xff] }
 0x1b5   : > { %3989 = vmatpush.bf16.msrb.mxu3 %v9432_v6  ;;  %v9344_v63 = vor.u32 %v12105_v54, %v9341_v42  ;;  %v9531_v6 = vld [vmem:[%s18200_s4 + $0x1c0] sm:$0xf]  ;;  %v2171_v19 = vadd.f32 %v2147_v44, %v14276_v10  ;;  %v9389_v40 = vld [vmem:[%s18200_s4 + $0xa8] sm:$0xf0]  ;;  %v9452_v42 = vor.u32 %v12134_v27, %v9451_v28 }
 0x1b6   : > { %v14680_v21 = vadd.f32 %v2848_v11, %v14212_v13  ;;  %v9484_v13 = vor.u32 %v12142_v22, %v9483_v26  ;;  %v9532_v11 = vor.u32 %v12154_v7, %v9531_v6  ;;  %v9400_v22 = vor.u32 %v12119_v17, %v9397_v18  ;;  %v12132_v6 = vld [vmem:[%s18200_s4 + $0x114] sm:$0xf0]  ;;  %v9507_v7 = vld [vmem:[%s18200_s4 + $0x190] sm:$0xf] }
 0x1b7   : > { %v2863_v4 = vpop.f32.mrf.mxu0  ;;  %v9508_v18 = vor.u32 %v12148_v12, %v9507_v7  ;;  %v12139_v7 = vld [vmem:[%s18200_s4 + $0x154] sm:$0xf]  ;;  %v9541_v12 = vld [vmem:[%s18200_s4 + $0x1d8] sm:$0xf0] }
 0x1b8   : > { %3948 = vmatpush.bf16.msra.mxu0 %v9484_v13  ;;  %v2882_v47 = vadd.f32 %v2881_v39, %v2863_v4  ;;  %3978 = vmatpush.bf16.msrb.mxu1 %v9344_v63  ;;  %v9468_v4 = vor.u32 %v12138_v2, %v9467_v1  ;;  %v12136_v13 = vld [vmem:[%s18200_s4 + $0x134] sm:$0xf0]  ;;  %v3228_v10 = vadd.f32 %v14692_v34, %v14680_v21  ;;  %v12117_v21 = vld [vmem:[%s18200_s4 + $0xa4] sm:$0xf] }
 0x1b9   : > { %3990 = vmatpush.bf16.msrb.mxu3 %v9424_v23  ;;  %3964 = vmatpush.bf16.msra.mxu2 %v9532_v11  ;;  %v9460_v35 = vor.u32 %v12136_v13, %v9459_v33  ;;  %v9328_v39 = vor.u32 %v12101_v37, %v9325_v38  ;;  %v2148_v33 = vld [vmem:[#allocation2 + $0x18] sm:$0xff]  ;;  %v9435_v13 = vld [vmem:[%s18200_s4 + $0x100] sm:$0xf]  ;;  %v12146_v38 = vld [vmem:[%s18200_s4 + $0x184] sm:$0xf0] }
 0x1ba   : > { %v3131_v57 = vadd.f32 %v2882_v47, %v2163_v45  ;;  %v9392_v45 = vor.u32 %v12117_v21, %v9389_v40  ;;  %v3252_v58 = vmax.f32 %v3228_v10, 0.0  ;;  %v9499_v10 = vld [vmem:[%s18200_s4 + $0x180] sm:$0xf]  ;;  %v9436_v37 = vor.u32 %v12130_v5, %v9435_v13  ;;  %v9493_v40 = vld [vmem:[%s18200_s4 + $0x178] sm:$0xf0] }
 0x1bb   : > { %v2832_v24 = vpop.f32.mrf.mxu1  ;;  %v2850_v46 = vpop.f32.mrf.mxu3  ;;  %v9500_v21 = vor.u32 %v12146_v38, %v9499_v10  ;;  %v12153_v13 = vld [vmem:[%s18200_s4 + $0x1c4] sm:$0xf] }
 0x1bc   : > { %v2851_v53 = vadd.f32 %v2850_v46, %v2832_v24  ;;  %3949 = vmatpush.bf16.msra.mxu0 %v9476_v52  ;;  %3155 = vst [vmem:[#allocation2] sm:$0xff] %v3131_v57  ;;  %v3221_v48 = vadd.f32 %v14710_v31, %v3131_v57  ;;  %v2883_v14 = vpop.f32.mrf.mxu2  ;;  %3979 = vmatpush.bf16.msrb.mxu1 %v9336_v15  ;;  %v2140_v52 = vld [vmem:[#allocation2 + $0x10] sm:$0xff]  ;;  %v9317_v57 = vld [vmem:[%s18200_s4 + $0x18] sm:$0xf0] }
 0x1bd   : > { %3991 = vmatpush.bf16.msrb.mxu3 %v9416_v43  ;;  %3965 = vmatpush.bf16.msra.mxu2 %v9524_v25  ;;  %v12159_v43 = vld [vmem:[%s18200_s4 + $0x1f4] sm:$0xf]  ;;  %v2172_v46 = vadd.f32 %v2148_v33, %v14358_v3  ;;  %v9485_v3 = vld [vmem:[%s18200_s4 + $0x168] sm:$0xf0] }
 0x1be   : > { %v3146_v61 = vadd.f32 %v3122_v56, %v2851_v53  ;;  %v3245_v9 = vmax.f32 %v3221_v48, 0.0  ;;  %v12150_v53 = vld [vmem:[%s18200_s4 + $0x1a4] sm:$0xf0]  ;;  %v12099_v56 = vld [vmem:[%s18200_s4 + $0x14] sm:$0xf] }
 0x1bf   : > { %v2865_v49 = vpop.f32.mrf.mxu0  ;;  %v9516_v55 = vor.u32 %v12150_v53, %v9515_v51  ;;  %v9320_v50 = vor.u32 %v12099_v56, %v9317_v57  ;;  %v9469_v33 = vld [vmem:[%s18200_s4 + $0x148] sm:$0xf0] }
 0x1c0   : > { %3170 = vst [vmem:[#allocation2 + $0xa8] sm:$0x1] %v3146_v61  ;;  %3950 = vmatpush.bf16.msra.mxu0 %v9468_v4  ;;  %v3268_v20 = vpack.c.bf16 %v3245_v9, %v3244_v8  ;;  %v2884_v24 = vadd.f32 %v2883_v14, %v2865_v49  ;;  %3980 = vmatpush.bf16.msrb.mxu1 %v9328_v39  ;;  %v12115_v61 = vld [vmem:[%s18200_s4 + $0x94] sm:$0xf]  ;;  %v9443_v4 = vld [vmem:[%s18200_s4 + $0x110] sm:$0xf] }
 0x1c1   : > { %3992 = vmatpush.bf16.msrb.mxu3 %v9408_v62  ;;  %v9381_v62 = vld [vmem:[%s18200_s4 + $0x98] sm:$0xf0]  ;;  %3966 = vmatpush.bf16.msra.mxu2 %v9516_v55  ;;  %v2164_v8 = vadd.f32 %v2140_v52, %v14320_v41  ;;  %v9444_v29 = vor.u32 %v12132_v6, %v9443_v4  ;;  %v12097_v14 = vld [vmem:[%s18200_s4 + $0x4] sm:$0xf]  ;;  %v9309_v41 = vld [vmem:[%s18200_s4 + $0x8] sm:$0xf0] }
 0x1c2   : > { %3280 = vst [vmem:[#allocation3] sm:$0xff] %v3268_v20  ;;  %v3139_v32 = vadd.f32 %v2884_v24, %v2171_v19  ;;  %v9384_v44 = vor.u32 %v12115_v61, %v9381_v62  ;;  %v12113_v19 = vld [vmem:[%s18200_s4 + $0x84] sm:$0xf]  ;;  %v9373_v24 = vld [vmem:[%s18200_s4 + $0x88] sm:$0xf0]  ;;  %v14913_v4 = vperm.slane %v14671_v16, 3 }
 0x1c3   : > { %v2834_v0 = vpop.f32.mrf.mxu1  ;;  %v2852_v23 = vpop.f32.mrf.mxu3  ;;  %v2141_v55 = vld [vmem:[#allocation2 + $0x48] sm:$0xff]  ;;  %v3295_v61 = vld [vmem:[#allocation3 + $0x40] sm:$0x11] }
 0x1c4   : > { %3951 = vmatpush.bf16.msra.mxu0 %v9460_v35  ;;  %3163 = vst [vmem:[#allocation2 + $0x90] sm:$0xff] %v3139_v32  ;;  %v3229_v47 = vadd.f32 %v14710_v31, %v3139_v32  ;;  %v2886_v63 = vpop.f32.mrf.mxu2  ;;  %3981 = vmatpush.bf16.msrb.mxu1 %v9320_v50  ;;  %v9312_v23 = vor.u32 %v12097_v14, %v9309_v41  ;;  %v12143_v32 = vld [vmem:[%s18200_s4 + $0x174] sm:$0xf]  ;;  %v3124_v14 = vld [vmem:[#allocation2 + $0x30] sm:$0x1] }
 0x1c5   : > { %3993 = vmatpush.bf16.msrb.mxu3 %v9400_v22  ;;  %3967 = vmatpush.bf16.msra.mxu2 %v9508_v18  ;;  %v9376_v22 = vor.u32 %v12113_v19, %v9373_v24  ;;  %v12137_v24 = vld [vmem:[%s18200_s4 + $0x144] sm:$0xf] }
 0x1c6   : > { %v3253_v54 = vmax.f32 %v3229_v47, 0.0  ;;  %v9472_v10 = vor.u32 %v12137_v24, %v9469_v33  ;;  %v3110_v33 = vld [vmem:[#allocation2 + $0x60] sm:$0xff] }
 0x1c7   : > { %v2868_v26 = vpop.f32.mrf.mxu0  ;;  %v3194_v35 = vld [vmem:[#allocation2 + $0xa8] sm:$0x1] }
 0x1c8   : > { %v3272_v48 = vpack.c.bf16 %v3253_v54, %v3252_v58  ;;  %v2887_v0 = vadd.f32 %v2886_v63, %v2868_v26  ;;  %3952 = vmatpush.bf16.msra.mxu0 %v9452_v42  ;;  %3982 = vmatpush.bf16.msrb.mxu1 %v9312_v23  ;;  %v3236_v27 = vadd.f32 %v14692_v34, %v3194_v35  ;;  %v12141_v54 = vld [vmem:[%s18200_s4 + $0x164] sm:$0xf]  ;;  %v14905_v42 = vperm.slane %v14671_v16, 2  ;;  %v9533_v35 = vld [vmem:[%s18200_s4 + $0x1c8] sm:$0xf0] }
 0x1c9   : > { %3994 = vmatpush.bf16.msrb.mxu3 %v9392_v45  ;;  %v3307_v9 = vld [vmem:[#allocation3] sm:$0x11]  ;;  %v9557_v45 = vld [vmem:[%s18200_s4 + $0x1f8] sm:$0xf0]  ;;  %3968 = vmatpush.bf16.msra.mxu2 %v9500_v21  ;;  %v9488_v63 = vor.u32 %v12141_v54, %v9485_v3 }
 0x1ca   : > { %v3308_v15 = vsel %vm14826_vm9, 0, %v3307_v9  ;;  %3284 = vst [vmem:[#allocation3 + $0x20] sm:$0xff] %v3272_v48  ;;  %v3147_v17 = vadd.f32 %v3123_v60, %v2887_v0  ;;  %v9560_v28 = vor.u32 %v12159_v43, %v9557_v45  ;;  %v12157_v34 = vld [vmem:[%s18200_s4 + $0x1e4] sm:$0xf]  ;;  %v3260_v56 = vmax.f32 %v3236_v27, 0.0 }
 0x1cb   : > { %v2899_v49 = vpop.f32.mrf.mxu1  ;;  %v2917_v1 = vpop.f32.mrf.mxu3  ;;  %3309 = vst [vmem:[#allocation3] sm:$0x11] %v3308_v15  ;;  %v2165_v0 = vadd.f32 %v2141_v55, %v14402_v30  ;;  %v9461_v21 = vld [vmem:[%s18200_s4 + $0x138] sm:$0xf0]  ;;  %v14972_v55 = vld [vmem:[%s18199_s3 + $0x74] sm:$0xf0] }
 0x1cc   : > { %v2918_v11 = vadd.f32 %v2917_v1, %v2899_v49  ;;  %3171 = vst [vmem:[#allocation2 + $0x68] sm:$0x1] %v3147_v17  ;;  %3953 = vmatpush.bf16.msra.mxu0 %v9444_v29  ;;  %v2888_v36 = vpop.f32.mrf.mxu2  ;;  %v9496_v49 = vor.u32 %v12143_v32, %v9493_v40  ;;  %v12155_v29 = vld [vmem:[%s18200_s4 + $0x1d4] sm:$0xf]  ;;  %v9536_v32 = vor.u32 %v12153_v13, %v9533_v35  ;;  %v9627_v35 = vld [vmem:[%s18199_s3 + $0x60] sm:$0xf] }
 0x1cd   : > { %3995 = vmatpush.bf16.msrb.mxu3 %v9384_v44  ;;  %4017 = vmatpush.bf16.msrb.mxu2 %v9560_v28  ;;  %v3117_v28 = vld [vmem:[#allocation2 + $0x98] sm:$0xff] }
 0x1ce   : > { %v14860_v20 = vadd.f32 %v2918_v11, %v2164_v8  ;;  %v9477_v8 = vld [vmem:[%s18200_s4 + $0x158] sm:$0xf0] }
 0x1cf   : > { %v2870_v2 = vpop.f32.mrf.mxu0  ;;  %v9480_v11 = vor.u32 %v12139_v7, %v9477_v8 }
 0x1d0   : > { %3156 = vst [vmem:[#allocation2 + $0x10] sm:$0xff] %v14860_v20  ;;  %3954 = vmatpush.bf16.msra.mxu0 %v9436_v37  ;;  %v3222_v30 = vadd.f32 %v14905_v42, %v14860_v20  ;;  %v9544_v20 = vor.u32 %v12155_v29, %v9541_v12  ;;  %v12131_v29 = vld [vmem:[%s18200_s4 + $0x114] sm:$0xf] }
 0x1d1   : > { %3996 = vmatpush.bf16.msrb.mxu3 %v9376_v22  ;;  %v11965_v48 = vld [vmem:[#allocation3 + $0x1c] sm:$0xf0]  ;;  %v9293_v19 = vld [vmem:[#allocation3 + $0x20] sm:$0xf0] }
 0x1d2   : > { %v9291_v62 = vld [vmem:[#allocation3] sm:$0xf]  ;;  %v11961_v41 = vld [vmem:[#allocation3 + $0x4] sm:$0xf]  ;;  %v3246_v36 = vmax.f32 %v3222_v30, 0.0 }
 0x1d3   : > { %v2901_v26 = vpop.f32.mrf.mxu1  ;;  %v2919_v25 = vpop.f32.mrf.mxu3  ;;  %v3195_v51 = vld [vmem:[#allocation2 + $0x68] sm:$0x1]  ;;  %v14931_v18 = vor.u32 %v11965_v48, %v9291_v62  ;;  %v14943_v5 = vor.u32 %v11961_v41, %v9293_v19  ;;  %v9699_v48 = vld [vmem:[%s18199_s3 + $0xf0] sm:$0xf] }
 0x1d4   : > { %v2920_v47 = vadd.f32 %v2919_v25, %v2901_v26  ;;  %4003 = vmatpush.bf16.msrb.mxu0 %v9496_v49  ;;  %v3237_v52 = vadd.f32 %v14710_v31, %v3195_v51  ;;  %v9549_v31 = vld [vmem:[%s18200_s4 + $0x1e8] sm:$0xf0]  ;;  %v2953_v50 = vpop.f32.mrf.mxu2  ;;  %v9525_v49 = vld [vmem:[%s18200_s4 + $0x1b8] sm:$0xf0] }
 0x1d5   : > { %v9552_v60 = vor.u32 %v12157_v34, %v9549_v31  ;;  %v3550_v38 = vshll.u32 %v14931_v18, 16  ;;  %v3562_v27 = vshll.u32 %v14943_v5, 16  ;;  %v14967_v31 = vld [vmem:[%s18199_s3 + $0x70] sm:$0xf] }
 0x1d6   : > { %v14892_v53 = vadd.f32 %v2920_v47, %v2172_v46  ;;  %v3261_v57 = vmax.f32 %v3237_v52, 0.0  ;;  %v12151_v47 = vld [vmem:[%s18200_s4 + $0x1b4] sm:$0xf]  ;;  %v9636_v41 = vor.u32 %v14972_v55, %v14967_v31  ;;  %v12129_v55 = vld [vmem:[%s18200_s4 + $0x104] sm:$0xf] }
 0x1d7   : > { %v2935_v39 = vpop.f32.mrf.mxu0  ;;  %4018 = vmatpush.bf16.msrb.mxu2 %v9552_v60  ;;  %v9528_v52 = vor.u32 %v12151_v47, %v9525_v49  ;;  %v3552_v34 = vrot.slane %v3550_v38, 1  ;;  %v12149_v60 = vld [vmem:[%s18200_s4 + $0x1a4] sm:$0xf]  ;;  %v3564_v7 = vrot.slane %v3562_v27, 1 }
 0x1d8   : > { %3164 = vst [vmem:[#allocation2 + $0x18] sm:$0xff] %v14892_v53  ;;  %v3276_v1 = vpack.c.bf16 %v3261_v57, %v3260_v56  ;;  %v2954_v44 = vadd.f32 %v2953_v50, %v2935_v39  ;;  %4004 = vmatpush.bf16.msrb.mxu0 %v9488_v63  ;;  %v12135_v39 = vld [vmem:[%s18200_s4 + $0x134] sm:$0xf]  ;;  %v12133_v56 = vld [vmem:[%s18200_s4 + $0x124] sm:$0xf] }
 0x1d9   : > { %v9464_v51 = vor.u32 %v12135_v39, %v9461_v21  ;;  %v9453_v63 = vld [vmem:[%s18200_s4 + $0x128] sm:$0xf0]  ;;  %v11982_v21 = vld [vmem:[%s18199_s3 + $0x64] sm:$0xf0] }
 0x1da   : > { %v3133_v15 = vadd.f32 %v2954_v44, %v2165_v0  ;;  %v3296_v17 = vsel %vm14826_vm9, %v3276_v1, %v3295_v61  ;;  %v9517_v50 = vld [vmem:[%s18200_s4 + $0x1a8] sm:$0xf0]  ;;  %v12000_v0 = vld [vmem:[%s18199_s3 + $0xf4] sm:$0xf0]  ;;  %v9456_v1 = vor.u32 %v12133_v56, %v9453_v63  ;;  %v12145_v63 = vld [vmem:[%s18200_s4 + $0x184] sm:$0xf] }
 0x1db   : > { %v2904_v58 = vpop.f32.mrf.mxu1  ;;  %v2922_v2 = vpop.f32.mrf.mxu3  ;;  %3297 = vst [vmem:[#allocation3 + $0x40] sm:$0x11] %v3296_v17  ;;  %4019 = vmatpush.bf16.msrb.mxu2 %v9544_v20  ;;  %v9700_v19 = vor.u32 %v12000_v0, %v9699_v48  ;;  %v9445_v20 = vld [vmem:[%s18200_s4 + $0x118] sm:$0xf0]  ;;  %v9437_v56 = vld [vmem:[%s18200_s4 + $0x108] sm:$0xf0] }
 0x1dc   : > { %v2923_v9 = vadd.f32 %v2922_v2, %v2904_v58  ;;  %3157 = vst [vmem:[#allocation2 + $0x48] sm:$0xff] %v3133_v15  ;;  %v3223_v26 = vadd.f32 %v14913_v4, %v3133_v15  ;;  %4005 = vmatpush.bf16.msrb.mxu0 %v9480_v11  ;;  %v2955_v25 = vpop.f32.mrf.mxu2  ;;  %v3230_v58 = vadd.f32 %v14905_v42, %v14892_v53  ;;  %v3560_v11 = vshrl.u32 %v14943_v5, 16 }
 0x1dd   : > { %v9520_v2 = vor.u32 %v12149_v60, %v9517_v50  ;;  %v9448_v47 = vor.u32 %v12131_v29, %v9445_v20  ;;  %v9501_v60 = vld [vmem:[%s18200_s4 + $0x188] sm:$0xf0]  ;;  %v11976_v20 = vld [vmem:[%s18199_s3 + $0x34] sm:$0xf0] }
 0x1de   : > { %v3148_v23 = vadd.f32 %v3124_v14, %v2923_v9  ;;  %v3247_v37 = vmax.f32 %v3223_v26, 0.0  ;;  %v3254_v8 = vmax.f32 %v3230_v58, 0.0  ;;  %v3548_v9 = vshrl.u32 %v14931_v18, 16  ;;  %v3125_v14 = vld [vmem:[#allocation2 + $0x58] sm:$0x1] }
 0x1df   : > { %v2937_v6 = vpop.f32.mrf.mxu0  ;;  %4020 = vmatpush.bf16.msrb.mxu2 %v9536_v32  ;;  %v9619_v58 = vld [vmem:[%s18199_s3 + $0x50] sm:$0xf] }
 0x1e0   : > { %3172 = vst [vmem:[#allocation2 + $0x30] sm:$0x1] %v3148_v23  ;;  %v3269_v40 = vpack.c.bf16 %v3247_v37, %v3246_v36  ;;  %v2956_v45 = vadd.f32 %v2955_v25, %v2937_v6  ;;  %4006 = vmatpush.bf16.msrb.mxu0 %v9472_v10  ;;  %v12147_v23 = vld [vmem:[%s18200_s4 + $0x194] sm:$0xf]  ;;  %v3553_v10 = vor.u32 %v3552_v34, %v3548_v9  ;;  %v9509_v36 = vld [vmem:[%s18200_s4 + $0x198] sm:$0xf0] }
 0x1e1   : > { %v3565_v25 = vor.u32 %v3564_v7, %v3560_v11  ;;  %v9512_v49 = vor.u32 %v12147_v23, %v9509_v36  ;;  %v9628_v34 = vor.u32 %v11982_v21, %v9627_v35  ;;  %v9611_v7 = vld [vmem:[%s18199_s3 + $0x40] sm:$0xf]  ;;  %v11994_v11 = vld [vmem:[%s18199_s3 + $0xc4] sm:$0xf0] }
 0x1e2   : > { %3281 = vst [vmem:[#allocation3 + $0x8] sm:$0xff] %v3269_v40  ;;  %v3141_v54 = vadd.f32 %v3117_v28, %v2956_v45  ;;  %v3327_v3 = vld [vmem:[#allocation3 + $0x40] sm:$0x11] }
 0x1e3   : > { %v2906_v22 = vpop.f32.mrf.mxu1  ;;  %v2924_v43 = vpop.f32.mrf.mxu3  ;;  %v3535_v57 = vunpack.c.l.b16 %v3327_v3  ;;  %v3536_v53 = vunpack.c.h.b16 %v3327_v3  ;;  %4021 = vmatpush.bf16.msrb.mxu2 %v9528_v52  ;;  %v9691_v45 = vld [vmem:[%s18199_s3 + $0xe0] sm:$0xf]  ;;  %v9683_v3 = vld [vmem:[%s18199_s3 + $0xd0] sm:$0xf] }
 0x1e4   : > { %3165 = vst [vmem:[#allocation2 + $0x98] sm:$0xff] %v3141_v54  ;;  %v3231_v61 = vadd.f32 %v14913_v4, %v3141_v54  ;;  %4007 = vmatpush.bf16.msrb.mxu0 %v9464_v51  ;;  %v2958_v12 = vpop.f32.mrf.mxu2  ;;  %v11980_v54 = vld [vmem:[%s18199_s3 + $0x54] sm:$0xf0]  ;;  %v9675_v9 = vld [vmem:[%s18199_s3 + $0xc0] sm:$0xf] }
 0x1e5   : > { %v3543_v44 = vpack.c.b16 %v3535_v57, %v3535_v57  ;;  %v3544_v6 = vpack.c.b16 %v3536_v53, %v3536_v53  ;;  %v11996_v57 = vld [vmem:[%s18199_s3 + $0xd4] sm:$0xf0]  ;;  %v9440_v53 = vor.u32 %v12129_v55, %v9437_v56  ;;  %v3126_v35 = vld [vmem:[#allocation2 + $0x80] sm:$0x1] }
 0x1e6   : > { %v3255_v30 = vmax.f32 %v3231_v61, 0.0 }
 0x1e7   : > { %v2940_v46 = vpop.f32.mrf.mxu0  ;;  %v3555_v15 = vshll.u32 %v3543_v44, 16  ;;  %v3567_v17 = vshll.u32 %v3544_v6, 16  ;;  %4022 = vmatpush.bf16.msrb.mxu2 %v9520_v2  ;;  %v3196_v50 = vld [vmem:[#allocation2 + $0x30] sm:$0x1]  ;;  %v3118_v2 = vld [vmem:[#allocation2 + $0x38] sm:$0xff]  ;;  %v9620_v44 = vor.u32 %v11980_v54, %v9619_v58  ;;  %v9684_v6 = vor.u32 %v11996_v57, %v9683_v3 }
 0x1e8   : > { %v3273_v24 = vpack.c.bf16 %v3255_v30, %v3254_v8  ;;  %v2959_v26 = vadd.f32 %v2958_v12, %v2940_v46  ;;  %4008 = vmatpush.bf16.msrb.mxu0 %v9456_v1  ;;  %v11998_v46 = vld [vmem:[%s18199_s3 + $0xe4] sm:$0xf0]  ;;  %v3238_v8 = vadd.f32 %v14905_v42, %v3196_v50  ;;  %v9651_v50 = vld [vmem:[%s18199_s3 + $0x90] sm:$0xf] }
 0x1e9   : > { %v3310_v37 = vld [vmem:[#allocation3 + $0x8] sm:$0x11]  ;;  %v3557_v32 = vrot.slane %v3555_v15, 1  ;;  %v3569_v39 = vrot.slane %v3567_v17, 1  ;;  %v9692_v31 = vor.u32 %v11998_v46, %v9691_v45  ;;  %v15075_v15 = vperm.slane %v14671_v16, 4 }
 0x1ea   : > { %v3311_v40 = vsel %vm14826_vm9, 0, %v3310_v37  ;;  %3285 = vst [vmem:[#allocation3 + $0x28] sm:$0xff] %v3273_v24  ;;  %v3149_v43 = vadd.f32 %v3125_v14, %v2959_v26  ;;  %v11978_v30 = vld [vmem:[%s18199_s3 + $0x44] sm:$0xf0]  ;;  %v3262_v23 = vmax.f32 %v3238_v8, 0.0 }
 0x1eb   : > { %v2971_v62 = vpop.f32.mrf.mxu1  ;;  %v2989_v22 = vpop.f32.mrf.mxu3  ;;  %3312 = vst [vmem:[#allocation3 + $0x8] sm:$0x11] %v3311_v40  ;;  %v15026_v27 = vsel %vm1333_vm1, %v3553_v10, %v3557_v32  ;;  %v15029_v51 = vsel %vm1333_vm1, %v3565_v25, %v3569_v39  ;;  %4023 = vmatpush.bf16.msrb.mxu2 %v9512_v49  ;;  %v9612_v17 = vor.u32 %v11978_v30, %v9611_v7  ;;  %v9667_v24 = vld [vmem:[%s18199_s3 + $0xb0] sm:$0xf]  ;;  %v11992_v26 = vld [vmem:[%s18199_s3 + $0xb4] sm:$0xf0] }
 0x1ec   : > { %v2990_v38 = vadd.f32 %v2989_v22, %v2971_v62  ;;  %3173 = vst [vmem:[#allocation2 + $0x58] sm:$0x1] %v3149_v43  ;;  %3927 = vmatmul.bf16.vlgmr.msra.gmra.mxu1 %v15026_v27  ;;  %3941 = vmatmul.bf16.vlgmr.msra.gmra.mxu3 %v15029_v51  ;;  %v2960_v61 = vpop.f32.mrf.mxu2  ;;  %v9504_v62 = vor.u32 %v12145_v63, %v9501_v60  ;;  %v3111_v37 = vld [vmem:[#allocation2 + $0x28] sm:$0xff]  ;;  %v9595_v25 = vld [vmem:[%s18199_s3 + $0x20] sm:$0xf]  ;;  %v3119_v30 = vld [vmem:[#allocation2 + $0x50] sm:$0xff] }
 0x1ed   : > { %4695 = vmatpush.bf16.msra.mxu1 %v9636_v41  ;;  %4709 = vmatpush.bf16.msra.mxu3 %v9700_v19  ;;  %v9676_v41 = vor.u32 %v11994_v11, %v9675_v9  ;;  %v9603_v19 = vld [vmem:[%s18199_s3 + $0x30] sm:$0xf]  ;;  %v11974_v39 = vld [vmem:[%s18199_s3 + $0x24] sm:$0xf0]  ;;  %v9668_v43 = vor.u32 %v11992_v26, %v9667_v24  ;;  %v9659_v45 = vld [vmem:[%s18199_s3 + $0xa0] sm:$0xf] }
 0x1ee   : > { %v15023_v28 = vadd.f32 %v3110_v33, %v2990_v38  ;;  %4009 = vmatpush.bf16.msrb.mxu0 %v9448_v47  ;;  %v3298_v33 = vld [vmem:[#allocation3 + $0x48] sm:$0x11]  ;;  %v15091_v38 = vperm.slane %v14671_v16, 5  ;;  %v9604_v40 = vor.u32 %v11976_v20, %v9603_v19  ;;  %v9596_v56 = vor.u32 %v11974_v39, %v9595_v25  ;;  %v11972_v63 = vld [vmem:[%s18199_s3 + $0x14] sm:$0xf0] }
 0x1ef   : > { %v2942_v13 = vpop.f32.mrf.mxu0  ;;  %4024 = vmatpush.bf16.msrb.mxu2 %v9504_v62  ;;  %v11988_v61 = vld [vmem:[%s18199_s3 + $0x94] sm:$0xf0]  ;;  %v9643_v7 = vld [vmem:[%s18199_s3 + $0x80] sm:$0xf] }
 0x1f0   : > { %3158 = vst [vmem:[#allocation2 + $0x60] sm:$0xff] %v15023_v28  ;;  %v3224_v47 = vadd.f32 %v15075_v15, %v15023_v28  ;;  %v9652_v11 = vor.u32 %v11988_v61, %v9651_v50  ;;  %v12048_v19 = vld [vmem:[%s18199_s3 + $0x274] sm:$0xf0] }
 0x1f1   : > { %4696 = vmatpush.bf16.msra.mxu1 %v9628_v34  ;;  %4710 = vmatpush.bf16.msra.mxu3 %v9692_v31  ;;  %v11966_v46 = vld [vmem:[#allocation3 + $0x24] sm:$0xf0]  ;;  %v9301_v3 = vld [vmem:[#allocation3 + $0x28] sm:$0xf0] }
 0x1f2   : > { %4010 = vmatpush.bf16.msrb.mxu0 %v9440_v53  ;;  %v9299_v16 = vld [vmem:[#allocation3 + $0x8] sm:$0xf]  ;;  %v11962_v54 = vld [vmem:[#allocation3 + $0xc] sm:$0xf]  ;;  %v9587_v53 = vld [vmem:[%s18199_s3 + $0x10] sm:$0xf] }
 0x1f3   : > { %v2973_v52 = vpop.f32.mrf.mxu1  ;;  %v2991_v48 = vpop.f32.mrf.mxu3  ;;  %v3197_v29 = vld [vmem:[#allocation2 + $0x58] sm:$0x1]  ;;  %v15112_v55 = vor.u32 %v11966_v46, %v9299_v16  ;;  %v15120_v60 = vor.u32 %v11962_v54, %v9301_v3  ;;  %v9588_v9 = vor.u32 %v11972_v63, %v9587_v53  ;;  %v12046_v3 = vld [vmem:[%s18199_s3 + $0x264] sm:$0xf0]  ;;  %v9947_v53 = vld [vmem:[%s18199_s3 + $0x2e0] sm:$0xf] }
 0x1f4   : > { %v2992_v1 = vadd.f32 %v2991_v48, %v2973_v52  ;;  %v3239_v14 = vadd.f32 %v14913_v4, %v3197_v29  ;;  %v3025_v22 = vpop.f32.mrf.mxu2  ;;  %v11990_v52 = vld [vmem:[%s18199_s3 + $0xa4] sm:$0xf0]  ;;  %v9579_v48 = vld [vmem:[%s18199_s3] sm:$0xf] }
 0x1f5   : > { %4697 = vmatpush.bf16.msra.mxu1 %v9620_v44  ;;  %4711 = vmatpush.bf16.msra.mxu3 %v9684_v6  ;;  %v9660_v57 = vor.u32 %v11990_v52, %v9659_v45  ;;  %v11970_v6 = vld [vmem:[%s18199_s3 + $0x4] sm:$0xf0]  ;;  %v3574_v8 = vshll.u32 %v15112_v55, 16  ;;  %v3572_v46 = vshrl.u32 %v15112_v55, 16 }
 0x1f6   : > { %v15071_v12 = vadd.f32 %v3118_v2, %v2992_v1  ;;  %v3263_v4 = vmax.f32 %v3239_v14, 0.0  ;;  %v11986_v29 = vld [vmem:[%s18199_s3 + $0x84] sm:$0xf0]  ;;  %v9891_v14 = vld [vmem:[%s18199_s3 + $0x270] sm:$0xf] }
 0x1f7   : > { %v3007_v0 = vpop.f32.mrf.mxu0  ;;  %v12062_v63 = vld [vmem:[%s18199_s3 + $0x2e4] sm:$0xf0] }
 0x1f8   : > { %3166 = vst [vmem:[#allocation2 + $0x38] sm:$0xff] %v15071_v12  ;;  %v3277_v13 = vpack.c.bf16 %v3263_v4, %v3262_v23  ;;  %v3026_v36 = vadd.f32 %v3025_v22, %v3007_v0  ;;  %v9955_v23 = vld [vmem:[%s18199_s3 + $0x2f0] sm:$0xf]  ;;  %v12064_v4 = vld [vmem:[%s18199_s3 + $0x2f4] sm:$0xf0] }
 0x1f9   : > { %4698 = vmatpush.bf16.msra.mxu1 %v9612_v17  ;;  %4712 = vmatpush.bf16.msra.mxu3 %v9676_v41  ;;  %v3232_v17 = vadd.f32 %v15075_v15, %v15071_v12  ;;  %v9956_v16 = vor.u32 %v12064_v4, %v9955_v23 }
 0x1fa   : > { %v3135_v49 = vadd.f32 %v3111_v37, %v3026_v36  ;;  %v3299_v58 = vsel %vm14826_vm9, %v3277_v13, %v3298_v33  ;;  %v9580_v33 = vor.u32 %v11970_v6, %v9579_v48  ;;  %v9644_v13 = vor.u32 %v11986_v29, %v9643_v7  ;;  %v12016_v36 = vld [vmem:[%s18199_s3 + $0x174] sm:$0xf0]  ;;  %v12014_v7 = vld [vmem:[%s18199_s3 + $0x164] sm:$0xf0] }
 0x1fb   : > { %v2976_v42 = vpop.f32.mrf.mxu1  ;;  %v2994_v10 = vpop.f32.mrf.mxu3  ;;  %3300 = vst [vmem:[#allocation3 + $0x48] sm:$0x11] %v3299_v58  ;;  %v9892_v37 = vor.u32 %v12048_v19, %v9891_v14  ;;  %v3584_v58 = vshrl.u32 %v15120_v60, 16  ;;  %v9948_v29 = vor.u32 %v12062_v63, %v9947_v53  ;;  %v12030_v14 = vld [vmem:[%s18199_s3 + $0x1e4] sm:$0xf0] }
 0x1fc   : > { %v2995_v21 = vadd.f32 %v2994_v10, %v2976_v42  ;;  %3159 = vst [vmem:[#allocation2 + $0x28] sm:$0xff] %v3135_v49  ;;  %v3225_v31 = vadd.f32 %v15091_v38, %v3135_v49  ;;  %3983 = vmatmul.bf16.vlgmr.msrb.gmra.mxu1 %v15026_v27  ;;  %3997 = vmatmul.bf16.vlgmr.msrb.gmra.mxu3 %v15029_v51  ;;  %v3248_v27 = vmax.f32 %v3224_v47, 0.0  ;;  %v3027_v62 = vpop.f32.mrf.mxu2  ;;  %v3586_v42 = vshll.u32 %v15120_v60, 16  ;;  %v9883_v47 = vld [vmem:[%s18199_s3 + $0x260] sm:$0xf] }
 0x1fd   : > { %4699 = vmatpush.bf16.msra.mxu1 %v9604_v40  ;;  %4713 = vmatpush.bf16.msra.mxu3 %v9668_v43  ;;  %v3576_v10 = vrot.slane %v3574_v8, 1  ;;  %v12032_v40 = vld [vmem:[%s18199_s3 + $0x1f4] sm:$0xf0]  ;;  %v3256_v43 = vmax.f32 %v3232_v17, 0.0  ;;  %v9884_v6 = vor.u32 %v12046_v3, %v9883_v47  ;;  %v9819_v8 = vld [vmem:[%s18199_s3 + $0x1e0] sm:$0xf] }
 0x1fe   : > { %v3150_v34 = vadd.f32 %v3126_v35, %v2995_v21  ;;  %v3249_v51 = vmax.f32 %v3225_v31, 0.0  ;;  %v9763_v35 = vld [vmem:[%s18199_s3 + $0x170] sm:$0xf]  ;;  %v3588_v39 = vrot.slane %v3586_v42, 1  ;;  %v12044_v17 = vld [vmem:[%s18199_s3 + $0x254] sm:$0xf0]  ;;  %v9820_v4 = vor.u32 %v12030_v14, %v9819_v8 }
 0x1ff   : > { %v3009_v32 = vpop.f32.mrf.mxu0  ;;  %v9827_v21 = vld [vmem:[%s18199_s3 + $0x1f0] sm:$0xf]  ;;  %v9739_v47 = vld [vmem:[%s18199_s3 + $0x140] sm:$0xf]  ;;  %v12056_v63 = vld [vmem:[%s18199_s3 + $0x2b4] sm:$0xf0] }
 0x200   : > { %3174 = vst [vmem:[#allocation2 + $0x80] sm:$0x1] %v3150_v34  ;;  %v3270_v0 = vpack.c.bf16 %v3249_v51, %v3248_v27  ;;  %v3028_v2 = vadd.f32 %v3027_v62, %v3009_v32  ;;  %v3127_v51 = vld [vmem:[#allocation2 + $0xb8] sm:$0x1]  ;;  %v3589_v62 = vor.u32 %v3588_v39, %v3584_v58  ;;  %v9875_v42 = vld [vmem:[%s18199_s3 + $0x250] sm:$0xf] }
 0x201   : > { %4700 = vmatpush.bf16.msra.mxu1 %v9596_v56  ;;  %4714 = vmatpush.bf16.msra.mxu3 %v9660_v57  ;;  %v3577_v56 = vor.u32 %v3576_v10, %v3572_v46  ;;  %v9764_v57 = vor.u32 %v12016_v36, %v9763_v35  ;;  %v9939_v19 = vld [vmem:[%s18199_s3 + $0x2d0] sm:$0xf]  ;;  %v12028_v35 = vld [vmem:[%s18199_s3 + $0x1d4] sm:$0xf0]  ;;  %v9867_v36 = vld [vmem:[%s18199_s3 + $0x240] sm:$0xf] }
 0x202   : > { %3282 = vst [vmem:[#allocation3 + $0x10] sm:$0xff] %v3270_v0  ;;  %v3143_v41 = vadd.f32 %v3119_v30, %v3028_v2  ;;  %v3328_v20 = vld [vmem:[#allocation3 + $0x48] sm:$0x11]  ;;  %v9755_v0 = vld [vmem:[%s18199_s3 + $0x160] sm:$0xf] }
 0x203   : > { %v2978_v28 = vpop.f32.mrf.mxu1  ;;  %v2996_v1 = vpop.f32.mrf.mxu3  ;;  %v3537_v24 = vunpack.c.l.b16 %v3328_v20  ;;  %v3538_v26 = vunpack.c.h.b16 %v3328_v20  ;;  %v3112_v2 = vld [vmem:[#allocation2 + $0x40] sm:$0xff]  ;;  %v12060_v20 = vld [vmem:[%s18199_s3 + $0x2d4] sm:$0xf0]  ;;  %v9756_v23 = vor.u32 %v12014_v7, %v9755_v0  ;;  %v12058_v39 = vld [vmem:[%s18199_s3 + $0x2c4] sm:$0xf0] }
 0x204   : > { %3167 = vst [vmem:[#allocation2 + $0x50] sm:$0xff] %v3143_v41  ;;  %v3233_v12 = vadd.f32 %v15091_v38, %v3143_v41  ;;  %v3030_v49 = vpop.f32.mrf.mxu2  ;;  %v9940_v10 = vor.u32 %v12060_v20, %v9939_v19  ;;  %v9923_v53 = vld [vmem:[%s18199_s3 + $0x2b0] sm:$0xf]  ;;  %v3113_v7 = vld [vmem:[#allocation2 + $0x78] sm:$0xff]  ;;  %v3128_v19 = vld [vmem:[#allocation2 + $0x20] sm:$0x1] }
 0x205   : > { %4701 = vmatpush.bf16.msra.mxu1 %v9588_v9  ;;  %4715 = vmatpush.bf16.msra.mxu3 %v9652_v11  ;;  %v3545_v32 = vpack.c.b16 %v3537_v24, %v3537_v24  ;;  %v3546_v25 = vpack.c.b16 %v3538_v26, %v3538_v26  ;;  %v9747_v24 = vld [vmem:[%s18199_s3 + $0x150] sm:$0xf]  ;;  %v12012_v26 = vld [vmem:[%s18199_s3 + $0x154] sm:$0xf0]  ;;  %v9924_v14 = vor.u32 %v12056_v63, %v9923_v53 }
 0x206   : > { %v3257_v45 = vmax.f32 %v3233_v12, 0.0  ;;  %v9811_v12 = vld [vmem:[%s18199_s3 + $0x1d0] sm:$0xf] }
 0x207   : > { %v3012_v44 = vpop.f32.mrf.mxu0  ;;  %v3579_v52 = vshll.u32 %v3545_v32, 16  ;;  %v3591_v54 = vshll.u32 %v3546_v25, 16  ;;  %v12042_v32 = vld [vmem:[%s18199_s3 + $0x244] sm:$0xf0]  ;;  %v9931_v25 = vld [vmem:[%s18199_s3 + $0x2c0] sm:$0xf]  ;;  %v9812_v46 = vor.u32 %v12028_v35, %v9811_v12 }
 0x208   : > { %v3274_v34 = vpack.c.bf16 %v3257_v45, %v3256_v43  ;;  %v3031_v31 = vadd.f32 %v3030_v49, %v3012_v44  ;;  %v9828_v44 = vor.u32 %v12032_v40, %v9827_v21  ;;  %v3120_v43 = vld [vmem:[#allocation2 + $0x70] sm:$0xff]  ;;  %v12010_v49 = vld [vmem:[%s18199_s3 + $0x144] sm:$0xf0]  ;;  %v9932_v3 = vor.u32 %v12058_v39, %v9931_v25  ;;  %v9787_v35 = vld [vmem:[%s18199_s3 + $0x1a0] sm:$0xf] }
 0x209   : > { %4702 = vmatpush.bf16.msra.mxu1 %v9580_v33  ;;  %4716 = vmatpush.bf16.msra.mxu3 %v9644_v13  ;;  %v3581_v61 = vrot.slane %v3579_v52, 1  ;;  %v3593_v48 = vrot.slane %v3591_v54, 1  ;;  %v9876_v13 = vor.u32 %v12044_v17, %v9875_v42  ;;  %v9803_v52 = vld [vmem:[%s18199_s3 + $0x1c0] sm:$0xf]  ;;  %v12022_v25 = vld [vmem:[%s18199_s3 + $0x1a4] sm:$0xf0] }
 0x20a   : > { %3286 = vst [vmem:[#allocation3 + $0x30] sm:$0xff] %v3274_v34  ;;  %v3151_v1 = vadd.f32 %v3127_v51, %v3031_v31  ;;  %v12026_v34 = vld [vmem:[%s18199_s3 + $0x1c4] sm:$0xf0]  ;;  %v9859_v31 = vld [vmem:[%s18199_s3 + $0x230] sm:$0xf] }
 0x20b   : > { %v3043_v22 = vpop.f32.mrf.mxu1  ;;  %v3061_v28 = vpop.f32.mrf.mxu3  ;;  %v15195_v9 = vsel %vm1333_vm1, %v3577_v56, %v3581_v61  ;;  %v15198_v11 = vsel %vm1333_vm1, %v3589_v62, %v3593_v48  ;;  %v9740_v48 = vor.u32 %v12010_v49, %v9739_v47  ;;  %v9804_v0 = vor.u32 %v12026_v34, %v9803_v52  ;;  %v9851_v42 = vld [vmem:[%s18199_s3 + $0x220] sm:$0xf]  ;;  %v9843_v39 = vld [vmem:[%s18199_s3 + $0x210] sm:$0xf]  ;;  %v12004_v49 = vld [vmem:[%s18199_s3 + $0x114] sm:$0xf0] }
 0x20c   : > { %v3062_v50 = vadd.f32 %v3061_v28, %v3043_v22  ;;  %3175 = vst [vmem:[#allocation2 + $0xb8] sm:$0x1] %v3151_v1  ;;  %3955 = vmatmul.bf16.vlgmr.msra.gmra.mxu0 %v15195_v9  ;;  %3969 = vmatmul.bf16.vlgmr.msra.gmra.mxu2 %v15198_v11  ;;  %v3198_v22 = vld [vmem:[#allocation2 + $0x80] sm:$0x1]  ;;  %v3032_v33 = vpop.f32.mrf.mxu2  ;;  %v9795_v1 = vld [vmem:[%s18199_s3 + $0x1b0] sm:$0xf]  ;;  %v9788_v34 = vor.u32 %v12022_v25, %v9787_v35 }
 0x20d   : > { %4751 = vmatpush.bf16.msrb.mxu1 %v9892_v37  ;;  %4765 = vmatpush.bf16.msrb.mxu3 %v9956_v16  ;;  %v3240_v45 = vadd.f32 %v15075_v15, %v3198_v22  ;;  %v9748_v16 = vor.u32 %v12012_v26, %v9747_v24  ;;  %v9868_v15 = vor.u32 %v12042_v32, %v9867_v36  ;;  %v12054_v24 = vld [vmem:[%s18199_s3 + $0x2a4] sm:$0xf0]  ;;  %v9715_v47 = vld [vmem:[%s18199_s3 + $0x110] sm:$0xf]  ;;  %v11981_v35 = vld [vmem:[%s18199_s3 + $0x64] sm:$0xf] }
 0x20e   : > { %v15192_v30 = vadd.f32 %v3112_v2, %v3062_v50  ;;  %4703 = vmatmul.bf16.vlgmr.msra.gmra.mxu1 %v14931_v18  ;;  %4717 = vmatmul.bf16.vlgmr.msra.gmra.mxu3 %v14943_v5  ;;  %v12008_v50 = vld [vmem:[%s18199_s3 + $0x134] sm:$0xf0] }
 0x20f   : > { %v3014_v27 = vpop.f32.mrf.mxu0  ;;  %4723 = vmatpush.bf16.msra.mxu0 %v9764_v57  ;;  %4737 = vmatpush.bf16.msra.mxu2 %v9828_v44  ;;  %v12040_v57 = vld [vmem:[%s18199_s3 + $0x234] sm:$0xf0]  ;;  %v3264_v61 = vmax.f32 %v3240_v45, 0.0  ;;  %v3301_v44 = vld [vmem:[#allocation3 + $0x50] sm:$0x11] }
 0x210   : > { %3160 = vst [vmem:[#allocation2 + $0x40] sm:$0xff] %v15192_v30  ;;  %v12502_v27 = vld [vmem:[%s18198_s2] sm:$0xff]  ;;  %v12024_v2 = vld [vmem:[%s18199_s3 + $0x1b4] sm:$0xf0]  ;;  %v9907_v45 = vld [vmem:[%s18199_s3 + $0x290] sm:$0xf] }
 0x211   : > { %4752 = vmatpush.bf16.msrb.mxu1 %v9884_v6  ;;  %4766 = vmatpush.bf16.msrb.mxu3 %v9948_v29  ;;  %v15275_v51 = vperm.slane %v12502_v27, 6  ;;  %v15290_v8 = vperm.slane %v12502_v27, 7  ;;  %v9860_v29 = vor.u32 %v12040_v57, %v9859_v31  ;;  %v9796_v33 = vor.u32 %v12024_v2, %v9795_v1  ;;  %v9835_v31 = vld [vmem:[%s18199_s3 + $0x200] sm:$0xf]  ;;  %v9701_v1 = vld [vmem:[%s18199_s3 + $0xf8] sm:$0xf0] }
 0x212   : > { %v3121_v57 = vld [vmem:[#allocation2 + $0xa0] sm:$0xff] }
 0x213   : > { %v3045_v41 = vpop.f32.mrf.mxu1  ;;  %v3063_v37 = vpop.f32.mrf.mxu3  ;;  %4724 = vmatpush.bf16.msra.mxu0 %v9756_v23  ;;  %4738 = vmatpush.bf16.msra.mxu2 %v9820_v4  ;;  %v3199_v58 = vld [vmem:[#allocation2 + $0xb8] sm:$0x1]  ;;  %v12038_v23 = vld [vmem:[%s18199_s3 + $0x224] sm:$0xf0]  ;;  %v9915_v4 = vld [vmem:[%s18199_s3 + $0x2a0] sm:$0xf] }
 0x214   : > { %v3064_v40 = vadd.f32 %v3063_v37, %v3045_v41  ;;  %v3241_v28 = vadd.f32 %v15091_v38, %v3199_v58  ;;  %v9731_v38 = vld [vmem:[%s18199_s3 + $0x130] sm:$0xf]  ;;  %v3097_v6 = vpop.f32.mrf.mxu2  ;;  %v3226_v37 = vadd.f32 %v15275_v51, %v15192_v30  ;;  %v9852_v30 = vor.u32 %v12038_v23, %v9851_v42  ;;  %v9899_v27 = vld [vmem:[%s18199_s3 + $0x280] sm:$0xf]  ;;  %v12018_v42 = vld [vmem:[%s18199_s3 + $0x184] sm:$0xf0] }
 0x215   : > { %4753 = vmatpush.bf16.msrb.mxu1 %v9876_v13  ;;  %4767 = vmatpush.bf16.msrb.mxu3 %v9940_v10  ;;  %v9732_v22 = vor.u32 %v12008_v50, %v9731_v38  ;;  %v9723_v13 = vld [vmem:[%s18199_s3 + $0x120] sm:$0xf]  ;;  %v12006_v10 = vld [vmem:[%s18199_s3 + $0x124] sm:$0xf0]  ;;  %v9779_v58 = vld [vmem:[%s18199_s3 + $0x190] sm:$0xf] }
 0x216   : > { %v15254_v54 = vadd.f32 %v3120_v43, %v3064_v40  ;;  %v3265_v62 = vmax.f32 %v3241_v28, 0.0  ;;  %v9916_v43 = vor.u32 %v12054_v24, %v9915_v4  ;;  %v12034_v28 = vld [vmem:[%s18199_s3 + $0x204] sm:$0xf0]  ;;  %v11983_v50 = vld [vmem:[%s18199_s3 + $0x74] sm:$0xf] }
 0x217   : > { %v3079_v21 = vpop.f32.mrf.mxu0  ;;  %4725 = vmatpush.bf16.msra.mxu0 %v9748_v16  ;;  %4739 = vmatpush.bf16.msra.mxu2 %v9812_v46  ;;  %v12052_v16 = vld [vmem:[%s18199_s3 + $0x294] sm:$0xf0]  ;;  %v12050_v38 = vld [vmem:[%s18199_s3 + $0x284] sm:$0xf0]  ;;  %v10019_v23 = vld [vmem:[%s18199_s3 + $0x370] sm:$0xf] }
 0x218   : > { %3168 = vst [vmem:[#allocation2 + $0x70] sm:$0xff] %v15254_v54  ;;  %v3278_v17 = vpack.c.bf16 %v3265_v62, %v3264_v61  ;;  %v3098_v20 = vadd.f32 %v3097_v6, %v3079_v21  ;;  %v12036_v21 = vld [vmem:[%s18199_s3 + $0x214] sm:$0xf0]  ;;  %v9908_v63 = vor.u32 %v12052_v16, %v9907_v45  ;;  %v9716_v6 = vor.u32 %v12004_v49, %v9715_v47  ;;  %v3129_v16 = vld [vmem:[#allocation2 + $0x8] sm:$0x1] }
 0x219   : > { %4754 = vmatpush.bf16.msrb.mxu1 %v9868_v15  ;;  %4768 = vmatpush.bf16.msrb.mxu3 %v9932_v3  ;;  %v3250_v15 = vmax.f32 %v3226_v37, 0.0  ;;  %v9724_v3 = vor.u32 %v12006_v10, %v9723_v13  ;;  %v9844_v53 = vor.u32 %v12036_v21, %v9843_v39  ;;  %v12080_v4 = vld [vmem:[%s18199_s3 + $0x374] sm:$0xf0]  ;;  %v11997_v37 = vld [vmem:[%s18199_s3 + $0xe4] sm:$0xf] }
 0x21a   : > { %v3302_v36 = vsel %vm14826_vm9, %v3278_v17, %v3301_v44  ;;  %v3137_v32 = vadd.f32 %v3113_v7, %v3098_v20  ;;  %v9707_v7 = vld [vmem:[%s18199_s3 + $0x100] sm:$0xf]  ;;  %v11963_v47 = vld [vmem:[#allocation3 + $0x14] sm:$0xf]  ;;  %v10020_v49 = vor.u32 %v12080_v4, %v10019_v23 }
 0x21b   : > { %v3048_v56 = vpop.f32.mrf.mxu1  ;;  %v3066_v41 = vpop.f32.mrf.mxu3  ;;  %4726 = vmatpush.bf16.msra.mxu0 %v9740_v48  ;;  %4740 = vmatpush.bf16.msra.mxu2 %v9804_v0  ;;  %3303 = vst [vmem:[#allocation3 + $0x50] sm:$0x11] %v3302_v36  ;;  %v9637_v48 = vld [vmem:[%s18199_s3 + $0x78] sm:$0xf0]  ;;  %v11999_v0 = vld [vmem:[%s18199_s3 + $0xf4] sm:$0xf] }
 0x21c   : > { %v3067_v12 = vadd.f32 %v3066_v41, %v3048_v56  ;;  %3161 = vst [vmem:[#allocation2 + $0x78] sm:$0xff] %v3137_v32  ;;  %v3227_v46 = vadd.f32 %v15290_v8, %v3137_v32  ;;  %4011 = vmatmul.bf16.vlgmr.msrb.gmra.mxu0 %v15195_v9  ;;  %4025 = vmatmul.bf16.vlgmr.msrb.gmra.mxu2 %v15198_v11  ;;  %v12020_v9 = vld [vmem:[%s18199_s3 + $0x194] sm:$0xf0]  ;;  %v3099_v56 = vpop.f32.mrf.mxu2  ;;  %v9629_v36 = vld [vmem:[%s18199_s3 + $0x68] sm:$0xf0] }
 0x21d   : > { %4755 = vmatpush.bf16.msrb.mxu1 %v9860_v29  ;;  %4769 = vmatpush.bf16.msrb.mxu3 %v9924_v14  ;;  %v12002_v29 = vld [vmem:[%s18199_s3 + $0x104] sm:$0xf0]  ;;  %v9771_v14 = vld [vmem:[%s18199_s3 + $0x180] sm:$0xf]  ;;  %v3234_v41 = vadd.f32 %v15275_v51, %v15254_v54  ;;  %v9780_v20 = vor.u32 %v12020_v9, %v9779_v58  ;;  %v9900_v54 = vor.u32 %v12050_v38, %v9899_v27  ;;  %v9693_v32 = vld [vmem:[%s18199_s3 + $0xe8] sm:$0xf0] }
 0x21e   : > { %v3152_v40 = vadd.f32 %v3128_v19, %v3067_v12  ;;  %v3251_v11 = vmax.f32 %v3227_v46, 0.0  ;;  %v10083_v12 = vld [vmem:[%s18199_s3 + $0x3f0] sm:$0xf]  ;;  %v9640_v13 = vor.u32 %v11983_v50, %v9637_v48  ;;  %v9704_v10 = vor.u32 %v11999_v0, %v9701_v1  ;;  %v9621_v27 = vld [vmem:[%s18199_s3 + $0x58] sm:$0xf0] }
 0x21f   : > { %v3081_v26 = vpop.f32.mrf.mxu0  ;;  %4727 = vmatpush.bf16.msra.mxu0 %v9732_v22  ;;  %4741 = vmatpush.bf16.msra.mxu2 %v9796_v33  ;;  %v12096_v22 = vld [vmem:[%s18199_s3 + $0x3f4] sm:$0xf0]  ;;  %v3258_v25 = vmax.f32 %v3234_v41, 0.0  ;;  %v9708_v21 = vor.u32 %v12002_v29, %v9707_v7  ;;  %v9563_v46 = vld [vmem:[#allocation3 + $0x10] sm:$0xf] }
 0x220   : > { %3176 = vst [vmem:[#allocation2 + $0x20] sm:$0x1] %v3152_v40  ;;  %v3271_v61 = vpack.c.bf16 %v3251_v11, %v3250_v15  ;;  %v3100_v62 = vadd.f32 %v3099_v56, %v3081_v26  ;;  %v9836_v26 = vor.u32 %v12034_v28, %v9835_v31  ;;  %v9772_v40 = vor.u32 %v12018_v42, %v9771_v14  ;;  %v10011_v15 = vld [vmem:[%s18199_s3 + $0x360] sm:$0xf]  ;;  %v12078_v11 = vld [vmem:[%s18199_s3 + $0x364] sm:$0xf0] }
 0x221   : > { %4756 = vmatpush.bf16.msrb.mxu1 %v9852_v30  ;;  %4770 = vmatpush.bf16.msrb.mxu3 %v9916_v43  ;;  %v11967_v30 = vld [vmem:[#allocation3 + $0x2c] sm:$0xf0]  ;;  %v9565_v43 = vld [vmem:[#allocation3 + $0x30] sm:$0xf0]  ;;  %v10084_v9 = vor.u32 %v12096_v22, %v10083_v12  ;;  %v9632_v56 = vor.u32 %v11981_v35, %v9629_v36  ;;  %v12076_v1 = vld [vmem:[%s18199_s3 + $0x354] sm:$0xf0] }
 0x222   : > { %v3313_v17 = vld [vmem:[#allocation3 + $0x50] sm:$0x11]  ;;  %3283 = vst [vmem:[#allocation3 + $0x18] sm:$0xff] %v3271_v61  ;;  %v3145_v19 = vadd.f32 %v3121_v57, %v3100_v62  ;;  %v15421_v31 = vor.u32 %v11967_v30, %v9563_v46  ;;  %v15423_v28 = vor.u32 %v11963_v47, %v9565_v43  ;;  %v9696_v57 = vor.u32 %v11997_v37, %v9693_v32  ;;  %v9685_v61 = vld [vmem:[%s18199_s3 + $0xd8] sm:$0xf0] }
 0x223   : > { %v3050_v52 = vpop.f32.mrf.mxu1  ;;  %v3068_v44 = vpop.f32.mrf.mxu3  ;;  %4728 = vmatpush.bf16.msra.mxu0 %v9724_v3  ;;  %4742 = vmatpush.bf16.msra.mxu2 %v9788_v34  ;;  %v3314_v24 = vsel %vm14826_vm9, 0, %v3313_v17  ;;  %v10075_v3 = vld [vmem:[%s18199_s3 + $0x3e0] sm:$0xf]  ;;  %v11995_v50 = vld [vmem:[%s18199_s3 + $0xd4] sm:$0xf]  ;;  %v10012_v62 = vor.u32 %v12078_v11, %v10011_v15 }
 0x224   : > { %3315 = vst [vmem:[#allocation3 + $0x50] sm:$0x11] %v3314_v24  ;;  %v3235_v33 = vadd.f32 %v15290_v8, %v3145_v19  ;;  %v3102_v45 = vpop.f32.mrf.mxu2  ;;  %v10003_v0 = vld [vmem:[%s18199_s3 + $0x350] sm:$0xf]  ;;  %v9688_v44 = vor.u32 %v11995_v50, %v9685_v61  ;;  %v12092_v7 = vld [vmem:[%s18199_s3 + $0x3d4] sm:$0xf0] }
 0x225   : > { %4757 = vmatpush.bf16.msrb.mxu1 %v9844_v53  ;;  %4771 = vmatpush.bf16.msrb.mxu3 %v9908_v63  ;;  %3169 = vst [vmem:[#allocation2 + $0xa0] sm:$0xff] %v3145_v19  ;;  %v12094_v53 = vld [vmem:[%s18199_s3 + $0x3e4] sm:$0xf0]  ;;  %v11979_v63 = vld [vmem:[%s18199_s3 + $0x54] sm:$0xf] }
 0x226   : > { %v3259_v39 = vmax.f32 %v3235_v33, 0.0  ;;  %v10076_v48 = vor.u32 %v12094_v53, %v10075_v3  ;;  %v11977_v29 = vld [vmem:[%s18199_s3 + $0x44] sm:$0xf]  ;;  %v9613_v14 = vld [vmem:[%s18199_s3 + $0x48] sm:$0xf0] }
 0x227   : > { %v3084_v2 = vpop.f32.mrf.mxu0  ;;  %4729 = vmatpush.bf16.msra.mxu0 %v9716_v6  ;;  %4743 = vmatpush.bf16.msra.mxu2 %v9780_v20  ;;  %v10067_v6 = vld [vmem:[%s18199_s3 + $0x3d0] sm:$0xf]  ;;  %v11993_v42 = vld [vmem:[%s18199_s3 + $0xc4] sm:$0xf]  ;;  %v9677_v17 = vld [vmem:[%s18199_s3 + $0xc8] sm:$0xf0]  ;;  %v10004_v20 = vor.u32 %v12076_v1, %v10003_v0 }
 0x228   : > { %v3275_v52 = vpack.c.bf16 %v3259_v39, %v3258_v25  ;;  %v3103_v58 = vadd.f32 %v3102_v45, %v3084_v2  ;;  %v9624_v2 = vor.u32 %v11979_v63, %v9621_v27  ;;  %v3200_v41 = vld [vmem:[#allocation2 + $0x20] sm:$0x1]  ;;  %v10068_v23 = vor.u32 %v12092_v7, %v10067_v6  ;;  %v12074_v24 = vld [vmem:[%s18199_s3 + $0x344] sm:$0xf0]  ;;  %v11975_v33 = vld [vmem:[%s18199_s3 + $0x34] sm:$0xf] }
 0x229   : > { %4758 = vmatpush.bf16.msrb.mxu1 %v9836_v26  ;;  %4772 = vmatpush.bf16.msrb.mxu3 %v9900_v54  ;;  %v9995_v4 = vld [vmem:[%s18199_s3 + $0x340] sm:$0xf]  ;;  %v9616_v26 = vor.u32 %v11977_v29, %v9613_v14  ;;  %v9680_v54 = vor.u32 %v11993_v42, %v9677_v17  ;;  %v12090_v22 = vld [vmem:[%s18199_s3 + $0x3c4] sm:$0xf0]  ;;  %v11991_v35 = vld [vmem:[%s18199_s3 + $0xb4] sm:$0xf] }
 0x22a   : > { %3287 = vst [vmem:[#allocation3 + $0x38] sm:$0xff] %v3275_v52  ;;  %v3153_v38 = vadd.f32 %v3129_v16, %v3103_v58  ;;  %v10059_v12 = vld [vmem:[%s18199_s3 + $0x3c0] sm:$0xf]  ;;  %v9669_v36 = vld [vmem:[%s18199_s3 + $0xb8] sm:$0xf0]  ;;  %v9996_v25 = vor.u32 %v12074_v24, %v9995_v4 }
 0x22b   : > { %4730 = vmatpush.bf16.msra.mxu0 %v9708_v21  ;;  %4744 = vmatpush.bf16.msra.mxu2 %v9772_v40  ;;  %v10060_v39 = vor.u32 %v12090_v22, %v10059_v12  ;;  %v12072_v21 = vld [vmem:[%s18199_s3 + $0x334] sm:$0xf0]  ;;  %v10051_v40 = vld [vmem:[%s18199_s3 + $0x3b0] sm:$0xf]  ;;  %v11973_v45 = vld [vmem:[%s18199_s3 + $0x24] sm:$0xf] }
 0x22c   : > { %4759 = vmatmul.bf16.vlgmr.msrb.gmra.mxu1 %v15421_v31  ;;  %4773 = vmatmul.bf16.vlgmr.msrb.gmra.mxu3 %v15423_v28  ;;  %3177 = vst [vmem:[#allocation2 + $0x8] sm:$0x1] %v3153_v38  ;;  %v3104_v19 = vpop.f32.mrf.mxu2  ;;  %v12088_v43 = vld [vmem:[%s18199_s3 + $0x3b4] sm:$0xf0]  ;;  %v9597_v16 = vld [vmem:[%s18199_s3 + $0x28] sm:$0xf0] }
 0x22d   : > { %4807 = vmatpush.bf16.msra.mxu1 %v9640_v13  ;;  %4821 = vmatpush.bf16.msra.mxu3 %v9704_v10  ;;  %v3242_v13 = vadd.f32 %v15275_v51, %v3200_v41  ;;  %v9605_v10 = vld [vmem:[%s18199_s3 + $0x38] sm:$0xf0]  ;;  %v9987_v51 = vld [vmem:[%s18199_s3 + $0x330] sm:$0xf]  ;;  %v9661_v52 = vld [vmem:[%s18199_s3 + $0xa8] sm:$0xf0]  ;;  %v10052_v11 = vor.u32 %v12088_v43, %v10051_v40 }
 0x22e   : > { %4731 = vmatmul.bf16.vlgmr.msra.gmra.mxu0 %v15112_v55  ;;  %4745 = vmatmul.bf16.vlgmr.msra.gmra.mxu2 %v15120_v60  ;;  %v9608_v30 = vor.u32 %v11975_v33, %v9605_v10  ;;  %v3304_v58 = vld [vmem:[#allocation3 + $0x58] sm:$0x11]  ;;  %v9988_v15 = vor.u32 %v12072_v21, %v9987_v51  ;;  %v9979_v3 = vld [vmem:[%s18199_s3 + $0x320] sm:$0xf]  ;;  %v12086_v63 = vld [vmem:[%s18199_s3 + $0x3a4] sm:$0xf0] }
 0x22f   : > { %v3086_v34 = vpop.f32.mrf.mxu0  ;;  %4779 = vmatpush.bf16.msrb.mxu0 %v10020_v49  ;;  %4793 = vmatpush.bf16.msrb.mxu2 %v10084_v9  ;;  %v3266_v46 = vmax.f32 %v3242_v13, 0.0  ;;  %v11989_v49 = vld [vmem:[%s18199_s3 + $0xa4] sm:$0xf]  ;;  %v10043_v53 = vld [vmem:[%s18199_s3 + $0x3a0] sm:$0xf] }
 0x230   : > { %v12070_v34 = vld [vmem:[%s18199_s3 + $0x324] sm:$0xf0]  ;;  %v11971_v27 = vld [vmem:[%s18199_s3 + $0x14] sm:$0xf]  ;;  %v9589_v50 = vld [vmem:[%s18199_s3 + $0x18] sm:$0xf0]  ;;  %v10044_v0 = vor.u32 %v12086_v63, %v10043_v53 }
 0x231   : > { %4808 = vmatpush.bf16.msra.mxu1 %v9632_v56  ;;  %4822 = vmatpush.bf16.msra.mxu3 %v9696_v57  ;;  %v9600_v56 = vor.u32 %v11973_v45, %v9597_v16  ;;  %v9664_v57 = vor.u32 %v11989_v49, %v9661_v52  ;;  %v11987_v61 = vld [vmem:[%s18199_s3 + $0x94] sm:$0xf]  ;;  %v9971_v1 = vld [vmem:[%s18199_s3 + $0x310] sm:$0xf]  ;;  %v9592_v6 = vor.u32 %v11971_v27, %v9589_v50  ;;  %v12084_v29 = vld [vmem:[%s18199_s3 + $0x394] sm:$0xf0] }
 0x232   : > { %v11969_v14 = vld [vmem:[%s18199_s3 + $0x4] sm:$0xf]  ;;  %v9581_v42 = vld [vmem:[%s18199_s3 + $0x8] sm:$0xf0]  ;;  %v12047_v19 = vld [vmem:[%s18199_s3 + $0x274] sm:$0xf] }
 0x233   : > { %4780 = vmatpush.bf16.msrb.mxu0 %v10012_v62  ;;  %4794 = vmatpush.bf16.msrb.mxu2 %v10076_v48  ;;  %v3201_v37 = vld [vmem:[#allocation2 + $0x8] sm:$0x1]  ;;  %v9653_v62 = vld [vmem:[%s18199_s3 + $0x98] sm:$0xf0]  ;;  %v9980_v48 = vor.u32 %v12070_v34, %v9979_v3  ;;  %v11985_v17 = vld [vmem:[%s18199_s3 + $0x84] sm:$0xf]  ;;  %v9584_v33 = vor.u32 %v11969_v14, %v9581_v42 }
 0x234   : > { %v3243_v32 = vadd.f32 %v15290_v8, %v3201_v37  ;;  %v9672_v8 = vor.u32 %v11991_v35, %v9669_v36  ;;  %v9656_v7 = vor.u32 %v11987_v61, %v9653_v62  ;;  %v9645_v41 = vld [vmem:[%s18199_s3 + $0x88] sm:$0xf0]  ;;  %v9957_v4 = vld [vmem:[%s18199_s3 + $0x2f8] sm:$0xf0]  ;;  %v12066_v12 = vld [vmem:[%s18199_s3 + $0x304] sm:$0xf0] }
 0x235   : > { %4809 = vmatpush.bf16.msra.mxu1 %v9624_v2  ;;  %4823 = vmatpush.bf16.msra.mxu3 %v9688_v44  ;;  %v12068_v2 = vld [vmem:[%s18199_s3 + $0x314] sm:$0xf0]  ;;  %v10035_v44 = vld [vmem:[%s18199_s3 + $0x390] sm:$0xf]  ;;  %v10027_v22 = vld [vmem:[%s18199_s3 + $0x380] sm:$0xf]  ;;  %v9648_v13 = vor.u32 %v11985_v17, %v9645_v41 }
 0x236   : > { %v3267_v47 = vmax.f32 %v3243_v32, 0.0  ;;  %v9972_v24 = vor.u32 %v12068_v2, %v9971_v1  ;;  %v12082_v10 = vld [vmem:[%s18199_s3 + $0x384] sm:$0xf0]  ;;  %v12015_v35 = vld [vmem:[%s18199_s3 + $0x174] sm:$0xf] }
 0x237   : > { %4781 = vmatpush.bf16.msrb.mxu0 %v10004_v20  ;;  %4795 = vmatpush.bf16.msrb.mxu2 %v10068_v23  ;;  %v9893_v20 = vld [vmem:[%s18199_s3 + $0x278] sm:$0xf0]  ;;  %v12063_v23 = vld [vmem:[%s18199_s3 + $0x2f4] sm:$0xf]  ;;  %v12045_v40 = vld [vmem:[%s18199_s3 + $0x264] sm:$0xf]  ;;  %v10028_v43 = vor.u32 %v12082_v10, %v10027_v22 }
 0x238   : > { %v3279_v9 = vpack.c.bf16 %v3267_v47, %v3266_v46  ;;  %v9765_v36 = vld [vmem:[%s18199_s3 + $0x178] sm:$0xf0]  ;;  %v9896_v32 = vor.u32 %v12047_v19, %v9893_v20  ;;  %v12061_v45 = vld [vmem:[%s18199_s3 + $0x2e4] sm:$0xf]  ;;  %v9949_v16 = vld [vmem:[%s18199_s3 + $0x2e8] sm:$0xf0] }
 0x239   : > { %4810 = vmatpush.bf16.msra.mxu1 %v9616_v26  ;;  %4824 = vmatpush.bf16.msra.mxu3 %v9680_v54  ;;  %v10036_v26 = vor.u32 %v12084_v29, %v10035_v44  ;;  %v9963_v54 = vld [vmem:[%s18199_s3 + $0x300] sm:$0xf]  ;;  %v9829_v51 = vld [vmem:[%s18199_s3 + $0x1f8] sm:$0xf0]  ;;  %v12013_v46 = vld [vmem:[%s18199_s3 + $0x164] sm:$0xf]  ;;  %v9768_v47 = vor.u32 %v12015_v35, %v9765_v36 }
 0x23a   : > { %v3305_v38 = vsel %vm14826_vm9, %v3279_v9, %v3304_v58  ;;  %v9757_v52 = vld [vmem:[%s18199_s3 + $0x168] sm:$0xf0]  ;;  %v12029_v58 = vld [vmem:[%s18199_s3 + $0x1e4] sm:$0xf]  ;;  %v11968_v3 = vld [vmem:[#allocation3 + $0x34] sm:$0xf0] }
 0x23b   : > { %4782 = vmatpush.bf16.msrb.mxu0 %v9996_v25  ;;  %4796 = vmatpush.bf16.msrb.mxu2 %v10060_v39  ;;  %3306 = vst [vmem:[#allocation3 + $0x58] sm:$0x11] %v3305_v38  ;;  %v9960_v25 = vor.u32 %v12063_v23, %v9957_v4  ;;  %v12031_v39 = vld [vmem:[%s18199_s3 + $0x1f4] sm:$0xf]  ;;  %v9821_v9 = vld [vmem:[%s18199_s3 + $0x1e8] sm:$0xf0]  ;;  %v9760_v50 = vor.u32 %v12013_v46, %v9757_v52 }
 0x23c   : > { %v9832_v49 = vor.u32 %v12031_v39, %v9829_v51  ;;  %v9573_v34 = vld [vmem:[#allocation3 + $0x38] sm:$0xf0]  ;;  %v12059_v53 = vld [vmem:[%s18199_s3 + $0x2d4] sm:$0xf]  ;;  %v9571_v27 = vld [vmem:[#allocation3 + $0x18] sm:$0xf] }
 0x23d   : > { %4811 = vmatpush.bf16.msra.mxu1 %v9608_v30  ;;  %4825 = vmatpush.bf16.msra.mxu3 %v9672_v8  ;;  %v9885_v30 = vld [vmem:[%s18199_s3 + $0x268] sm:$0xf0]  ;;  %v9964_v8 = vor.u32 %v12066_v12, %v9963_v54  ;;  %v9941_v63 = vld [vmem:[%s18199_s3 + $0x2d8] sm:$0xf0]  ;;  %v15644_v61 = vor.u32 %v11968_v3, %v9571_v27  ;;  %v12027_v2 = vld [vmem:[%s18199_s3 + $0x1d4] sm:$0xf] }
 0x23e   : > { %v11964_v38 = vld [vmem:[#allocation3 + $0x1c] sm:$0xf]  ;;  %v9944_v1 = vor.u32 %v12059_v53, %v9941_v63  ;;  %v12057_v29 = vld [vmem:[%s18199_s3 + $0x2c4] sm:$0xf]  ;;  %v9933_v14 = vld [vmem:[%s18199_s3 + $0x2c8] sm:$0xf0] }
 0x23f   : > { %4783 = vmatpush.bf16.msrb.mxu0 %v9988_v15  ;;  %4797 = vmatpush.bf16.msrb.mxu2 %v10052_v11  ;;  %v9888_v15 = vor.u32 %v12045_v40, %v9885_v30  ;;  %v9952_v11 = vor.u32 %v12061_v45, %v9949_v16  ;;  %v15646_v62 = vor.u32 %v11964_v38, %v9573_v34  ;;  %v9813_v44 = vld [vmem:[%s18199_s3 + $0x1d8] sm:$0xf0]  ;;  %v12009_v41 = vld [vmem:[%s18199_s3 + $0x144] sm:$0xf]  ;;  %v9741_v19 = vld [vmem:[%s18199_s3 + $0x148] sm:$0xf0] }
 0x240   : > { %v9816_v17 = vor.u32 %v12027_v2, %v9813_v44  ;;  %v9936_v23 = vor.u32 %v12057_v29, %v9933_v14  ;;  %v12025_v4 = vld [vmem:[%s18199_s3 + $0x1c4] sm:$0xf]  ;;  %v9861_v54 = vld [vmem:[%s18199_s3 + $0x238] sm:$0xf0]  ;;  %v12055_v12 = vld [vmem:[%s18199_s3 + $0x2b4] sm:$0xf] }
 0x241   : > { %4812 = vmatpush.bf16.msra.mxu1 %v9600_v56  ;;  %4826 = vmatpush.bf16.msra.mxu3 %v9664_v57  ;;  %v12043_v56 = vld [vmem:[%s18199_s3 + $0x254] sm:$0xf]  ;;  %v9877_v57 = vld [vmem:[%s18199_s3 + $0x258] sm:$0xf0]  ;;  %v12037_v39 = vld [vmem:[%s18199_s3 + $0x224] sm:$0xf] }
 0x242   : > { %v3316_v37 = vld [vmem:[#allocation3 + $0x58] sm:$0x11]  ;;  %v12007_v10 = vld [vmem:[%s18199_s3 + $0x134] sm:$0xf]  ;;  %v9853_v51 = vld [vmem:[%s18199_s3 + $0x228] sm:$0xf0] }
 0x243   : > { %4784 = vmatpush.bf16.msrb.mxu0 %v9980_v48  ;;  %4798 = vmatpush.bf16.msrb.mxu2 %v10044_v0  ;;  %v3317_v21 = vsel %vm14826_vm9, 0, %v3316_v37  ;;  %v9824_v48 = vor.u32 %v12029_v58, %v9821_v9  ;;  %v12011_v0 = vld [vmem:[%s18199_s3 + $0x154] sm:$0xf]  ;;  %v9925_v22 = vld [vmem:[%s18199_s3 + $0x2b8] sm:$0xf0]  ;;  %v9856_v16 = vor.u32 %v12037_v39, %v9853_v51 }
 0x244   : > { %3318 = vst [vmem:[#allocation3 + $0x58] sm:$0x11] %v3317_v21  ;;  %v9733_v35 = vld [vmem:[%s18199_s3 + $0x138] sm:$0xf0]  ;;  %v9928_v37 = vor.u32 %v12055_v12, %v9925_v22  ;;  %v12053_v21 = vld [vmem:[%s18199_s3 + $0x2a4] sm:$0xf] }
 0x245   : > { %4813 = vmatpush.bf16.msra.mxu1 %v9592_v6  ;;  %4827 = vmatpush.bf16.msra.mxu3 %v9656_v7  ;;  %v12041_v6 = vld [vmem:[%s18199_s3 + $0x244] sm:$0xf]  ;;  %v9869_v7 = vld [vmem:[%s18199_s3 + $0x248] sm:$0xf0]  ;;  %v9736_v30 = vor.u32 %v12007_v10, %v9733_v35  ;;  %v12035_v52 = vld [vmem:[%s18199_s3 + $0x214] sm:$0xf] }
 0x246   : > { %v9872_v20 = vor.u32 %v12041_v6, %v9869_v7  ;;  %v9917_v40 = vld [vmem:[%s18199_s3 + $0x2a8] sm:$0xf0]  ;;  %v9845_v58 = vld [vmem:[%s18199_s3 + $0x218] sm:$0xf0]  ;;  %v12051_v9 = vld [vmem:[%s18199_s3 + $0x294] sm:$0xf] }
 0x247   : > { %4785 = vmatpush.bf16.msrb.mxu0 %v9972_v24  ;;  %4799 = vmatpush.bf16.msrb.mxu2 %v10036_v26  ;;  %v9805_v24 = vld [vmem:[%s18199_s3 + $0x1c8] sm:$0xf0]  ;;  %v12039_v26 = vld [vmem:[%s18199_s3 + $0x234] sm:$0xf]  ;;  %v9920_v46 = vor.u32 %v12053_v21, %v9917_v40  ;;  %v9781_v27 = vld [vmem:[%s18199_s3 + $0x198] sm:$0xf0] }
 0x248   : > { %v9864_v36 = vor.u32 %v12039_v26, %v9861_v54  ;;  %v9725_v45 = vld [vmem:[%s18199_s3 + $0x128] sm:$0xf0]  ;;  %v12003_v34 = vld [vmem:[%s18199_s3 + $0x114] sm:$0xf]  ;;  %v12033_v38 = vld [vmem:[%s18199_s3 + $0x204] sm:$0xf] }
 0x249   : > { %4814 = vmatpush.bf16.msra.mxu1 %v9584_v33  ;;  %4828 = vmatpush.bf16.msra.mxu3 %v9648_v13  ;;  %v9744_v33 = vor.u32 %v12009_v41, %v9741_v19  ;;  %v9808_v13 = vor.u32 %v12025_v4, %v9805_v24  ;;  %v12019_v63 = vld [vmem:[%s18199_s3 + $0x194] sm:$0xf]  ;;  %v9709_v6 = vld [vmem:[%s18199_s3 + $0x108] sm:$0xf0]  ;;  %v12017_v7 = vld [vmem:[%s18199_s3 + $0x184] sm:$0xf] }
 0x24a   : > { %v9773_v29 = vld [vmem:[%s18199_s3 + $0x188] sm:$0xf0]  ;;  %v12079_v14 = vld [vmem:[%s18199_s3 + $0x374] sm:$0xf]  ;;  %v10085_v41 = vld [vmem:[%s18199_s3 + $0x3f8] sm:$0xf0] }
 0x24b   : > { %4786 = vmatpush.bf16.msrb.mxu0 %v9964_v8  ;;  %4800 = vmatpush.bf16.msrb.mxu2 %v10028_v43  ;;  %v12005_v43 = vld [vmem:[%s18199_s3 + $0x124] sm:$0xf]  ;;  %v10013_v26 = vld [vmem:[%s18199_s3 + $0x368] sm:$0xf0]  ;;  %v10005_v10 = vld [vmem:[%s18199_s3 + $0x358] sm:$0xf0] }
 0x24c   : > { %4815 = vmatmul.bf16.vlgmr.msra.gmra.mxu1 %v14931_v18  ;;  %4829 = vmatmul.bf16.vlgmr.msra.gmra.mxu3 %v14943_v5  ;;  %v9749_v18 = vld [vmem:[%s18199_s3 + $0x158] sm:$0xf0]  ;;  %v9880_v5 = vor.u32 %v12043_v56, %v9877_v57  ;;  %v9848_v57 = vor.u32 %v12035_v52, %v9845_v58  ;;  %v12077_v24 = vld [vmem:[%s18199_s3 + $0x364] sm:$0xf]  ;;  %v10077_v12 = vld [vmem:[%s18199_s3 + $0x3e8] sm:$0xf0] }
 0x24d   : > { %4863 = vmatpush.bf16.msrb.mxu1 %v9896_v32  ;;  %4877 = vmatpush.bf16.msrb.mxu3 %v9960_v25  ;;  %v9752_v42 = vor.u32 %v12011_v0, %v9749_v18  ;;  %v12023_v32 = vld [vmem:[%s18199_s3 + $0x1b4] sm:$0xf]  ;;  %v9797_v25 = vld [vmem:[%s18199_s3 + $0x1b8] sm:$0xf0]  ;;  %v9901_v0 = vld [vmem:[%s18199_s3 + $0x288] sm:$0xf0]  ;;  %v10016_v22 = vor.u32 %v12077_v24, %v10013_v26 }
 0x24e   : > { %4787 = vmatmul.bf16.vlgmr.msrb.gmra.mxu0 %v15644_v61  ;;  %4801 = vmatmul.bf16.vlgmr.msrb.gmra.mxu2 %v15646_v62  ;;  %v9800_v8 = vor.u32 %v12023_v32, %v9797_v25  ;;  %v9717_v56 = vld [vmem:[%s18199_s3 + $0x118] sm:$0xf0]  ;;  %v12093_v54 = vld [vmem:[%s18199_s3 + $0x3e4] sm:$0xf]  ;;  %v10061_v32 = vld [vmem:[%s18199_s3 + $0x3c8] sm:$0xf0] }
 0x24f   : > { %4835 = vmatpush.bf16.msra.mxu0 %v9768_v47  ;;  %4849 = vmatpush.bf16.msra.mxu2 %v9832_v49  ;;  %v12021_v47 = vld [vmem:[%s18199_s3 + $0x1a4] sm:$0xf]  ;;  %v9789_v49 = vld [vmem:[%s18199_s3 + $0x1a8] sm:$0xf0]  ;;  %v9720_v18 = vor.u32 %v12003_v34, %v9717_v56  ;;  %v12083_v34 = vld [vmem:[%s18199_s3 + $0x394] sm:$0xf] }
 0x250   : > { %v9792_v3 = vor.u32 %v12021_v47, %v9789_v49  ;;  %v12069_v47 = vld [vmem:[%s18199_s3 + $0x324] sm:$0xf]  ;;  %v9981_v49 = vld [vmem:[%s18199_s3 + $0x328] sm:$0xf0]  ;;  %v10037_v56 = vld [vmem:[%s18199_s3 + $0x398] sm:$0xf0] }
 0x251   : > { %4864 = vmatpush.bf16.msrb.mxu1 %v9888_v15  ;;  %4878 = vmatpush.bf16.msrb.mxu3 %v9952_v11  ;;  %v9909_v15 = vld [vmem:[%s18199_s3 + $0x298] sm:$0xf0]  ;;  %v9728_v11 = vor.u32 %v12005_v43, %v9725_v45  ;;  %v12087_v43 = vld [vmem:[%s18199_s3 + $0x3b4] sm:$0xf]  ;;  %v12085_v52 = vld [vmem:[%s18199_s3 + $0x3a4] sm:$0xf] }
 0x252   : > { %v9912_v53 = vor.u32 %v12051_v9, %v9909_v15  ;;  %v10053_v45 = vld [vmem:[%s18199_s3 + $0x3b8] sm:$0xf0]  ;;  %v10045_v58 = vld [vmem:[%s18199_s3 + $0x3a8] sm:$0xf0]  ;;  %v9984_v9 = vor.u32 %v12069_v47, %v9981_v49  ;;  %v12193_v24 = vld [vmem:[%s18202_s6 + $0xec] sm:$0xf0] }
 0x253   : > { %4836 = vmatpush.bf16.msra.mxu0 %v9760_v50  ;;  %4850 = vmatpush.bf16.msra.mxu2 %v9824_v48  ;;  %v9837_v50 = vld [vmem:[%s18199_s3 + $0x208] sm:$0xf0]  ;;  %v12049_v48 = vld [vmem:[%s18199_s3 + $0x284] sm:$0xf]  ;;  %v10048_v15 = vor.u32 %v12085_v52, %v10045_v58  ;;  %v10339_v26 = vld [vmem:[%s18202_s6 + $0x1e0] sm:$0xf] }
 0x254   : > { %v9840_v2 = vor.u32 %v12033_v38, %v9837_v50  ;;  %v9904_v44 = vor.u32 %v12049_v48, %v9901_v0  ;;  %v12081_v38 = vld [vmem:[%s18199_s3 + $0x384] sm:$0xf]  ;;  %v10029_v50 = vld [vmem:[%s18199_s3 + $0x388] sm:$0xf0]  ;;  %v10307_v47 = vld [vmem:[%s18202_s6 + $0x1a0] sm:$0xf] }
 0x255   : > { %4865 = vmatpush.bf16.msrb.mxu1 %v9880_v5  ;;  %4879 = vmatpush.bf16.msrb.mxu3 %v9944_v1  ;;  %v9784_v5 = vor.u32 %v12019_v63, %v9781_v27  ;;  %v12001_v1 = vld [vmem:[%s18199_s3 + $0x104] sm:$0xf]  ;;  %v9965_v27 = vld [vmem:[%s18199_s3 + $0x308] sm:$0xf0]  ;;  %v10032_v0 = vor.u32 %v12081_v38, %v10029_v50  ;;  %v10291_v38 = vld [vmem:[%s18202_s6 + $0x180] sm:$0xf] }
 0x256   : > { %v9712_v19 = vor.u32 %v12001_v1, %v9709_v6  ;;  %v12065_v63 = vld [vmem:[%s18199_s3 + $0x304] sm:$0xf] }
 0x257   : > { %4837 = vmatpush.bf16.msra.mxu0 %v9752_v42  ;;  %4851 = vmatpush.bf16.msra.mxu2 %v9816_v17  ;;  %v10021_v42 = vld [vmem:[%s18199_s3 + $0x378] sm:$0xf0]  ;;  %v12095_v17 = vld [vmem:[%s18199_s3 + $0x3f4] sm:$0xf]  ;;  %v9968_v48 = vor.u32 %v12065_v63, %v9965_v27  ;;  %v10163_v63 = vld [vmem:[%s18202_s6 + $0x80] sm:$0xf] }
 0x258   : > { %v10088_v4 = vor.u32 %v12095_v17, %v10085_v41  ;;  %v12181_v27 = vld [vmem:[%s18202_s6 + $0x8c] sm:$0xf0] }
 0x259   : > { %4866 = vmatpush.bf16.msrb.mxu1 %v9872_v20  ;;  %4880 = vmatpush.bf16.msrb.mxu3 %v9936_v23  ;;  %v9776_v20 = vor.u32 %v12017_v7, %v9773_v29  ;;  %v10024_v23 = vor.u32 %v12079_v14, %v10021_v42 }
 0x25b   : > { %4838 = vmatpush.bf16.msra.mxu0 %v9744_v33  ;;  %4852 = vmatpush.bf16.msra.mxu2 %v9808_v13  ;;  %v10080_v33 = vor.u32 %v12093_v54, %v10077_v12  ;;  %v12075_v13 = vld [vmem:[%s18199_s3 + $0x354] sm:$0xf]  ;;  %v12225_v12 = vld [vmem:[%s18202_s6 + $0x1ec] sm:$0xf0] }
 0x25c   : > { %v10008_v35 = vor.u32 %v12075_v13, %v10005_v10  ;;  %v10340_v13 = vor.u32 %v12225_v12, %v10339_v26  ;;  %v12211_v26 = vld [vmem:[%s18202_s6 + $0x184] sm:$0xf]  ;;  %v10147_v12 = vld [vmem:[%s18202_s6 + $0x60] sm:$0xf] }
 0x25d   : > { %4867 = vmatpush.bf16.msrb.mxu1 %v9864_v36  ;;  %4881 = vmatpush.bf16.msrb.mxu3 %v9928_v37  ;;  %v12089_v37 = vld [vmem:[%s18199_s3 + $0x3c4] sm:$0xf] }
 0x25e   : > { %v10064_v40 = vor.u32 %v12089_v37, %v10061_v32  ;;  %v12189_v37 = vld [vmem:[%s18202_s6 + $0xcc] sm:$0xf0]  ;;  %v10323_v32 = vld [vmem:[%s18202_s6 + $0x1c0] sm:$0xf] }
 0x25f   : > { %4839 = vmatpush.bf16.msra.mxu0 %v9736_v30  ;;  %4853 = vmatpush.bf16.msra.mxu2 %v9800_v8  ;;  %v12071_v30 = vld [vmem:[%s18199_s3 + $0x334] sm:$0xf]  ;;  %v9989_v8 = vld [vmem:[%s18199_s3 + $0x338] sm:$0xf0] }
 0x261   : > { %4868 = vmatpush.bf16.msrb.mxu1 %v9856_v16  ;;  %4882 = vmatpush.bf16.msrb.mxu3 %v9920_v46  ;;  %v9992_v16 = vor.u32 %v12071_v30, %v9989_v8  ;;  %v10056_v46 = vor.u32 %v12087_v43, %v10053_v45  ;;  %v12219_v8 = vld [vmem:[%s18202_s6 + $0x1c4] sm:$0xf]  ;;  %v10325_v43 = vld [vmem:[%s18202_s6 + $0x1d0] sm:$0xf0] }
 0x262   : > { %v10328_v45 = vor.u32 %v12219_v8, %v10325_v43  ;;  %v12205_v8 = vld [vmem:[%s18202_s6 + $0x14c] sm:$0xf0] }
 0x263   : > { %4840 = vmatpush.bf16.msra.mxu0 %v9728_v11  ;;  %4854 = vmatpush.bf16.msra.mxu2 %v9792_v3  ;;  %v12067_v11 = vld [vmem:[%s18199_s3 + $0x314] sm:$0xf]  ;;  %v9973_v3 = vld [vmem:[%s18199_s3 + $0x318] sm:$0xf0] }
 0x265   : > { %4869 = vmatpush.bf16.msrb.mxu1 %v9848_v57  ;;  %4883 = vmatpush.bf16.msrb.mxu3 %v9912_v53  ;;  %v9976_v57 = vor.u32 %v12067_v11, %v9973_v3  ;;  %v10040_v53 = vor.u32 %v12083_v34, %v10037_v56  ;;  %v10181_v3 = vld [vmem:[%s18202_s6 + $0xb0] sm:$0xf0]  ;;  %v12215_v34 = vld [vmem:[%s18202_s6 + $0x1a4] sm:$0xf] }
 0x266   : > { %v10309_v56 = vld [vmem:[%s18202_s6 + $0x1b0] sm:$0xf0] }
 0x267   : > { %4841 = vmatpush.bf16.msra.mxu0 %v9720_v18  ;;  %4855 = vmatpush.bf16.msra.mxu2 %v9784_v5 }
 0x269   : > { %4870 = vmatpush.bf16.msrb.mxu1 %v9840_v2  ;;  %4884 = vmatpush.bf16.msrb.mxu3 %v9904_v44  ;;  %v3928_v25 = vpop.f32.mrf.mxu1 }
 0x26b   : > { %4842 = vmatpush.bf16.msra.mxu0 %v9712_v19  ;;  %4856 = vmatpush.bf16.msra.mxu2 %v9776_v20 }
 0x26c   : > { %4871 = vmatmul.bf16.vlgmr.msrb.gmra.mxu1 %v15421_v31  ;;  %4885 = vmatmul.bf16.vlgmr.msrb.gmra.mxu3 %v15423_v28  ;;  %v12091_v31 = vld [vmem:[%s18199_s3 + $0x3d4] sm:$0xf]  ;;  %v10069_v28 = vld [vmem:[%s18199_s3 + $0x3d8] sm:$0xf0] }
 0x26d   : > { %v10072_v36 = vor.u32 %v12091_v31, %v10069_v28  ;;  %v12223_v31 = vld [vmem:[%s18202_s6 + $0x1e4] sm:$0xf]  ;;  %v10341_v28 = vld [vmem:[%s18202_s6 + $0x1f0] sm:$0xf0]  ;;  %5361 = vmatpush.bf16.msra.mxu3 %v10340_v13  ;;  %v10275_v13 = vld [vmem:[%s18202_s6 + $0x160] sm:$0xf] }
 0x26e   : > { %4843 = vmatmul.bf16.vlgmr.msra.gmra.mxu0 %v15112_v55  ;;  %4857 = vmatmul.bf16.vlgmr.msra.gmra.mxu2 %v15120_v60  ;;  %v12073_v55 = vld [vmem:[%s18199_s3 + $0x344] sm:$0xf]  ;;  %v9997_v60 = vld [vmem:[%s18199_s3 + $0x348] sm:$0xf0] }
 0x26f   : > { %4891 = vmatpush.bf16.msrb.mxu0 %v10024_v23  ;;  %4905 = vmatpush.bf16.msrb.mxu2 %v10088_v4  ;;  %v3942_v39 = vpop.f32.mrf.mxu3  ;;  %v10000_v21 = vor.u32 %v12073_v55, %v9997_v60  ;;  %v10211_v4 = vld [vmem:[%s18202_s6 + $0xe0] sm:$0xf]  ;;  %v10344_v55 = vor.u32 %v12223_v31, %v10341_v28 }
 0x270   : > { %v3943_v51 = vadd.f32 %v3942_v39, %v3928_v25  ;;  %v10212_v54 = vor.u32 %v12193_v24, %v10211_v4  ;;  %v10195_v60 = vld [vmem:[%s18202_s6 + $0xc0] sm:$0xf]  ;;  %v12221_v39 = vld [vmem:[%s18202_s6 + $0x1cc] sm:$0xf0] }
 0x271   : > { %v15886_v44 = vpop.f32.mrf.mxu1  ;;  %v10196_v25 = vor.u32 %v12189_v37, %v10195_v60  ;;  %v10149_v60 = vld [vmem:[%s18202_s6 + $0x70] sm:$0xf0]  ;;  %v12207_v37 = vld [vmem:[%s18202_s6 + $0x164] sm:$0xf] }
 0x272   : > { %5347 = vmatpush.bf16.msra.mxu1 %v10212_v54  ;;  %v10293_v54 = vld [vmem:[%s18202_s6 + $0x190] sm:$0xf0] }
 0x273   : > { %4892 = vmatpush.bf16.msrb.mxu0 %v10016_v22  ;;  %4906 = vmatpush.bf16.msrb.mxu2 %v10080_v33  ;;  %v12191_v22 = vld [vmem:[%s18202_s6 + $0xe4] sm:$0xf]  ;;  %v10213_v33 = vld [vmem:[%s18202_s6 + $0xf0] sm:$0xf0] }
 0x274   : > { %v10216_v10 = vor.u32 %v12191_v22, %v10213_v33  ;;  %v10296_v22 = vor.u32 %v12211_v26, %v10293_v54  ;;  %v12177_v33 = vld [vmem:[%s18202_s6 + $0x6c] sm:$0xf0] }
 0x275   : > { %v10148_v31 = vor.u32 %v12177_v33, %v10147_v12  ;;  %v10099_v12 = vld [vmem:[%s18202_s6] sm:$0xf] }
 0x276   : > { %5348 = vmatpush.bf16.msra.mxu1 %v10196_v25  ;;  %v10227_v33 = vld [vmem:[%s18202_s6 + $0x100] sm:$0xf] }
 0x277   : > { %4893 = vmatpush.bf16.msrb.mxu0 %v10008_v35  ;;  %4907 = vmatpush.bf16.msrb.mxu2 %v10072_v36  ;;  %v15888_v6 = vpop.f32.mrf.mxu3 }
 0x279   : > { %v15892_v29 = vpop.f32.mrf.mxu1 }
 0x27b   : > { %4894 = vmatpush.bf16.msrb.mxu0 %v10000_v21  ;;  %4908 = vmatpush.bf16.msrb.mxu2 %v10064_v40  ;;  %v10197_v21 = vld [vmem:[%s18202_s6 + $0xd0] sm:$0xf0]  ;;  %v10324_v40 = vor.u32 %v12221_v39, %v10323_v32 }
 0x27c   : > { %v10277_v39 = vld [vmem:[%s18202_s6 + $0x170] sm:$0xf0] }
 0x27d   : > { %5362 = vmatpush.bf16.msra.mxu3 %v10324_v40  ;;  %v12173_v40 = vld [vmem:[%s18202_s6 + $0x4c] sm:$0xf0] }
 0x27f   : > { %4895 = vmatpush.bf16.msrb.mxu0 %v9992_v16  ;;  %4909 = vmatpush.bf16.msrb.mxu2 %v10056_v46  ;;  %v15896_v42 = vpop.f32.mrf.mxu3  ;;  %v10179_v16 = vld [vmem:[%s18202_s6 + $0xa0] sm:$0xf]  ;;  %v12185_v46 = vld [vmem:[%s18202_s6 + $0xac] sm:$0xf0] }
 0x280   : > { %v10180_v58 = vor.u32 %v12185_v46, %v10179_v16  ;;  %v12171_v16 = vld [vmem:[%s18202_s6 + $0x44] sm:$0xf]  ;;  %v10133_v46 = vld [vmem:[%s18202_s6 + $0x50] sm:$0xf0] }
 0x282   : > { %5349 = vmatpush.bf16.msra.mxu1 %v10180_v58 }
 0x283   : > { %4896 = vmatpush.bf16.msrb.mxu0 %v9984_v9  ;;  %4910 = vmatpush.bf16.msrb.mxu2 %v10048_v15  ;;  %v12217_v9 = vld [vmem:[%s18202_s6 + $0x1ac] sm:$0xf0]  ;;  %v12183_v15 = vld [vmem:[%s18202_s6 + $0xa4] sm:$0xf] }
 0x284   : > { %v10308_v11 = vor.u32 %v12217_v9, %v10307_v47  ;;  %v12203_v47 = vld [vmem:[%s18202_s6 + $0x144] sm:$0xf]  ;;  %v10261_v9 = vld [vmem:[%s18202_s6 + $0x150] sm:$0xf0] }
 0x286   : > { %5363 = vmatpush.bf16.msra.mxu3 %v10308_v11 }
 0x287   : > { %4897 = vmatpush.bf16.msrb.mxu0 %v9976_v57  ;;  %4911 = vmatpush.bf16.msrb.mxu2 %v10040_v53  ;;  %v15904_v41 = vpop.f32.mrf.mxu3  ;;  %v10184_v57 = vor.u32 %v12183_v15, %v10181_v3  ;;  %v10312_v53 = vor.u32 %v12215_v34, %v10309_v56  ;;  %v10136_v3 = vor.u32 %v12171_v16, %v10133_v46  ;;  %v10115_v56 = vld [vmem:[%s18202_s6 + $0x20] sm:$0xf] }
 0x288   : > { %v10264_v34 = vor.u32 %v12203_v47, %v10261_v9  ;;  %v12192_v47 = vld [vmem:[%s18202_s6 + $0xec] sm:$0xf] }
 0x289   : > { %v3956_v18 = vpop.f32.mrf.mxu0 }
 0x28a   : > { %v3957_v5 = vadd.f32 %v3956_v18, %v3943_v51  ;;  %v12187_v51 = vld [vmem:[%s18202_s6 + $0xc4] sm:$0xf]  ;;  %v12213_v18 = vld [vmem:[%s18202_s6 + $0x18c] sm:$0xf0] }
 0x28b   : > { %4898 = vmatpush.bf16.msrb.mxu0 %v9968_v48  ;;  %4912 = vmatpush.bf16.msrb.mxu2 %v10032_v0  ;;  %v10200_v30 = vor.u32 %v12187_v51, %v10197_v21  ;;  %v10164_v0 = vor.u32 %v12181_v27, %v10163_v63  ;;  %v10292_v4 = vor.u32 %v12213_v18, %v10291_v38  ;;  %v10131_v51 = vld [vmem:[%s18202_s6 + $0x40] sm:$0xf]  ;;  %v12201_v27 = vld [vmem:[%s18202_s6 + $0x12c] sm:$0xf0]  ;;  %v12167_v38 = vld [vmem:[%s18202_s6 + $0x24] sm:$0xf] }
 0x28c   : > { %v10280_v21 = vor.u32 %v12207_v37, %v10277_v39  ;;  %v12195_v37 = vld [vmem:[%s18202_s6 + $0x104] sm:$0xf]  ;;  %v10219_v39 = vld [vmem:[%s18202_s6 + $0xe8] sm:$0xf] }
 0x28d   : > { %5350 = vmatpush.bf16.msra.mxu1 %v10164_v0  ;;  %5364 = vmatpush.bf16.msra.mxu3 %v10292_v4  ;;  %v10117_v0 = vld [vmem:[%s18202_s6 + $0x30] sm:$0xf0] }
 0x28e   : > { %4899 = vmatmul.bf16.vlgmr.msrb.gmra.mxu0 %v15644_v61  ;;  %4913 = vmatmul.bf16.vlgmr.msrb.gmra.mxu2 %v15646_v62  ;;  %v15900_v62 = vpop.f32.mrf.mxu1  ;;  %v10245_v4 = vld [vmem:[%s18202_s6 + $0x130] sm:$0xf0] }
 0x28f   : > { %v3970_v1 = vpop.f32.mrf.mxu2  ;;  %5375 = vmatpush.bf16.msra.mxu0 %v10216_v10  ;;  %5389 = vmatpush.bf16.msra.mxu2 %v10344_v55  ;;  %v12209_v10 = vld [vmem:[%s18202_s6 + $0x16c] sm:$0xf0]  ;;  %v12175_v55 = vld [vmem:[%s18202_s6 + $0x64] sm:$0xf] }
 0x290   : > { %v15884_v2 = vadd.f32 %v3970_v1, %v3957_v5  ;;  %v12179_v5 = vld [vmem:[%s18202_s6 + $0x84] sm:$0xf]  ;;  %v10165_v1 = vld [vmem:[%s18202_s6 + $0x90] sm:$0xf0]  ;;  %v10276_v28 = vor.u32 %v12209_v10, %v10275_v13  ;;  %v10152_v25 = vor.u32 %v12175_v55, %v10149_v60  ;;  %v12197_v10 = vld [vmem:[%s18202_s6 + $0x10c] sm:$0xf0] }
 0x291   : > { %v15890_v7 = vpop.f32.mrf.mxu0  ;;  %v15936_v35 = vpop.f32.mrf.mxu3  ;;  %v10168_v24 = vor.u32 %v12179_v5, %v10165_v1  ;;  %5351 = vmatpush.bf16.msra.mxu1 %v10148_v31  ;;  %v10120_v5 = vor.u32 %v12167_v38, %v10117_v0  ;;  %v12199_v1 = vld [vmem:[%s18202_s6 + $0x124] sm:$0xf]  ;;  %v10228_v55 = vor.u32 %v12197_v10, %v10227_v33  ;;  %v12186_v10 = vld [vmem:[%s18202_s6 + $0xb4] sm:$0xf0] }
 0x292   : > { %5365 = vmatpush.bf16.msra.mxu3 %v10276_v28  ;;  %v10248_v54 = vor.u32 %v12199_v1, %v10245_v4  ;;  %v12163_v31 = vld [vmem:[%s18202_s6 + $0x4] sm:$0xf]  ;;  %v10101_v28 = vld [vmem:[%s18202_s6 + $0x10] sm:$0xf0]  ;;  %v10205_v1 = vld [vmem:[%s18202_s6 + $0xd8] sm:$0xf0] }
 0x293   : > { %5376 = vmatpush.bf16.msra.mxu0 %v10200_v30  ;;  %5390 = vmatpush.bf16.msra.mxu2 %v10328_v45  ;;  %v10259_v30 = vld [vmem:[%s18202_s6 + $0x140] sm:$0xf]  ;;  %v10132_v45 = vor.u32 %v12173_v40, %v10131_v51  ;;  %v10104_v60 = vor.u32 %v12163_v31, %v10101_v28  ;;  %v12220_v4 = vld [vmem:[%s18202_s6 + $0x1cc] sm:$0xf]  ;;  %v10315_v31 = vld [vmem:[%s18202_s6 + $0x1a8] sm:$0xf] }
 0x294   : > { %v10260_v58 = vor.u32 %v12205_v8, %v10259_v30  ;;  %v12194_v30 = vld [vmem:[%s18202_s6 + $0xf4] sm:$0xf0]  ;;  %v10347_v8 = vld [vmem:[%s18202_s6 + $0x1e8] sm:$0xf] }
 0x295   : > { %5352 = vmatpush.bf16.msra.mxu1 %v10132_v45  ;;  %v12226_v45 = vld [vmem:[%s18202_s6 + $0x1f4] sm:$0xf0]  ;;  %v10220_v16 = vor.u32 %v12194_v30, %v10219_v39  ;;  %v3945_v39 = vadd.f32 %v15888_v6, %v15886_v44  ;;  %v10171_v6 = vld [vmem:[%s18202_s6 + $0x88] sm:$0xf] }
 0x296   : > { %v15908_v20 = vpop.f32.mrf.mxu1  ;;  %5366 = vmatpush.bf16.msra.mxu3 %v10260_v58  ;;  %v10348_v46 = vor.u32 %v12226_v45, %v10347_v8  ;;  %v10221_v58 = vld [vmem:[%s18202_s6 + $0xf8] sm:$0xf0]  ;;  %v12216_v8 = vld [vmem:[%s18202_s6 + $0x1ac] sm:$0xf] }
 0x297   : > { %v15894_v14 = vpop.f32.mrf.mxu2  ;;  %5377 = vmatpush.bf16.msra.mxu0 %v10184_v57  ;;  %5391 = vmatpush.bf16.msra.mxu2 %v10312_v53  ;;  %v12169_v57 = vld [vmem:[%s18202_s6 + $0x2c] sm:$0xf0]  ;;  %v10243_v53 = vld [vmem:[%s18202_s6 + $0x120] sm:$0xf]  ;;  %v10224_v9 = vor.u32 %v12192_v47, %v10221_v58  ;;  %v4705_v28 = vadd.f32 %v15908_v20, %v15884_v2  ;;  %v10317_v45 = vld [vmem:[%s18202_s6 + $0x1b8] sm:$0xf0]  ;;  %v3959_v44 = vadd.f32 %v15890_v7, %v3945_v39 }
 0x298   : > { %v10116_v63 = vor.u32 %v12169_v57, %v10115_v56  ;;  %v10244_v18 = vor.u32 %v12201_v27, %v10243_v53  ;;  %v10203_v56 = vld [vmem:[%s18202_s6 + $0xc8] sm:$0xf]  ;;  %v12190_v53 = vld [vmem:[%s18202_s6 + $0xd4] sm:$0xf0] }
 0x299   : > { %v15898_v61 = vpop.f32.mrf.mxu0  ;;  %v16001_v50 = vpop.f32.mrf.mxu3  ;;  %v12222_v27 = vld [vmem:[%s18202_s6 + $0x1d4] sm:$0xf0]  ;;  %v10204_v0 = vor.u32 %v12190_v53, %v10203_v56  ;;  %v10299_v58 = vld [vmem:[%s18202_s6 + $0x188] sm:$0xf]  ;;  %v3973_v56 = vadd.f32 %v15894_v14, %v3959_v44  ;;  %v10301_v53 = vld [vmem:[%s18202_s6 + $0x198] sm:$0xf0] }
 0x29a   : > { %5353 = vmatpush.bf16.msra.mxu1 %v10116_v63  ;;  %5367 = vmatpush.bf16.msra.mxu3 %v10244_v18  ;;  %v10331_v63 = vld [vmem:[%s18202_s6 + $0x1c8] sm:$0xf]  ;;  %v12182_v47 = vld [vmem:[%s18202_s6 + $0x94] sm:$0xf0] }
 0x29b   : > { %5378 = vmatpush.bf16.msra.mxu0 %v10168_v24  ;;  %5392 = vmatpush.bf16.msra.mxu2 %v10296_v22  ;;  %v12165_v22 = vld [vmem:[%s18202_s6 + $0xc] sm:$0xf0]  ;;  %v10332_v18 = vor.u32 %v12222_v27, %v10331_v63  ;;  %v12214_v7 = vld [vmem:[%s18202_s6 + $0x194] sm:$0xf0] }
 0x29c   : > { %v10100_v13 = vor.u32 %v12165_v22, %v10099_v12  ;;  %v10333_v12 = vld [vmem:[%s18202_s6 + $0x1d8] sm:$0xf0] }
 0x29d   : > { %v10336_v33 = vor.u32 %v12220_v4, %v10333_v12  ;;  %v12178_v4 = vld [vmem:[%s18202_s6 + $0x74] sm:$0xf0] }
 0x29e   : > { %v15973_v49 = vpop.f32.mrf.mxu1  ;;  %5354 = vmatpush.bf16.msra.mxu1 %v10100_v13  ;;  %5368 = vmatpush.bf16.msra.mxu3 %v10228_v55  ;;  %v10187_v13 = vld [vmem:[%s18202_s6 + $0xa8] sm:$0xf] }
 0x29f   : > { %v15902_v17 = vpop.f32.mrf.mxu2  ;;  %5379 = vmatpush.bf16.msra.mxu0 %v10152_v25  ;;  %5393 = vmatpush.bf16.msra.mxu2 %v10280_v21  ;;  %v10229_v25 = vld [vmem:[%s18202_s6 + $0x110] sm:$0xf0]  ;;  %v10188_v55 = vor.u32 %v12186_v10, %v10187_v13  ;;  %v4707_v13 = vadd.f32 %v15973_v49, %v3973_v56  ;;  %v12168_v56 = vld [vmem:[%s18202_s6 + $0x2c] sm:$0xf] }
 0x2a0   : > { %v10232_v40 = vor.u32 %v12195_v37, %v10229_v25  ;;  %v12184_v37 = vld [vmem:[%s18202_s6 + $0xac] sm:$0xf]  ;;  %v10189_v25 = vld [vmem:[%s18202_s6 + $0xb8] sm:$0xf0] }
 0x2a1   : > { %v15906_v19 = vpop.f32.mrf.mxu0  ;;  %v10192_v30 = vor.u32 %v12184_v37, %v10189_v25  ;;  %v4721_v44 = vadd.f32 %v16001_v50, %v4707_v13  ;;  %v10123_v50 = vld [vmem:[%s18202_s6 + $0x28] sm:$0xf] }
 0x2a2   : > { %5403 = vmatpush.bf16.msrb.mxu1 %v10220_v16  ;;  %5417 = vmatpush.bf16.msrb.mxu3 %v10348_v46  ;;  %v3999_v16 = vadd.f32 %v15896_v42, %v15892_v29  ;;  %v10320_v46 = vor.u32 %v12216_v8, %v10317_v45  ;;  %v10172_v42 = vor.u32 %v12182_v47, %v10171_v6  ;;  %v10267_v8 = vld [vmem:[%s18202_s6 + $0x148] sm:$0xf]  ;;  %v12206_v45 = vld [vmem:[%s18202_s6 + $0x154] sm:$0xf0]  ;;  %v12204_v47 = vld [vmem:[%s18202_s6 + $0x14c] sm:$0xf] }
 0x2a3   : > { %5380 = vmatpush.bf16.msra.mxu0 %v10136_v3  ;;  %5394 = vmatpush.bf16.msra.mxu2 %v10264_v34  ;;  %v12224_v3 = vld [vmem:[%s18202_s6 + $0x1ec] sm:$0xf]  ;;  %v10349_v34 = vld [vmem:[%s18202_s6 + $0x1f8] sm:$0xf0] }
 0x2a4   : > { %v10352_v57 = vor.u32 %v12224_v3, %v10349_v34  ;;  %v4013_v29 = vadd.f32 %v15898_v61, %v3999_v16  ;;  %v12180_v3 = vld [vmem:[%s18202_s6 + $0x8c] sm:$0xf]  ;;  %v10173_v34 = vld [vmem:[%s18202_s6 + $0x98] sm:$0xf0] }
 0x2a5   : > { %v10176_v61 = vor.u32 %v12180_v3, %v10173_v34  ;;  %v12172_v16 = vld [vmem:[%s18202_s6 + $0x4c] sm:$0xf] }
 0x2a6   : > { %5404 = vmatpush.bf16.msrb.mxu1 %v10204_v0  ;;  %5418 = vmatpush.bf16.msrb.mxu3 %v10332_v18  ;;  %v4027_v63 = vadd.f32 %v15902_v17, %v4013_v29  ;;  %v12511_v0 = vmov 0   ;;  %v10283_v17 = vld [vmem:[%s18202_s6 + $0x168] sm:$0xf] }
 0x2a7   : > { %v15910_v23 = vpop.f32.mrf.mxu2  ;;  %5381 = vmatpush.bf16.msra.mxu0 %v10120_v5  ;;  %5395 = vmatpush.bf16.msra.mxu2 %v10248_v54  ;;  %v12188_v5 = vld [vmem:[%s18202_s6 + $0xcc] sm:$0xf]  ;;  %4933 = vst [vmem:[#allocation4] sm:$0x11] %v12511_v0 }
 0x2a8   : > { %v10208_v54 = vor.u32 %v12188_v5, %v10205_v1  ;;  %v10155_v1 = vld [vmem:[%s18202_s6 + $0x68] sm:$0xf]  ;;  %4934 = vst [vmem:[#allocation4 + $0x10] sm:$0x22] %v12511_v0 }
 0x2a9   : > { %v16041_v32 = vpop.f32.mrf.mxu1  ;;  %v10156_v12 = vor.u32 %v12178_v4, %v10155_v1  ;;  %v12166_v1 = vld [vmem:[%s18202_s6 + $0x14] sm:$0xf0]  ;;  %v10235_v4 = vld [vmem:[%s18202_s6 + $0x108] sm:$0xf] }
 0x2aa   : > { %5405 = vmatpush.bf16.msrb.mxu1 %v10188_v55  ;;  %v10285_v55 = vld [vmem:[%s18202_s6 + $0x178] sm:$0xf0] }
 0x2ab   : > { %v15938_v36 = vpop.f32.mrf.mxu0  ;;  %5382 = vmatpush.bf16.msra.mxu0 %v10104_v60  ;;  %5396 = vmatpush.bf16.msra.mxu2 %v10232_v40  ;;  %v12218_v60 = vld [vmem:[%s18202_s6 + $0x1b4] sm:$0xf0] }
 0x2ac   : > { %v10316_v20 = vor.u32 %v12218_v60, %v10315_v31  ;;  %v4001_v60 = vadd.f32 %v15904_v41, %v15900_v62 }
 0x2ae   : > { %5419 = vmatpush.bf16.msrb.mxu3 %v10316_v20  ;;  %5406 = vmatpush.bf16.msrb.mxu1 %v10172_v42  ;;  %v10139_v20 = vld [vmem:[%s18202_s6 + $0x48] sm:$0xf]  ;;  %v4015_v62 = vadd.f32 %v15906_v19, %v4001_v60 }
 0x2af   : > { %v16072_v15 = vpop.f32.mrf.mxu3  ;;  %5431 = vmatpush.bf16.msrb.mxu0 %v10224_v9  ;;  %5445 = vmatpush.bf16.msrb.mxu2 %v10352_v57  ;;  %v4719_v9 = vadd.f32 %v15936_v35, %v4705_v28  ;;  %v10300_v35 = vor.u32 %v12214_v7, %v10299_v58  ;;  %v12212_v57 = vld [vmem:[%s18202_s6 + $0x18c] sm:$0xf]  ;;  %v10269_v58 = vld [vmem:[%s18202_s6 + $0x158] sm:$0xf0]  ;;  %v10251_v7 = vld [vmem:[%s18202_s6 + $0x128] sm:$0xf] }
 0x2b0   : > { %v10304_v27 = vor.u32 %v12212_v57, %v10301_v53  ;;  %v12208_v28 = vld [vmem:[%s18202_s6 + $0x16c] sm:$0xf]  ;;  %v10272_v42 = vor.u32 %v12204_v47, %v10269_v58 }
 0x2b1   : > { %v15975_v52 = vpop.f32.mrf.mxu2  ;;  %v16100_v24 = vpop.f32.mrf.mxu1  ;;  %v4733_v18 = vadd.f32 %v15938_v36, %v4719_v9  ;;  %v12210_v36 = vld [vmem:[%s18202_s6 + $0x174] sm:$0xf0]  ;;  %v10288_v37 = vor.u32 %v12208_v28, %v10285_v55  ;;  %v4029_v9 = vadd.f32 %v15910_v23, %v4015_v62  ;;  %v10237_v28 = vld [vmem:[%s18202_s6 + $0x118] sm:$0xf0] }
 0x2b2   : > { %5420 = vmatpush.bf16.msrb.mxu3 %v10300_v35  ;;  %v10284_v31 = vor.u32 %v12210_v36, %v10283_v17  ;;  %5407 = vmatpush.bf16.msrb.mxu1 %v10156_v12  ;;  %v12202_v23 = vld [vmem:[%s18202_s6 + $0x134] sm:$0xf0]  ;;  %v10125_v35 = vld [vmem:[%s18202_s6 + $0x38] sm:$0xf0]  ;;  %v12164_v36 = vld [vmem:[%s18202_s6 + $0xc] sm:$0xf] }
 0x2b3   : > { %v16003_v48 = vpop.f32.mrf.mxu0  ;;  %5432 = vmatpush.bf16.msrb.mxu0 %v10208_v54  ;;  %5446 = vmatpush.bf16.msrb.mxu2 %v10336_v33  ;;  %v12176_v33 = vld [vmem:[%s18202_s6 + $0x6c] sm:$0xf]  ;;  %v4747_v10 = vadd.f32 %v15975_v52, %v4733_v18  ;;  %v10252_v53 = vor.u32 %v12202_v23, %v10251_v7  ;;  %v12198_v17 = vld [vmem:[%s18202_s6 + $0x114] sm:$0xf0] }
 0x2b4   : > { %v4735_v3 = vadd.f32 %v16003_v48, %v4721_v44  ;;  %v12200_v48 = vld [vmem:[%s18202_s6 + $0x12c] sm:$0xf] }
 0x2b5   : > { %v4761_v19 = vadd.f32 %v16041_v32, %v4747_v10  ;;  %v12170_v32 = vld [vmem:[%s18202_s6 + $0x34] sm:$0xf0] }
 0x2b6   : > { %5421 = vmatpush.bf16.msrb.mxu3 %v10284_v31  ;;  %v10124_v57 = vor.u32 %v12170_v32, %v10123_v50 }
 0x2b7   : > { %v16131_v51 = vpop.f32.mrf.mxu3  ;;  %5433 = vmatpush.bf16.msrb.mxu0 %v10192_v30  ;;  %5447 = vmatpush.bf16.msrb.mxu2 %v10320_v46  ;;  %v12174_v30 = vld [vmem:[%s18202_s6 + $0x54] sm:$0xf0]  ;;  %v10141_v46 = vld [vmem:[%s18202_s6 + $0x58] sm:$0xf0]  ;;  %v4775_v18 = vadd.f32 %v16072_v15, %v4761_v19 }
 0x2b8   : > { %v10144_v6 = vor.u32 %v12172_v16, %v10141_v46 }
 0x2b9   : > { %v16058_v43 = vpop.f32.mrf.mxu2 }
 0x2ba   : > { %v4749_v0 = vadd.f32 %v16058_v43, %v4735_v3  ;;  %v4919_v43 = vld [vmem:[%s18201_s5] sm:$0x3] }
 0x2bb   : > { %5434 = vmatpush.bf16.msrb.mxu0 %v10176_v61  ;;  %5448 = vmatpush.bf16.msrb.mxu2 %v10304_v27  ;;  %v10107_v27 = vld [vmem:[%s18202_s6 + $0x8] sm:$0xf] }
 0x2bc   : > { %v10108_v60 = vor.u32 %v12166_v1, %v10107_v27  ;;  %v12257_v27 = vld [vmem:[%s18202_s6 + $0x2e4] sm:$0xf] }
 0x2bf   : > { %5449 = vmatpush.bf16.msrb.mxu2 %v10288_v37  ;;  %v4921_v37 = vperm.slane %v4919_v43, 0 }
 0x2c3   : > { %5450 = vmatpush.bf16.msrb.mxu2 %v10272_v42 }
 0x2c9   : > { %v4816_v38 = vpop.f32.mrf.mxu1 }
 0x2ca   : > { %v4817_v54 = vadd.f32 %v4816_v38, %v4027_v63  ;;  %v10157_v38 = vld [vmem:[%s18202_s6 + $0x78] sm:$0xf0] }
 0x2cb   : > { %v16074_v11 = vpop.f32.mrf.mxu0  ;;  %v10160_v52 = vor.u32 %v12176_v33, %v10157_v38  ;;  %v10253_v63 = vld [vmem:[%s18202_s6 + $0x138] sm:$0xf0]  ;;  %v12196_v38 = vld [vmem:[%s18202_s6 + $0x10c] sm:$0xf] }
 0x2cc   : > { %v10256_v12 = vor.u32 %v12200_v48, %v10253_v63  ;;  %v10109_v33 = vld [vmem:[%s18202_s6 + $0x18] sm:$0xf0]  ;;  %v4789_v13 = vadd.f32 %v16074_v11, %v4775_v18  ;;  %v10667_v48 = vld [vmem:[%s18202_s6 + $0x3e0] sm:$0xf]  ;;  %v12291_v63 = vld [vmem:[%s18202_s6 + $0x3ec] sm:$0xf0] }
 0x2cd   : > { %5435 = vmatpush.bf16.msrb.mxu0 %v10160_v52  ;;  %v4763_v52 = vadd.f32 %v16100_v24, %v4749_v0  ;;  %v10112_v11 = vor.u32 %v12164_v36, %v10109_v33  ;;  %v10541_v0 = vld [vmem:[%s18202_s6 + $0x2f0] sm:$0xf0]  ;;  %v10523_v36 = vld [vmem:[%s18202_s6 + $0x2c0] sm:$0xf]  ;;  %v12255_v33 = vld [vmem:[%s18202_s6 + $0x2cc] sm:$0xf0] }
 0x2ce   : > { %5451 = vmatpush.bf16.msrb.mxu2 %v10256_v12  ;;  %v10668_v12 = vor.u32 %v12291_v63, %v10667_v48  ;;  %v12271_v48 = vld [vmem:[%s18202_s6 + $0x34c] sm:$0xf0] }
 0x2cf   : > { %v4830_v40 = vpop.f32.mrf.mxu3  ;;  %v4777_v16 = vadd.f32 %v16131_v51, %v4763_v52  ;;  %v10524_v52 = vor.u32 %v12255_v33, %v10523_v36 }
 0x2d0   : > { %v4831_v49 = vadd.f32 %v4830_v40, %v4817_v54  ;;  %v10140_v40 = vor.u32 %v12174_v30, %v10139_v20 }
 0x2d1   : > { %v16102_v26 = vpop.f32.mrf.mxu2  ;;  %v4818_v14 = vpop.f32.mrf.mxu1  ;;  %5436 = vmatpush.bf16.msrb.mxu0 %v10144_v6 }
 0x2d2   : > { %v4819_v61 = vadd.f32 %v4818_v14, %v4029_v9  ;;  %5408 = vmatpush.bf16.msrb.mxu1 %v10140_v40 }
 0x2d3   : > { %v16133_v21 = vpop.f32.mrf.mxu0 }
 0x2d4   : > { %v4791_v44 = vadd.f32 %v16133_v21, %v4777_v16 }
 0x2d6   : > { %5409 = vmatpush.bf16.msrb.mxu1 %v10124_v57  ;;  %v10539_v57 = vld [vmem:[%s18202_s6 + $0x2e0] sm:$0xf] }
 0x2d7   : > { %v4832_v25 = vpop.f32.mrf.mxu3 }
 0x2d8   : > { %v4833_v15 = vadd.f32 %v4832_v25, %v4819_v61  ;;  %v4803_v25 = vadd.f32 %v16102_v26, %v4789_v13  ;;  %v10544_v13 = vor.u32 %v12257_v27, %v10541_v0 }
 0x2d9   : > { %v16180_v22 = vpop.f32.mrf.mxu2 }
 0x2da   : > { %5410 = vmatpush.bf16.msrb.mxu1 %v10108_v60  ;;  %v4805_v47 = vadd.f32 %v16180_v22, %v4791_v44  ;;  %v12285_v60 = vld [vmem:[%s18202_s6 + $0x3c4] sm:$0xf]  ;;  %v12247_v44 = vld [vmem:[%s18202_s6 + $0x28c] sm:$0xf0] }
 0x2dc   : > { %v4927_v32 = vadd.f32 %v4921_v37, %v4805_v47  ;;  %v12245_v47 = vld [vmem:[%s18202_s6 + $0x284] sm:$0xf] }
 0x2e9   : > { %v4872_v34 = vpop.f32.mrf.mxu1 }
 0x2eb   : > { %v16204_v2 = vpop.f32.mrf.mxu0 }
 0x2ec   : > { %v4845_v41 = vadd.f32 %v16204_v2, %v4831_v49  ;;  %v10268_v2 = vor.u32 %v12206_v45, %v10267_v8  ;;  %v10236_v49 = vor.u32 %v12198_v17, %v10235_v4  ;;  %v10240_v8 = vor.u32 %v12196_v38, %v10237_v28  ;;  %v12287_v38 = vld [vmem:[%s18202_s6 + $0x3cc] sm:$0xf0]  ;;  %v12253_v28 = vld [vmem:[%s18202_s6 + $0x2c4] sm:$0xf] }
 0x2ed   : > { %v4925_v45 = vadd.f32 %v4921_v37, %v4803_v25  ;;  %v12251_v25 = vld [vmem:[%s18202_s6 + $0x2ac] sm:$0xf0] }
 0x2ee   : > { %5422 = vmatpush.bf16.msrb.mxu3 %v10268_v2  ;;  %5452 = vmatpush.bf16.msrb.mxu2 %v10240_v8  ;;  %v10635_v8 = vld [vmem:[%s18202_s6 + $0x3a0] sm:$0xf] }
 0x2ef   : > { %v4886_v10 = vpop.f32.mrf.mxu3  ;;  %v4929_v6 = vmax.f32 %v4925_v45, 0.0  ;;  %v10637_v45 = vld [vmem:[%s18202_s6 + $0x3b0] sm:$0xf0] }
 0x2f1   : > { %v4858_v5 = vpop.f32.mrf.mxu2 }
 0x2f2   : > { %v4859_v29 = vadd.f32 %v4858_v5, %v4845_v41  ;;  %v10128_v5 = vor.u32 %v12168_v56, %v10125_v35  ;;  %5423 = vmatpush.bf16.msrb.mxu3 %v10252_v53  ;;  %v4922_v41 = vperm.slane %v4919_v43, 1  ;;  %v12259_v53 = vld [vmem:[%s18202_s6 + $0x2ec] sm:$0xf0] }
 0x2f3   : > { %v4846_v39 = vpop.f32.mrf.mxu0 }
 0x2f4   : > { %v4873_v54 = vadd.f32 %v4872_v34, %v4859_v29  ;;  %v4847_v55 = vadd.f32 %v4846_v39, %v4833_v15  ;;  %5437 = vmatpush.bf16.msrb.mxu0 %v10128_v5  ;;  %v4874_v39 = vpop.f32.mrf.mxu1  ;;  %v4931_v34 = vmax.f32 %v4927_v32, 0.0  ;;  %v10669_v5 = vld [vmem:[%s18202_s6 + $0x3f0] sm:$0xf0]  ;;  %v10475_v32 = vld [vmem:[%s18202_s6 + $0x260] sm:$0xf] }
 0x2f6   : > { %v4887_v30 = vadd.f32 %v4886_v10, %v4873_v54  ;;  %5424 = vmatpush.bf16.msrb.mxu3 %v10236_v49  ;;  %v10540_v54 = vor.u32 %v12259_v53, %v10539_v57  ;;  %v10653_v49 = vld [vmem:[%s18202_s6 + $0x3d0] sm:$0xf0]  ;;  %v12239_v57 = vld [vmem:[%s18202_s6 + $0x24c] sm:$0xf0]  ;;  %v10587_v53 = vld [vmem:[%s18202_s6 + $0x340] sm:$0xf] }
 0x2f7   : > { %v4888_v19 = vpop.f32.mrf.mxu3 }
 0x2f8   : > { %5438 = vmatpush.bf16.msrb.mxu0 %v10112_v11  ;;  %v10507_v11 = vld [vmem:[%s18202_s6 + $0x2a0] sm:$0xf] }
 0x2f9   : > { %v4860_v14 = vpop.f32.mrf.mxu2  ;;  %v10508_v16 = vor.u32 %v12251_v25, %v10507_v11  ;;  %v12233_v11 = vld [vmem:[%s18202_s6 + $0x224] sm:$0xf]  ;;  %v10445_v25 = vld [vmem:[%s18202_s6 + $0x230] sm:$0xf0] }
 0x2fa   : > { %v4861_v20 = vadd.f32 %v4860_v14, %v4847_v55  ;;  %v12289_v14 = vld [vmem:[%s18202_s6 + $0x3e4] sm:$0xf]  ;;  %v10525_v55 = vld [vmem:[%s18202_s6 + $0x2d0] sm:$0xf0] }
 0x2fb   : > { %v10672_v10 = vor.u32 %v12289_v14, %v10669_v5 }
 0x2fc   : > { %v4875_v24 = vadd.f32 %v4874_v39, %v4861_v20  ;;  %v10528_v20 = vor.u32 %v12253_v28, %v10525_v55  ;;  %v10509_v39 = vld [vmem:[%s18202_s6 + $0x2b0] sm:$0xf0]  ;;  %v10588_v55 = vor.u32 %v12271_v48, %v10587_v53 }
 0x2fe   : > { %v4889_v9 = vadd.f32 %v4888_v19, %v4875_v24 }
 0x30b   : > { %v4900_v31 = vpop.f32.mrf.mxu0 }
 0x30c   : > { %v4901_v62 = vadd.f32 %v4900_v31, %v4887_v30  ;;  %v10651_v31 = vld [vmem:[%s18202_s6 + $0x3c0] sm:$0xf]  ;;  %v10656_v30 = vor.u32 %v12285_v60, %v10653_v49 }
 0x30d   : > { %v10652_v37 = vor.u32 %v12287_v38, %v10651_v31  ;;  %v10443_v60 = vld [vmem:[%s18202_s6 + $0x220] sm:$0xf] }
 0x311   : > { %v4914_v40 = vpop.f32.mrf.mxu2 }
 0x312   : > { %v4915_v46 = vadd.f32 %v4914_v40, %v4901_v62  ;;  %v12283_v62 = vld [vmem:[%s18202_s6 + $0x3ac] sm:$0xf0]  ;;  %v12281_v40 = vld [vmem:[%s18202_s6 + $0x3a4] sm:$0xf] }
 0x313   : > { %v4902_v2 = vpop.f32.mrf.mxu0  ;;  %v10636_v24 = vor.u32 %v12283_v62, %v10635_v8  ;;  %v10640_v19 = vor.u32 %v12281_v40, %v10637_v45  ;;  %v10427_v8 = vld [vmem:[%s18202_s6 + $0x200] sm:$0xf]  ;;  %v12231_v62 = vld [vmem:[%s18202_s6 + $0x20c] sm:$0xf0] }
 0x314   : > { %v4926_v26 = vadd.f32 %v4922_v41, %v4915_v46  ;;  %v4903_v42 = vadd.f32 %v4902_v2, %v4889_v9  ;;  %v10491_v46 = vld [vmem:[%s18202_s6 + $0x280] sm:$0xf]  ;;  %v12277_v9 = vld [vmem:[%s18202_s6 + $0x384] sm:$0xf] }
 0x315   : > { %v10619_v2 = vld [vmem:[%s18202_s6 + $0x380] sm:$0xf] }
 0x316   : > { %v4930_v58 = vmax.f32 %v4926_v26, 0.0 }
 0x318   : > { %v4935_v29 = vpack.c.bf16 %v4930_v58, %v4929_v6  ;;  %v12279_v6 = vld [vmem:[%s18202_s6 + $0x38c] sm:$0xf0]  ;;  %v10493_v58 = vld [vmem:[%s18202_s6 + $0x290] sm:$0xf0] }
 0x319   : > { %v4916_v50 = vpop.f32.mrf.mxu2 }
 0x31a   : > { %v4940_v7 = vrot.slane %v4935_v29, 7  ;;  %v4917_v3 = vadd.f32 %v4916_v50, %v4903_v42  ;;  %v10621_v29 = vld [vmem:[%s18202_s6 + $0x390] sm:$0xf0]  ;;  %v10492_v42 = vor.u32 %v12247_v44, %v10491_v46  ;;  %v10620_v50 = vor.u32 %v12279_v6, %v10619_v2  ;;  %v12261_v2 = vld [vmem:[%s18202_s6 + $0x304] sm:$0xf] }
 0x31b   : > { %v10557_v6 = vld [vmem:[%s18202_s6 + $0x310] sm:$0xf0] }
 0x31c   : > { %4948 = vst [vmem:[#allocation4] sm:$0xee] %v4940_v7  ;;  %v4928_v51 = vadd.f32 %v4922_v41, %v4917_v3  ;;  %v4941_v21 = vrot.slane %v4940_v7, 4  ;;  %v12249_v41 = vld [vmem:[%s18202_s6 + $0x2a4] sm:$0xf]  ;;  %v10496_v3 = vor.u32 %v12245_v47, %v10493_v58  ;;  %v10448_v47 = vor.u32 %v12233_v11, %v10445_v25 }
 0x31d   : > { %v10512_v26 = vor.u32 %v12249_v41, %v10509_v39  ;;  %v12243_v7 = vld [vmem:[%s18202_s6 + $0x26c] sm:$0xf0]  ;;  %v10555_v41 = vld [vmem:[%s18202_s6 + $0x300] sm:$0xf]  ;;  %v12284_v11 = vld [vmem:[%s18202_s6 + $0x3b4] sm:$0xf0] }
 0x31e   : > { %v4932_v23 = vmax.f32 %v4928_v51, 0.0  ;;  %v10624_v51 = vor.u32 %v12277_v9, %v10621_v29  ;;  %v10476_v63 = vor.u32 %v12243_v7, %v10475_v32  ;;  %v12263_v39 = vld [vmem:[%s18202_s6 + $0x30c] sm:$0xf0]  ;;  %v10547_v9 = vld [vmem:[%s18202_s6 + $0x2e8] sm:$0xf] }
 0x31f   : > { %v12260_v29 = vld [vmem:[%s18202_s6 + $0x2f4] sm:$0xf0]  ;;  %v12258_v32 = vld [vmem:[%s18202_s6 + $0x2ec] sm:$0xf]  ;;  %v10549_v7 = vld [vmem:[%s18202_s6 + $0x2f8] sm:$0xf0] }
 0x320   : > { %v4936_v56 = vpack.c.bf16 %v4932_v23, %v4931_v34  ;;  %v10603_v34 = vld [vmem:[%s18202_s6 + $0x360] sm:$0xf]  ;;  %v12275_v23 = vld [vmem:[%s18202_s6 + $0x36c] sm:$0xf0]  ;;  %v12250_v25 = vld [vmem:[%s18202_s6 + $0x2ac] sm:$0xf] }
 0x321   : > { %v10604_v27 = vor.u32 %v12275_v23, %v10603_v34 }
 0x322   : > { %v4942_v35 = vrot.slane %v4936_v56, 7  ;;  %v12241_v56 = vld [vmem:[%s18202_s6 + $0x264] sm:$0xf] }
 0x323   : > { %v10091_v18 = vld [vmem:[#allocation4] sm:$0xf]  ;;  %v12161_v4 = vld [vmem:[#allocation4 + $0x4] sm:$0xf] }
 0x324   : > { %v4943_v61 = vsel %vm4939_vm10, %v4941_v21, %v4942_v35  ;;  %v4944_v22 = vrot.slane %v4942_v35, 4  ;;  %v10477_v21 = vld [vmem:[%s18202_s6 + $0x270] sm:$0xf0]  ;;  %v12273_v35 = vld [vmem:[%s18202_s6 + $0x364] sm:$0xf]  ;;  %vm18154_vm10 = vmor %vm3289_vm4, %vm7750_vm8 }
 0x325   : > { %4949 = vst [vmem:[#allocation4 + $0x8] sm:$0xff] %v4943_v61  ;;  %v10605_v61 = vld [vmem:[%s18202_s6 + $0x370] sm:$0xf0]  ;;  %v10480_v5 = vor.u32 %v12241_v56, %v10477_v21  ;;  %v10419_v36 = vld [vmem:[#allocation4] sm:$0xf] }
 0x326   : > { %4950 = vst [vmem:[#allocation4 + $0x10] sm:$0x11] %v4944_v22  ;;  %v10459_v22 = vld [vmem:[%s18202_s6 + $0x240] sm:$0xf]  ;;  %v12227_v33 = vld [vmem:[#allocation4 + $0x4] sm:$0xf] }
 0x327   : > { %v10460_v28 = vor.u32 %v12239_v57, %v10459_v22  ;;  %v10560_v57 = vor.u32 %v12261_v2, %v10557_v6  ;;  %v10629_v2 = vld [vmem:[%s18202_s6 + $0x398] sm:$0xf0] }
 0x32c   : > { %v12162_v1 = vld [vmem:[#allocation4 + $0x4] sm:$0xf0]  ;;  %v10093_v17 = vld [vmem:[#allocation4 + $0x8] sm:$0xf0] }
 0x32d   : > { %v16387_v43 = vor.u32 %v12162_v1, %v10091_v18  ;;  %v16389_v15 = vor.u32 %v12161_v4, %v10093_v17  ;;  %v12228_v0 = vld [vmem:[#allocation4 + $0x4] sm:$0xf0]  ;;  %v5469_v18 = vld [vmem:[#allocation4 + $0x10] sm:$0x11]  ;;  %v10421_v14 = vld [vmem:[#allocation4 + $0x8] sm:$0xf0]  ;;  %v10608_v1 = vor.u32 %v12273_v35, %v10605_v61  ;;  %v10428_v35 = vor.u32 %v12231_v62, %v10427_v8 }
 0x32e   : > { %v12237_v4 = vld [vmem:[%s18202_s6 + $0x244] sm:$0xf]  ;;  %v10461_v17 = vld [vmem:[%s18202_s6 + $0x250] sm:$0xf0]  ;;  %v5543_v31 = vunpack.c.h.b16 %v5469_v18  ;;  %v16521_v38 = vor.u32 %v12227_v33, %v10421_v14  ;;  %v10556_v61 = vor.u32 %v12263_v39, %v10555_v41  ;;  %v12254_v33 = vld [vmem:[%s18202_s6 + $0x2cc] sm:$0xf] }
 0x32f   : > { %5355 = vmatmul.bf16.vlgmr.msra.gmra.mxu1 %v16387_v43  ;;  %5369 = vmatmul.bf16.vlgmr.msra.gmra.mxu3 %v16389_v15  ;;  %v10645_v8 = vld [vmem:[%s18202_s6 + $0x3b8] sm:$0xf0]  ;;  %v10499_v39 = vld [vmem:[%s18202_s6 + $0x288] sm:$0xf] }
 0x330   : > { %5383 = vmatmul.bf16.vlgmr.msra.gmra.mxu0 %v16387_v43  ;;  %5397 = vmatmul.bf16.vlgmr.msra.gmra.mxu2 %v16389_v15  ;;  %v5561_v48 = vshrl.u32 %v16521_v38, 16 }
 0x331   : > { %5894 = vmatpush.bf16.msra.mxu1 %v10540_v54  ;;  %5908 = vmatpush.bf16.msra.mxu3 %v10668_v12  ;;  %v12269_v54 = vld [vmem:[%s18202_s6 + $0x344] sm:$0xf]  ;;  %v10589_v12 = vld [vmem:[%s18202_s6 + $0x350] sm:$0xf0] }
 0x332   : > { %5922 = vmatpush.bf16.msra.mxu0 %v10544_v13  ;;  %5936 = vmatpush.bf16.msra.mxu2 %v10672_v10  ;;  %v5542_v13 = vunpack.c.l.b16 %v5469_v18  ;;  %v16519_v10 = vor.u32 %v12228_v0, %v10419_v36  ;;  %v10592_v49 = vor.u32 %v12269_v54, %v10589_v12  ;;  %v10552_v18 = vor.u32 %v12258_v32, %v10549_v7  ;;  %v12276_v32 = vld [vmem:[%s18202_s6 + $0x374] sm:$0xf0]  ;;  %v12242_v7 = vld [vmem:[%s18202_s6 + $0x26c] sm:$0xf] }
 0x334   : > { %v5546_v40 = vpack.c.b16 %v5542_v13, %v5542_v13  ;;  %v5551_v45 = vshll.u32 %v16519_v10, 16  ;;  %v5549_v53 = vshrl.u32 %v16519_v10, 16  ;;  %v10533_v13 = vld [vmem:[%s18202_s6 + $0x2d8] sm:$0xf0]  ;;  %v12286_v10 = vld [vmem:[%s18202_s6 + $0x3cc] sm:$0xf] }
 0x335   : > { %5895 = vmatpush.bf16.msra.mxu1 %v10524_v52  ;;  %5909 = vmatpush.bf16.msra.mxu3 %v10652_v37  ;;  %v10571_v52 = vld [vmem:[%s18202_s6 + $0x320] sm:$0xf]  ;;  %v12267_v37 = vld [vmem:[%s18202_s6 + $0x32c] sm:$0xf0] }
 0x336   : > { %5923 = vmatpush.bf16.msra.mxu0 %v10528_v20  ;;  %5937 = vmatpush.bf16.msra.mxu2 %v10656_v30  ;;  %v12265_v20 = vld [vmem:[%s18202_s6 + $0x324] sm:$0xf]  ;;  %v10573_v30 = vld [vmem:[%s18202_s6 + $0x330] sm:$0xf0]  ;;  %v10572_v44 = vor.u32 %v12267_v37, %v10571_v52  ;;  %v5553_v34 = vrot.slane %v5551_v45, 1  ;;  %v5556_v23 = vshll.u32 %v5546_v40, 16 }
 0x337   : > { %v10576_v58 = vor.u32 %v12265_v20, %v10573_v30  ;;  %v10643_v37 = vld [vmem:[%s18202_s6 + $0x3a8] sm:$0xf]  ;;  %v10517_v20 = vld [vmem:[%s18202_s6 + $0x2b8] sm:$0xf0]  ;;  %v12282_v30 = vld [vmem:[%s18202_s6 + $0x3ac] sm:$0xf] }
 0x338   : > { %v5558_v54 = vrot.slane %v5556_v23, 1  ;;  %v10644_v41 = vor.u32 %v12284_v11, %v10643_v37  ;;  %v12248_v40 = vld [vmem:[%s18202_s6 + $0x294] sm:$0xf0]  ;;  %v10520_v45 = vor.u32 %v12250_v25, %v10517_v20  ;;  %v12230_v11 = vld [vmem:[%s18202_s6 + $0x20c] sm:$0xf] }
 0x339   : > { %5896 = vmatpush.bf16.msra.mxu1 %v10508_v16  ;;  %5910 = vmatpush.bf16.msra.mxu3 %v10636_v24  ;;  %v5547_v16 = vpack.c.b16 %v5543_v31, %v5543_v31  ;;  %v5563_v24 = vshll.u32 %v16521_v38, 16  ;;  %v10661_v31 = vld [vmem:[%s18202_s6 + $0x3d8] sm:$0xf0]  ;;  %v10500_v6 = vor.u32 %v12248_v40, %v10499_v39  ;;  %v12262_v20 = vld [vmem:[%s18202_s6 + $0x30c] sm:$0xf] }
 0x33a   : > { %5924 = vmatpush.bf16.msra.mxu0 %v10512_v26  ;;  %5938 = vmatpush.bf16.msra.mxu2 %v10640_v19  ;;  %v12229_v26 = vld [vmem:[%s18202_s6 + $0x204] sm:$0xf]  ;;  %v10429_v19 = vld [vmem:[%s18202_s6 + $0x210] sm:$0xf0]  ;;  %v10664_v52 = vor.u32 %v12286_v10, %v10661_v31  ;;  %v10581_v10 = vld [vmem:[%s18202_s6 + $0x338] sm:$0xf0] }
 0x33b   : > { %v5565_v56 = vrot.slane %v5563_v24, 1  ;;  %v5568_v21 = vshll.u32 %v5547_v16, 16  ;;  %v10432_v22 = vor.u32 %v12229_v26, %v10429_v19  ;;  %v10648_v16 = vor.u32 %v12282_v30, %v10645_v8  ;;  %v10627_v24 = vld [vmem:[%s18202_s6 + $0x388] sm:$0xf]  ;;  %v10501_v26 = vld [vmem:[%s18202_s6 + $0x298] sm:$0xf0] }
 0x33c   : > { %v12278_v19 = vld [vmem:[%s18202_s6 + $0x38c] sm:$0xf]  ;;  %v10435_v31 = vld [vmem:[%s18202_s6 + $0x208] sm:$0xf]  ;;  %v10437_v25 = vld [vmem:[%s18202_s6 + $0x218] sm:$0xf0] }
 0x33d   : > { %5897 = vmatpush.bf16.msra.mxu1 %v10492_v42  ;;  %5911 = vmatpush.bf16.msra.mxu3 %v10620_v50  ;;  %v10675_v42 = vld [vmem:[%s18202_s6 + $0x3e8] sm:$0xf]  ;;  %v12292_v50 = vld [vmem:[%s18202_s6 + $0x3f4] sm:$0xf0]  ;;  %v5566_v12 = vor.u32 %v5565_v56, %v5561_v48  ;;  %v5570_v36 = vrot.slane %v5568_v21, 1 }
 0x33e   : > { %5925 = vmatpush.bf16.msra.mxu0 %v10496_v3  ;;  %5939 = vmatpush.bf16.msra.mxu2 %v10624_v51  ;;  %v12290_v3 = vld [vmem:[%s18202_s6 + $0x3ec] sm:$0xf]  ;;  %v10677_v51 = vld [vmem:[%s18202_s6 + $0x3f8] sm:$0xf0]  ;;  %v10676_v0 = vor.u32 %v12292_v50, %v10675_v42  ;;  %v10632_v42 = vor.u32 %v12278_v19, %v10629_v2  ;;  %v10611_v50 = vld [vmem:[%s18202_s6 + $0x368] sm:$0xf] }
 0x33f   : > { %5411 = vmatmul.bf16.vlgmr.msrb.gmra.mxu1 %v16387_v43  ;;  %5425 = vmatmul.bf16.vlgmr.msrb.gmra.mxu3 %v16389_v15  ;;  %v10680_v14 = vor.u32 %v12290_v3, %v10677_v51  ;;  %v10485_v3 = vld [vmem:[%s18202_s6 + $0x278] sm:$0xf0]  ;;  %v12274_v51 = vld [vmem:[%s18202_s6 + $0x36c] sm:$0xf]  ;;  %v10612_v56 = vor.u32 %v12276_v32, %v10611_v50  ;;  %v10467_v21 = vld [vmem:[%s18202_s6 + $0x248] sm:$0xf] }
 0x340   : > { %5439 = vmatmul.bf16.vlgmr.msrb.gmra.mxu0 %v16387_v43  ;;  %5453 = vmatmul.bf16.vlgmr.msrb.gmra.mxu2 %v16389_v15  ;;  %v12235_v43 = vld [vmem:[%s18202_s6 + $0x22c] sm:$0xf0]  ;;  %v10464_v15 = vor.u32 %v12237_v4, %v10461_v17  ;;  %v12288_v4 = vld [vmem:[%s18202_s6 + $0x3d4] sm:$0xf0]  ;;  %v5554_v17 = vor.u32 %v5553_v34, %v5549_v53  ;;  %v10613_v34 = vld [vmem:[%s18202_s6 + $0x378] sm:$0xf0] }
 0x341   : > { %5898 = vmatpush.bf16.msra.mxu1 %v10476_v63  ;;  %5912 = vmatpush.bf16.msra.mxu3 %v10604_v27  ;;  %v10444_v46 = vor.u32 %v12235_v43, %v10443_v60  ;;  %v10531_v63 = vld [vmem:[%s18202_s6 + $0x2c8] sm:$0xf]  ;;  %v10548_v27 = vor.u32 %v12260_v29, %v10547_v9  ;;  %v12252_v43 = vld [vmem:[%s18202_s6 + $0x2b4] sm:$0xf0]  ;;  %v12238_v48 = vld [vmem:[%s18202_s6 + $0x24c] sm:$0xf] }
 0x342   : > { %5926 = vmatpush.bf16.msra.mxu0 %v10480_v5  ;;  %5940 = vmatpush.bf16.msra.mxu2 %v10608_v1  ;;  %v12256_v5 = vld [vmem:[%s18202_s6 + $0x2d4] sm:$0xf0]  ;;  %v10659_v1 = vld [vmem:[%s18202_s6 + $0x3c8] sm:$0xf]  ;;  %v10565_v30 = vld [vmem:[%s18202_s6 + $0x318] sm:$0xf0] }
 0x343   : > { %v10532_v38 = vor.u32 %v12256_v5, %v10531_v63  ;;  %v10515_v60 = vld [vmem:[%s18202_s6 + $0x2a8] sm:$0xf]  ;;  %v12244_v9 = vld [vmem:[%s18202_s6 + $0x274] sm:$0xf0]  ;;  %v10469_v63 = vld [vmem:[%s18202_s6 + $0x258] sm:$0xf0]  ;;  %v10568_v19 = vor.u32 %v12262_v20, %v10565_v30 }
 0x344   : > { %v10516_v62 = vor.u32 %v12252_v43, %v10515_v60  ;;  %v12272_v53 = vld [vmem:[%s18202_s6 + $0x354] sm:$0xf0]  ;;  %v10451_v5 = vld [vmem:[%s18202_s6 + $0x228] sm:$0xf]  ;;  %v10867_v8 = vld [vmem:[%s18202_s6 + $0x4e0] sm:$0xf] }
 0x345   : > { %5899 = vmatpush.bf16.msra.mxu1 %v10460_v28  ;;  %5913 = vmatpush.bf16.msra.mxu3 %v10588_v55  ;;  %v10660_v28 = vor.u32 %v12288_v4, %v10659_v1  ;;  %v10536_v55 = vor.u32 %v12254_v33, %v10533_v13  ;;  %v12236_v1 = vld [vmem:[%s18202_s6 + $0x234] sm:$0xf0]  ;;  %v10472_v4 = vor.u32 %v12238_v48, %v10469_v63  ;;  %v10453_v33 = vld [vmem:[%s18202_s6 + $0x238] sm:$0xf0]  ;;  %v12266_v13 = vld [vmem:[%s18202_s6 + $0x32c] sm:$0xf] }
 0x346   : > { %5927 = vmatpush.bf16.msra.mxu0 %v10464_v15  ;;  %5941 = vmatpush.bf16.msra.mxu2 %v10592_v49  ;;  %v16630_v15 = vsel %vm1333_vm1, %v5554_v17, %v5558_v54  ;;  %v16633_v49 = vsel %vm1333_vm1, %v5566_v12, %v5570_v36  ;;  %v10579_v54 = vld [vmem:[%s18202_s6 + $0x328] sm:$0xf]  ;;  %v12268_v12 = vld [vmem:[%s18202_s6 + $0x334] sm:$0xf0]  ;;  %v12234_v36 = vld [vmem:[%s18202_s6 + $0x22c] sm:$0xf]  ;;  %v10584_v37 = vor.u32 %v12266_v13, %v10581_v10 }
 0x347   : > { %v10563_v60 = vld [vmem:[%s18202_s6 + $0x308] sm:$0xf]  ;;  %v12264_v43 = vld [vmem:[%s18202_s6 + $0x314] sm:$0xf0]  ;;  %v12357_v39 = vld [vmem:[%s18202_s6 + $0x5ec] sm:$0xf0] }
 0x348   : > { %v12323_v40 = vld [vmem:[%s18202_s6 + $0x4e4] sm:$0xf]  ;;  %v12353_v50 = vld [vmem:[%s18202_s6 + $0x5cc] sm:$0xf0]  ;;  %v10837_v48 = vld [vmem:[%s18202_s6 + $0x4b0] sm:$0xf0] }
 0x349   : > { %5900 = vmatpush.bf16.msra.mxu1 %v10444_v46  ;;  %5914 = vmatpush.bf16.msra.mxu3 %v10572_v44  ;;  %v12280_v46 = vld [vmem:[%s18202_s6 + $0x394] sm:$0xf0]  ;;  %v12246_v44 = vld [vmem:[%s18202_s6 + $0x28c] sm:$0xf]  ;;  %v12319_v32 = vld [vmem:[%s18202_s6 + $0x4c4] sm:$0xf] }
 0x34a   : > { %5928 = vmatpush.bf16.msra.mxu0 %v10448_v47  ;;  %5942 = vmatpush.bf16.msra.mxu2 %v10576_v58  ;;  %v10628_v47 = vor.u32 %v12280_v46, %v10627_v24  ;;  %v10483_v58 = vld [vmem:[%s18202_s6 + $0x268] sm:$0xf]  ;;  %v10504_v29 = vor.u32 %v12246_v44, %v10501_v26  ;;  %v10869_v24 = vld [vmem:[%s18202_s6 + $0x4f0] sm:$0xf0]  ;;  %v12355_v46 = vld [vmem:[%s18202_s6 + $0x5e4] sm:$0xf]  ;;  %v10440_v26 = vor.u32 %v12230_v11, %v10437_v25 }
 0x34b   : > { %v10484_v23 = vor.u32 %v12244_v9, %v10483_v58  ;;  %v10997_v44 = vld [vmem:[%s18202_s6 + $0x5f0] sm:$0xf0]  ;;  %v12321_v58 = vld [vmem:[%s18202_s6 + $0x4cc] sm:$0xf0]  ;;  %v10872_v9 = vor.u32 %v12323_v40, %v10869_v24  ;;  %v12347_v63 = vld [vmem:[%s18202_s6 + $0x5a4] sm:$0xf] }
 0x34c   : > { %v10803_v10 = vld [vmem:[%s18202_s6 + $0x460] sm:$0xf]  ;;  %v10933_v11 = vld [vmem:[%s18202_s6 + $0x570] sm:$0xf0]  ;;  %v12337_v40 = vld [vmem:[%s18202_s6 + $0x54c] sm:$0xf0] }
 0x34d   : > { %5901 = vmatpush.bf16.msra.mxu1 %v10428_v35  ;;  %5915 = vmatpush.bf16.msra.mxu3 %v10556_v61  ;;  %v12240_v35 = vld [vmem:[%s18202_s6 + $0x254] sm:$0xf0]  ;;  %v10488_v61 = vor.u32 %v12242_v7, %v10485_v3  ;;  %v10853_v7 = vld [vmem:[%s18202_s6 + $0x4d0] sm:$0xf0]  ;;  %v12351_v3 = vld [vmem:[%s18202_s6 + $0x5c4] sm:$0xf] }
 0x34e   : > { %5929 = vmatpush.bf16.msra.mxu0 %v10432_v22  ;;  %5943 = vmatpush.bf16.msra.mxu2 %v10560_v57  ;;  %v10616_v22 = vor.u32 %v12274_v51, %v10613_v34  ;;  %v10595_v57 = vld [vmem:[%s18202_s6 + $0x348] sm:$0xf]  ;;  %v10981_v51 = vld [vmem:[%s18202_s6 + $0x5d0] sm:$0xf0]  ;;  %v10787_v30 = vld [vmem:[%s18202_s6 + $0x440] sm:$0xf] }
 0x34f   : > { %v12335_v24 = vld [vmem:[%s18202_s6 + $0x544] sm:$0xf]  ;;  %vm7743_vm1 = vmor %vm7742_vm0, %vm7740_vm15 }
 0x350   : > { %5902 = vmatmul.bf16.vlgmr.msra.gmra.mxu1 %v16630_v15  ;;  %5916 = vmatmul.bf16.vlgmr.msra.gmra.mxu3 %v16633_v49 }
 0x351   : > { %5950 = vmatpush.bf16.msrb.mxu1 %v10548_v27  ;;  %5964 = vmatpush.bf16.msrb.mxu3 %v10676_v0  ;;  %v12270_v27 = vld [vmem:[%s18202_s6 + $0x34c] sm:$0xf]  ;;  %v10597_v0 = vld [vmem:[%s18202_s6 + $0x358] sm:$0xf0] }
 0x352   : > { %5978 = vmatpush.bf16.msrb.mxu0 %v10552_v18  ;;  %5992 = vmatpush.bf16.msrb.mxu2 %v10680_v14  ;;  %v10468_v18 = vor.u32 %v12240_v35, %v10467_v21  ;;  %v10596_v14 = vor.u32 %v12272_v53, %v10595_v57  ;;  %v10600_v17 = vor.u32 %v12270_v27, %v10597_v0  ;;  %v12317_v21 = vld [vmem:[%s18202_s6 + $0x4ac] sm:$0xf0]  ;;  %v12315_v53 = vld [vmem:[%s18202_s6 + $0x4a4] sm:$0xf]  ;;  %v10965_v27 = vld [vmem:[%s18202_s6 + $0x5b0] sm:$0xf0] }
 0x353   : > { %5930 = vmatmul.bf16.vlgmr.msra.gmra.mxu0 %v16630_v15  ;;  %5944 = vmatmul.bf16.vlgmr.msra.gmra.mxu2 %v16633_v49  ;;  %v10856_v35 = vor.u32 %v12319_v32, %v10853_v7  ;;  %v12349_v57 = vld [vmem:[%s18202_s6 + $0x5ac] sm:$0xf0]  ;;  %v10773_v32 = vld [vmem:[%s18202_s6 + $0x430] sm:$0xf0]  ;;  %v12331_v7 = vld [vmem:[%s18202_s6 + $0x524] sm:$0xf] }
 0x355   : > { %5951 = vmatpush.bf16.msrb.mxu1 %v10532_v38  ;;  %5965 = vmatpush.bf16.msrb.mxu3 %v10660_v28  ;;  %v10452_v38 = vor.u32 %v12236_v1, %v10451_v5  ;;  %v10580_v28 = vor.u32 %v12268_v12, %v10579_v54  ;;  %v12313_v5 = vld [vmem:[%s18202_s6 + $0x48c] sm:$0xf0]  ;;  %v10840_v1 = vor.u32 %v12315_v53, %v10837_v48  ;;  %v10821_v54 = vld [vmem:[%s18202_s6 + $0x490] sm:$0xf0]  ;;  %v12343_v12 = vld [vmem:[%s18202_s6 + $0x584] sm:$0xf] }
 0x356   : > { %5979 = vmatpush.bf16.msrb.mxu0 %v10536_v55  ;;  %5993 = vmatpush.bf16.msrb.mxu2 %v10664_v52  ;;  %v12232_v55 = vld [vmem:[%s18202_s6 + $0x214] sm:$0xf0]  ;;  %v10456_v52 = vor.u32 %v12234_v36, %v10453_v33  ;;  %v10949_v36 = vld [vmem:[%s18202_s6 + $0x590] sm:$0xf0]  ;;  %v10749_v53 = vld [vmem:[#allocation4 + $0x8] sm:$0xf0] }
 0x359   : > { %5952 = vmatpush.bf16.msrb.mxu1 %v10516_v62  ;;  %5966 = vmatpush.bf16.msrb.mxu3 %v10644_v41  ;;  %v12325_v62 = vld [vmem:[%s18202_s6 + $0x4ec] sm:$0xf0]  ;;  %v10995_v41 = vld [vmem:[%s18202_s6 + $0x5e0] sm:$0xf] }
 0x35a   : > { %5980 = vmatpush.bf16.msrb.mxu0 %v10520_v45  ;;  %5994 = vmatpush.bf16.msrb.mxu2 %v10648_v16  ;;  %v10436_v45 = vor.u32 %v12232_v55, %v10435_v31  ;;  %v10564_v16 = vor.u32 %v12264_v43, %v10563_v60  ;;  %v10868_v2 = vor.u32 %v12325_v62, %v10867_v8  ;;  %v12309_v31 = vld [vmem:[%s18202_s6 + $0x46c] sm:$0xf0]  ;;  %v10931_v55 = vld [vmem:[%s18202_s6 + $0x560] sm:$0xf]  ;;  %v12307_v43 = vld [vmem:[%s18202_s6 + $0x464] sm:$0xf] }
 0x35b   : > { %v12341_v60 = vld [vmem:[%s18202_s6 + $0x56c] sm:$0xf0]  ;;  %v10804_v25 = vor.u32 %v12309_v31, %v10803_v10  ;;  %v10877_v10 = vld [vmem:[%s18202_s6 + $0x4f8] sm:$0xf0]  ;;  %v12356_v31 = vld [vmem:[%s18202_s6 + $0x5ec] sm:$0xf] }
 0x35c   : > { %v10932_v20 = vor.u32 %v12341_v60, %v10931_v55  ;;  %v12305_v8 = vld [vmem:[%s18202_s6 + $0x44c] sm:$0xf0] }
 0x35d   : > { %5953 = vmatpush.bf16.msrb.mxu1 %v10500_v6  ;;  %5967 = vmatpush.bf16.msrb.mxu3 %v10628_v47  ;;  %v10996_v6 = vor.u32 %v12357_v39, %v10995_v41  ;;  %v10851_v47 = vld [vmem:[%s18202_s6 + $0x4c0] sm:$0xf] }
 0x35e   : > { %5981 = vmatpush.bf16.msrb.mxu0 %v10504_v29  ;;  %5995 = vmatpush.bf16.msrb.mxu2 %v10632_v42  ;;  %v11000_v29 = vor.u32 %v12355_v46, %v10997_v44  ;;  %v10979_v42 = vld [vmem:[%s18202_s6 + $0x5c0] sm:$0xf]  ;;  %v10852_v34 = vor.u32 %v12321_v58, %v10851_v47  ;;  %v10917_v46 = vld [vmem:[%s18202_s6 + $0x550] sm:$0xf0]  ;;  %v12294_v47 = vld [vmem:[#allocation4 + $0x4] sm:$0xf0] }
 0x35f   : > { %v10915_v39 = vld [vmem:[%s18202_s6 + $0x540] sm:$0xf]  ;;  %v6032_v44 = vld [vmem:[#allocation4 + $0x10] sm:$0x11] }
 0x361   : > { %5954 = vmatpush.bf16.msrb.mxu1 %v10484_v23  ;;  %5968 = vmatpush.bf16.msrb.mxu3 %v10612_v56  ;;  %v10980_v23 = vor.u32 %v12353_v50, %v10979_v42  ;;  %v10835_v56 = vld [vmem:[%s18202_s6 + $0x4a0] sm:$0xf]  ;;  %v12333_v42 = vld [vmem:[%s18202_s6 + $0x52c] sm:$0xf0]  ;;  %v12299_v50 = vld [vmem:[%s18202_s6 + $0x424] sm:$0xf] }
 0x362   : > { %5982 = vmatpush.bf16.msrb.mxu0 %v10488_v61  ;;  %5996 = vmatpush.bf16.msrb.mxu2 %v10616_v22  ;;  %v10984_v61 = vor.u32 %v12351_v3, %v10981_v51  ;;  %v10963_v22 = vld [vmem:[%s18202_s6 + $0x5a0] sm:$0xf]  ;;  %v10836_v0 = vor.u32 %v12317_v21, %v10835_v56  ;;  %v10901_v3 = vld [vmem:[%s18202_s6 + $0x530] sm:$0xf0]  ;;  %v6105_v51 = vunpack.c.l.b16 %v6032_v44  ;;  %v10776_v48 = vor.u32 %v12299_v50, %v10773_v32  ;;  %v12316_v50 = vld [vmem:[%s18202_s6 + $0x4ac] sm:$0xf] }
 0x363   : > { %v10747_v56 = vld [vmem:[#allocation4] sm:$0xe]  ;;  %v10845_v32 = vld [vmem:[%s18202_s6 + $0x4b8] sm:$0xf0] }
 0x365   : > { %5955 = vmatpush.bf16.msrb.mxu1 %v10468_v18  ;;  %5969 = vmatpush.bf16.msrb.mxu3 %v10596_v14  ;;  %v10964_v18 = vor.u32 %v12349_v57, %v10963_v22  ;;  %v10819_v14 = vld [vmem:[%s18202_s6 + $0x480] sm:$0xf]  ;;  %v12329_v57 = vld [vmem:[%s18202_s6 + $0x50c] sm:$0xf0] }
 0x366   : > { %5983 = vmatpush.bf16.msrb.mxu0 %v10472_v4  ;;  %5997 = vmatpush.bf16.msrb.mxu2 %v10600_v17  ;;  %v10968_v4 = vor.u32 %v12347_v63, %v10965_v27  ;;  %v12311_v17 = vld [vmem:[%s18202_s6 + $0x484] sm:$0xf]  ;;  %v10820_v33 = vor.u32 %v12313_v5, %v10819_v14  ;;  %v10883_v22 = vld [vmem:[%s18202_s6 + $0x500] sm:$0xf]  ;;  %v10904_v63 = vor.u32 %v12331_v7, %v10901_v3  ;;  %v10885_v5 = vld [vmem:[%s18202_s6 + $0x510] sm:$0xf0] }
 0x367   : > { %v12295_v27 = vld [vmem:[%s18202_s6 + $0x404] sm:$0xf]  ;;  %v10748_v14 = vor.u32 %v12294_v47, %v10747_v56  ;;  %v12348_v7 = vld [vmem:[%s18202_s6 + $0x5ac] sm:$0xf]  ;;  %v10973_v3 = vld [vmem:[%s18202_s6 + $0x5b8] sm:$0xf0] }
 0x368   : > { %v12314_v56 = vld [vmem:[%s18202_s6 + $0x494] sm:$0xf0] }
 0x369   : > { %5956 = vmatpush.bf16.msrb.mxu1 %v10452_v38  ;;  %5970 = vmatpush.bf16.msrb.mxu3 %v10580_v28  ;;  %v10824_v38 = vor.u32 %v12311_v17, %v10821_v54  ;;  %v10952_v28 = vor.u32 %v12343_v12, %v10949_v36  ;;  %v11003_v54 = vld [vmem:[%s18202_s6 + $0x5e8] sm:$0xf]  ;;  %v12358_v12 = vld [vmem:[%s18202_s6 + $0x5f4] sm:$0xf0]  ;;  %v12324_v36 = vld [vmem:[%s18202_s6 + $0x4ec] sm:$0xf] }
 0x36a   : > { %5984 = vmatpush.bf16.msrb.mxu0 %v10456_v52  ;;  %5998 = vmatpush.bf16.msrb.mxu2 %v10584_v37  ;;  %v10805_v52 = vld [vmem:[%s18202_s6 + $0x470] sm:$0xf0]  ;;  %v12339_v37 = vld [vmem:[%s18202_s6 + $0x564] sm:$0xf]  ;;  %v6111_v60 = vrot.slane %v10748_v14, 1 }
 0x36b   : > { %v10808_v62 = vor.u32 %v12307_v43, %v10805_v52  ;;  %v10936_v41 = vor.u32 %v12339_v37, %v10933_v11  ;;  %v11004_v37 = vor.u32 %v12358_v12, %v11003_v54  ;;  %v12310_v14 = vld [vmem:[%s18202_s6 + $0x474] sm:$0xf0]  ;;  %v12340_v54 = vld [vmem:[%s18202_s6 + $0x56c] sm:$0xf]  ;;  %v10941_v12 = vld [vmem:[%s18202_s6 + $0x578] sm:$0xf0] }
 0x36d   : > { %5957 = vmatpush.bf16.msrb.mxu1 %v10436_v45  ;;  %5971 = vmatpush.bf16.msrb.mxu3 %v10564_v16  ;;  %v12303_v45 = vld [vmem:[%s18202_s6 + $0x444] sm:$0xf]  ;;  %v10789_v16 = vld [vmem:[%s18202_s6 + $0x450] sm:$0xf0] }
 0x36e   : > { %5985 = vmatpush.bf16.msrb.mxu0 %v10440_v26  ;;  %5999 = vmatpush.bf16.msrb.mxu2 %v10568_v19  ;;  %v10788_v26 = vor.u32 %v12305_v8, %v10787_v30  ;;  %v10916_v19 = vor.u32 %v12337_v40, %v10915_v39  ;;  %v10792_v58 = vor.u32 %v12303_v45, %v10789_v16  ;;  %v12322_v30 = vld [vmem:[%s18202_s6 + $0x4d4] sm:$0xf0]  ;;  %v12320_v40 = vld [vmem:[%s18202_s6 + $0x4cc] sm:$0xf]  ;;  %v10861_v45 = vld [vmem:[%s18202_s6 + $0x4d8] sm:$0xf0] }
 0x36f   : > { %v10880_v8 = vor.u32 %v12324_v36, %v10877_v10  ;;  %v12354_v39 = vld [vmem:[%s18202_s6 + $0x5d4] sm:$0xf0]  ;;  %v12352_v16 = vld [vmem:[%s18202_s6 + $0x5cc] sm:$0xf] }
 0x370   : > { %5958 = vmatmul.bf16.vlgmr.msrb.gmra.mxu1 %v16630_v15  ;;  %5972 = vmatmul.bf16.vlgmr.msrb.gmra.mxu3 %v16633_v49  ;;  %v12306_v10 = vld [vmem:[%s18202_s6 + $0x454] sm:$0xf0] }
 0x371   : > { %6439 = vmatpush.bf16.msra.mxu1 %v10868_v2  ;;  %6453 = vmatpush.bf16.msra.mxu3 %v10996_v6  ;;  %v10771_v2 = vld [vmem:[%s18202_s6 + $0x420] sm:$0xf]  ;;  %v12301_v6 = vld [vmem:[%s18202_s6 + $0x42c] sm:$0xf0] }
 0x372   : > { %6467 = vmatpush.bf16.msra.mxu0 %v10872_v9  ;;  %6481 = vmatpush.bf16.msra.mxu2 %v11000_v29  ;;  %v10920_v9 = vor.u32 %v12335_v24, %v10917_v46  ;;  %v10899_v29 = vld [vmem:[%s18202_s6 + $0x520] sm:$0xf]  ;;  %v10772_v21 = vor.u32 %v12301_v6, %v10771_v2  ;;  %v10989_v24 = vld [vmem:[%s18202_s6 + $0x5d8] sm:$0xf0]  ;;  %v10843_v2 = vld [vmem:[%s18202_s6 + $0x4a8] sm:$0xf] }
 0x373   : > { %5986 = vmatmul.bf16.vlgmr.msrb.gmra.mxu0 %v16630_v15  ;;  %6000 = vmatmul.bf16.vlgmr.msrb.gmra.mxu2 %v16633_v49  ;;  %v10947_v15 = vld [vmem:[%s18202_s6 + $0x580] sm:$0xf]  ;;  %v12345_v49 = vld [vmem:[%s18202_s6 + $0x58c] sm:$0xf0]  ;;  %v12318_v6 = vld [vmem:[%s18202_s6 + $0x4b4] sm:$0xf0] }
 0x374   : > { %v10948_v13 = vor.u32 %v12345_v49, %v10947_v15  ;;  %v6109_v15 = vpack.c.b16 %v6105_v51, %v6105_v51  ;;  %v12293_v49 = vld [vmem:[#allocation4 + $0x4] sm:$0xe]  ;;  %v10844_v51 = vor.u32 %v12318_v6, %v10843_v2  ;;  %v12298_v2 = vld [vmem:[%s18202_s6 + $0x414] sm:$0xf0]  ;;  %v10891_v6 = vld [vmem:[%s18202_s6 + $0x508] sm:$0xf] }
 0x375   : > { %6440 = vmatpush.bf16.msra.mxu1 %v10852_v34  ;;  %6454 = vmatpush.bf16.msra.mxu3 %v10980_v23  ;;  %v6106_v34 = vunpack.c.h.b16 %v6032_v44  ;;  %v10755_v23 = vld [vmem:[%s18202_s6 + $0x400] sm:$0xf]  ;;  %v10752_v43 = vor.u32 %v12293_v49, %v10749_v53  ;;  %v10829_v53 = vld [vmem:[%s18202_s6 + $0x498] sm:$0xf0]  ;;  %v12308_v49 = vld [vmem:[%s18202_s6 + $0x46c] sm:$0xf] }
 0x376   : > { %6468 = vmatpush.bf16.msra.mxu0 %v10856_v35  ;;  %6482 = vmatpush.bf16.msra.mxu2 %v10984_v61  ;;  %v10900_v35 = vor.u32 %v12333_v42, %v10899_v29  ;;  %v12297_v61 = vld [vmem:[%s18202_s6 + $0x40c] sm:$0xf0]  ;;  %v6112_v11 = vrot.slane %v6109_v15, 1  ;;  %v10971_v29 = vld [vmem:[%s18202_s6 + $0x5a8] sm:$0xf] }
 0x377   : > { %v6110_v17 = vpack.c.b16 %v6106_v34, %v6106_v34  ;;  %v6114_v46 = vrot.slane %v10752_v43, 1  ;;  %v12350_v42 = vld [vmem:[%s18202_s6 + $0x5b4] sm:$0xf0]  ;;  %v10797_v43 = vld [vmem:[%s18202_s6 + $0x458] sm:$0xf0] }
 0x378   : > { %v17022_v44 = vsel %vm2323_vm2, %v6111_v60, %v6112_v11  ;;  %v10972_v34 = vor.u32 %v12350_v42, %v10971_v29  ;;  %v12342_v15 = vld [vmem:[%s18202_s6 + $0x574] sm:$0xf0]  ;;  %v12304_v60 = vld [vmem:[%s18202_s6 + $0x44c] sm:$0xf] }
 0x379   : > { %6441 = vmatpush.bf16.msra.mxu1 %v10836_v0  ;;  %6455 = vmatpush.bf16.msra.mxu3 %v10964_v18  ;;  %v10757_v0 = vld [vmem:[%s18202_s6 + $0x410] sm:$0xf0]  ;;  %v12327_v18 = vld [vmem:[%s18202_s6 + $0x504] sm:$0xf]  ;;  %v12296_v42 = vld [vmem:[%s18202_s6 + $0x40c] sm:$0xf] }
 0x37a   : > { %6469 = vmatpush.bf16.msra.mxu0 %v10840_v1  ;;  %6483 = vmatpush.bf16.msra.mxu2 %v10968_v4  ;;  %v10875_v1 = vld [vmem:[%s18202_s6 + $0x4e8] sm:$0xf]  ;;  %v12326_v4 = vld [vmem:[%s18202_s6 + $0x4f4] sm:$0xf0]  ;;  %v10888_v55 = vor.u32 %v12327_v18, %v10885_v5 }
 0x37b   : > { %v10876_v52 = vor.u32 %v12326_v4, %v10875_v1  ;;  %v10811_v18 = vld [vmem:[%s18202_s6 + $0x468] sm:$0xf] }
 0x37c   : > { %v10939_v4 = vld [vmem:[%s18202_s6 + $0x568] sm:$0xf]  ;;  %v10812_v36 = vor.u32 %v12310_v14, %v10811_v18  ;;  %v12387_v18 = vld [vmem:[%s18202_s6 + $0x6cc] sm:$0xf0] }
 0x37d   : > { %6442 = vmatpush.bf16.msra.mxu1 %v10820_v33  ;;  %6456 = vmatpush.bf16.msra.mxu3 %v10948_v13  ;;  %v10756_v33 = vor.u32 %v12297_v61, %v10755_v23  ;;  %v10884_v13 = vor.u32 %v12329_v57, %v10883_v22  ;;  %v10827_v23 = vld [vmem:[%s18202_s6 + $0x488] sm:$0xf]  ;;  %v12346_v22 = vld [vmem:[%s18202_s6 + $0x594] sm:$0xf0]  ;;  %v12312_v57 = vld [vmem:[%s18202_s6 + $0x48c] sm:$0xf] }
 0x37e   : > { %6470 = vmatpush.bf16.msra.mxu0 %v10824_v38  ;;  %6484 = vmatpush.bf16.msra.mxu2 %v10952_v28  ;;  %v11005_v38 = vld [vmem:[%s18202_s6 + $0x5f8] sm:$0xf0]  ;;  %v10760_v28 = vor.u32 %v12295_v27, %v10757_v0  ;;  %v10955_v61 = vld [vmem:[%s18202_s6 + $0x588] sm:$0xf]  ;;  %v10828_v27 = vor.u32 %v12314_v56, %v10827_v23  ;;  %v10832_v5 = vor.u32 %v12312_v57, %v10829_v53  ;;  %v12423_v23 = vld [vmem:[%s18202_s6 + $0x7ec] sm:$0xf0] }
 0x37f   : > { %v10956_v0 = vor.u32 %v12346_v22, %v10955_v61  ;;  %v12389_v56 = vld [vmem:[%s18202_s6 + $0x6e4] sm:$0xf]  ;;  %v11197_v61 = vld [vmem:[%s18202_s6 + $0x6f0] sm:$0xf0] }
 0x380   : > { %v12421_v22 = vld [vmem:[%s18202_s6 + $0x7e4] sm:$0xf]  ;;  %v11325_v57 = vld [vmem:[%s18202_s6 + $0x7f0] sm:$0xf0]  ;;  %v11200_v14 = vor.u32 %v12389_v56, %v11197_v61 }
 0x381   : > { %6443 = vmatpush.bf16.msra.mxu1 %v10804_v25  ;;  %6457 = vmatpush.bf16.msra.mxu3 %v10932_v20  ;;  %v6115_v25 = vrot.slane %v6110_v17, 1  ;;  %v10859_v20 = vld [vmem:[%s18202_s6 + $0x4c8] sm:$0xf]  ;;  %v10813_v17 = vld [vmem:[%s18202_s6 + $0x478] sm:$0xf0] }
 0x382   : > { %6471 = vmatpush.bf16.msra.mxu0 %v10808_v62  ;;  %6485 = vmatpush.bf16.msra.mxu2 %v10936_v41  ;;  %v11008_v62 = vor.u32 %v12356_v31, %v11005_v38  ;;  %v10987_v41 = vld [vmem:[%s18202_s6 + $0x5c8] sm:$0xf]  ;;  %v10816_v31 = vor.u32 %v12308_v49, %v10813_v17  ;;  %v10944_v38 = vor.u32 %v12340_v54, %v10941_v12  ;;  %v11181_v49 = vld [vmem:[%s18202_s6 + $0x6d0] sm:$0xf0]  ;;  %v12417_v17 = vld [vmem:[%s18202_s6 + $0x7c4] sm:$0xf] }
 0x383   : > { %v17031_v47 = vsel %vm2323_vm2, %v6114_v46, %v6115_v25  ;;  %v10763_v46 = vld [vmem:[%s18202_s6 + $0x408] sm:$0xf]  ;;  %v11309_v54 = vld [vmem:[%s18202_s6 + $0x7d0] sm:$0xf0]  ;;  %v12373_v61 = vld [vmem:[%s18202_s6 + $0x664] sm:$0xf] }
 0x384   : > { %v12360_v12 = vld [vmem:[#allocation4 + $0x4] sm:$0xf0]  ;;  %vm7792_vm2 = vcmask 1043456  }
 0x385   : > { %6444 = vmatpush.bf16.msra.mxu1 %v10788_v26  ;;  %6458 = vmatpush.bf16.msra.mxu3 %v10916_v19  ;;  %v10860_v26 = vor.u32 %v12322_v30, %v10859_v20  ;;  %v10988_v19 = vor.u32 %v12354_v39, %v10987_v41  ;;  %v10779_v20 = vld [vmem:[%s18202_s6 + $0x428] sm:$0xf]  ;;  %v12302_v30 = vld [vmem:[%s18202_s6 + $0x434] sm:$0xf0]  ;;  %vm18133_vm5 = vmand %vm7792_vm2, %vm7739_vm13 }
 0x386   : > { %6472 = vmatpush.bf16.msra.mxu0 %v10792_v58  ;;  %6486 = vmatpush.bf16.msra.mxu2 %v10920_v9  ;;  %v10864_v58 = vor.u32 %v12320_v40, %v10861_v45  ;;  %v10992_v9 = vor.u32 %v12352_v16, %v10989_v24  ;;  %v10907_v41 = vld [vmem:[%s18202_s6 + $0x528] sm:$0xf]  ;;  %v12334_v39 = vld [vmem:[%s18202_s6 + $0x534] sm:$0xf0]  ;;  %v12300_v40 = vld [vmem:[%s18202_s6 + $0x42c] sm:$0xf] }
 0x387   : > { %v10781_v45 = vld [vmem:[%s18202_s6 + $0x438] sm:$0xf0]  ;;  %v12332_v16 = vld [vmem:[%s18202_s6 + $0x52c] sm:$0xf]  ;;  %vm7796_vm7 = vmor %vm18138_vm6, %vm18133_vm5 }
 0x388   : > { %v10909_v24 = vld [vmem:[%s18202_s6 + $0x538] sm:$0xf0] }
 0x389   : > { %6445 = vmatpush.bf16.msra.mxu1 %v10772_v21  ;;  %6459 = vmatpush.bf16.msra.mxu3 %v10900_v35  ;;  %v10848_v21 = vor.u32 %v12316_v50, %v10845_v32  ;;  %v10976_v35 = vor.u32 %v12348_v7, %v10973_v3  ;;  %v10912_v29 = vor.u32 %v12332_v16, %v10909_v24  ;;  %v10765_v50 = vld [vmem:[%s18202_s6 + $0x418] sm:$0xf0]  ;;  %v12328_v32 = vld [vmem:[%s18202_s6 + $0x50c] sm:$0xf]  ;;  %v11195_v3 = vld [vmem:[%s18202_s6 + $0x6e0] sm:$0xf] }
 0x38a   : > { %6473 = vmatpush.bf16.msra.mxu0 %v10776_v48  ;;  %6487 = vmatpush.bf16.msra.mxu2 %v10904_v63  ;;  %v12344_v48 = vld [vmem:[%s18202_s6 + $0x58c] sm:$0xf]  ;;  %v10957_v63 = vld [vmem:[%s18202_s6 + $0x598] sm:$0xf0]  ;;  %v10768_v53 = vor.u32 %v12296_v42, %v10765_v50  ;;  %v11275_v16 = vld [vmem:[%s18202_s6 + $0x780] sm:$0xf] }
 0x38b   : > { %v10960_v1 = vor.u32 %v12344_v48, %v10957_v63  ;;  %v10893_v7 = vld [vmem:[%s18202_s6 + $0x518] sm:$0xf0]  ;;  %v12411_v24 = vld [vmem:[%s18202_s6 + $0x78c] sm:$0xf0]  ;;  %v11131_v50 = vld [vmem:[%s18202_s6 + $0x660] sm:$0xf] }
 0x38c   : > { %v10896_v48 = vor.u32 %v12328_v32, %v10893_v7  ;;  %v11276_v42 = vor.u32 %v12411_v24, %v11275_v16  ;;  %v12375_v32 = vld [vmem:[%s18202_s6 + $0x66c] sm:$0xf0] }
 0x38d   : > { %6446 = vmatpush.bf16.msra.mxu1 %v10756_v33  ;;  %6460 = vmatpush.bf16.msra.mxu3 %v10884_v13  ;;  %v10940_v33 = vor.u32 %v12342_v15, %v10939_v4  ;;  %v10795_v13 = vld [vmem:[%s18202_s6 + $0x448] sm:$0xf]  ;;  %v12419_v4 = vld [vmem:[%s18202_s6 + $0x7cc] sm:$0xf0]  ;;  %v12385_v15 = vld [vmem:[%s18202_s6 + $0x6c4] sm:$0xf] }
 0x38e   : > { %6474 = vmatpush.bf16.msra.mxu0 %v10760_v28  ;;  %6488 = vmatpush.bf16.msra.mxu2 %v10888_v55  ;;  %v10923_v28 = vld [vmem:[%s18202_s6 + $0x548] sm:$0xf]  ;;  %v12338_v55 = vld [vmem:[%s18202_s6 + $0x554] sm:$0xf0]  ;;  %v10796_v11 = vor.u32 %v12306_v10, %v10795_v13  ;;  %v11163_v13 = vld [vmem:[%s18202_s6 + $0x6a0] sm:$0xf] }
 0x38f   : > { %v10924_v25 = vor.u32 %v12338_v55, %v10923_v28  ;;  %v12383_v10 = vld [vmem:[%s18202_s6 + $0x6ac] sm:$0xf0]  ;;  %v11184_v28 = vor.u32 %v12385_v15, %v11181_v49  ;;  %v11312_v55 = vor.u32 %v12417_v17, %v11309_v54  ;;  %v11115_v49 = vld [vmem:[%s18202_s6 + $0x640] sm:$0xf] }
 0x390   : > { %6447 = vmatmul.bf16.vlgmr.msra.gmra.mxu1 %v17022_v44  ;;  %6461 = vmatmul.bf16.vlgmr.msra.gmra.mxu3 %v17031_v47  ;;  %v12371_v17 = vld [vmem:[%s18202_s6 + $0x64c] sm:$0xf0] }
 0x391   : > { %6495 = vmatpush.bf16.msrb.mxu1 %v10876_v52  ;;  %6509 = vmatpush.bf16.msrb.mxu3 %v11004_v37  ;;  %v12336_v52 = vld [vmem:[%s18202_s6 + $0x54c] sm:$0xf]  ;;  %v10925_v37 = vld [vmem:[%s18202_s6 + $0x558] sm:$0xf0] }
 0x392   : > { %6523 = vmatpush.bf16.msrb.mxu0 %v10880_v8  ;;  %6537 = vmatpush.bf16.msrb.mxu2 %v11008_v62  ;;  %v10800_v8 = vor.u32 %v12304_v60, %v10797_v43  ;;  %v10928_v62 = vor.u32 %v12336_v52, %v10925_v37  ;;  %v11291_v60 = vld [vmem:[%s18202_s6 + $0x7a0] sm:$0xf]  ;;  %v12415_v43 = vld [vmem:[%s18202_s6 + $0x7ac] sm:$0xf0]  ;;  %v12381_v52 = vld [vmem:[%s18202_s6 + $0x6a4] sm:$0xf] }
 0x393   : > { %6475 = vmatmul.bf16.vlgmr.msra.gmra.mxu0 %v17022_v44  ;;  %6489 = vmatmul.bf16.vlgmr.msra.gmra.mxu2 %v17031_v47  ;;  %v11165_v37 = vld [vmem:[%s18202_s6 + $0x6b0] sm:$0xf0] }
 0x395   : > { %6496 = vmatpush.bf16.msrb.mxu1 %v10860_v26  ;;  %6510 = vmatpush.bf16.msrb.mxu3 %v10988_v19  ;;  %v10780_v26 = vor.u32 %v12302_v30, %v10779_v20  ;;  %v10908_v19 = vor.u32 %v12334_v39, %v10907_v41  ;;  %v11147_v39 = vld [vmem:[%s18202_s6 + $0x680] sm:$0xf] }
 0x396   : > { %6524 = vmatpush.bf16.msrb.mxu0 %v10864_v58  ;;  %6538 = vmatpush.bf16.msrb.mxu2 %v10992_v9  ;;  %v12330_v58 = vld [vmem:[%s18202_s6 + $0x514] sm:$0xf0]  ;;  %v10784_v9 = vor.u32 %v12300_v40, %v10781_v45  ;;  %v12379_v40 = vld [vmem:[%s18202_s6 + $0x68c] sm:$0xf0] }
 0x399   : > { %6497 = vmatpush.bf16.msrb.mxu1 %v10844_v51  ;;  %6511 = vmatpush.bf16.msrb.mxu3 %v10972_v34  ;;  %v12391_v51 = vld [vmem:[%s18202_s6 + $0x6ec] sm:$0xf0]  ;;  %v11323_v34 = vld [vmem:[%s18202_s6 + $0x7e0] sm:$0xf] }
 0x39a   : > { %6525 = vmatpush.bf16.msrb.mxu0 %v10848_v21  ;;  %6539 = vmatpush.bf16.msrb.mxu2 %v10976_v35  ;;  %v10764_v21 = vor.u32 %v12298_v2, %v10763_v46  ;;  %v10892_v35 = vor.u32 %v12330_v58, %v10891_v6  ;;  %v11196_v63 = vor.u32 %v12391_v51, %v11195_v3  ;;  %v12377_v46 = vld [vmem:[%s18202_s6 + $0x684] sm:$0xf]  ;;  %v11277_v2 = vld [vmem:[%s18202_s6 + $0x790] sm:$0xf0]  ;;  %v11077_v51 = vld [vmem:[#allocation4 + $0x8] sm:$0xf0] }
 0x39b   : > { %v12359_v3 = vld [vmem:[#allocation4 + $0x4] sm:$0xe] }
 0x39d   : > { %6498 = vmatpush.bf16.msrb.mxu1 %v10828_v27  ;;  %6512 = vmatpush.bf16.msrb.mxu3 %v10956_v0  ;;  %v11324_v27 = vor.u32 %v12423_v23, %v11323_v34  ;;  %v11179_v0 = vld [vmem:[%s18202_s6 + $0x6c0] sm:$0xf] }
 0x39e   : > { %6526 = vmatpush.bf16.msrb.mxu0 %v10832_v5  ;;  %6540 = vmatpush.bf16.msrb.mxu2 %v10960_v1  ;;  %v11328_v5 = vor.u32 %v12421_v22, %v11325_v57  ;;  %v11307_v1 = vld [vmem:[%s18202_s6 + $0x7c0] sm:$0xf] }
 0x3a1   : > { %6499 = vmatpush.bf16.msrb.mxu1 %v10812_v36  ;;  %6513 = vmatpush.bf16.msrb.mxu3 %v10940_v33  ;;  %v11180_v36 = vor.u32 %v12387_v18, %v11179_v0  ;;  %v11308_v33 = vor.u32 %v12419_v4, %v11307_v1  ;;  %v11132_v1 = vor.u32 %v12375_v32, %v11131_v50  ;;  %v12363_v32 = vld [vmem:[%s18202_s6 + $0x60c] sm:$0xf0] }
 0x3a2   : > { %6527 = vmatpush.bf16.msrb.mxu0 %v10816_v31  ;;  %6541 = vmatpush.bf16.msrb.mxu2 %v10944_v38  ;;  %v11075_v31 = vld [vmem:[#allocation4] sm:$0xe]  ;;  %v17229_v38 = vld [vmem:[#allocation4 + $0x10] sm:$0x33] }
 0x3a3   : > { %v17253_v30 = vor.u32 %v12360_v12, %v11075_v31  ;;  %v12369_v31 = vld [vmem:[%s18202_s6 + $0x644] sm:$0xf] }
 0x3a5   : > { %6500 = vmatpush.bf16.msrb.mxu1 %v10796_v11  ;;  %6514 = vmatpush.bf16.msrb.mxu3 %v10924_v25  ;;  %v12413_v11 = vld [vmem:[%s18202_s6 + $0x7a4] sm:$0xf]  ;;  %v11293_v25 = vld [vmem:[%s18202_s6 + $0x7b0] sm:$0xf0]  ;;  %v6658_v6 = vshrl.u32 %v17253_v30, 16  ;;  %v6661_v58 = vshll.u32 %v17253_v30, 16 }
 0x3a6   : > { %6528 = vmatpush.bf16.msrb.mxu0 %v10800_v8  ;;  %6542 = vmatpush.bf16.msrb.mxu2 %v10928_v62  ;;  %v11164_v8 = vor.u32 %v12383_v10, %v11163_v13  ;;  %v11292_v62 = vor.u32 %v12415_v43, %v11291_v60  ;;  %v11296_v45 = vor.u32 %v12413_v11, %v11293_v25  ;;  %v11243_v13 = vld [vmem:[%s18202_s6 + $0x740] sm:$0xf]  ;;  %v12403_v10 = vld [vmem:[%s18202_s6 + $0x74c] sm:$0xf0] }
 0x3a7   : > { %v17311_v18 = vrot.slane %v6658_v6, 1  ;;  %v17339_v60 = vrot.slane %v6661_v58, 2  ;;  %v11116_v11 = vor.u32 %v12371_v17, %v11115_v49  ;;  %v11244_v25 = vor.u32 %v12403_v10, %v11243_v13  ;;  %v12367_v30 = vld [vmem:[%s18202_s6 + $0x62c] sm:$0xf0]  ;;  %v11083_v6 = vld [vmem:[%s18202_s6 + $0x600] sm:$0xf] }
 0x3a8   : > { %v12422_v49 = vld [vmem:[%s18202_s6 + $0x7ec] sm:$0xf]  ;;  %v11333_v17 = vld [vmem:[%s18202_s6 + $0x7f8] sm:$0xf0] }
 0x3a9   : > { %6501 = vmatpush.bf16.msrb.mxu1 %v10780_v26  ;;  %6515 = vmatpush.bf16.msrb.mxu3 %v10908_v19  ;;  %v11149_v26 = vld [vmem:[%s18202_s6 + $0x690] sm:$0xf0]  ;;  %v12409_v19 = vld [vmem:[%s18202_s6 + $0x784] sm:$0xf] }
 0x3aa   : > { %6529 = vmatpush.bf16.msrb.mxu0 %v10784_v9  ;;  %6543 = vmatpush.bf16.msrb.mxu2 %v10912_v29  ;;  %v6651_v9 = vunpack.c.h.b16 %v17229_v38  ;;  %v11148_v29 = vor.u32 %v12379_v40, %v11147_v39  ;;  %v11152_v34 = vor.u32 %v12377_v46, %v11149_v26  ;;  %v11280_v23 = vor.u32 %v12409_v19, %v11277_v2  ;;  %v11101_v46 = vld [vmem:[%s18202_s6 + $0x630] sm:$0xf0]  ;;  %v12397_v26 = vld [vmem:[%s18202_s6 + $0x724] sm:$0xf] }
 0x3ab   : > { %v11229_v19 = vld [vmem:[%s18202_s6 + $0x730] sm:$0xf0] }
 0x3ac   : > { %v5356_v20 = vpop.f32.mrf.mxu1 }
 0x3ad   : > { %6502 = vmatpush.bf16.msrb.mxu1 %v10764_v21  ;;  %6516 = vmatpush.bf16.msrb.mxu3 %v10892_v35  ;;  %v5384_v41 = vpop.f32.mrf.mxu0  ;;  %v11259_v21 = vld [vmem:[%s18202_s6 + $0x760] sm:$0xf]  ;;  %v12407_v35 = vld [vmem:[%s18202_s6 + $0x76c] sm:$0xf0] }
 0x3ae   : > { %6530 = vmatpush.bf16.msrb.mxu0 %v10768_v53  ;;  %6544 = vmatpush.bf16.msrb.mxu2 %v10896_v48  ;;  %v11133_v53 = vld [vmem:[%s18202_s6 + $0x670] sm:$0xf0]  ;;  %v12405_v48 = vld [vmem:[%s18202_s6 + $0x764] sm:$0xf]  ;;  %v11260_v4 = vor.u32 %v12407_v35, %v11259_v21 }
 0x3af   : > { %v11085_v21 = vld [vmem:[%s18202_s6 + $0x610] sm:$0xf0]  ;;  %v12393_v35 = vld [vmem:[%s18202_s6 + $0x704] sm:$0xf] }
 0x3b0   : > { %6503 = vmatmul.bf16.vlgmr.msrb.gmra.mxu1 %v17022_v44  ;;  %6517 = vmatmul.bf16.vlgmr.msrb.gmra.mxu3 %v17031_v47 }
 0x3b1   : > { %7013 = vmatpush.bf16.msra.mxu1 %v11196_v63  ;;  %7027 = vmatpush.bf16.msra.mxu3 %v11324_v27  ;;  %v11261_v63 = vld [vmem:[%s18202_s6 + $0x770] sm:$0xf0] }
 0x3b2   : > { %7041 = vmatpush.bf16.msra.mxu0 %v11200_v14  ;;  %7055 = vmatpush.bf16.msra.mxu2 %v11328_v5  ;;  %v5370_v56 = vpop.f32.mrf.mxu3  ;;  %v17313_v14 = vor.u32 %v12359_v3, %v11077_v51  ;;  %v6655_v5 = vpack.c.b16 %v6651_v9, %v6651_v9  ;;  %v12395_v3 = vld [vmem:[%s18202_s6 + $0x70c] sm:$0xf0] }
 0x3b3   : > { %6531 = vmatmul.bf16.vlgmr.msrb.gmra.mxu0 %v17022_v44  ;;  %6545 = vmatmul.bf16.vlgmr.msrb.gmra.mxu2 %v17031_v47  ;;  %v6650_v44 = vunpack.c.l.b16 %v17229_v38  ;;  %v11168_v47 = vor.u32 %v12381_v52, %v11165_v37  ;;  %v17298_v22 = vadd.f32 %v5370_v56, %v5356_v20  ;;  %v5398_v57 = vpop.f32.mrf.mxu2  ;;  %v11117_v38 = vld [vmem:[%s18202_s6 + $0x650] sm:$0xf0]  ;;  %v11099_v20 = vld [vmem:[%s18202_s6 + $0x620] sm:$0xf]  ;;  %v12361_v56 = vld [vmem:[%s18202_s6 + $0x604] sm:$0xf] }
 0x3b4   : > { %v17309_v27 = vadd.f32 %v5398_v57, %v5384_v41  ;;  %v5358_v0 = vpop.f32.mrf.mxu1  ;;  %v6675_v43 = vshrl.u32 %v17313_v14, 16  ;;  %v6683_v52 = vshrl.u32 %v6655_v5, 16  ;;  %v6686_v37 = vshll.u32 %v6655_v5, 16  ;;  %v11213_v57 = vld [vmem:[%s18202_s6 + $0x710] sm:$0xf0] }
 0x3b5   : > { %7014 = vmatpush.bf16.msra.mxu1 %v11180_v36  ;;  %7028 = vmatpush.bf16.msra.mxu3 %v11308_v33  ;;  %v6654_v7 = vpack.c.b16 %v6650_v44, %v6650_v44  ;;  %v5386_v15 = vpop.f32.mrf.mxu0  ;;  %v11136_v36 = vor.u32 %v12373_v61, %v11133_v53  ;;  %v11264_v33 = vor.u32 %v12405_v48, %v11261_v63  ;;  %v11227_v44 = vld [vmem:[%s18202_s6 + $0x720] sm:$0xf]  ;;  %v6678_v58 = vshll.u32 %v17313_v14, 16  ;;  %v11203_v53 = vld [vmem:[%s18202_s6 + $0x6e8] sm:$0xf] }
 0x3b6   : > { %7042 = vmatpush.bf16.msra.mxu0 %v11184_v28  ;;  %7056 = vmatpush.bf16.msra.mxu2 %v11312_v55  ;;  %v12401_v28 = vld [vmem:[%s18202_s6 + $0x744] sm:$0xf]  ;;  %v11245_v55 = vld [vmem:[%s18202_s6 + $0x750] sm:$0xf0]  ;;  %v11120_v41 = vor.u32 %v12369_v31, %v11117_v38  ;;  %v17378_v9 = vrot.slane %v6683_v52, 1  ;;  %v11336_v14 = vor.u32 %v12422_v49, %v11333_v17 }
 0x3b7   : > { %v6666_v54 = vshrl.u32 %v6654_v7, 16  ;;  %v6669_v12 = vshll.u32 %v6654_v7, 16  ;;  %v11248_v39 = vor.u32 %v12401_v28, %v11245_v55  ;;  %v11211_v7 = vld [vmem:[%s18202_s6 + $0x700] sm:$0xf]  ;;  %v12392_v48 = vld [vmem:[%s18202_s6 + $0x6f4] sm:$0xf0] }
 0x3b8   : > { %v11331_v63 = vld [vmem:[%s18202_s6 + $0x7e8] sm:$0xf]  ;;  %v12390_v5 = vld [vmem:[%s18202_s6 + $0x6ec] sm:$0xf]  ;;  %v6680_v13 = vrot.slane %v6678_v58, 2  ;;  %v11204_v10 = vor.u32 %v12392_v48, %v11203_v53 }
 0x3b9   : > { %7015 = vmatpush.bf16.msra.mxu1 %v11164_v8  ;;  %7029 = vmatpush.bf16.msra.mxu3 %v11292_v62  ;;  %v17348_v8 = vrot.slane %v6666_v54, 1  ;;  %v17350_v62 = vrot.slane %v6669_v12, 2  ;;  %v11088_v54 = vor.u32 %v12361_v56, %v11085_v21  ;;  %v11216_v12 = vor.u32 %v12393_v35, %v11213_v57  ;;  %v11187_v52 = vld [vmem:[%s18202_s6 + $0x6c8] sm:$0xf]  ;;  %v12380_v35 = vld [vmem:[%s18202_s6 + $0x694] sm:$0xf0] }
 0x3ba   : > { %7043 = vmatpush.bf16.msra.mxu0 %v11168_v47  ;;  %7057 = vmatpush.bf16.msra.mxu2 %v11296_v45  ;;  %v5372_v40 = vpop.f32.mrf.mxu3  ;;  %v12399_v47 = vld [vmem:[%s18202_s6 + $0x72c] sm:$0xf0]  ;;  %v12365_v45 = vld [vmem:[%s18202_s6 + $0x624] sm:$0xf]  ;;  %v11299_v58 = vld [vmem:[%s18202_s6 + $0x7a8] sm:$0xf] }
 0x3bb   : > { %v17361_v16 = vadd.f32 %v5372_v40, %v5358_v0  ;;  %v5400_v24 = vpop.f32.mrf.mxu2  ;;  %v11228_v50 = vor.u32 %v12399_v47, %v11227_v44  ;;  %v11104_v51 = vor.u32 %v12365_v45, %v11101_v46  ;;  %v12424_v0 = vld [vmem:[%s18202_s6 + $0x7f4] sm:$0xf0]  ;;  %v6672_v55 = vor.u32 %v17350_v62, %v17348_v8  ;;  %v12386_v8 = vld [vmem:[%s18202_s6 + $0x6cc] sm:$0xf]  ;;  %v11317_v40 = vld [vmem:[%s18202_s6 + $0x7d8] sm:$0xf0] }
 0x3bc   : > { %v17372_v2 = vadd.f32 %v5400_v24, %v5386_v15  ;;  %v11205_v15 = vld [vmem:[%s18202_s6 + $0x6f8] sm:$0xf0]  ;;  %v11332_v31 = vor.u32 %v12424_v0, %v11331_v63  ;;  %v6664_v62 = vor.u32 %v17339_v60, %v17311_v18  ;;  %v11171_v45 = vld [vmem:[%s18202_s6 + $0x6a8] sm:$0xf]  ;;  %v12384_v24 = vld [vmem:[%s18202_s6 + $0x6b4] sm:$0xf0] }
 0x3bd   : > { %7016 = vmatpush.bf16.msra.mxu1 %v11148_v29  ;;  %7030 = vmatpush.bf16.msra.mxu3 %v11276_v42  ;;  %v17380_v29 = vrot.slane %v6686_v37, 2  ;;  %v11100_v42 = vor.u32 %v12367_v30, %v11099_v20  ;;  %v5440_v61 = vpop.f32.mrf.mxu0  ;;  %v12388_v37 = vld [vmem:[%s18202_s6 + $0x6d4] sm:$0xf0]  ;;  %v11315_v20 = vld [vmem:[%s18202_s6 + $0x7c8] sm:$0xf] }
 0x3be   : > { %7044 = vmatpush.bf16.msra.mxu0 %v11152_v34  ;;  %7058 = vmatpush.bf16.msra.mxu2 %v11280_v23  ;;  %v11232_v34 = vor.u32 %v12397_v26, %v11229_v19  ;;  %v5412_v23 = vpop.f32.mrf.mxu1  ;;  %v12420_v30 = vld [vmem:[%s18202_s6 + $0x7d4] sm:$0xf0]  ;;  %v17464_v47 = vsel %vm6656_vm11, %v6664_v62, %v6672_v55  ;;  %v11188_v18 = vor.u32 %v12388_v37, %v11187_v52  ;;  %v11155_v21 = vld [vmem:[%s18202_s6 + $0x688] sm:$0xf]  ;;  %v12378_v0 = vld [vmem:[%s18202_s6 + $0x68c] sm:$0xf] }
 0x3bf   : > { %v11316_v60 = vor.u32 %v12420_v30, %v11315_v20  ;;  %v11283_v48 = vld [vmem:[%s18202_s6 + $0x788] sm:$0xf]  ;;  %v12412_v63 = vld [vmem:[%s18202_s6 + $0x794] sm:$0xf0]  ;;  %v11269_v55 = vld [vmem:[%s18202_s6 + $0x778] sm:$0xf0] }
 0x3c0   : > { %v11284_v49 = vor.u32 %v12412_v63, %v11283_v48  ;;  %v11139_v17 = vld [vmem:[%s18202_s6 + $0x668] sm:$0xf]  ;;  %v12372_v20 = vld [vmem:[%s18202_s6 + $0x654] sm:$0xf0] }
 0x3c1   : > { %7017 = vmatpush.bf16.msra.mxu1 %v11132_v1  ;;  %7031 = vmatpush.bf16.msra.mxu3 %v11260_v4  ;;  %v11084_v1 = vor.u32 %v12363_v32, %v11083_v6  ;;  %v11212_v4 = vor.u32 %v12395_v3, %v11211_v7  ;;  %v12414_v32 = vld [vmem:[%s18202_s6 + $0x7ac] sm:$0xf]  ;;  %v11301_v7 = vld [vmem:[%s18202_s6 + $0x7b8] sm:$0xf0]  ;;  %v12396_v48 = vld [vmem:[%s18202_s6 + $0x714] sm:$0xf0] }
 0x3c2   : > { %7045 = vmatpush.bf16.msra.mxu0 %v11136_v36  ;;  %7059 = vmatpush.bf16.msra.mxu2 %v11264_v33  ;;  %v5426_v36 = vpop.f32.mrf.mxu3  ;;  %v6677_v33 = vrot.slane %v6675_v43, 1  ;;  %v11304_v57 = vor.u32 %v12414_v32, %v11301_v7  ;;  %v12400_v7 = vld [vmem:[%s18202_s6 + $0x734] sm:$0xf0] }
 0x3c3   : > { %v17429_v38 = vadd.f32 %v5426_v36, %v5412_v23  ;;  %v5454_v28 = vpop.f32.mrf.mxu2 }
 0x3c4   : > { %v17439_v43 = vadd.f32 %v5454_v28, %v5440_v61  ;;  %v6681_v44 = vor.u32 %v6680_v13, %v6677_v33  ;;  %v11267_v33 = vld [vmem:[%s18202_s6 + $0x768] sm:$0xf]  ;;  %v12408_v13 = vld [vmem:[%s18202_s6 + $0x774] sm:$0xf0]  ;;  %v12406_v28 = vld [vmem:[%s18202_s6 + $0x76c] sm:$0xf] }
 0x3c5   : > { %7018 = vmatpush.bf16.msra.mxu1 %v11116_v11  ;;  %7032 = vmatpush.bf16.msra.mxu3 %v11244_v25  ;;  %v11208_v11 = vor.u32 %v12390_v5, %v11205_v15  ;;  %v6689_v25 = vor.u32 %v17380_v29, %v17378_v9  ;;  %v12416_v9 = vld [vmem:[%s18202_s6 + $0x7b4] sm:$0xf0]  ;;  %v12382_v29 = vld [vmem:[%s18202_s6 + $0x6ac] sm:$0xf]  ;;  %v11157_v5 = vld [vmem:[%s18202_s6 + $0x698] sm:$0xf0]  ;;  %v11156_v15 = vor.u32 %v12380_v35, %v11155_v21 }
 0x3c6   : > { %7046 = vmatpush.bf16.msra.mxu0 %v11120_v41  ;;  %7060 = vmatpush.bf16.msra.mxu2 %v11248_v39  ;;  %v11189_v41 = vld [vmem:[%s18202_s6 + $0x6d8] sm:$0xf0]  ;;  %v12418_v39 = vld [vmem:[%s18202_s6 + $0x7cc] sm:$0xf]  ;;  %v5414_v26 = vpop.f32.mrf.mxu1 }
 0x3c7   : > { %v17473_v46 = vsel %vm6656_vm11, %v6681_v44, %v6689_v25  ;;  %v11192_v19 = vor.u32 %v12386_v8, %v11189_v41  ;;  %v11320_v6 = vor.u32 %v12418_v39, %v11317_v40  ;;  %v11123_v25 = vld [vmem:[%s18202_s6 + $0x648] sm:$0xf]  ;;  %v11272_v8 = vor.u32 %v12406_v28, %v11269_v55  ;;  %v12404_v39 = vld [vmem:[%s18202_s6 + $0x754] sm:$0xf0]  ;;  %v12370_v40 = vld [vmem:[%s18202_s6 + $0x64c] sm:$0xf] }
 0x3c8   : > { %v11251_v41 = vld [vmem:[%s18202_s6 + $0x748] sm:$0xf]  ;;  %v12489_v28 = vld [vmem:[%s18202_s6 + $0x9ec] sm:$0xf0]  ;;  %v12455_v55 = vld [vmem:[%s18202_s6 + $0x8e4] sm:$0xf] }
 0x3c9   : > { %7019 = vmatpush.bf16.msra.mxu1 %v11100_v42  ;;  %7033 = vmatpush.bf16.msra.mxu3 %v11228_v50  ;;  %v5442_v42 = vpop.f32.mrf.mxu0  ;;  %v11173_v50 = vld [vmem:[%s18202_s6 + $0x6b8] sm:$0xf0] }
 0x3ca   : > { %7047 = vmatpush.bf16.msra.mxu0 %v11104_v51  ;;  %7061 = vmatpush.bf16.msra.mxu2 %v11232_v34  ;;  %v5428_v3 = vpop.f32.mrf.mxu3  ;;  %v11172_v51 = vor.u32 %v12384_v24, %v11171_v45  ;;  %v11300_v34 = vor.u32 %v12416_v9, %v11299_v58  ;;  %v11176_v61 = vor.u32 %v12382_v29, %v11173_v50  ;;  %v12402_v45 = vld [vmem:[%s18202_s6 + $0x74c] sm:$0xf]  ;;  %v11253_v24 = vld [vmem:[%s18202_s6 + $0x758] sm:$0xf0]  ;;  %v11107_v9 = vld [vmem:[%s18202_s6 + $0x628] sm:$0xf] }
 0x3cb   : > { %v17497_v23 = vadd.f32 %v5428_v3, %v5414_v26  ;;  %v5456_v56 = vpop.f32.mrf.mxu2  ;;  %v11252_v58 = vor.u32 %v12404_v39, %v11251_v41  ;;  %v12368_v29 = vld [vmem:[%s18202_s6 + $0x634] sm:$0xf0]  ;;  %v11256_v32 = vor.u32 %v12402_v45, %v11253_v24  ;;  %v12366_v3 = vld [vmem:[%s18202_s6 + $0x62c] sm:$0xf]  ;;  %v11507_v39 = vld [vmem:[%s18202_s6 + $0x8c0] sm:$0xf] }
 0x3cc   : > { %v17505_v53 = vadd.f32 %v5456_v56, %v5442_v42  ;;  %v11091_v56 = vld [vmem:[%s18202_s6 + $0x608] sm:$0xf]  ;;  %v11108_v21 = vor.u32 %v12368_v29, %v11107_v9  ;;  %v12451_v45 = vld [vmem:[%s18202_s6 + $0x8c4] sm:$0xf]  ;;  %v11509_v24 = vld [vmem:[%s18202_s6 + $0x8d0] sm:$0xf0] }
 0x3cd   : > { %7020 = vmatpush.bf16.msra.mxu1 %v11084_v1  ;;  %7034 = vmatpush.bf16.msra.mxu3 %v11212_v4  ;;  %v12410_v1 = vld [vmem:[%s18202_s6 + $0x78c] sm:$0xf]  ;;  %v11285_v4 = vld [vmem:[%s18202_s6 + $0x798] sm:$0xf0]  ;;  %v11491_v29 = vld [vmem:[%s18202_s6 + $0x8a0] sm:$0xf] }
 0x3ce   : > { %7048 = vmatpush.bf16.msra.mxu0 %v11088_v54  ;;  %7062 = vmatpush.bf16.msra.mxu2 %v11216_v12  ;;  %v12376_v54 = vld [vmem:[%s18202_s6 + $0x674] sm:$0xf0]  ;;  %v11160_v12 = vor.u32 %v12378_v0, %v11157_v5  ;;  %v11288_v36 = vor.u32 %v12410_v1, %v11285_v4  ;;  %v5903_v52 = vpop.f32.mrf.mxu1  ;;  %v12362_v4 = vld [vmem:[%s18202_s6 + $0x60c] sm:$0xf] }
 0x3d0   : > { %7021 = vmatmul.bf16.vlgmr.msra.gmra.mxu1 %v17464_v47  ;;  %7035 = vmatmul.bf16.vlgmr.msra.gmra.mxu3 %v17473_v46 }
 0x3d1   : > { %7069 = vmatpush.bf16.msrb.mxu1 %v11204_v10  ;;  %7083 = vmatpush.bf16.msrb.mxu3 %v11332_v31  ;;  %v12374_v10 = vld [vmem:[%s18202_s6 + $0x66c] sm:$0xf]  ;;  %v11141_v31 = vld [vmem:[%s18202_s6 + $0x678] sm:$0xf0]  ;;  %v5931_v37 = vpop.f32.mrf.mxu0 }
 0x3d2   : > { %7097 = vmatpush.bf16.msrb.mxu0 %v11208_v11  ;;  %7111 = vmatpush.bf16.msrb.mxu2 %v11336_v14  ;;  %v11140_v11 = vor.u32 %v12376_v54, %v11139_v17  ;;  %v11268_v14 = vor.u32 %v12408_v13, %v11267_v33  ;;  %v11144_v30 = vor.u32 %v12374_v10, %v11141_v31  ;;  %v11523_v33 = vld [vmem:[%s18202_s6 + $0x8e0] sm:$0xf]  ;;  %v12457_v13 = vld [vmem:[%s18202_s6 + $0x8ec] sm:$0xf0] }
 0x3d3   : > { %7049 = vmatmul.bf16.vlgmr.msra.gmra.mxu0 %v17464_v47  ;;  %7063 = vmatmul.bf16.vlgmr.msra.gmra.mxu2 %v17473_v46  ;;  %v5917_v62 = vpop.f32.mrf.mxu3  ;;  %v11651_v31 = vld [vmem:[%s18202_s6 + $0x9e0] sm:$0xf] }
 0x3d4   : > { %v5918_v44 = vadd.f32 %v5917_v62, %v5903_v52  ;;  %v11524_v62 = vor.u32 %v12457_v13, %v11523_v33  ;;  %v11652_v41 = vor.u32 %v12489_v28, %v11651_v31  ;;  %v11587_v33 = vld [vmem:[%s18202_s6 + $0x960] sm:$0xf]  ;;  %v12473_v13 = vld [vmem:[%s18202_s6 + $0x96c] sm:$0xf0]  ;;  %v11461_v31 = vld [vmem:[%s18202_s6 + $0x870] sm:$0xf0] }
 0x3d5   : > { %7070 = vmatpush.bf16.msrb.mxu1 %v11188_v18  ;;  %7084 = vmatpush.bf16.msrb.mxu3 %v11316_v60  ;;  %v11125_v60 = vld [vmem:[%s18202_s6 + $0x658] sm:$0xf0]  ;;  %v12471_v28 = vld [vmem:[%s18202_s6 + $0x964] sm:$0xf] }
 0x3d6   : > { %7098 = vmatpush.bf16.msrb.mxu0 %v11192_v19  ;;  %7112 = vmatpush.bf16.msrb.mxu2 %v11320_v6  ;;  %v5945_v18 = vpop.f32.mrf.mxu2  ;;  %v17574_v19 = vadd.f32 %v5918_v44, %v17298_v22  ;;  %v11124_v6 = vor.u32 %v12372_v20, %v11123_v25  ;;  %v11128_v50 = vor.u32 %v12370_v40, %v11125_v60  ;;  %v11235_v22 = vld [vmem:[%s18202_s6 + $0x728] sm:$0xf]  ;;  %v5905_v63 = vpop.f32.mrf.mxu1  ;;  %v12487_v25 = vld [vmem:[%s18202_s6 + $0x9e4] sm:$0xf]  ;;  %v11653_v20 = vld [vmem:[%s18202_s6 + $0x9f0] sm:$0xf0] }
 0x3d7   : > { %v5946_v26 = vadd.f32 %v5945_v18, %v5931_v37  ;;  %v11236_v35 = vor.u32 %v12400_v7, %v11235_v22  ;;  %v12453_v40 = vld [vmem:[%s18202_s6 + $0x8cc] sm:$0xf0]  ;;  %v11656_v18 = vor.u32 %v12487_v25, %v11653_v20  ;;  %v11635_v60 = vld [vmem:[%s18202_s6 + $0x9c0] sm:$0xf]  ;;  %v11588_v25 = vor.u32 %v12473_v13, %v11587_v33  ;;  %v12459_v33 = vld [vmem:[%s18202_s6 + $0x904] sm:$0xf] }
 0x3d8   : > { %v11619_v7 = vld [vmem:[%s18202_s6 + $0x9a0] sm:$0xf] }
 0x3d9   : > { %7071 = vmatpush.bf16.msrb.mxu1 %v11172_v51  ;;  %7085 = vmatpush.bf16.msrb.mxu3 %v11300_v34  ;;  %v17583_v42 = vadd.f32 %v5946_v26, %v17309_v27  ;;  %v11109_v51 = vld [vmem:[%s18202_s6 + $0x638] sm:$0xf0]  ;;  %v12398_v27 = vld [vmem:[%s18202_s6 + $0x72c] sm:$0xf]  ;;  %v5933_v17 = vpop.f32.mrf.mxu0  ;;  %v12483_v26 = vld [vmem:[%s18202_s6 + $0x9c4] sm:$0xf] }
 0x3da   : > { %7099 = vmatpush.bf16.msrb.mxu0 %v11176_v61  ;;  %7113 = vmatpush.bf16.msrb.mxu2 %v11304_v57  ;;  %v11237_v34 = vld [vmem:[%s18202_s6 + $0x738] sm:$0xf0]  ;;  %v12364_v61 = vld [vmem:[%s18202_s6 + $0x614] sm:$0xf0]  ;;  %v11219_v57 = vld [vmem:[%s18202_s6 + $0x708] sm:$0xf]  ;;  %v11112_v0 = vor.u32 %v12366_v3, %v11109_v51 }
 0x3db   : > { %v11240_v5 = vor.u32 %v12398_v27, %v11237_v34  ;;  %v5919_v1 = vpop.f32.mrf.mxu3  ;;  %v11092_v37 = vor.u32 %v12364_v61, %v11091_v56  ;;  %v12481_v3 = vld [vmem:[%s18202_s6 + $0x9ac] sm:$0xf0]  ;;  %v12447_v51 = vld [vmem:[%s18202_s6 + $0x8a4] sm:$0xf]  ;;  %v11493_v27 = vld [vmem:[%s18202_s6 + $0x8b0] sm:$0xf0] }
 0x3dc   : > { %v5920_v54 = vadd.f32 %v5919_v1, %v5905_v63  ;;  %v12479_v34 = vld [vmem:[%s18202_s6 + $0x9a4] sm:$0xf]  ;;  %v11621_v56 = vld [vmem:[%s18202_s6 + $0x9b0] sm:$0xf0]  ;;  %v11475_v61 = vld [vmem:[%s18202_s6 + $0x880] sm:$0xf] }
 0x3dd   : > { %7072 = vmatpush.bf16.msrb.mxu1 %v11156_v15  ;;  %7086 = vmatpush.bf16.msrb.mxu3 %v11284_v49  ;;  %v11093_v15 = vld [vmem:[%s18202_s6 + $0x618] sm:$0xf0]  ;;  %v12394_v49 = vld [vmem:[%s18202_s6 + $0x70c] sm:$0xf]  ;;  %v11624_v63 = vor.u32 %v12479_v34, %v11621_v56  ;;  %v12475_v1 = vld [vmem:[%s18202_s6 + $0x984] sm:$0xf] }
 0x3de   : > { %7100 = vmatpush.bf16.msrb.mxu0 %v11160_v12  ;;  %7114 = vmatpush.bf16.msrb.mxu2 %v11288_v36  ;;  %v5947_v12 = vpop.f32.mrf.mxu2  ;;  %v11221_v36 = vld [vmem:[%s18202_s6 + $0x718] sm:$0xf0]  ;;  %v17643_v52 = vadd.f32 %v5920_v54, %v17361_v16  ;;  %v11096_v16 = vor.u32 %v12362_v4, %v11093_v15  ;;  %v11605_v4 = vld [vmem:[%s18202_s6 + $0x990] sm:$0xf0]  ;;  %v12441_v54 = vld [vmem:[%s18202_s6 + $0x86c] sm:$0xf0] }
 0x3df   : > { %v5948_v10 = vadd.f32 %v5947_v12, %v5933_v17  ;;  %v11459_v17 = vld [vmem:[%s18202_s6 + $0x860] sm:$0xf]  ;;  %v12431_v34 = vld [vmem:[%s18202_s6 + $0x824] sm:$0xf]  ;;  %v11429_v56 = vld [vmem:[%s18202_s6 + $0x830] sm:$0xf0] }
 0x3e0   : > { %v11443_v20 = vld [vmem:[%s18202_s6 + $0x840] sm:$0xf] }
 0x3e1   : > { %7073 = vmatpush.bf16.msrb.mxu1 %v11140_v11  ;;  %7087 = vmatpush.bf16.msrb.mxu3 %v11268_v14  ;;  %v11220_v11 = vor.u32 %v12396_v48, %v11219_v57  ;;  %v11525_v14 = vld [vmem:[%s18202_s6 + $0x8f0] sm:$0xf0]  ;;  %v12445_v57 = vld [vmem:[%s18202_s6 + $0x88c] sm:$0xf0]  ;;  %v11496_v48 = vor.u32 %v12447_v51, %v11493_v27 }
 0x3e2   : > { %7101 = vmatpush.bf16.msrb.mxu0 %v11144_v30  ;;  %7115 = vmatpush.bf16.msrb.mxu2 %v11272_v8  ;;  %v17655_v30 = vadd.f32 %v5948_v10, %v17372_v2  ;;  %v11224_v8 = vor.u32 %v12394_v49, %v11221_v36  ;;  %v11528_v44 = vor.u32 %v12455_v55, %v11525_v14  ;;  %v12485_v2 = vld [vmem:[%s18202_s6 + $0x9cc] sm:$0xf0]  ;;  %v12439_v10 = vld [vmem:[%s18202_s6 + $0x864] sm:$0xf]  ;;  %v11589_v55 = vld [vmem:[%s18202_s6 + $0x970] sm:$0xf0] }
 0x3e3   : > { %v11636_v9 = vor.u32 %v12485_v2, %v11635_v60  ;;  %v11476_v15 = vor.u32 %v12445_v57, %v11475_v61  ;;  %v11608_v36 = vor.u32 %v12475_v1, %v11605_v4  ;;  %v11460_v14 = vor.u32 %v12441_v54, %v11459_v17  ;;  %v11445_v2 = vld [vmem:[%s18202_s6 + $0x850] sm:$0xf0]  ;;  %v12465_v27 = vld [vmem:[%s18202_s6 + $0x92c] sm:$0xf0]  ;;  %v11411_v57 = vld [vmem:[%s18202_s6 + $0x800] sm:$0xf] }
 0x3e4   : > { %v12461_v1 = vld [vmem:[%s18202_s6 + $0x90c] sm:$0xf0]  ;;  %v12425_v4 = vld [vmem:[#allocation4 + $0x4] sm:$0xc] }
 0x3e5   : > { %7074 = vmatpush.bf16.msrb.mxu1 %v11124_v6  ;;  %7088 = vmatpush.bf16.msrb.mxu3 %v11252_v58  ;;  %v11637_v6 = vld [vmem:[%s18202_s6 + $0x9d0] sm:$0xf0]  ;;  %v11508_v58 = vor.u32 %v12453_v40, %v11507_v39  ;;  %v11571_v39 = vld [vmem:[%s18202_s6 + $0x940] sm:$0xf]  ;;  %v12469_v40 = vld [vmem:[%s18202_s6 + $0x94c] sm:$0xf0] }
 0x3e6   : > { %7102 = vmatpush.bf16.msrb.mxu0 %v11128_v50  ;;  %7116 = vmatpush.bf16.msrb.mxu2 %v11256_v32  ;;  %v12449_v50 = vld [vmem:[%s18202_s6 + $0x8ac] sm:$0xf0]  ;;  %v11512_v32 = vor.u32 %v12451_v45, %v11509_v24  ;;  %v11640_v22 = vor.u32 %v12483_v26, %v11637_v6  ;;  %v12467_v45 = vld [vmem:[%s18202_s6 + $0x944] sm:$0xf]  ;;  %v11573_v24 = vld [vmem:[%s18202_s6 + $0x950] sm:$0xf0] }
 0x3e7   : > { %v7151_v6 = vld [vmem:[#allocation4 + $0x10] sm:$0x33]  ;;  %v11576_v51 = vor.u32 %v12467_v45, %v11573_v24 }
 0x3e8   : > { %v7225_v61 = vunpack.c.h.b16 %v7151_v6 }
 0x3e9   : > { %7075 = vmatpush.bf16.msrb.mxu1 %v11108_v21  ;;  %7089 = vmatpush.bf16.msrb.mxu3 %v11236_v35  ;;  %v11492_v21 = vor.u32 %v12449_v50, %v11491_v29  ;;  %v11620_v35 = vor.u32 %v12481_v3, %v11619_v7  ;;  %v11572_v29 = vor.u32 %v12469_v40, %v11571_v39  ;;  %v11427_v50 = vld [vmem:[%s18202_s6 + $0x820] sm:$0xf] }
 0x3ea   : > { %7103 = vmatpush.bf16.msrb.mxu0 %v11112_v0  ;;  %7117 = vmatpush.bf16.msrb.mxu2 %v11240_v5  ;;  %v12443_v0 = vld [vmem:[%s18202_s6 + $0x884] sm:$0xf]  ;;  %v11477_v5 = vld [vmem:[%s18202_s6 + $0x890] sm:$0xf0] }
 0x3eb   : > { %v11480_v12 = vor.u32 %v12443_v0, %v11477_v5  ;;  %v12429_v0 = vld [vmem:[%s18202_s6 + $0x80c] sm:$0xf0]  ;;  %v11539_v5 = vld [vmem:[%s18202_s6 + $0x900] sm:$0xf] }
 0x3ec   : > { %v11412_v40 = vor.u32 %v12429_v0, %v11411_v57 }
 0x3ed   : > { %7076 = vmatpush.bf16.msrb.mxu1 %v11092_v37  ;;  %7090 = vmatpush.bf16.msrb.mxu3 %v11220_v11  ;;  %v5959_v37 = vpop.f32.mrf.mxu1 }
 0x3ee   : > { %7104 = vmatpush.bf16.msrb.mxu0 %v11096_v16  ;;  %7118 = vmatpush.bf16.msrb.mxu2 %v11224_v8  ;;  %v12437_v16 = vld [vmem:[%s18202_s6 + $0x84c] sm:$0xf0]  ;;  %v11464_v8 = vor.u32 %v12439_v10, %v11461_v31 }
 0x3f0   : > { %7077 = vmatmul.bf16.vlgmr.msrb.gmra.mxu1 %v17464_v47  ;;  %7091 = vmatmul.bf16.vlgmr.msrb.gmra.mxu3 %v17473_v46  ;;  %v5987_v11 = vpop.f32.mrf.mxu0 }
 0x3f1   : > { %7559 = vmatpush.bf16.msra.mxu1 %v11524_v62  ;;  %7573 = vmatpush.bf16.msra.mxu3 %v11652_v41  ;;  %v11592_v62 = vor.u32 %v12471_v28, %v11589_v55  ;;  %v11541_v55 = vld [vmem:[%s18202_s6 + $0x910] sm:$0xf0] }
 0x3f2   : > { %7587 = vmatpush.bf16.msra.mxu0 %v11528_v44  ;;  %7601 = vmatpush.bf16.msra.mxu2 %v11656_v18  ;;  %v12435_v44 = vld [vmem:[%s18202_s6 + $0x844] sm:$0xf]  ;;  %v11544_v24 = vor.u32 %v12459_v33, %v11541_v55  ;;  %v12446_v33 = vld [vmem:[%s18202_s6 + $0x894] sm:$0xf0]  ;;  %v12444_v55 = vld [vmem:[%s18202_s6 + $0x88c] sm:$0xf] }
 0x3f3   : > { %7105 = vmatmul.bf16.vlgmr.msrb.gmra.mxu0 %v17464_v47  ;;  %7119 = vmatmul.bf16.vlgmr.msrb.gmra.mxu2 %v17473_v46  ;;  %v11603_v47 = vld [vmem:[%s18202_s6 + $0x980] sm:$0xf]  ;;  %v12477_v46 = vld [vmem:[%s18202_s6 + $0x98c] sm:$0xf0]  ;;  %v5973_v41 = vpop.f32.mrf.mxu3  ;;  %v11448_v3 = vor.u32 %v12435_v44, %v11445_v2  ;;  %v11540_v44 = vor.u32 %v12461_v1, %v11539_v5  ;;  %v11661_v2 = vld [vmem:[%s18202_s6 + $0x9f8] sm:$0xf0] }
 0x3f4   : > { %v11604_v49 = vor.u32 %v12477_v46, %v11603_v47  ;;  %v5974_v18 = vadd.f32 %v5973_v41, %v5959_v37  ;;  %v11531_v37 = vld [vmem:[%s18202_s6 + $0x8e8] sm:$0xf]  ;;  %v12482_v1 = vld [vmem:[%s18202_s6 + $0x9b4] sm:$0xf0] }
 0x3f5   : > { %7560 = vmatpush.bf16.msra.mxu1 %v11508_v58  ;;  %7574 = vmatpush.bf16.msra.mxu3 %v11636_v9  ;;  %v11444_v9 = vor.u32 %v12437_v16, %v11443_v20  ;;  %v11659_v16 = vld [vmem:[%s18202_s6 + $0x9e8] sm:$0xf] }
 0x3f6   : > { %7588 = vmatpush.bf16.msra.mxu0 %v11512_v32  ;;  %7602 = vmatpush.bf16.msra.mxu2 %v11640_v22  ;;  %v6001_v60 = vpop.f32.mrf.mxu2  ;;  %v17782_v58 = vadd.f32 %v5974_v18, %v17429_v38  ;;  %v12433_v32 = vld [vmem:[%s18202_s6 + $0x82c] sm:$0xf0]  ;;  %v12426_v22 = vld [vmem:[#allocation4 + $0x4] sm:$0xf0]  ;;  %v11555_v38 = vld [vmem:[%s18202_s6 + $0x920] sm:$0xf] }
 0x3f7   : > { %v6002_v26 = vadd.f32 %v6001_v60, %v5987_v11  ;;  %v11428_v47 = vor.u32 %v12433_v32, %v11427_v50  ;;  %v11556_v46 = vor.u32 %v12465_v27, %v11555_v38  ;;  %v12458_v11 = vld [vmem:[%s18202_s6 + $0x8f4] sm:$0xf0]  ;;  %v11533_v18 = vld [vmem:[%s18202_s6 + $0x8f8] sm:$0xf0]  ;;  %v12488_v60 = vld [vmem:[%s18202_s6 + $0x9ec] sm:$0xf] }
 0x3f8   : > { %v5989_v10 = vpop.f32.mrf.mxu0  ;;  %v11515_v32 = vld [vmem:[%s18202_s6 + $0x8c8] sm:$0xf]  ;;  %v12486_v38 = vld [vmem:[%s18202_s6 + $0x9d4] sm:$0xf0]  ;;  %v12452_v27 = vld [vmem:[%s18202_s6 + $0x8cc] sm:$0xf] }
 0x3f9   : > { %7561 = vmatpush.bf16.msra.mxu1 %v11492_v21  ;;  %7575 = vmatpush.bf16.msra.mxu3 %v11620_v35  ;;  %v17791_v7 = vadd.f32 %v6002_v26, %v17439_v43  ;;  %v12463_v43 = vld [vmem:[%s18202_s6 + $0x924] sm:$0xf]  ;;  %v11557_v21 = vld [vmem:[%s18202_s6 + $0x930] sm:$0xf0]  ;;  %v7224_v35 = vunpack.c.l.b16 %v7151_v6  ;;  %v11532_v6 = vor.u32 %v12458_v11, %v11531_v37  ;;  %v11627_v5 = vld [vmem:[%s18202_s6 + $0x9a8] sm:$0xf] }
 0x3fa   : > { %7589 = vmatpush.bf16.msra.mxu0 %v11496_v48  ;;  %7603 = vmatpush.bf16.msra.mxu2 %v11624_v63  ;;  %v11403_v48 = vld [vmem:[#allocation4] sm:$0xc]  ;;  %v17814_v63 = vld [vmem:[#allocation4 + $0x8] sm:$0xf0]  ;;  %v11560_v17 = vor.u32 %v12463_v43, %v11557_v21  ;;  %v11645_v43 = vld [vmem:[%s18202_s6 + $0x9d8] sm:$0xf0] }
 0x3fb   : > { %v5975_v54 = vpop.f32.mrf.mxu3  ;;  %v11404_v13 = vor.u32 %v12426_v22, %v11403_v48  ;;  %v11408_v41 = vor.u32 %v12425_v4, %v17814_v63  ;;  %v12454_v22 = vld [vmem:[%s18202_s6 + $0x8d4] sm:$0xf0]  ;;  %v11499_v48 = vld [vmem:[%s18202_s6 + $0x8a8] sm:$0xf]  ;;  %v12448_v4 = vld [vmem:[%s18202_s6 + $0x8ac] sm:$0xf] }
 0x3fc   : > { %v12450_v63 = vld [vmem:[%s18202_s6 + $0x8b4] sm:$0xf0]  ;;  %v11485_v37 = vld [vmem:[%s18202_s6 + $0x898] sm:$0xf0]  ;;  %v12476_v11 = vld [vmem:[%s18202_s6 + $0x98c] sm:$0xf] }
 0x3fd   : > { %7562 = vmatpush.bf16.msra.mxu1 %v11476_v15  ;;  %7576 = vmatpush.bf16.msra.mxu3 %v11604_v49  ;;  %v5961_v15 = vpop.f32.mrf.mxu1  ;;  %v11432_v49 = vor.u32 %v12431_v34, %v11429_v56  ;;  %v7231_v26 = vrot.slane %v11404_v13, 2  ;;  %v11517_v34 = vld [vmem:[%s18202_s6 + $0x8d8] sm:$0xf0]  ;;  %v12484_v56 = vld [vmem:[%s18202_s6 + $0x9cc] sm:$0xf]  ;;  %v7234_v21 = vrot.slane %v11408_v41, 2 }
 0x3fe   : > { %7590 = vmatpush.bf16.msra.mxu0 %v11480_v12  ;;  %7604 = vmatpush.bf16.msra.mxu2 %v11608_v36  ;;  %v12427_v12 = vld [vmem:[%s18202_s6 + $0x804] sm:$0xf]  ;;  %v11413_v36 = vld [vmem:[%s18202_s6 + $0x810] sm:$0xf0]  ;;  %v5976_v31 = vadd.f32 %v5975_v54, %v5961_v15  ;;  %v6003_v28 = vpop.f32.mrf.mxu2  ;;  %v11648_v0 = vor.u32 %v12484_v56, %v11645_v43  ;;  %v11501_v15 = vld [vmem:[%s18202_s6 + $0x8b8] sm:$0xf0]  ;;  %v11500_v54 = vor.u32 %v12450_v63, %v11499_v48 }
 0x3ff   : > { %v6004_v20 = vadd.f32 %v6003_v28, %v5989_v10  ;;  %v11504_v13 = vor.u32 %v12448_v4, %v11501_v15  ;;  %v12478_v28 = vld [vmem:[%s18202_s6 + $0x994] sm:$0xf0]  ;;  %v11435_v56 = vld [vmem:[%s18202_s6 + $0x828] sm:$0xf]  ;;  %v12432_v63 = vld [vmem:[%s18202_s6 + $0x82c] sm:$0xf] }
 0x400   : > { %v17854_v39 = vadd.f32 %v5976_v31, %v17497_v23  ;;  %v11416_v23 = vor.u32 %v12427_v12, %v11413_v36  ;;  %v11628_v12 = vor.u32 %v12482_v1, %v11627_v5  ;;  %v11483_v36 = vld [vmem:[%s18202_s6 + $0x888] sm:$0xf]  ;;  %v12434_v43 = vld [vmem:[%s18202_s6 + $0x834] sm:$0xf0]  ;;  %v11565_v5 = vld [vmem:[%s18202_s6 + $0x938] sm:$0xf0] }
 0x401   : > { %7563 = vmatpush.bf16.msra.mxu1 %v11460_v14  ;;  %7577 = vmatpush.bf16.msra.mxu3 %v11588_v25  ;;  %v7228_v14 = vpack.c.b16 %v7224_v35, %v7224_v35  ;;  %v7229_v25 = vpack.c.b16 %v7225_v61, %v7225_v61  ;;  %v17866_v45 = vadd.f32 %v6004_v20, %v17505_v53  ;;  %v11643_v53 = vld [vmem:[%s18202_s6 + $0x9c8] sm:$0xf]  ;;  %v12466_v48 = vld [vmem:[%s18202_s6 + $0x934] sm:$0xf0] }
 0x402   : > { %7591 = vmatpush.bf16.msra.mxu0 %v11464_v8  ;;  %7605 = vmatpush.bf16.msra.mxu2 %v11592_v62  ;;  %v12490_v8 = vld [vmem:[%s18202_s6 + $0x9f4] sm:$0xf0]  ;;  %v12456_v62 = vld [vmem:[%s18202_s6 + $0x8ec] sm:$0xf]  ;;  %v11516_v61 = vor.u32 %v12454_v22, %v11515_v32  ;;  %v11644_v57 = vor.u32 %v12486_v38, %v11643_v53  ;;  %v11611_v31 = vld [vmem:[%s18202_s6 + $0x988] sm:$0xf]  ;;  %v11436_v1 = vor.u32 %v12434_v43, %v11435_v56 }
 0x403   : > { %v7235_v50 = vrot.slane %v7229_v25, 2  ;;  %v11484_v25 = vor.u32 %v12446_v33, %v11483_v36  ;;  %v11612_v20 = vor.u32 %v12478_v28, %v11611_v31  ;;  %v11579_v32 = vld [vmem:[%s18202_s6 + $0x948] sm:$0xf]  ;;  %v12470_v22 = vld [vmem:[%s18202_s6 + $0x954] sm:$0xf0] }
 0x404   : > { %v12468_v53 = vld [vmem:[%s18202_s6 + $0x94c] sm:$0xf]  ;;  %v11581_v38 = vld [vmem:[%s18202_s6 + $0x958] sm:$0xf0]  ;;  %v11419_v15 = vld [vmem:[%s18202_s6 + $0x808] sm:$0xf] }
 0x405   : > { %7564 = vmatpush.bf16.msra.mxu1 %v11444_v9  ;;  %7578 = vmatpush.bf16.msra.mxu3 %v11572_v29  ;;  %v11660_v9 = vor.u32 %v12490_v8, %v11659_v16  ;;  %v7232_v29 = vrot.slane %v7228_v14, 2  ;;  %v11613_v14 = vld [vmem:[%s18202_s6 + $0x998] sm:$0xf0]  ;;  %v11467_v16 = vld [vmem:[%s18202_s6 + $0x868] sm:$0xf] }
 0x406   : > { %7592 = vmatpush.bf16.msra.mxu0 %v11448_v3  ;;  %7606 = vmatpush.bf16.msra.mxu2 %v11576_v51  ;;  %v11536_v3 = vor.u32 %v12456_v62, %v11533_v18  ;;  %v11664_v51 = vor.u32 %v12488_v60, %v11661_v2  ;;  %v12442_v8 = vld [vmem:[%s18202_s6 + $0x874] sm:$0xf0]  ;;  %v11488_v62 = vor.u32 %v12444_v55, %v11485_v37  ;;  %v12440_v18 = vld [vmem:[%s18202_s6 + $0x86c] sm:$0xf]  ;;  %v11469_v60 = vld [vmem:[%s18202_s6 + $0x878] sm:$0xf0] }
 0x407   : > { %v17893_v35 = vsel %vm7230_vm12, %v7231_v26, %v7232_v29  ;;  %v11616_v41 = vor.u32 %v12476_v11, %v11613_v14  ;;  %v12472_v2 = vld [vmem:[%s18202_s6 + $0x96c] sm:$0xf]  ;;  %v11472_v29 = vor.u32 %v12440_v18, %v11469_v60  ;;  %v12462_v36 = vld [vmem:[%s18202_s6 + $0x914] sm:$0xf0]  ;;  %v11549_v31 = vld [vmem:[%s18202_s6 + $0x918] sm:$0xf0] }
 0x408   : > { %v12428_v33 = vld [vmem:[%s18202_s6 + $0x80c] sm:$0xf]  ;;  %v7744_v43 = vld [vmem:[%s18080_s22 + $0x20] sm:$0x11] }
 0x409   : > { %7565 = vmatpush.bf16.msra.mxu1 %v11428_v47  ;;  %7579 = vmatpush.bf16.msra.mxu3 %v11556_v46  ;;  %v17902_v47 = vsel %vm7230_vm12, %v7234_v21, %v7235_v50  ;;  %v11520_v46 = vor.u32 %v12452_v27, %v11517_v34  ;;  %v11580_v34 = vor.u32 %v12470_v22, %v11579_v32 }
 0x40a   : > { %7593 = vmatpush.bf16.msra.mxu0 %v11432_v49  ;;  %7607 = vmatpush.bf16.msra.mxu2 %v11560_v17  ;;  %v12480_v49 = vld [vmem:[%s18202_s6 + $0x9ac] sm:$0xf]  ;;  %v11629_v17 = vld [vmem:[%s18202_s6 + $0x9b8] sm:$0xf0] }
 0x40b   : > { %v11632_v10 = vor.u32 %v12480_v49, %v11629_v17  ;;  %v12430_v49 = vld [vmem:[%s18202_s6 + $0x814] sm:$0xf0] }
 0x40c   : > { %v11420_v37 = vor.u32 %v12430_v49, %v11419_v15 }
 0x40d   : > { %7566 = vmatpush.bf16.msra.mxu1 %v11412_v40  ;;  %7580 = vmatpush.bf16.msra.mxu3 %v11540_v44  ;;  %v11595_v40 = vld [vmem:[%s18202_s6 + $0x968] sm:$0xf]  ;;  %v12474_v44 = vld [vmem:[%s18202_s6 + $0x974] sm:$0xf0]  ;;  %v18046_v28 = vpop.f32.mrf.mxu1 }
 0x40e   : > { %7594 = vmatpush.bf16.msra.mxu0 %v11416_v23  ;;  %7608 = vmatpush.bf16.msra.mxu2 %v11544_v24  ;;  %v11597_v23 = vld [vmem:[%s18202_s6 + $0x978] sm:$0xf0]  ;;  %v11468_v24 = vor.u32 %v12442_v8, %v11467_v16  ;;  %v11596_v26 = vor.u32 %v12474_v44, %v11595_v40 }
 0x40f   : > { %v11600_v50 = vor.u32 %v12472_v2, %v11597_v23 }
 0x410   : > { %7567 = vmatmul.bf16.vlgmr.msra.gmra.mxu1 %v17893_v35  ;;  %7581 = vmatmul.bf16.vlgmr.msra.gmra.mxu3 %v17902_v47  ;;  %v18048_v55 = vpop.f32.mrf.mxu0 }
 0x411   : > { %7615 = vmatpush.bf16.msrb.mxu1 %v11532_v6  ;;  %7629 = vmatpush.bf16.msrb.mxu3 %v11660_v9  ;;  %v11451_v6 = vld [vmem:[%s18202_s6 + $0x848] sm:$0xf]  ;;  %v12438_v9 = vld [vmem:[%s18202_s6 + $0x854] sm:$0xf0] }
 0x412   : > { %7643 = vmatpush.bf16.msrb.mxu0 %v11536_v3  ;;  %7657 = vmatpush.bf16.msrb.mxu2 %v11664_v51  ;;  %v12436_v3 = vld [vmem:[%s18202_s6 + $0x84c] sm:$0xf]  ;;  %v11453_v51 = vld [vmem:[%s18202_s6 + $0x858] sm:$0xf0]  ;;  %v11452_v27 = vor.u32 %v12438_v9, %v11451_v6 }
 0x413   : > { %7595 = vmatmul.bf16.vlgmr.msra.gmra.mxu0 %v17893_v35  ;;  %7609 = vmatmul.bf16.vlgmr.msra.gmra.mxu2 %v17902_v47  ;;  %v11456_v21 = vor.u32 %v12436_v3, %v11453_v51  ;;  %v18050_v14 = vpop.f32.mrf.mxu3 }
 0x414   : > { %v6463_v49 = vadd.f32 %v18050_v14, %v18046_v28 }
 0x415   : > { %7616 = vmatpush.bf16.msrb.mxu1 %v11516_v61  ;;  %7630 = vmatpush.bf16.msrb.mxu3 %v11644_v57  ;;  %v11584_v61 = vor.u32 %v12468_v53, %v11581_v38  ;;  %v11563_v57 = vld [vmem:[%s18202_s6 + $0x928] sm:$0xf]  ;;  %v18056_v8 = vpop.f32.mrf.mxu1 }
 0x416   : > { %7644 = vmatpush.bf16.msrb.mxu0 %v11520_v46  ;;  %7658 = vmatpush.bf16.msrb.mxu2 %v11648_v0  ;;  %v11437_v46 = vld [vmem:[%s18202_s6 + $0x838] sm:$0xf0]  ;;  %v12464_v0 = vld [vmem:[%s18202_s6 + $0x92c] sm:$0xf]  ;;  %v11564_v4 = vor.u32 %v12466_v48, %v11563_v57  ;;  %v6490_v16 = vpop.f32.mrf.mxu2 }
 0x417   : > { %v11440_v17 = vor.u32 %v12432_v63, %v11437_v46  ;;  %v7745_v63 = vsel %vm7743_vm1, 0, %v7744_v43 }
 0x418   : > { %7746 = vst [vmem:[%s18080_s22 + $0x20] sm:$0x11] %v7745_v63 }
 0x419   : > { %7617 = vmatpush.bf16.msrb.mxu1 %v11500_v54  ;;  %7631 = vmatpush.bf16.msrb.mxu3 %v11628_v12  ;;  %v11568_v54 = vor.u32 %v12464_v0, %v11565_v5  ;;  %v11547_v12 = vld [vmem:[%s18202_s6 + $0x908] sm:$0xf] }
 0x41a   : > { %7645 = vmatpush.bf16.msrb.mxu0 %v11504_v13  ;;  %7659 = vmatpush.bf16.msrb.mxu2 %v11632_v10  ;;  %v11421_v13 = vld [vmem:[%s18202_s6 + $0x818] sm:$0xf0]  ;;  %v12460_v10 = vld [vmem:[%s18202_s6 + $0x90c] sm:$0xf]  ;;  %v11548_v11 = vor.u32 %v12462_v36, %v11547_v12 }
 0x41d   : > { %7618 = vmatpush.bf16.msrb.mxu1 %v11484_v25  ;;  %7632 = vmatpush.bf16.msrb.mxu3 %v11612_v20  ;;  %v11424_v25 = vor.u32 %v12428_v33, %v11421_v13  ;;  %v11552_v20 = vor.u32 %v12460_v10, %v11549_v31  ;;  %v18116_v33 = vld [vmem:[%s18203_s7] sm:$0xf]  ;;  %v6559_v13 = vadd.f32 %v6463_v49, %v17574_v19 }
 0x41e   : > { %7646 = vmatpush.bf16.msrb.mxu0 %v11488_v62  ;;  %7660 = vmatpush.bf16.msrb.mxu2 %v11616_v41  ;;  %v18058_v62 = vpop.f32.mrf.mxu0  ;;  %v18060_v41 = vpop.f32.mrf.mxu3  ;;  %v7705_v28 = vperm.slane %v18116_v33, 0 }
 0x41f   : > { %v18062_v40 = vpop.f32.mrf.mxu2 }
 0x420   : > { %v6493_v19 = vadd.f32 %v18062_v40, %v18058_v62 }
 0x421   : > { %7619 = vmatpush.bf16.msrb.mxu1 %v11468_v24  ;;  %7633 = vmatpush.bf16.msrb.mxu3 %v11596_v26 }
 0x422   : > { %7647 = vmatpush.bf16.msrb.mxu0 %v11472_v29  ;;  %7661 = vmatpush.bf16.msrb.mxu2 %v11600_v50 }
 0x425   : > { %7620 = vmatpush.bf16.msrb.mxu1 %v11452_v27  ;;  %7634 = vmatpush.bf16.msrb.mxu3 %v11580_v34 }
 0x426   : > { %7648 = vmatpush.bf16.msrb.mxu0 %v11456_v21  ;;  %7662 = vmatpush.bf16.msrb.mxu2 %v11584_v61  ;;  %v7747_v21 = vld [vmem:[%s18080_s22 + $0x28] sm:$0x11] }
 0x427   : > { %v7748_v46 = vsel %vm7743_vm1, 0, %v7747_v21 }
 0x428   : > { %7749 = vst [vmem:[%s18080_s22 + $0x28] sm:$0x11] %v7748_v46 }
 0x429   : > { %7621 = vmatpush.bf16.msrb.mxu1 %v11436_v1  ;;  %7635 = vmatpush.bf16.msrb.mxu3 %v11564_v4 }
 0x42a   : > { %7649 = vmatpush.bf16.msrb.mxu0 %v11440_v17  ;;  %7663 = vmatpush.bf16.msrb.mxu2 %v11568_v54  ;;  %v6491_v17 = vadd.f32 %v6490_v16, %v18048_v55  ;;  %v7706_v16 = vperm.slane %v18116_v33, 1 }
 0x42c   : > { %v6560_v31 = vadd.f32 %v6491_v17, %v17583_v42 }
 0x42d   : > { %7622 = vmatpush.bf16.msrb.mxu1 %v11420_v37  ;;  %7636 = vmatpush.bf16.msrb.mxu3 %v11548_v11  ;;  %v6504_v44 = vpop.f32.mrf.mxu1 }
 0x42e   : > { %7650 = vmatpush.bf16.msrb.mxu0 %v11424_v25  ;;  %7664 = vmatpush.bf16.msrb.mxu2 %v11552_v20 }
 0x430   : > { %7623 = vmatmul.bf16.vlgmr.msrb.gmra.mxu1 %v17893_v35  ;;  %7637 = vmatmul.bf16.vlgmr.msrb.gmra.mxu3 %v17902_v47  ;;  %v6532_v18 = vpop.f32.mrf.mxu0 }
 0x431   : > { %7651 = vmatmul.bf16.vlgmr.msrb.gmra.mxu0 %v17893_v35  ;;  %7665 = vmatmul.bf16.vlgmr.msrb.gmra.mxu2 %v17902_v47 }
 0x433   : > { %v6518_v60 = vpop.f32.mrf.mxu3 }
 0x434   : > { %v6519_v2 = vadd.f32 %v6518_v60, %v6504_v44  ;;  %v6465_v44 = vadd.f32 %v18060_v41, %v18056_v8 }
 0x435   : > { %v6506_v47 = vpop.f32.mrf.mxu1 }
 0x436   : > { %v6546_v23 = vpop.f32.mrf.mxu2  ;;  %v18065_v26 = vadd.f32 %v6519_v2, %v17782_v58 }
 0x437   : > { %v6547_v24 = vadd.f32 %v6546_v23, %v6532_v18 }
 0x438   : > { %v6534_v9 = vpop.f32.mrf.mxu0 }
 0x439   : > { %v18068_v35 = vadd.f32 %v6547_v24, %v17791_v7 }
 0x43b   : > { %v6520_v6 = vpop.f32.mrf.mxu3 }
 0x43c   : > { %v6521_v29 = vadd.f32 %v6520_v6, %v6506_v47  ;;  %v6563_v47 = vadd.f32 %v6465_v44, %v17643_v52 }
 0x43e   : > { %v6548_v50 = vpop.f32.mrf.mxu2  ;;  %v18071_v22 = vadd.f32 %v6521_v29, %v17854_v39  ;;  %v6564_v29 = vadd.f32 %v6493_v19, %v17655_v30 }
 0x43f   : > { %v6549_v32 = vadd.f32 %v6548_v50, %v6534_v9  ;;  %v7736_v9 = vld [vmem:[%s18080_s22 + $0x8] sm:$0x11] }
 0x440   : > { %v7737_v41 = vsel %vm14826_vm9, 0, %v7736_v9 }
 0x441   : > { %v18074_v3 = vadd.f32 %v6549_v32, %v17866_v45  ;;  %v7733_v45 = vld [vmem:[%s18080_s22] sm:$0x11]  ;;  %7738 = vst [vmem:[%s18080_s22 + $0x8] sm:$0x11] %v7737_v41 }
 0x442   : > { %v7734_v56 = vsel %vm14826_vm9, 0, %v7733_v45 }
 0x443   : > { %7735 = vst [vmem:[%s18080_s22] sm:$0x11] %v7734_v56 }
 0x44a   : > { %v7797_v63 = vld [vmem:[%s18080_s22] sm:$0xff] }
 0x44d   : > { %v7022_v51 = vpop.f32.mrf.mxu1 }
 0x450   : > { %v7050_v53 = vpop.f32.mrf.mxu0 }
 0x453   : > { %v7036_v38 = vpop.f32.mrf.mxu3 }
 0x454   : > { %v7037_v54 = vadd.f32 %v7036_v38, %v7022_v51 }
 0x455   : > { %v7024_v27 = vpop.f32.mrf.mxu1 }
 0x456   : > { %v7064_v58 = vpop.f32.mrf.mxu2  ;;  %v7133_v11 = vadd.f32 %v7037_v54, %v6559_v13 }
 0x457   : > { %v7065_v12 = vadd.f32 %v7064_v58, %v7050_v53 }
 0x458   : > { %v7052_v7 = vpop.f32.mrf.mxu0 }
 0x459   : > { %v7134_v14 = vadd.f32 %v7065_v12, %v6560_v31 }
 0x45b   : > { %v7038_v34 = vpop.f32.mrf.mxu3 }
 0x45c   : > { %v7039_v42 = vadd.f32 %v7038_v34, %v7024_v27 }
 0x45e   : > { %v7066_v39 = vpop.f32.mrf.mxu2  ;;  %v7137_v62 = vadd.f32 %v7039_v42, %v6563_v47 }
 0x45f   : > { %v7067_v23 = vadd.f32 %v7066_v39, %v7052_v7 }
 0x461   : > { %v7138_v38 = vadd.f32 %v7067_v23, %v6564_v29 }
 0x46d   : > { %v18089_v61 = vpop.f32.mrf.mxu1 }
 0x470   : > { %v18094_v57 = vpop.f32.mrf.mxu0 }
 0x473   : > { %v18096_v48 = vpop.f32.mrf.mxu3 }
 0x475   : > { %v18102_v5 = vpop.f32.mrf.mxu1 }
 0x476   : > { %v18098_v0 = vpop.f32.mrf.mxu2 }
 0x478   : > { %v18104_v1 = vpop.f32.mrf.mxu0 }
 0x47b   : > { %v18106_v4 = vpop.f32.mrf.mxu3 }
 0x47e   : > { %v18108_v15 = vpop.f32.mrf.mxu2 }
 0x47f   : > { %v7123_v9 = vadd.f32 %v18108_v15, %v18104_v1 }
 0x48d   : > { %v7568_v36 = vpop.f32.mrf.mxu1 }
 0x490   : > { %v7596_v10 = vpop.f32.mrf.mxu0 }
 0x493   : > { %v7582_v37 = vpop.f32.mrf.mxu3 }
 0x494   : > { %v7583_v25 = vadd.f32 %v7582_v37, %v7568_v36  ;;  %v7805_v37 = vld [vmem:[%s18080_s22 + $0x20] sm:$0x11] }
 0x495   : > { %v7570_v32 = vpop.f32.mrf.mxu1 }
 0x496   : > { %v7610_v55 = vpop.f32.mrf.mxu2  ;;  %v7679_v18 = vadd.f32 %v7583_v25, %v7133_v11 }
 0x497   : > { %v7611_v20 = vadd.f32 %v7610_v55, %v7596_v10  ;;  %v7093_v55 = vadd.f32 %v18096_v48, %v18089_v61 }
 0x498   : > { %v7713_v2 = vadd.f32 %v7705_v28, %v7679_v18  ;;  %v7598_v40 = vpop.f32.mrf.mxu0 }
 0x499   : > { %v7680_v60 = vadd.f32 %v7611_v20, %v7134_v14 }
 0x49a   : > { %v7721_v6 = vmax.f32 %v7713_v2, 0.0  ;;  %v7707_v2 = vperm.slane %v18116_v33, 2 }
 0x49b   : > { %v7714_v24 = vadd.f32 %v7706_v16, %v7680_v60  ;;  %v7584_v8 = vpop.f32.mrf.mxu3  ;;  %v7135_v60 = vadd.f32 %v7093_v55, %v18065_v26 }
 0x49c   : > { %v7585_v51 = vadd.f32 %v7584_v8, %v7570_v32 }
 0x49d   : > { %v7722_v50 = vmax.f32 %v7714_v24, 0.0  ;;  %v7708_v24 = vperm.slane %v18116_v33, 3 }
 0x49e   : > { %v7612_v53 = vpop.f32.mrf.mxu2  ;;  %v7683_v27 = vadd.f32 %v7585_v51, %v7137_v62 }
 0x49f   : > { %v7729_v52 = vpack.c.bf16 %v7722_v50, %v7721_v6  ;;  %v7613_v58 = vadd.f32 %v7612_v53, %v7598_v40  ;;  %v7140_v40 = vadd.f32 %v7123_v9, %v18074_v3 }
 0x4a0   : > { %v7717_v45 = vadd.f32 %v7705_v28, %v7683_v27  ;;  %v7800_v27 = vld [vmem:[%s18080_s22 + $0x8] sm:$0xff] }
 0x4a1   : > { %v7753_v7 = vshrl.u32 %v7729_v52, 16  ;;  %v7684_v39 = vadd.f32 %v7613_v58, %v7138_v38  ;;  %v7756_v43 = vshll.u32 %v7729_v52, 16 }
 0x4a2   : > { %v7725_v46 = vmax.f32 %v7717_v45, 0.0 }
 0x4a3   : > { %v7755_v56 = vrot.slane %v7753_v7, 7  ;;  %v7718_v21 = vadd.f32 %v7706_v16, %v7684_v39  ;;  %v7121_v16 = vadd.f32 %v18098_v0, %v18094_v57  ;;  %v7095_v57 = vadd.f32 %v18106_v4, %v18102_v5 }
 0x4a5   : > { %v7758_v49 = vor.u32 %v7756_v43, %v7755_v56  ;;  %v7726_v17 = vmax.f32 %v7718_v21, 0.0  ;;  %v7766_v11 = vrot.slane %v7755_v56, 4  ;;  %v7136_v48 = vadd.f32 %v7121_v16, %v18068_v35 }
 0x4a6   : > { %v7139_v35 = vadd.f32 %v7095_v57, %v18071_v22 }
 0x4a7   : > { %v7798_v54 = vsel %vm7796_vm7, %v7758_v49, %v7797_v63  ;;  %v7731_v12 = vpack.c.bf16 %v7726_v17, %v7725_v46  ;;  %v7808_v63 = vld [vmem:[%s18080_s22 + $0x28] sm:$0x11] }
 0x4a8   : > { %7799 = vst [vmem:[%s18080_s22] sm:$0xff] %v7798_v54 }
 0x4a9   : > { %v7768_v36 = vshrl.u32 %v7731_v12, 16  ;;  %v7771_v10 = vshll.u32 %v7731_v12, 16 }
 0x4ab   : > { %v7770_v13 = vrot.slane %v7768_v36, 7 }
 0x4ad   : > { %v7773_v25 = vor.u32 %v7771_v10, %v7770_v13  ;;  %v7784_v28 = vrot.slane %v7770_v13, 4  ;;  %v7624_v44 = vpop.f32.mrf.mxu1 }
 0x4ae   : > { %v7652_v18 = vpop.f32.mrf.mxu0 }
 0x4af   : > { %v7774_v14 = vsel %vm18154_vm10, %v7766_v11, %v7773_v25  ;;  %v7806_v20 = vsel %vm14826_vm9, %v7784_v28, %v7805_v37 }
 0x4b0   : > { %7803 = vst [vmem:[%s18080_s22 + $0x10] sm:$0xff] %v7774_v14 }
 0x4b1   : > { %7807 = vst [vmem:[%s18080_s22 + $0x20] sm:$0x11] %v7806_v20 }
 0x4b3   : > { %v7638_v19 = vpop.f32.mrf.mxu3 }
 0x4b4   : > { %v7639_v42 = vadd.f32 %v7638_v19, %v7624_v44  ;;  %v7666_v61 = vpop.f32.mrf.mxu2 }
 0x4b5   : > { %v7667_v23 = vadd.f32 %v7666_v61, %v7652_v18  ;;  %v7626_v32 = vpop.f32.mrf.mxu1 }
 0x4b6   : > { %v7681_v47 = vadd.f32 %v7639_v42, %v7135_v60  ;;  %v7654_v41 = vpop.f32.mrf.mxu0 }
 0x4b7   : > { %v7682_v6 = vadd.f32 %v7667_v23, %v7136_v48 }
 0x4b8   : > { %v7715_v0 = vadd.f32 %v7707_v2, %v7681_v47 }
 0x4b9   : > { %v7716_v29 = vadd.f32 %v7708_v24, %v7682_v6 }
 0x4ba   : > { %v7723_v26 = vmax.f32 %v7715_v0, 0.0 }
 0x4bb   : > { %v7724_v50 = vmax.f32 %v7716_v29, 0.0  ;;  %v7640_v8 = vpop.f32.mrf.mxu3 }
 0x4bc   : > { %v7641_v62 = vadd.f32 %v7640_v8, %v7626_v32  ;;  %v7668_v33 = vpop.f32.mrf.mxu2 }
 0x4bd   : > { %v7730_v51 = vpack.c.bf16 %v7724_v50, %v7723_v26  ;;  %v7669_v5 = vadd.f32 %v7668_v33, %v7654_v41 }
 0x4be   : > { %v7685_v4 = vadd.f32 %v7641_v62, %v7139_v35 }
 0x4bf   : > { %v7760_v53 = vshrl.u32 %v7730_v51, 16  ;;  %v7686_v1 = vadd.f32 %v7669_v5, %v7140_v40  ;;  %v7763_v52 = vshll.u32 %v7730_v51, 16 }
 0x4c0   : > { %v7719_v15 = vadd.f32 %v7707_v2, %v7685_v4 }
 0x4c1   : > { %v7762_v38 = vrot.slane %v7760_v53, 7  ;;  %v7720_v58 = vadd.f32 %v7708_v24, %v7686_v1 }
 0x4c2   : > { %v7727_v7 = vmax.f32 %v7719_v15, 0.0 }
 0x4c3   : > { %v7765_v22 = vor.u32 %v7763_v52, %v7762_v38  ;;  %v7728_v39 = vmax.f32 %v7720_v58, 0.0  ;;  %v7775_v46 = vrot.slane %v7762_v38, 4 }
 0x4c5   : > { %v7801_v3 = vsel %vm7796_vm7, %v7765_v22, %v7800_v27  ;;  %v7732_v45 = vpack.c.bf16 %v7728_v39, %v7727_v7 }
 0x4c6   : > { %7802 = vst [vmem:[%s18080_s22 + $0x8] sm:$0xff] %v7801_v3 }
 0x4c7   : > { %v7777_v56 = vshrl.u32 %v7732_v45, 16  ;;  %v7780_v21 = vshll.u32 %v7732_v45, 16 }
 0x4c9   : > { %v7779_v43 = vrot.slane %v7777_v56, 7 }
 0x4cb   : > { %v7782_v49 = vor.u32 %v7780_v21, %v7779_v43  ;;  %v7785_v17 = vrot.slane %v7779_v43, 4 }
 0x4cd   : > { %v7783_v54 = vsel %vm18154_vm10, %v7775_v46, %v7782_v49  ;;  %v7809_v12 = vsel %vm14826_vm9, %v7785_v17, %v7808_v63 }
 0x4ce   : > { %7804 = vst [vmem:[%s18080_s22 + $0x18] sm:$0xff] %v7783_v54 }
 0x4cf   : > { %7810 = vst [vmem:[%s18080_s22 + $0x28] sm:$0x11] %v7809_v12 }
 0x4d0 PF: > { %s18_s27 = sadd.s32 1, %s12509_s27  }
 0x4d1   : > { %p15_p4 = scmp.ge.s32.totalorder %s18_s27, 4  }
 0x4d3   :  { %17 = sbr.rel (!%p15_p4) target bundleno = 1 (0x1), region = 88 }

// kernel: tile.48
= control target key start
LH: loop header
LB: loop body
LE: loop exit
PB: predicated region body
PF: predicated region fallthrough
CT: control target
= control target key end

     0   :  { %s22_s0 = inlined_call_operand.vmem [shape: f32[32], index: 0, kind: input, shape index: {}]   ;;  %s23_s1 = inlined_call_operand.vmem [shape: f32[8,32], index: 1, kind: output, shape index: {}]  }
   0x1   :  { %v4_v0 = vld [vmem:[%s22_s0] ss:$0 sm:$0xff] }
   0x2   :  { %5 = vst [vmem:[%s23_s1] sm:$0xff] %v4_v0 }

// kernel: tile.49
= control target key start
LH: loop header
LB: loop body
LE: loop exit
PB: predicated region body
PF: predicated region fallthrough
CT: control target
= control target key end

     0   :  { %s7_s6 = smov 3  ;;  %s46_s9 = smov 96   ;;  %vm4_vm0 = vcmask 261120   ;;  %vm11_vm1 = vcmask 1048320   ;;  %vm18_vm2 = vcmask 785920   ;;  %vm25_vm3 = vcmask 523520   ;;  %s77_s0 = inlined_call_operand.vmem [shape: f32[8,32], index: 0, kind: input, shape index: {}]   ;;  %s78_s1 = inlined_call_operand.vmem [shape: f32[1,256], index: 1, kind: output, shape index: {}]  }
   0x1   :  { %v39_v0 = vld [vmem:[%s77_s0 + $0x3] ss:$4 sm:%s7_s6]   ;;  %s21_s10 = smov 3  ;;  %s14_s13 = smov 3 }
   0x2   :  { %9 = vrot.lane.b32.xlu0 %v39_v0, %s46_s9  ;;  %v41_v1 = vld [vmem:[%s77_s0 + $0x1] ss:$4 sm:%s21_s10]   ;;  %s47_s14 = smov 32   ;;  %s48_s17 = smov 64  }
   0x3   :  { %23 = vrot.lane.b32.xlu1 %v41_v1, %s47_s14  ;;  %v40_v2 = vld [vmem:[%s77_s0 + $0x2] ss:$4 sm:%s14_s13]   ;;  %s2_s18 = smov 3 }
   0x4   :  { %v3_v3 = vld [vmem:[%s77_s0] ss:$4 sm:%s2_s18]  }
   0x5   :  { %5 = vst.msk [vmem:[#allocation0] ss:$8 sm:$0x3] %vm4_vm0, %v3_v3  }
   0xa   :  { %16 = vrot.lane.b32.xlu0 %v40_v2, %s48_s17 }
  0x74   :  { %v10_v4 = vpop.permute.xlu0 %9  }
  0x75   :  { %12 = vst.msk [vmem:[#allocation0] ss:$8 sm:$0x3] %vm11_vm1, %v10_v4   ;;  %v24_v5 = vpop.permute.xlu1 %23  }
  0x7c   :  { %v17_v6 = vpop.permute.xlu0 %16  }
  0x7d   :  { %19 = vst.msk [vmem:[#allocation0] ss:$8 sm:$0x3] %vm18_vm2, %v17_v6  }
  0x7e   :  { %26 = vst.msk [vmem:[#allocation0] ss:$8 sm:$0x3] %vm25_vm3, %v24_v5  }
  0x85   :  { %v29_v7 = vld [vmem:[#allocation0] sm:$0x1]  ;;  %v34_v8 = vld [vmem:[#allocation0 + $0x8] sm:$0x1] }
  0x86   :  { %32 = vst [vmem:[%s78_s1] sm:$0x1] %v29_v7 }
  0x87   :  { %42 = vst [vmem:[%s78_s1 + $0x1] sm:$0x1] %v34_v8 }

// kernel: tile.58
= control target key start
LH: loop header
LB: loop body
LE: loop exit
PB: predicated region body
PF: predicated region fallthrough
CT: control target
= control target key end

     0   :  { %s22_s0 = inlined_call_operand.vmem [shape: f32[4], index: 0, kind: input, shape index: {}]   ;;  %s23_s1 = inlined_call_operand.vmem [shape: f32[8,4], index: 1, kind: output, shape index: {}]  }
   0x1   :  { %v4_v0 = vld [vmem:[%s22_s0] ss:$0 sm:$0xff] }
   0x2   :  { %5 = vst [vmem:[%s23_s1] sm:$0xff] %v4_v0 }

// kernel: tile.59
= control target key start
LH: loop header
LB: loop body
LE: loop exit
PB: predicated region body
PF: predicated region fallthrough
CT: control target
= control target key end

     0   :  { %s67_s10 = smov 28   ;;  %s68_s11 = smov 20   ;;  %vm3_vm0 = vcmask 31744   ;;  %vm9_vm1 = vcmask 261344   ;;  %vm15_vm2 = vcmask 228544   ;;  %vm21_vm3 = vcmask 195744   ;;  %s111_s0 = inlined_call_operand.vmem [shape: f32[8,4], index: 0, kind: input, shape index: {}]   ;;  %s112_s1 = inlined_call_operand.vmem [shape: f32[1,32], index: 1, kind: output, shape index: {}]  }
   0x1   :  { %v53_v0 = vld [vmem:[%s111_s0 + $0x7] sm:$0x1]   ;;  %v55_v1 = vld [vmem:[%s111_s0 + $0x5] sm:$0x1]   ;;  %v57_v2 = vld [vmem:[%s111_s0 + $0x3] sm:$0x1]  }
   0x2   :  { %7 = vrot.lane.b32.xlu0 %v53_v0, %s67_s10  ;;  %19 = vrot.lane.b32.xlu1 %v55_v1, %s68_s11  ;;  %s69_s14 = smov 12   ;;  %v54_v3 = vld [vmem:[%s111_s0 + $0x6] sm:$0x1]   ;;  %v56_v4 = vld [vmem:[%s111_s0 + $0x4] sm:$0x1]   ;;  %s70_s21 = smov 24  }
   0x3   :  { %31 = vrot.lane.b32.xlu2 %v57_v2, %s69_s14  ;;  %v58_v5 = vld [vmem:[%s111_s0 + $0x2] sm:$0x1]   ;;  %s71_s22 = smov 16   ;;  %s72_s23 = smov 8   ;;  %v59_v6 = vld [vmem:[%s111_s0 + $0x1] sm:$0x1]  }
   0x4   :  { %s73_s26 = smov 4   ;;  %v2_v7 = vld [vmem:[%s111_s0] sm:$0x1]   ;;  %vm27_vm4 = vcmask 162944   ;;  %vm33_vm5 = vcmask 130144   ;;  %vm39_vm6 = vcmask 97344  }
   0x5   :  { %4 = vst.msk [vmem:[#allocation0] sm:$0x1] %vm3_vm0, %v2_v7   ;;  %vm45_vm7 = vcmask 64544  }
   0xa   :  { %13 = vrot.lane.b32.xlu0 %v54_v3, %s70_s21  ;;  %25 = vrot.lane.b32.xlu1 %v56_v4, %s71_s22 }
   0xb   :  { %37 = vrot.lane.b32.xlu2 %v58_v5, %s72_s23 }
  0x12   :  { %43 = vrot.lane.b32.xlu0 %v59_v6, %s73_s26 }
  0x5d   :  { %v32_v8 = vpop.permute.xlu2 %31  }
  0x65   :  { %v38_v9 = vpop.permute.xlu2 %37  }
  0x74   :  { %v8_v10 = vpop.permute.xlu0 %7   ;;  %v20_v11 = vpop.permute.xlu1 %19  }
  0x75   :  { %10 = vst.msk [vmem:[#allocation0] sm:$0x1] %vm9_vm1, %v8_v10  }
  0x7c   :  { %v14_v12 = vpop.permute.xlu0 %13   ;;  %v26_v13 = vpop.permute.xlu1 %25  }
  0x7d   :  { %16 = vst.msk [vmem:[#allocation0] sm:$0x1] %vm15_vm2, %v14_v12  }
  0x7e   :  { %22 = vst.msk [vmem:[#allocation0] sm:$0x1] %vm21_vm3, %v20_v11  }
  0x7f   :  { %28 = vst.msk [vmem:[#allocation0] sm:$0x1] %vm27_vm4, %v26_v13  }
  0x80   :  { %34 = vst.msk [vmem:[#allocation0] sm:$0x1] %vm33_vm5, %v32_v8  }
  0x81   :  { %40 = vst.msk [vmem:[#allocation0] sm:$0x1] %vm39_vm6, %v38_v9  }
  0x84   :  { %v44_v14 = vpop.permute.xlu0 %43  }
  0x85   :  { %46 = vst.msk [vmem:[#allocation0] sm:$0x1] %vm45_vm7, %v44_v14  }
  0x8c   :  { %v49_v15 = vld [vmem:[#allocation0] sm:$0x1] }
  0x8d   :  { %52 = vst [vmem:[%s112_s1] sm:$0x1] %v49_v15 }

// kernel: net_csi_forward.3
= control target key start
LH: loop header
LB: loop body
LE: loop exit
PB: predicated region body
PF: predicated region fallthrough
CT: control target
= control target key end

     0   :  { %s4835_s27 = smov 0   ;;  %s6593_s0 = inlined_call_operand.vmem [shape: bf16[2,9,1024], index: 0, kind: input, shape index: {}]   ;;  %s6594_s1 = inlined_call_operand.vmem [shape: bf16[1024,256], index: 1, kind: input, shape index: {}]   ;;  %s6595_s2 = inlined_call_operand.vmem [shape: bf16[512,256], index: 2, kind: input, shape index: {}]   ;;  %s6596_s3 = inlined_call_operand.vmem [shape: f32[1,256], index: 3, kind: input, shape index: {}]   ;;  %s6597_s4 = inlined_call_operand.vmem [shape: bf16[256,256], index: 4, kind: input, shape index: {}]   ;;  %s6598_s5 = inlined_call_operand.vmem [shape: f32[1,256], index: 5, kind: input, shape index: {}]   ;;  %s6599_s6 = inlined_call_operand.vmem [shape: bf16[256,32], index: 6, kind: input, shape index: {}]   ;;  %s6600_s7 = inlined_call_operand.vmem [shape: f32[1,32], index: 7, kind: input, shape index: {}]   ;;  %s6601_s8 = inlined_call_operand.vmem [shape: bf16[256,128], index: 8, kind: input, shape index: {}]   ;;  %s6602_s9 = inlined_call_operand.vmem [shape: f32[1,128], index: 9, kind: input, shape index: {}]   ;;  %s6603_s10 = inlined_call_operand.vmem [shape: bf16[128,64], index: 10, kind: input, shape index: {}]   ;;  %s6604_s11 = inlined_call_operand.vmem [shape: f32[1,64], index: 11, kind: input, shape index: {}]   ;;  %s6605_s12 = inlined_call_operand.vmem [shape: bf16[64,128], index: 12, kind: input, shape index: {}]   ;;  %s6606_s13 = inlined_call_operand.vmem [shape: f32[1,128], index: 13, kind: input, shape index: {}]   ;;  %s6607_s14 = inlined_call_operand.vmem [shape: bf16[128,256], index: 14, kind: input, shape index: {}]   ;;  %s6608_s15 = inlined_call_operand.vmem [shape: f32[1,256], index: 15, kind: input, shape index: {}]   ;;  %s6609_s16 = inlined_call_operand.vmem [shape: bf16[128,128], index: 16, kind: input, shape index: {}]   ;;  %s6610_s17 = inlined_call_operand.vmem [shape: f32[1,128], index: 17, kind: input, shape index: {}]   ;;  %s6611_s18 = inlined_call_operand.vmem [shape: f32[2,1,384], index: 18, kind: output, shape index: {}]  }
   0x1   :  { %6616 = sst [smem:[#allocation4_spill]] %s6593_s0 }
   0x2   :  { %6617 = sst [smem:[#allocation5_spill]] %s6594_s1 }
   0x3   :  { %6618 = sst [smem:[#allocation6_spill]] %s6595_s2 }
   0x4 LB: > { %6619 = sst [smem:[#allocation3_spill]] %s4738_s27  ;;  %s3243_s28 = sadd.s32 4294967295, %s4738_s27   ;;  %s4738_s27 = sphi %s4835_s27, %s28_s27  }
   0x5   : > { %p3247_p0 = scmp.ge.s32.totalorder %s4738_s27, 1  ;;  %p512_p1 = scmp.lt.s32.totalorder %s4738_s27, 3 }
   0x7   : > { %p513_p2 = pnand %p3247_p0, %p512_p1 }
   0x8   : > { %s6620_s0 = sld [smem:[#allocation6_spill]] (!%p513_p2)  ;;  %p565_p3 = scmp.lt.s32.totalorder (!%p513_p2), %s3243_s28, 1 }
   0x9   : > { %516 = sbr.rel (%p513_p2) target bundleno = 1344 (0x540), region = 92  ;;  %s6621_s21 = sld [smem:[#allocation4_spill]] (!%p513_p2) }
   0xa   : > { %s6622_s1 = sld [smem:[#allocation5_spill]] (!%p513_p2) }
   0xe   : > { %v3308_v0 = vld [vmem:[%s6620_s0 + $0x70] sm:$0xf]  ;;  %v4573_v1 = vld [vmem:[%s6620_s0 + $0x74] sm:$0xf0]  ;;  %v3300_v11 = vld [vmem:[%s6620_s0 + $0x60] sm:$0xf] }
   0xf   : > { %v3372_v2 = vld [vmem:[%s6620_s0 + $0xf0] sm:$0xf]  ;;  %v3309_v3 = vor.u32 %v4573_v1, %v3308_v0  ;;  %v4589_v4 = vld [vmem:[%s6620_s0 + $0xf4] sm:$0xf0]  ;;  %v4571_v13 = vld [vmem:[%s6620_s0 + $0x64] sm:$0xf0] }
  0x10   : > { %v3436_v5 = vld [vmem:[%s6620_s0 + $0x170] sm:$0xf]  ;;  %v4605_v6 = vld [vmem:[%s6620_s0 + $0x174] sm:$0xf0]  ;;  %v3373_v7 = vor.u32 %v4589_v4, %v3372_v2  ;;  %v3364_v14 = vld [vmem:[%s6620_s0 + $0xe0] sm:$0xf]  ;;  %v3301_v16 = vor.u32 %v4571_v13, %v3300_v11 }
  0x11   : > { %v3437_v8 = vor.u32 %v4605_v6, %v3436_v5  ;;  %v3500_v9 = vld [vmem:[%s6620_s0 + $0x1f0] sm:$0xf]  ;;  %v4621_v10 = vld [vmem:[%s6620_s0 + $0x1f4] sm:$0xf0]  ;;  %1141 = vmatpush.bf16.msra.mxu0 %v3309_v3  ;;  %v4587_v15 = vld [vmem:[%s6620_s0 + $0xe4] sm:$0xf0] }
  0x12   : > { %v3501_v12 = vor.u32 %v4621_v10, %v3500_v9  ;;  %1154 = vmatpush.bf16.msra.mxu1 %v3373_v7  ;;  %v3365_v17 = vor.u32 %v4587_v15, %v3364_v14  ;;  %v3428_v18 = vld [vmem:[%s6620_s0 + $0x160] sm:$0xf]  ;;  %v4603_v19 = vld [vmem:[%s6620_s0 + $0x164] sm:$0xf0]  ;;  %v3292_v23 = vld [vmem:[%s6620_s0 + $0x50] sm:$0xf] }
  0x13   : > { %1167 = vmatpush.bf16.msra.mxu2 %v3437_v8  ;;  %v3492_v20 = vld [vmem:[%s6620_s0 + $0x1e0] sm:$0xf]  ;;  %v3429_v21 = vor.u32 %v4603_v19, %v3428_v18  ;;  %v4619_v22 = vld [vmem:[%s6620_s0 + $0x1e4] sm:$0xf0]  ;;  %v4569_v24 = vld [vmem:[%s6620_s0 + $0x54] sm:$0xf0] }
  0x14   : > { %1180 = vmatpush.bf16.msra.mxu3 %v3501_v12  ;;  %v3493_v25 = vor.u32 %v4619_v22, %v3492_v20  ;;  %v3356_v26 = vld [vmem:[%s6620_s0 + $0xd0] sm:$0xf]  ;;  %v4585_v27 = vld [vmem:[%s6620_s0 + $0xd4] sm:$0xf0]  ;;  %v3293_v29 = vor.u32 %v4569_v24, %v3292_v23  ;;  %v3284_v35 = vld [vmem:[%s6620_s0 + $0x40] sm:$0xf] }
  0x15   : > { %v3420_v28 = vld [vmem:[%s6620_s0 + $0x150] sm:$0xf]  ;;  %1142 = vmatpush.bf16.msra.mxu0 %v3301_v16  ;;  %v4601_v30 = vld [vmem:[%s6620_s0 + $0x154] sm:$0xf0]  ;;  %v3357_v33 = vor.u32 %v4585_v27, %v3356_v26  ;;  %v4567_v36 = vld [vmem:[%s6620_s0 + $0x44] sm:$0xf0] }
  0x16   : > { %v3484_v31 = vld [vmem:[%s6620_s0 + $0x1d0] sm:$0xf]  ;;  %v4617_v32 = vld [vmem:[%s6620_s0 + $0x1d4] sm:$0xf0]  ;;  %1155 = vmatpush.bf16.msra.mxu1 %v3365_v17  ;;  %v3421_v34 = vor.u32 %v4601_v30, %v3420_v28  ;;  %v3348_v37 = vld [vmem:[%s6620_s0 + $0xc0] sm:$0xf]  ;;  %v3285_v44 = vor.u32 %v4567_v36, %v3284_v35 }
  0x17   : > { %1168 = vmatpush.bf16.msra.mxu2 %v3429_v21  ;;  %v3485_v38 = vor.u32 %v4617_v32, %v3484_v31  ;;  %v4583_v39 = vld [vmem:[%s6620_s0 + $0xc4] sm:$0xf0]  ;;  %v3412_v40 = vld [vmem:[%s6620_s0 + $0x140] sm:$0xf]  ;;  %v3276_v47 = vld [vmem:[%s6620_s0 + $0x30] sm:$0xf] }
  0x18   : > { %1181 = vmatpush.bf16.msra.mxu3 %v3493_v25  ;;  %v4599_v41 = vld [vmem:[%s6620_s0 + $0x144] sm:$0xf0]  ;;  %v3476_v42 = vld [vmem:[%s6620_s0 + $0x1c0] sm:$0xf]  ;;  %v3349_v45 = vor.u32 %v4583_v39, %v3348_v37  ;;  %v4565_v48 = vld [vmem:[%s6620_s0 + $0x34] sm:$0xf0] }
  0x19   : > { %v4615_v43 = vld [vmem:[%s6620_s0 + $0x1c4] sm:$0xf0]  ;;  %1143 = vmatpush.bf16.msra.mxu0 %v3293_v29  ;;  %v3413_v46 = vor.u32 %v4599_v41, %v3412_v40  ;;  %v3340_v49 = vld [vmem:[%s6620_s0 + $0xb0] sm:$0xf]  ;;  %v4581_v51 = vld [vmem:[%s6620_s0 + $0xb4] sm:$0xf0]  ;;  %v3277_v56 = vor.u32 %v4565_v48, %v3276_v47 }
  0x1a   : > { %1156 = vmatpush.bf16.msra.mxu1 %v3357_v33  ;;  %v3477_v50 = vor.u32 %v4615_v43, %v3476_v42  ;;  %v3404_v52 = vld [vmem:[%s6620_s0 + $0x130] sm:$0xf]  ;;  %v4597_v53 = vld [vmem:[%s6620_s0 + $0x134] sm:$0xf0]  ;;  %v3341_v57 = vor.u32 %v4581_v51, %v3340_v49  ;;  %v3268_v59 = vld [vmem:[%s6620_s0 + $0x20] sm:$0xf] }
  0x1b   : > { %1169 = vmatpush.bf16.msra.mxu2 %v3421_v34  ;;  %v3468_v54 = vld [vmem:[%s6620_s0 + $0x1b0] sm:$0xf]  ;;  %v4613_v55 = vld [vmem:[%s6620_s0 + $0x1b4] sm:$0xf0]  ;;  %v3405_v58 = vor.u32 %v4597_v53, %v3404_v52  ;;  %v4563_v60 = vld [vmem:[%s6620_s0 + $0x24] sm:$0xf0] }
  0x1c   : > { %1182 = vmatpush.bf16.msra.mxu3 %v3485_v38  ;;  %v3332_v61 = vld [vmem:[%s6620_s0 + $0xa0] sm:$0xf]  ;;  %v3469_v62 = vor.u32 %v4613_v55, %v3468_v54  ;;  %v4579_v63 = vld [vmem:[%s6620_s0 + $0xa4] sm:$0xf0]  ;;  %v3269_v4 = vor.u32 %v4563_v60, %v3268_v59  ;;  %v3260_v7 = vld [vmem:[%s6620_s0 + $0x10] sm:$0xf] }
  0x1d   : > { %1144 = vmatpush.bf16.msra.mxu0 %v3285_v44  ;;  %v3396_v0 = vld [vmem:[%s6620_s0 + $0x120] sm:$0xf]  ;;  %v4595_v1 = vld [vmem:[%s6620_s0 + $0x124] sm:$0xf0]  ;;  %v3333_v5 = vor.u32 %v4579_v63, %v3332_v61  ;;  %v4561_v8 = vld [vmem:[%s6620_s0 + $0x14] sm:$0xf0] }
  0x1e   : > { %1157 = vmatpush.bf16.msra.mxu1 %v3349_v45  ;;  %v3460_v2 = vld [vmem:[%s6620_s0 + $0x1a0] sm:$0xf]  ;;  %v4611_v3 = vld [vmem:[%s6620_s0 + $0x1a4] sm:$0xf0]  ;;  %v3397_v6 = vor.u32 %v4595_v1, %v3396_v0  ;;  %v3324_v9 = vld [vmem:[%s6620_s0 + $0x90] sm:$0xf]  ;;  %v3261_v16 = vor.u32 %v4561_v8, %v3260_v7 }
  0x1f   : > { %1170 = vmatpush.bf16.msra.mxu2 %v3413_v46  ;;  %v3461_v10 = vor.u32 %v4611_v3, %v3460_v2  ;;  %v4577_v11 = vld [vmem:[%s6620_s0 + $0x94] sm:$0xf0]  ;;  %v3388_v12 = vld [vmem:[%s6620_s0 + $0x110] sm:$0xf]  ;;  %v3252_v17 = vld [vmem:[%s6620_s0] sm:$0xf] }
  0x20   : > { %1183 = vmatpush.bf16.msra.mxu3 %v3477_v50  ;;  %v4593_v13 = vld [vmem:[%s6620_s0 + $0x114] sm:$0xf0]  ;;  %v3452_v14 = vld [vmem:[%s6620_s0 + $0x190] sm:$0xf]  ;;  %v4559_v18 = vld [vmem:[%s6620_s0 + $0x4] sm:$0xf0]  ;;  %v3325_v19 = vor.u32 %v4577_v11, %v3324_v9 }
  0x21   : > { %1145 = vmatpush.bf16.msra.mxu0 %v3277_v56  ;;  %v4609_v15 = vld [vmem:[%s6620_s0 + $0x194] sm:$0xf0]  ;;  %v3389_v20 = vor.u32 %v4593_v13, %v3388_v12  ;;  %v3316_v21 = vld [vmem:[%s6620_s0 + $0x80] sm:$0xf]  ;;  %v4575_v22 = vld [vmem:[%s6620_s0 + $0x84] sm:$0xf0]  ;;  %v3253_v31 = vor.u32 %v4559_v18, %v3252_v17 }
  0x22   : > { %1158 = vmatpush.bf16.msra.mxu1 %v3341_v57  ;;  %v3380_v23 = vld [vmem:[%s6620_s0 + $0x100] sm:$0xf]  ;;  %v3453_v24 = vor.u32 %v4609_v15, %v3452_v14  ;;  %v4591_v25 = vld [vmem:[%s6620_s0 + $0x104] sm:$0xf0]  ;;  %v4572_v28 = vld [vmem:[%s6620_s0 + $0x74] sm:$0xf]  ;;  %v3317_v35 = vor.u32 %v4575_v22, %v3316_v21 }
  0x23   : > { %1171 = vmatpush.bf16.msra.mxu2 %v3405_v58  ;;  %v3444_v26 = vld [vmem:[%s6620_s0 + $0x180] sm:$0xf]  ;;  %v4607_v27 = vld [vmem:[%s6620_s0 + $0x184] sm:$0xf0]  ;;  %v3310_v29 = vld [vmem:[%s6620_s0 + $0x78] sm:$0xf0]  ;;  %v3381_v36 = vor.u32 %v4591_v25, %v3380_v23 }
  0x24   : > { %1184 = vmatpush.bf16.msra.mxu3 %v3469_v62  ;;  %v4588_v30 = vld [vmem:[%s6620_s0 + $0xf4] sm:$0xf]  ;;  %v3374_v32 = vld [vmem:[%s6620_s0 + $0xf8] sm:$0xf0]  ;;  %v3445_v39 = vor.u32 %v4607_v27, %v3444_v26  ;;  %v3313_v40 = vor.u32 %v4572_v28, %v3310_v29  ;;  %v4570_v43 = vld [vmem:[%s6620_s0 + $0x64] sm:$0xf] }
  0x25   : > { %1146 = vmatpush.bf16.msra.mxu0 %v3269_v4  ;;  %v4604_v33 = vld [vmem:[%s6620_s0 + $0x174] sm:$0xf]  ;;  %v3438_v34 = vld [vmem:[%s6620_s0 + $0x178] sm:$0xf0]  ;;  %v3377_v41 = vor.u32 %v4588_v30, %v3374_v32  ;;  %v3302_v44 = vld [vmem:[%s6620_s0 + $0x68] sm:$0xf0] }
  0x26   : > { %1159 = vmatpush.bf16.msra.mxu1 %v3333_v5  ;;  %v4620_v37 = vld [vmem:[%s6620_s0 + $0x1f4] sm:$0xf]  ;;  %v3502_v38 = vld [vmem:[%s6620_s0 + $0x1f8] sm:$0xf0]  ;;  %v3441_v42 = vor.u32 %v4604_v33, %v3438_v34  ;;  %v4586_v45 = vld [vmem:[%s6620_s0 + $0xe4] sm:$0xf]  ;;  %v3305_v52 = vor.u32 %v4570_v43, %v3302_v44 }
  0x27   : > { %1172 = vmatpush.bf16.msra.mxu2 %v3397_v6  ;;  %v3505_v46 = vor.u32 %v4620_v37, %v3502_v38  ;;  %v3366_v47 = vld [vmem:[%s6620_s0 + $0xe8] sm:$0xf0]  ;;  %v4602_v48 = vld [vmem:[%s6620_s0 + $0x164] sm:$0xf]  ;;  %v4568_v55 = vld [vmem:[%s6620_s0 + $0x54] sm:$0xf] }
  0x28   : > { %1185 = vmatpush.bf16.msra.mxu3 %v3461_v10  ;;  %v3430_v49 = vld [vmem:[%s6620_s0 + $0x168] sm:$0xf0]  ;;  %v4618_v50 = vld [vmem:[%s6620_s0 + $0x1e4] sm:$0xf]  ;;  %v3369_v53 = vor.u32 %v4586_v45, %v3366_v47  ;;  %v3294_v56 = vld [vmem:[%s6620_s0 + $0x58] sm:$0xf0] }
  0x29   : > { %1147 = vmatpush.bf16.msra.mxu0 %v3261_v16  ;;  %v3494_v51 = vld [vmem:[%s6620_s0 + $0x1e8] sm:$0xf0]  ;;  %v3433_v54 = vor.u32 %v4602_v48, %v3430_v49  ;;  %v4584_v57 = vld [vmem:[%s6620_s0 + $0xd4] sm:$0xf]  ;;  %v3358_v59 = vld [vmem:[%s6620_s0 + $0xd8] sm:$0xf0]  ;;  %v3297_v0 = vor.u32 %v4568_v55, %v3294_v56 }
  0x2a   : > { %1160 = vmatpush.bf16.msra.mxu1 %v3325_v19  ;;  %v3497_v58 = vor.u32 %v4618_v50, %v3494_v51  ;;  %v4600_v60 = vld [vmem:[%s6620_s0 + $0x154] sm:$0xf]  ;;  %v3422_v61 = vld [vmem:[%s6620_s0 + $0x158] sm:$0xf0]  ;;  %v4566_v1 = vld [vmem:[%s6620_s0 + $0x44] sm:$0xf]  ;;  %v3361_v3 = vor.u32 %v4584_v57, %v3358_v59 }
  0x2b   : > { %1173 = vmatpush.bf16.msra.mxu2 %v3389_v20  ;;  %v4616_v62 = vld [vmem:[%s6620_s0 + $0x1d4] sm:$0xf]  ;;  %v3486_v63 = vld [vmem:[%s6620_s0 + $0x1d8] sm:$0xf0]  ;;  %v3286_v2 = vld [vmem:[%s6620_s0 + $0x48] sm:$0xf0]  ;;  %v3425_v4 = vor.u32 %v4600_v60, %v3422_v61 }
  0x2c   : > { %1186 = vmatpush.bf16.msra.mxu3 %v3453_v24  ;;  %v4582_v5 = vld [vmem:[%s6620_s0 + $0xc4] sm:$0xf]  ;;  %v3350_v6 = vld [vmem:[%s6620_s0 + $0xc8] sm:$0xf0]  ;;  %v3489_v8 = vor.u32 %v4616_v62, %v3486_v63  ;;  %s6627_s28 = smov (!%p565_p3, %s3243_s28), 1  ;;  %v3289_v14 = vor.u32 %v4566_v1, %v3286_v2  ;;  %vm2541_vm0 = vcmask 257024  }
  0x2d   : > { %1148 = vmatpush.bf16.msra.mxu0 %v3253_v31  ;;  %v4598_v7 = vld [vmem:[%s6620_s0 + $0x144] sm:$0xf]  ;;  %v3414_v9 = vld [vmem:[%s6620_s0 + $0x148] sm:$0xf0]  ;;  %v4564_v12 = vld [vmem:[%s6620_s0 + $0x34] sm:$0xf]  ;;  %v3353_v17 = vor.u32 %v4582_v5, %v3350_v6 }
  0x2e   : > { %1161 = vmatpush.bf16.msra.mxu1 %v3317_v35  ;;  %v4614_v10 = vld [vmem:[%s6620_s0 + $0x1c4] sm:$0xf]  ;;  %v3478_v11 = vld [vmem:[%s6620_s0 + $0x1c8] sm:$0xf0]  ;;  %v3278_v13 = vld [vmem:[%s6620_s0 + $0x38] sm:$0xf0]  ;;  %v3417_v18 = vor.u32 %v4598_v7, %v3414_v9 }
  0x2f   : > { %1174 = vmatpush.bf16.msra.mxu2 %v3381_v36  ;;  %v4580_v15 = vld [vmem:[%s6620_s0 + $0xb4] sm:$0xf]  ;;  %v3342_v16 = vld [vmem:[%s6620_s0 + $0xb8] sm:$0xf0]  ;;  %s4429_s23 = sshll.u32 %s6627_s28, 6  ;;  %v3481_v22 = vor.u32 %v4614_v10, %v3478_v11  ;;  %v3281_v23 = vor.u32 %v4564_v12, %v3278_v13  ;;  %vm2570_vm1 = vcmask 261120  }
  0x30   : > { %1187 = vmatpush.bf16.msra.mxu3 %v3445_v39  ;;  %v4596_v19 = vld [vmem:[%s6620_s0 + $0x134] sm:$0xf]  ;;  %v3406_v20 = vld [vmem:[%s6620_s0 + $0x138] sm:$0xf0]  ;;  %s5162_s22 = scalar_lea.vmem %s6621_s21, %s4429_s23  ;;  %v4562_v28 = vld [vmem:[%s6620_s0 + $0x24] sm:$0xf] }
  0x31   : > { %1193 = vmatpush.bf16.msrb.mxu0 %v3313_v40  ;;  %v4612_v21 = vld [vmem:[%s6620_s0 + $0x1b4] sm:$0xf]  ;;  %v576_v24 = vld [vmem:[%s5162_s22 + $0x8] sm:$0xff]  ;;  %v575_v26 = vld [vmem:[%s5162_s22] sm:$0xff]  ;;  %vm2957_vm2 = vcmask 523264   ;;  %s4722_s21 = smul.u32 3, %s6627_s28 }
  0x32   : > { %1206 = vmatpush.bf16.msrb.mxu1 %v3377_v41  ;;  %v580_v25 = vld [vmem:[%s5162_s22 + $0x28] sm:$0x11]  ;;  %v3470_v27 = vld [vmem:[%s6620_s0 + $0x1b8] sm:$0xf0]  ;;  %v5173_v29 = vunpack.c.l.b16 %v576_v24  ;;  %v579_v31 = vld [vmem:[%s5162_s22 + $0x20] sm:$0x11]  ;;  %v5176_v32 = vunpack.c.l.b16 %v575_v26  ;;  %v5178_v33 = vunpack.c.h.b16 %v576_v24  ;;  %v5189_v39 = vunpack.c.h.b16 %v575_v26 }
  0x33   : > { %1219 = vmatpush.bf16.msrb.mxu2 %v3441_v42  ;;  %v783_v30 = vunpack.c.l.b16 %v580_v25  ;;  %v3270_v34 = vld [vmem:[%s6620_s0 + $0x28] sm:$0xf0]  ;;  %v4578_v35 = vld [vmem:[%s6620_s0 + $0xa4] sm:$0xf]  ;;  %v781_v37 = vunpack.c.l.b16 %v579_v31  ;;  %v784_v38 = vunpack.c.h.b16 %v580_v25  ;;  %v782_v40 = vunpack.c.h.b16 %v579_v31  ;;  %v4560_v56 = vld [vmem:[%s6620_s0 + $0x14] sm:$0xf]  ;;  %s573_s27 = scalar_lea.vmem %s6611_s18, %s4722_s21 }
  0x34   : > { %1232 = vmatpush.bf16.msrb.mxu3 %v3505_v46  ;;  %v3334_v36 = vld [vmem:[%s6620_s0 + $0xa8] sm:$0xf0]  ;;  %v3345_v41 = vor.u32 %v4580_v15, %v3342_v16  ;;  %v3409_v42 = vor.u32 %v4596_v19, %v3406_v20  ;;  %v4594_v43 = vld [vmem:[%s6620_s0 + $0x124] sm:$0xf]  ;;  %v3473_v45 = vor.u32 %v4612_v21, %v3470_v27  ;;  %v3262_v57 = vld [vmem:[%s6620_s0 + $0x18] sm:$0xf0] }
  0x35   : > { %1194 = vmatpush.bf16.msrb.mxu0 %v3305_v52  ;;  %v787_v44 = vpack.c.b16 %v783_v30, %v5173_v29  ;;  %v3398_v46 = vld [vmem:[%s6620_s0 + $0x128] sm:$0xf0]  ;;  %v4610_v47 = vld [vmem:[%s6620_s0 + $0x1a4] sm:$0xf]  ;;  %v785_v49 = vpack.c.b16 %v781_v37, %v5176_v32  ;;  %v788_v50 = vpack.c.b16 %v784_v38, %v5178_v33  ;;  %v786_v51 = vpack.c.b16 %v782_v40, %v5189_v39  ;;  %v4576_v62 = vld [vmem:[%s6620_s0 + $0x94] sm:$0xf] }
  0x36   : > { %1207 = vmatpush.bf16.msrb.mxu1 %v3369_v53  ;;  %v3462_v48 = vld [vmem:[%s6620_s0 + $0x1a8] sm:$0xf0]  ;;  %v3273_v52 = vor.u32 %v4562_v28, %v3270_v34  ;;  %v3337_v53 = vor.u32 %v4578_v35, %v3334_v36  ;;  %v3401_v63 = vor.u32 %v4594_v43, %v3398_v46  ;;  %v3326_v1 = vld [vmem:[%s6620_s0 + $0x98] sm:$0xf0]  ;;  %v4592_v7 = vld [vmem:[%s6620_s0 + $0x114] sm:$0xf]  ;;  %v3265_v15 = vor.u32 %v4560_v56, %v3262_v57 }
  0x37   : > { %1220 = vmatpush.bf16.msrb.mxu2 %v3433_v54  ;;  %v804_v54 = vshrl.u32 %v787_v44, 16  ;;  %v806_v55 = vshll.u32 %v787_v44, 16  ;;  %v792_v59 = vshll.u32 %v785_v49, 16  ;;  %v811_v60 = vshrl.u32 %v788_v50, 16  ;;  %v4608_v10 = vld [vmem:[%s6620_s0 + $0x194] sm:$0xf] }
  0x38   : > { %1233 = vmatpush.bf16.msrb.mxu3 %v3497_v58  ;;  %v790_v58 = vshrl.u32 %v785_v49, 16  ;;  %v813_v61 = vshll.u32 %v788_v50, 16  ;;  %v797_v2 = vshrl.u32 %v786_v51, 16  ;;  %v3454_v11 = vld [vmem:[%s6620_s0 + $0x198] sm:$0xf0] }
  0x39   : > { %1195 = vmatpush.bf16.msrb.mxu0 %v3297_v0  ;;  %v808_v0 = vrot.slane %v806_v55, 1  ;;  %v794_v5 = vrot.slane %v792_v59, 1  ;;  %v4558_v16 = vld [vmem:[%s6620_s0 + $0x4] sm:$0xf]  ;;  %v3457_v24 = vor.u32 %v4608_v10, %v3454_v11  ;;  %v3382_v25 = vld [vmem:[%s6620_s0 + $0x108] sm:$0xf0] }
  0x3a   : > { %1208 = vmatpush.bf16.msrb.mxu1 %v3361_v3  ;;  %v799_v3 = vshll.u32 %v786_v51, 16  ;;  %v815_v6 = vrot.slane %v813_v61, 1  ;;  %v4574_v21 = vld [vmem:[%s6620_s0 + $0x84] sm:$0xf]  ;;  %v3446_v27 = vld [vmem:[%s6620_s0 + $0x188] sm:$0xf0] }
  0x3b   : > { %1221 = vmatpush.bf16.msrb.mxu2 %v3425_v4  ;;  %v3465_v4 = vor.u32 %v4610_v47, %v3462_v48  ;;  %v5225_v9 = vor.u32 %v808_v0, %v804_v54  ;;  %v5233_v13 = vor.u32 %v794_v5, %v790_v58  ;;  %v4606_v26 = vld [vmem:[%s6620_s0 + $0x184] sm:$0xf]  ;;  %v3564_v28 = vld [vmem:[%s6622_s1 + $0x70] sm:$0xf]  ;;  %v4445_v30 = vld [vmem:[%s6622_s1 + $0x74] sm:$0xf0] }
  0x3c   : > { %1234 = vmatpush.bf16.msrb.mxu3 %v3489_v8  ;;  %v3390_v8 = vld [vmem:[%s6620_s0 + $0x118] sm:$0xf0]  ;;  %v801_v12 = vrot.slane %v799_v3, 1  ;;  %v3628_v31 = vld [vmem:[%s6622_s1 + $0xf0] sm:$0xf]  ;;  %v3449_v43 = vor.u32 %v4606_v26, %v3446_v27  ;;  %v3565_v44 = vor.u32 %v4445_v30, %v3564_v28 }
  0x3d   : > { %1196 = vmatpush.bf16.msrb.mxu0 %v3289_v14  ;;  %v5235_v14 = vor.u32 %v815_v6, %v811_v60  ;;  %v3393_v19 = vor.u32 %v4592_v7, %v3390_v8  ;;  %1175 = vmatmul.bf16.vlgmr.msra.gmra.mxu2 %v5225_v9  ;;  %v4461_v35 = vld [vmem:[%s6622_s1 + $0xf4] sm:$0xf0]  ;;  %v3692_v36 = vld [vmem:[%s6622_s1 + $0x170] sm:$0xf]  ;;  %v3556_v47 = vld [vmem:[%s6622_s1 + $0x60] sm:$0xf] }
  0x3e   : > { %1209 = vmatpush.bf16.msrb.mxu1 %v3353_v17  ;;  %v3254_v17 = vld [vmem:[%s6620_s0 + $0x8] sm:$0xf0]  ;;  %v5243_v20 = vor.u32 %v801_v12, %v797_v2  ;;  %1149 = vmatmul.bf16.vlgmr.msra.gmra.mxu0 %v5233_v13  ;;  %v4477_v37 = vld [vmem:[%s6622_s1 + $0x174] sm:$0xf0]  ;;  %v4443_v48 = vld [vmem:[%s6622_s1 + $0x64] sm:$0xf0] }
  0x3f   : > { %1222 = vmatpush.bf16.msrb.mxu2 %v3417_v18  ;;  %v3329_v18 = vor.u32 %v4576_v62, %v3326_v1  ;;  %1188 = vmatmul.bf16.vlgmr.msra.gmra.mxu3 %v5235_v14  ;;  %v3257_v34 = vor.u32 %v4558_v16, %v3254_v17  ;;  %v3693_v46 = vor.u32 %v4477_v37, %v3692_v36  ;;  %v3620_v49 = vld [vmem:[%s6622_s1 + $0xe0] sm:$0xf]  ;;  %v4459_v51 = vld [vmem:[%s6622_s1 + $0xe4] sm:$0xf0]  ;;  %v3548_v59 = vld [vmem:[%s6622_s1 + $0x50] sm:$0xf] }
  0x40   : > { %1235 = vmatpush.bf16.msrb.mxu3 %v3481_v22  ;;  %v3318_v22 = vld [vmem:[%s6620_s0 + $0x88] sm:$0xf0]  ;;  %1162 = vmatmul.bf16.vlgmr.msra.gmra.mxu1 %v5243_v20  ;;  %v3748_v54 = vld [vmem:[%s6622_s1 + $0x1e0] sm:$0xf]  ;;  %v4491_v55 = vld [vmem:[%s6622_s1 + $0x1e4] sm:$0xf0]  ;;  %v3557_v56 = vor.u32 %v4443_v48, %v3556_v47  ;;  %v3621_v57 = vor.u32 %v4459_v51, %v3620_v49 }
  0x41   : > { %1197 = vmatpush.bf16.msrb.mxu0 %v3281_v23  ;;  %v4590_v23 = vld [vmem:[%s6620_s0 + $0x104] sm:$0xf]  ;;  %v3321_v38 = vor.u32 %v4574_v21, %v3318_v22  ;;  %v4441_v60 = vld [vmem:[%s6622_s1 + $0x54] sm:$0xf0]  ;;  %v3612_v61 = vld [vmem:[%s6622_s1 + $0xd0] sm:$0xf]  ;;  %v3749_v62 = vor.u32 %v4491_v55, %v3748_v54 }
  0x42   : > { %1210 = vmatpush.bf16.msrb.mxu1 %v3345_v41  ;;  %v3385_v40 = vor.u32 %v4590_v23, %v3382_v25  ;;  %v3756_v41 = vld [vmem:[%s6622_s1 + $0x1f0] sm:$0xf]  ;;  %v4473_v1 = vld [vmem:[%s6622_s1 + $0x154] sm:$0xf0]  ;;  %v3540_v7 = vld [vmem:[%s6622_s1 + $0x40] sm:$0xf] }
  0x43   : > { %1223 = vmatpush.bf16.msrb.mxu2 %v3409_v42  ;;  %v4493_v42 = vld [vmem:[%s6622_s1 + $0x1f4] sm:$0xf0]  ;;  %v3676_v0 = vld [vmem:[%s6622_s1 + $0x150] sm:$0xf]  ;;  %v4439_v8 = vld [vmem:[%s6622_s1 + $0x44] sm:$0xf0] }
  0x44   : > { %1236 = vmatpush.bf16.msrb.mxu3 %v3473_v45  ;;  %v3629_v45 = vor.u32 %v4461_v35, %v3628_v31  ;;  %v3757_v50 = vor.u32 %v4493_v42, %v3756_v41  ;;  %v3740_v2 = vld [vmem:[%s6622_s1 + $0x1d0] sm:$0xf]  ;;  %v4489_v3 = vld [vmem:[%s6622_s1 + $0x1d4] sm:$0xf0]  ;;  %v3677_v6 = vor.u32 %v4473_v1, %v3676_v0  ;;  %v3604_v10 = vld [vmem:[%s6622_s1 + $0xc0] sm:$0xf] }
  0x45   : > { %1198 = vmatpush.bf16.msrb.mxu0 %v3273_v52  ;;  %v3684_v52 = vld [vmem:[%s6622_s1 + $0x160] sm:$0xf]  ;;  %v3741_v11 = vor.u32 %v4489_v3, %v3740_v2  ;;  %v4455_v12 = vld [vmem:[%s6622_s1 + $0xc4] sm:$0xf0]  ;;  %v3532_v23 = vld [vmem:[%s6622_s1 + $0x30] sm:$0xf] }
  0x46   : > { %1211 = vmatpush.bf16.msrb.mxu1 %v3337_v53  ;;  %v4475_v53 = vld [vmem:[%s6622_s1 + $0x164] sm:$0xf0]  ;;  %v3732_v17 = vld [vmem:[%s6622_s1 + $0x1c0] sm:$0xf]  ;;  %v3605_v21 = vor.u32 %v4455_v12, %v3604_v10  ;;  %v3596_v25 = vld [vmem:[%s6622_s1 + $0xb0] sm:$0xf] }
  0x47   : > { %1224 = vmatpush.bf16.msrb.mxu2 %v3401_v63  ;;  %v3685_v58 = vor.u32 %v4475_v53, %v3684_v52  ;;  %v4457_v63 = vld [vmem:[%s6622_s1 + $0xd4] sm:$0xf0]  ;;  %v4471_v16 = vld [vmem:[%s6622_s1 + $0x144] sm:$0xf0]  ;;  %v3660_v27 = vld [vmem:[%s6622_s1 + $0x130] sm:$0xf] }
  0x48   : > { %1237 = vmatpush.bf16.msrb.mxu3 %v3465_v4  ;;  %v3549_v4 = vor.u32 %v4441_v60, %v3548_v59  ;;  %v3613_v5 = vor.u32 %v4457_v63, %v3612_v61  ;;  %v4469_v28 = vld [vmem:[%s6622_s1 + $0x134] sm:$0xf0]  ;;  %v3724_v30 = vld [vmem:[%s6622_s1 + $0x1b0] sm:$0xf]  ;;  %v3524_v36 = vld [vmem:[%s6622_s1 + $0x20] sm:$0xf] }
  0x49   : > { %1199 = vmatpush.bf16.msrb.mxu0 %v3265_v15  ;;  %v3668_v15 = vld [vmem:[%s6622_s1 + $0x140] sm:$0xf]  ;;  %v3661_v35 = vor.u32 %v4469_v28, %v3660_v27  ;;  %v4435_v37 = vld [vmem:[%s6622_s1 + $0x24] sm:$0xf0]  ;;  %v3516_v47 = vld [vmem:[%s6622_s1 + $0x10] sm:$0xf] }
  0x4a   : > { %1212 = vmatpush.bf16.msrb.mxu1 %v3329_v18  ;;  %v4487_v18 = vld [vmem:[%s6622_s1 + $0x1c4] sm:$0xf0]  ;;  %v3669_v22 = vor.u32 %v4471_v16, %v3668_v15  ;;  %v3716_v42 = vld [vmem:[%s6622_s1 + $0x1a0] sm:$0xf]  ;;  %v4433_v48 = vld [vmem:[%s6622_s1 + $0x14] sm:$0xf0] }
  0x4b   : > { %1225 = vmatpush.bf16.msrb.mxu2 %v3393_v19  ;;  %v3541_v19 = vor.u32 %v4439_v8, %v3540_v7  ;;  %v3733_v26 = vor.u32 %v4487_v18, %v3732_v17  ;;  %v4467_v41 = vld [vmem:[%s6622_s1 + $0x124] sm:$0xf0]  ;;  %v3580_v49 = vld [vmem:[%s6622_s1 + $0x90] sm:$0xf]  ;;  %v4449_v51 = vld [vmem:[%s6622_s1 + $0x94] sm:$0xf0] }
  0x4c   : > { %1238 = vmatpush.bf16.msrb.mxu3 %v3457_v24  ;;  %v4437_v24 = vld [vmem:[%s6622_s1 + $0x34] sm:$0xf0]  ;;  %v3644_v52 = vld [vmem:[%s6622_s1 + $0x110] sm:$0xf]  ;;  %v3581_v59 = vor.u32 %v4449_v51, %v3580_v49  ;;  %v3572_v61 = vld [vmem:[%s6622_s1 + $0x80] sm:$0xf] }
  0x4d   : > { %1200 = vmatpush.bf16.msrb.mxu0 %v3257_v34  ;;  %v3533_v31 = vor.u32 %v4437_v24, %v3532_v23  ;;  %v4465_v53 = vld [vmem:[%s6622_s1 + $0x114] sm:$0xf0]  ;;  %v3708_v54 = vld [vmem:[%s6622_s1 + $0x190] sm:$0xf]  ;;  %v3636_v63 = vld [vmem:[%s6622_s1 + $0x100] sm:$0xf] }
  0x4e   : > { %1213 = vmatpush.bf16.msrb.mxu1 %v3321_v38  ;;  %v4451_v38 = vld [vmem:[%s6622_s1 + $0xa4] sm:$0xf0]  ;;  %v4481_v55 = vld [vmem:[%s6622_s1 + $0x194] sm:$0xf0]  ;;  %v3645_v60 = vor.u32 %v4465_v53, %v3644_v52  ;;  %v3700_v2 = vld [vmem:[%s6622_s1 + $0x180] sm:$0xf] }
  0x4f   : > { %1226 = vmatpush.bf16.msrb.mxu2 %v3385_v40  ;;  %v3652_v40 = vld [vmem:[%s6622_s1 + $0x120] sm:$0xf]  ;;  %v3709_v0 = vor.u32 %v4481_v55, %v3708_v54  ;;  %v4463_v1 = vld [vmem:[%s6622_s1 + $0x104] sm:$0xf0]  ;;  %v4525_v8 = vld [vmem:[%s6622_s1 + $0x2f4] sm:$0xf0] }
  0x50   : > { %1239 = vmatpush.bf16.msrb.mxu3 %v3449_v43  ;;  %1201 = vmatmul.bf16.vlgmr.msrb.gmra.mxu0 %v5233_v13  ;;  %v4485_v13 = vld [vmem:[%s6622_s1 + $0x1b4] sm:$0xf0]  ;;  %v4483_v43 = vld [vmem:[%s6622_s1 + $0x1a4] sm:$0xf0]  ;;  %v3948_v10 = vld [vmem:[%s6622_s1 + $0x370] sm:$0xf]  ;;  %v3637_v15 = vor.u32 %v4463_v1, %v3636_v63 }
  0x51   : > { %1907 = vmatpush.bf16.msra.mxu0 %v3565_v44  ;;  %1214 = vmatmul.bf16.vlgmr.msrb.gmra.mxu1 %v5243_v20  ;;  %v3588_v20 = vld [vmem:[%s6622_s1 + $0xa0] sm:$0xf]  ;;  %v3525_v44 = vor.u32 %v4435_v37, %v3524_v36  ;;  %v4479_v3 = vld [vmem:[%s6622_s1 + $0x184] sm:$0xf0]  ;;  %v4012_v16 = vld [vmem:[%s6622_s1 + $0x3f0] sm:$0xf] }
  0x52   : > { %1920 = vmatpush.bf16.msra.mxu1 %v3629_v45  ;;  %1227 = vmatmul.bf16.vlgmr.msrb.gmra.mxu2 %v5225_v9  ;;  %v4453_v9 = vld [vmem:[%s6622_s1 + $0xb4] sm:$0xf0]  ;;  %v3589_v45 = vor.u32 %v4451_v38, %v3588_v20  ;;  %v3701_v18 = vor.u32 %v4479_v3, %v3700_v2  ;;  %v3812_v23 = vld [vmem:[%s6622_s1 + $0x260] sm:$0xf]  ;;  %v4507_v24 = vld [vmem:[%s6622_s1 + $0x264] sm:$0xf0] }
  0x53   : > { %1933 = vmatpush.bf16.msra.mxu2 %v3693_v46  ;;  %1240 = vmatmul.bf16.vlgmr.msrb.gmra.mxu3 %v5235_v14  ;;  %v3597_v34 = vor.u32 %v4453_v9, %v3596_v25  ;;  %v3725_v14 = vor.u32 %v4485_v13, %v3724_v30  ;;  %v3653_v46 = vor.u32 %v4467_v41, %v3652_v40  ;;  %v4557_v17 = vld [vmem:[%s6622_s1 + $0x3f4] sm:$0xf0]  ;;  %v3876_v25 = vld [vmem:[%s6622_s1 + $0x2e0] sm:$0xf]  ;;  %v4523_v27 = vld [vmem:[%s6622_s1 + $0x2e4] sm:$0xf0] }
  0x54   : > { %1946 = vmatpush.bf16.msra.mxu3 %v3757_v50  ;;  %v3717_v50 = vor.u32 %v4483_v43, %v3716_v42  ;;  %v5498_v9 = vpack.c.b16 %v5176_v32, %v5176_v32  ;;  %v3940_v28 = vld [vmem:[%s6622_s1 + $0x360] sm:$0xf]  ;;  %v4539_v30 = vld [vmem:[%s6622_s1 + $0x364] sm:$0xf0]  ;;  %v5511_v13 = vpack.c.b16 %v5173_v29, %v5173_v29  ;;  %v5515_v32 = vpack.c.b16 %v5189_v39, %v5189_v39  ;;  %v3804_v37 = vld [vmem:[%s6622_s1 + $0x250] sm:$0xf] }
  0x55   : > { %1908 = vmatpush.bf16.msra.mxu0 %v3557_v56  ;;  %v3517_v56 = vor.u32 %v4433_v48, %v3516_v47  ;;  %v3813_v29 = vor.u32 %v4507_v24, %v3812_v23  ;;  %v3877_v36 = vor.u32 %v4523_v27, %v3876_v25  ;;  %v3941_v39 = vor.u32 %v4539_v30, %v3940_v28  ;;  %v4505_v20 = vld [vmem:[%s6622_s1 + $0x254] sm:$0xf0]  ;;  %v3932_v40 = vld [vmem:[%s6622_s1 + $0x350] sm:$0xf]  ;;  %v3796_v47 = vld [vmem:[%s6622_s1 + $0x240] sm:$0xf] }
  0x56   : > { %1921 = vmatpush.bf16.msra.mxu1 %v3621_v57  ;;  %v3508_v57 = vld [vmem:[%s6622_s1] sm:$0xf]  ;;  %v4521_v38 = vld [vmem:[%s6622_s1 + $0x2d4] sm:$0xf0]  ;;  %v3996_v42 = vld [vmem:[%s6622_s1 + $0x3d0] sm:$0xf] }
  0x57   : > { %1934 = vmatpush.bf16.msra.mxu2 %v3685_v58  ;;  %v4431_v58 = vld [vmem:[%s6622_s1 + $0x4] sm:$0xf0]  ;;  %v4537_v41 = vld [vmem:[%s6622_s1 + $0x354] sm:$0xf0]  ;;  %v3860_v49 = vld [vmem:[%s6622_s1 + $0x2c0] sm:$0xf] }
  0x58   : > { %1947 = vmatpush.bf16.msra.mxu3 %v3749_v62  ;;  %v4447_v62 = vld [vmem:[%s6622_s1 + $0x84] sm:$0xf0]  ;;  %v3509_v7 = vor.u32 %v4431_v58, %v3508_v57  ;;  %v4553_v43 = vld [vmem:[%s6622_s1 + $0x3d4] sm:$0xf0]  ;;  %v3924_v52 = vld [vmem:[%s6622_s1 + $0x340] sm:$0xf] }
  0x59   : > { %1909 = vmatpush.bf16.msra.mxu0 %v3549_v4  ;;  %v3820_v4 = vld [vmem:[%s6622_s1 + $0x270] sm:$0xf]  ;;  %v3573_v12 = vor.u32 %v4447_v62, %v3572_v61  ;;  %v4503_v48 = vld [vmem:[%s6622_s1 + $0x244] sm:$0xf0]  ;;  %v3988_v54 = vld [vmem:[%s6622_s1 + $0x3c0] sm:$0xf] }
  0x5a   : > { %1922 = vmatpush.bf16.msra.mxu1 %v3613_v5  ;;  %v4509_v5 = vld [vmem:[%s6622_s1 + $0x274] sm:$0xf0]  ;;  %v4519_v51 = vld [vmem:[%s6622_s1 + $0x2c4] sm:$0xf0]  ;;  %v3852_v61 = vld [vmem:[%s6622_s1 + $0x2b0] sm:$0xf] }
  0x5b   : > { %1935 = vmatpush.bf16.msra.mxu2 %v3677_v6  ;;  %v3884_v6 = vld [vmem:[%s6622_s1 + $0x2f0] sm:$0xf]  ;;  %v4535_v53 = vld [vmem:[%s6622_s1 + $0x344] sm:$0xf0]  ;;  %v3861_v57 = vor.u32 %v4519_v51, %v3860_v49  ;;  %v4517_v63 = vld [vmem:[%s6622_s1 + $0x2b4] sm:$0xf0] }
  0x5c   : > { %1948 = vmatpush.bf16.msra.mxu3 %v3741_v11  ;;  %v4541_v11 = vld [vmem:[%s6622_s1 + $0x374] sm:$0xf0]  ;;  %v4551_v55 = vld [vmem:[%s6622_s1 + $0x3c4] sm:$0xf0]  ;;  %v3925_v58 = vor.u32 %v4535_v53, %v3924_v52  ;;  %v3980_v2 = vld [vmem:[%s6622_s1 + $0x3b0] sm:$0xf] }
  0x5d   : > { %1910 = vmatpush.bf16.msra.mxu0 %v3541_v19  ;;  %v3821_v19 = vor.u32 %v4509_v5, %v3820_v4  ;;  %v3989_v62 = vor.u32 %v4551_v55, %v3988_v54  ;;  %v4533_v1 = vld [vmem:[%s6622_s1 + $0x334] sm:$0xf0]  ;;  %v3853_v5 = vor.u32 %v4517_v63, %v3852_v61  ;;  %v3772_v23 = vld [vmem:[%s6622_s1 + $0x210] sm:$0xf]  ;;  %v4476_v51 = vld [vmem:[%s6622_s1 + $0x174] sm:$0xf] }
  0x5e   : > { %1923 = vmatpush.bf16.msra.mxu1 %v3605_v21  ;;  %v3885_v21 = vor.u32 %v4525_v8, %v3884_v6  ;;  %v4549_v3 = vld [vmem:[%s6622_s1 + $0x3b4] sm:$0xf0]  ;;  %v4499_v8 = vld [vmem:[%s6622_s1 + $0x224] sm:$0xf0]  ;;  %v3836_v25 = vld [vmem:[%s6622_s1 + $0x290] sm:$0xf] }
  0x5f   : > { %1936 = vmatpush.bf16.msra.mxu2 %v3669_v22  ;;  %v3949_v22 = vor.u32 %v4541_v11, %v3948_v10  ;;  %v3844_v10 = vld [vmem:[%s6622_s1 + $0x2a0] sm:$0xf]  ;;  %v3981_v11 = vor.u32 %v4549_v3, %v3980_v2  ;;  %v4497_v24 = vld [vmem:[%s6622_s1 + $0x214] sm:$0xf0]  ;;  %v3900_v28 = vld [vmem:[%s6622_s1 + $0x310] sm:$0xf] }
  0x60   : > { %1949 = vmatpush.bf16.msra.mxu3 %v3733_v26  ;;  %v4013_v26 = vor.u32 %v4557_v17, %v4012_v16  ;;  %v4531_v16 = vld [vmem:[%s6622_s1 + $0x324] sm:$0xf0]  ;;  %v3972_v17 = vld [vmem:[%s6622_s1 + $0x3a0] sm:$0xf]  ;;  %v4513_v27 = vld [vmem:[%s6622_s1 + $0x294] sm:$0xf0] }
  0x61   : > { %1911 = vmatpush.bf16.msra.mxu0 %v3533_v31  ;;  %v4004_v31 = vld [vmem:[%s6622_s1 + $0x3e0] sm:$0xf]  ;;  %v4529_v30 = vld [vmem:[%s6622_s1 + $0x314] sm:$0xf0]  ;;  %v3694_v52 = vld [vmem:[%s6622_s1 + $0x178] sm:$0xf0] }
  0x62   : > { %1924 = vmatpush.bf16.msra.mxu1 %v3597_v34  ;;  %v4555_v34 = vld [vmem:[%s6622_s1 + $0x3e4] sm:$0xf0]  ;;  %v3558_v2 = vld [vmem:[%s6622_s1 + $0x68] sm:$0xf0]  ;;  %v4458_v3 = vld [vmem:[%s6622_s1 + $0xe4] sm:$0xf] }
  0x63   : > { %1937 = vmatpush.bf16.msra.mxu2 %v3661_v35  ;;  %v5525_v35 = vpack.c.b16 %v5178_v33, %v5178_v33  ;;  %v4005_v33 = vor.u32 %v4555_v34, %v4004_v31  ;;  %v3964_v31 = vld [vmem:[%s6622_s1 + $0x390] sm:$0xf]  ;;  %v4545_v34 = vld [vmem:[%s6622_s1 + $0x394] sm:$0xf0] }
  0x64   : > { %1950 = vmatpush.bf16.msra.mxu3 %v3725_v14  ;;  %v3868_v14 = vld [vmem:[%s6622_s1 + $0x2d0] sm:$0xf] }
  0x65   : > { %1912 = vmatpush.bf16.msra.mxu0 %v3525_v44  ;;  %v3805_v44 = vor.u32 %v4505_v20, %v3804_v37  ;;  %v3828_v37 = vld [vmem:[%s6622_s1 + $0x280] sm:$0xf]  ;;  %v4511_v20 = vld [vmem:[%s6622_s1 + $0x284] sm:$0xf0] }
  0x66   : > { %1925 = vmatpush.bf16.msra.mxu1 %v3589_v45  ;;  %v3869_v45 = vor.u32 %v4521_v38, %v3868_v14  ;;  %v3837_v14 = vor.u32 %v4513_v27, %v3836_v25  ;;  %v3892_v38 = vld [vmem:[%s6622_s1 + $0x300] sm:$0xf]  ;;  %v3829_v54 = vor.u32 %v4511_v20, %v3828_v37  ;;  %v3614_v25 = vld [vmem:[%s6622_s1 + $0xd8] sm:$0xf0]  ;;  %v4454_v37 = vld [vmem:[%s6622_s1 + $0xc4] sm:$0xf] }
  0x67   : > { %1938 = vmatpush.bf16.msra.mxu2 %v3653_v46  ;;  %v3933_v46 = vor.u32 %v4537_v41, %v3932_v40  ;;  %v4527_v40 = vld [vmem:[%s6622_s1 + $0x304] sm:$0xf0]  ;;  %v577_v41 = vld [vmem:[%s5162_s22 + $0x10] sm:$0xff]  ;;  %v3678_v27 = vld [vmem:[%s6622_s1 + $0x158] sm:$0xf0] }
  0x68   : > { %1951 = vmatpush.bf16.msra.mxu3 %v3717_v50  ;;  %v3997_v50 = vor.u32 %v4553_v43, %v3996_v42  ;;  %v3965_v42 = vor.u32 %v4545_v34, %v3964_v31  ;;  %v3956_v43 = vld [vmem:[%s6622_s1 + $0x380] sm:$0xf]  ;;  %v1247_v53 = vunpack.c.l.b16 %v577_v41  ;;  %v3893_v55 = vor.u32 %v4527_v40, %v3892_v38  ;;  %v3670_v38 = vld [vmem:[%s6622_s1 + $0x148] sm:$0xf0]  ;;  %v4486_v40 = vld [vmem:[%s6622_s1 + $0x1c4] sm:$0xf] }
  0x69   : > { %1913 = vmatpush.bf16.msra.mxu0 %v3517_v56  ;;  %v3797_v56 = vor.u32 %v4503_v48, %v3796_v47  ;;  %v3566_v47 = vld [vmem:[%s6622_s1 + $0x78] sm:$0xf0]  ;;  %v4460_v48 = vld [vmem:[%s6622_s1 + $0xf4] sm:$0xf] }
  0x6a   : > { %1926 = vmatpush.bf16.msra.mxu1 %v3581_v59  ;;  %v3788_v59 = vld [vmem:[%s6622_s1 + $0x230] sm:$0xf] }
  0x6b   : > { %1939 = vmatpush.bf16.msra.mxu2 %v3645_v60  ;;  %v4501_v60 = vld [vmem:[%s6622_s1 + $0x234] sm:$0xf0] }
  0x6c   : > { %1952 = vmatpush.bf16.msra.mxu3 %v3709_v0  ;;  %v3916_v0 = vld [vmem:[%s6622_s1 + $0x330] sm:$0xf]  ;;  %v3789_v4 = vor.u32 %v4501_v60, %v3788_v59  ;;  %v1248_v59 = vunpack.c.h.b16 %v577_v41  ;;  %v3734_v41 = vld [vmem:[%s6622_s1 + $0x1c8] sm:$0xf0] }
  0x6d   : > { %1914 = vmatpush.bf16.msra.mxu0 %v3509_v7  ;;  %v3917_v6 = vor.u32 %v4533_v1, %v3916_v0  ;;  %v3780_v7 = vld [vmem:[%s6622_s1 + $0x220] sm:$0xf]  ;;  %v3697_v0 = vor.u32 %v4476_v51, %v3694_v52  ;;  %v4442_v1 = vld [vmem:[%s6622_s1 + $0x64] sm:$0xf]  ;;  %v3662_v51 = vld [vmem:[%s6622_s1 + $0x138] sm:$0xf0] }
  0x6e   : > { %1927 = vmatpush.bf16.msra.mxu1 %v3573_v12  ;;  %v4515_v12 = vld [vmem:[%s6622_s1 + $0x2a4] sm:$0xf0]  ;;  %v4484_v52 = vld [vmem:[%s6622_s1 + $0x1b4] sm:$0xf] }
  0x6f   : > { %1940 = vmatpush.bf16.msra.mxu2 %v3637_v15  ;;  %v3908_v15 = vld [vmem:[%s6622_s1 + $0x320] sm:$0xf] }
  0x70   : > { %1953 = vmatpush.bf16.msra.mxu3 %v3701_v18  ;;  %1915 = vmatmul.bf16.vlgmr.msra.gmra.mxu0 %v5498_v9  ;;  %v4547_v18 = vld [vmem:[%s6622_s1 + $0x3a4] sm:$0xf0] }
  0x71   : > { %1959 = vmatpush.bf16.msrb.mxu0 %v3821_v19  ;;  %1928 = vmatmul.bf16.vlgmr.msra.gmra.mxu1 %v5515_v32  ;;  %v3781_v19 = vor.u32 %v4499_v8, %v3780_v7  ;;  %v4474_v7 = vld [vmem:[%s6622_s1 + $0x164] sm:$0xf]  ;;  %v3686_v8 = vld [vmem:[%s6622_s1 + $0x168] sm:$0xf0] }
  0x72   : > { %1972 = vmatpush.bf16.msrb.mxu1 %v3885_v21  ;;  %1941 = vmatmul.bf16.vlgmr.msra.gmra.mxu2 %v5511_v13  ;;  %v3845_v21 = vor.u32 %v4515_v12, %v3844_v10  ;;  %v4490_v12 = vld [vmem:[%s6622_s1 + $0x1e4] sm:$0xf] }
  0x73   : > { %1985 = vmatpush.bf16.msrb.mxu2 %v3949_v22  ;;  %1954 = vmatmul.bf16.vlgmr.msra.gmra.mxu3 %v5525_v35  ;;  %v3909_v22 = vor.u32 %v4531_v16, %v3908_v15  ;;  %v3750_v15 = vld [vmem:[%s6622_s1 + $0x1e8] sm:$0xf0] }
  0x74   : > { %1998 = vmatpush.bf16.msrb.mxu3 %v4013_v26  ;;  %v3973_v26 = vor.u32 %v4547_v18, %v3972_v17  ;;  %v3561_v17 = vor.u32 %v4442_v1, %v3558_v2  ;;  %v3718_v1 = vld [vmem:[%s6622_s1 + $0x1a8] sm:$0xf0] }
  0x75   : > { %1960 = vmatpush.bf16.msrb.mxu0 %v3813_v29  ;;  %v3764_v29 = vld [vmem:[%s6622_s1 + $0x200] sm:$0xf] }
  0x76   : > { %1973 = vmatpush.bf16.msrb.mxu1 %v3877_v36  ;;  %v3773_v36 = vor.u32 %v4497_v24, %v3772_v23  ;;  %v4456_v23 = vld [vmem:[%s6622_s1 + $0xd4] sm:$0xf]  ;;  %v3753_v24 = vor.u32 %v4490_v12, %v3750_v15  ;;  %v3582_v15 = vld [vmem:[%s6622_s1 + $0x98] sm:$0xf0] }
  0x77   : > { %1986 = vmatpush.bf16.msrb.mxu2 %v3941_v39  ;;  %v4495_v39 = vld [vmem:[%s6622_s1 + $0x204] sm:$0xf0]  ;;  %v3617_v34 = vor.u32 %v4456_v23, %v3614_v25  ;;  %v4430_v23 = vld [vmem:[%s6622_s1 + $0x4] sm:$0xf] }
  0x78   : > { %1999 = vmatpush.bf16.msrb.mxu3 %v4005_v33  ;;  %v3901_v33 = vor.u32 %v4529_v30, %v3900_v28  ;;  %v3765_v49 = vor.u32 %v4495_v39, %v3764_v29  ;;  %v4488_v28 = vld [vmem:[%s6622_s1 + $0x1d4] sm:$0xf]  ;;  %v3742_v30 = vld [vmem:[%s6622_s1 + $0x1d8] sm:$0xf0]  ;;  %v3542_v39 = vld [vmem:[%s6622_s1 + $0x48] sm:$0xf0] }
  0x79   : > { %1961 = vmatpush.bf16.msrb.mxu0 %v3805_v44  ;;  %v4543_v44 = vld [vmem:[%s6622_s1 + $0x384] sm:$0xf0]  ;;  %v3745_v20 = vor.u32 %v4488_v28, %v3742_v30  ;;  %v3574_v28 = vld [vmem:[%s6622_s1 + $0x88] sm:$0xf0]  ;;  %v4462_v30 = vld [vmem:[%s6622_s1 + $0x104] sm:$0xf] }
  0x7a   : > { %1974 = vmatpush.bf16.msrb.mxu1 %v3869_v45  ;;  %v578_v45 = vld [vmem:[%s5162_s22 + $0x18] sm:$0xff]  ;;  %v3957_v60 = vor.u32 %v4543_v44, %v3956_v43 }
  0x7b   : > { %1987 = vmatpush.bf16.msrb.mxu2 %v3933_v46  ;;  %v4444_v46 = vld [vmem:[%s6622_s1 + $0x74] sm:$0xf] }
  0x7c   : > { %2000 = vmatpush.bf16.msrb.mxu3 %v3997_v50  ;;  %v3630_v50 = vld [vmem:[%s6622_s1 + $0xf8] sm:$0xf0]  ;;  %v3569_v61 = vor.u32 %v4444_v46, %v3566_v47  ;;  %v4452_v47 = vld [vmem:[%s6622_s1 + $0xb4] sm:$0xf] }
  0x7d   : > { %1962 = vmatpush.bf16.msrb.mxu0 %v3797_v56  ;;  %v4492_v56 = vld [vmem:[%s6622_s1 + $0x1f4] sm:$0xf]  ;;  %v3633_v63 = vor.u32 %v4460_v48, %v3630_v50  ;;  %v3534_v46 = vld [vmem:[%s6622_s1 + $0x38] sm:$0xf0]  ;;  %v3737_v48 = vor.u32 %v4486_v40, %v3734_v41 }
  0x7e   : > { %1975 = vmatpush.bf16.msrb.mxu1 %v3861_v57  ;;  %v3758_v57 = vld [vmem:[%s6622_s1 + $0x1f8] sm:$0xf0]  ;;  %v4468_v50 = vld [vmem:[%s6622_s1 + $0x134] sm:$0xf] }
  0x7f   : > { %1988 = vmatpush.bf16.msrb.mxu2 %v3925_v58  ;;  %v1249_v58 = vunpack.c.l.b16 %v578_v45  ;;  %v3950_v40 = vld [vmem:[%s6622_s1 + $0x378] sm:$0xf0] }
  0x80   : > { %2001 = vmatpush.bf16.msrb.mxu3 %v3989_v62  ;;  %v1250_v62 = vunpack.c.h.b16 %v578_v45  ;;  %v4436_v45 = vld [vmem:[%s6622_s1 + $0x34] sm:$0xf] }
  0x81   : > { %1963 = vmatpush.bf16.msrb.mxu0 %v3789_v4  ;;  %v3761_v4 = vor.u32 %v4492_v56, %v3758_v57  ;;  %v5721_v10 = vpack.c.b16 %v1249_v58, %v1249_v58  ;;  %v3665_v56 = vor.u32 %v4468_v50, %v3662_v51  ;;  %v4434_v57 = vld [vmem:[%s6622_s1 + $0x24] sm:$0xf]  ;;  %v3526_v58 = vld [vmem:[%s6622_s1 + $0x28] sm:$0xf0] }
  0x82   : > { %1976 = vmatpush.bf16.msrb.mxu1 %v3853_v5  ;;  %v5710_v5 = vpack.c.b16 %v1247_v53, %v1247_v53  ;;  %v5731_v16 = vpack.c.b16 %v1250_v62, %v1250_v62  ;;  %v3726_v53 = vld [vmem:[%s6622_s1 + $0x1b8] sm:$0xf0]  ;;  %v4466_v62 = vld [vmem:[%s6622_s1 + $0x124] sm:$0xf]  ;;  %v3529_v2 = vor.u32 %v4434_v57, %v3526_v58  ;;  %v3814_v50 = vld [vmem:[%s6622_s1 + $0x268] sm:$0xf0] }
  0x83   : > { %1989 = vmatpush.bf16.msrb.mxu2 %v3917_v6  ;;  %v3622_v6 = vld [vmem:[%s6622_s1 + $0xe8] sm:$0xf0]  ;;  %v4522_v51 = vld [vmem:[%s6622_s1 + $0x2e4] sm:$0xf] }
  0x84   : > { %2002 = vmatpush.bf16.msrb.mxu3 %v3981_v11  ;;  %v5723_v11 = vpack.c.b16 %v1248_v59, %v1248_v59  ;;  %v3625_v18 = vor.u32 %v4458_v3, %v3622_v6  ;;  %v4450_v59 = vld [vmem:[%s6622_s1 + $0xa4] sm:$0xf]  ;;  %v4432_v6 = vld [vmem:[%s6622_s1 + $0x14] sm:$0xf]  ;;  %v4006_v57 = vld [vmem:[%s6622_s1 + $0x3e8] sm:$0xf0] }
  0x85   : > { %1964 = vmatpush.bf16.msrb.mxu0 %v3781_v19  ;;  %v3689_v19 = vor.u32 %v4474_v7, %v3686_v8  ;;  %v3518_v7 = vld [vmem:[%s6622_s1 + $0x18] sm:$0xf0]  ;;  %v4448_v8 = vld [vmem:[%s6622_s1 + $0x94] sm:$0xf] }
  0x86   : > { %1977 = vmatpush.bf16.msrb.mxu1 %v3845_v21  ;;  %v4440_v21 = vld [vmem:[%s6622_s1 + $0x54] sm:$0xf]  ;;  %v3585_v25 = vor.u32 %v4448_v8, %v3582_v15  ;;  %v3862_v15 = vld [vmem:[%s6622_s1 + $0x2c8] sm:$0xf0] }
  0x87   : > { %1990 = vmatpush.bf16.msrb.mxu2 %v3909_v22  ;;  %v3550_v22 = vld [vmem:[%s6622_s1 + $0x58] sm:$0xf0] }
  0x88   : > { %2003 = vmatpush.bf16.msrb.mxu3 %v3973_v26  ;;  %v4472_v26 = vld [vmem:[%s6622_s1 + $0x154] sm:$0xf]  ;;  %v3553_v31 = vor.u32 %v4440_v21, %v3550_v22  ;;  %v3710_v21 = vld [vmem:[%s6622_s1 + $0x198] sm:$0xf0]  ;;  %v3521_v22 = vor.u32 %v4432_v6, %v3518_v7 }
  0x89   : > { %1965 = vmatpush.bf16.msrb.mxu0 %v3773_v36  ;;  %v3681_v29 = vor.u32 %v4472_v26, %v3678_v27  ;;  %v4438_v36 = vld [vmem:[%s6622_s1 + $0x44] sm:$0xf] }
  0x8a   : > { %1978 = vmatpush.bf16.msrb.mxu1 %v3837_v14  ;;  %v3606_v14 = vld [vmem:[%s6622_s1 + $0xc8] sm:$0xf0]  ;;  %v4446_v27 = vld [vmem:[%s6622_s1 + $0x84] sm:$0xf] }
  0x8b   : > { %1991 = vmatpush.bf16.msrb.mxu2 %v3901_v33  ;;  %v4470_v33 = vld [vmem:[%s6622_s1 + $0x144] sm:$0xf]  ;;  %v3609_v43 = vor.u32 %v4454_v37, %v3606_v14  ;;  %v3822_v37 = vld [vmem:[%s6622_s1 + $0x278] sm:$0xf0]  ;;  %v3577_v41 = vor.u32 %v4446_v27, %v3574_v28  ;;  %v4516_v27 = vld [vmem:[%s6622_s1 + $0x2b4] sm:$0xf] }
  0x8c   : > { %2004 = vmatpush.bf16.msrb.mxu3 %v3965_v42  ;;  %v3545_v42 = vor.u32 %v4438_v36, %v3542_v39  ;;  %v3673_v44 = vor.u32 %v4470_v33, %v3670_v38  ;;  %v3702_v36 = vld [vmem:[%s6622_s1 + $0x188] sm:$0xf0]  ;;  %v4508_v39 = vld [vmem:[%s6622_s1 + $0x274] sm:$0xf]  ;;  %v3886_v33 = vld [vmem:[%s6622_s1 + $0x2f8] sm:$0xf0] }
  0x8d   : > { %1966 = vmatpush.bf16.msrb.mxu0 %v3765_v49  ;;  %v3598_v49 = vld [vmem:[%s6622_s1 + $0xb8] sm:$0xf0]  ;;  %v4540_v38 = vld [vmem:[%s6622_s1 + $0x374] sm:$0xf] }
  0x8e   : > { %1979 = vmatpush.bf16.msrb.mxu1 %v3829_v54  ;;  %v3537_v54 = vor.u32 %v4436_v45, %v3534_v46  ;;  %v3825_v46 = vor.u32 %v4508_v39, %v3822_v37 }
  0x8f   : > { %1992 = vmatpush.bf16.msrb.mxu2 %v3893_v55  ;;  %v3601_v55 = vor.u32 %v4452_v47, %v3598_v49  ;;  %v4506_v49 = vld [vmem:[%s6622_s1 + $0x264] sm:$0xf] }
  0x90   : > { %2005 = vmatpush.bf16.msrb.mxu3 %v3957_v60  ;;  %1967 = vmatmul.bf16.vlgmr.msrb.gmra.mxu0 %v5710_v5  ;;  %v3729_v60 = vor.u32 %v4484_v52, %v3726_v53  ;;  %v3878_v53 = vld [vmem:[%s6622_s1 + $0x2e8] sm:$0xf0]  ;;  %v3817_v58 = vor.u32 %v4506_v49, %v3814_v50  ;;  %v4496_v49 = vld [vmem:[%s6622_s1 + $0x214] sm:$0xf]  ;;  %v3774_v50 = vld [vmem:[%s6622_s1 + $0x218] sm:$0xf0] }
  0x91   : > { %2011 = vmatpush.bf16.msra.mxu0 %v3569_v61  ;;  %1980 = vmatmul.bf16.vlgmr.msrb.gmra.mxu1 %v5723_v11  ;;  %v3590_v61 = vld [vmem:[%s6622_s1 + $0xa8] sm:$0xf0] }
  0x92   : > { %2024 = vmatpush.bf16.msra.mxu1 %v3633_v63  ;;  %1993 = vmatmul.bf16.vlgmr.msrb.gmra.mxu2 %v5721_v10  ;;  %v3654_v63 = vld [vmem:[%s6622_s1 + $0x128] sm:$0xf0]  ;;  %v3593_v3 = vor.u32 %v4450_v59, %v3590_v61  ;;  %v3881_v59 = vor.u32 %v4522_v51, %v3878_v53  ;;  %v4504_v61 = vld [vmem:[%s6622_s1 + $0x254] sm:$0xf]  ;;  %v3838_v53 = vld [vmem:[%s6622_s1 + $0x298] sm:$0xf0] }
  0x93   : > { %2037 = vmatpush.bf16.msra.mxu2 %v3697_v0  ;;  %2006 = vmatmul.bf16.vlgmr.msrb.gmra.mxu3 %v5731_v16  ;;  %v4482_v0 = vld [vmem:[%s6622_s1 + $0x1a4] sm:$0xf]  ;;  %v4512_v51 = vld [vmem:[%s6622_s1 + $0x294] sm:$0xf] }
  0x94   : > { %2050 = vmatpush.bf16.msra.mxu3 %v3761_v4  ;;  %v3657_v4 = vor.u32 %v4466_v62, %v3654_v63  ;;  %v3721_v12 = vor.u32 %v4482_v0, %v3718_v1  ;;  %v3806_v62 = vld [vmem:[%s6622_s1 + $0x258] sm:$0xf0]  ;;  %v4520_v63 = vld [vmem:[%s6622_s1 + $0x2d4] sm:$0xf] }
  0x95   : > { %2012 = vmatpush.bf16.msra.mxu0 %v3561_v17  ;;  %v4464_v17 = vld [vmem:[%s6622_s1 + $0x114] sm:$0xf]  ;;  %v3870_v1 = vld [vmem:[%s6622_s1 + $0x2d8] sm:$0xf0]  ;;  %v3809_v6 = vor.u32 %v4504_v61, %v3806_v62  ;;  %v4494_v61 = vld [vmem:[%s6622_s1 + $0x204] sm:$0xf] }
  0x96   : > { %2025 = vmatpush.bf16.msra.mxu1 %v3625_v18  ;;  %v3646_v18 = vld [vmem:[%s6622_s1 + $0x118] sm:$0xf0]  ;;  %v3873_v7 = vor.u32 %v4520_v63, %v3870_v1  ;;  %v3766_v62 = vld [vmem:[%s6622_s1 + $0x208] sm:$0xf0]  ;;  %v4510_v63 = vld [vmem:[%s6622_s1 + $0x284] sm:$0xf] }
  0x97   : > { %2038 = vmatpush.bf16.msra.mxu2 %v3689_v19  ;;  %v4480_v19 = vld [vmem:[%s6622_s1 + $0x194] sm:$0xf]  ;;  %v3649_v26 = vor.u32 %v4464_v17, %v3646_v18  ;;  %v4534_v17 = vld [vmem:[%s6622_s1 + $0x344] sm:$0xf]  ;;  %v3926_v18 = vld [vmem:[%s6622_s1 + $0x348] sm:$0xf0] }
  0x98   : > { %2051 = vmatpush.bf16.msra.mxu3 %v3753_v24  ;;  %v3510_v24 = vld [vmem:[%s6622_s1 + $0x8] sm:$0xf0] }
  0x99   : > { %2013 = vmatpush.bf16.msra.mxu0 %v3553_v31  ;;  %v3713_v31 = vor.u32 %v4480_v19, %v3710_v21  ;;  %v3513_v14 = vor.u32 %v4430_v23, %v3510_v24  ;;  %v4550_v19 = vld [vmem:[%s6622_s1 + $0x3c4] sm:$0xf]  ;;  %v3990_v21 = vld [vmem:[%s6622_s1 + $0x3c8] sm:$0xf0]  ;;  %v3929_v24 = vor.u32 %v4534_v17, %v3926_v18 }
  0x9a   : > { %2026 = vmatpush.bf16.msra.mxu1 %v3617_v34  ;;  %v3638_v34 = vld [vmem:[%s6622_s1 + $0x108] sm:$0xf0]  ;;  %v3993_v28 = vor.u32 %v4550_v19, %v3990_v21 }
  0x9b   : > { %2039 = vmatpush.bf16.msra.mxu2 %v3681_v29  ;;  %v4478_v29 = vld [vmem:[%s6622_s1 + $0x184] sm:$0xf]  ;;  %v3830_v1 = vld [vmem:[%s6622_s1 + $0x288] sm:$0xf0] }
  0x9c   : > { %2052 = vmatpush.bf16.msra.mxu3 %v3745_v20  ;;  %v4524_v20 = vld [vmem:[%s6622_s1 + $0x2f4] sm:$0xf]  ;;  %v3705_v45 = vor.u32 %v4478_v29, %v3702_v36  ;;  %v3982_v36 = vld [vmem:[%s6622_s1 + $0x3b8] sm:$0xf0] }
  0x9d   : > { %2014 = vmatpush.bf16.msra.mxu0 %v3545_v42  ;;  %v3641_v42 = vor.u32 %v4462_v30, %v3638_v34  ;;  %v3889_v47 = vor.u32 %v4524_v20, %v3886_v33  ;;  %v3854_v30 = vld [vmem:[%s6622_s1 + $0x2b8] sm:$0xf0]  ;;  %v4548_v29 = vld [vmem:[%s6622_s1 + $0x3b4] sm:$0xf]  ;;  %v3782_v33 = vld [vmem:[%s6622_s1 + $0x228] sm:$0xf0] }
  0x9e   : > { %2027 = vmatpush.bf16.msra.mxu1 %v3609_v43  ;;  %v4556_v43 = vld [vmem:[%s6622_s1 + $0x3f4] sm:$0xf]  ;;  %v3918_v34 = vld [vmem:[%s6622_s1 + $0x338] sm:$0xf0]  ;;  %v3857_v37 = vor.u32 %v4516_v27, %v3854_v30  ;;  %v4634_v30 = vld [vmem:[%s6597_s4 + $0x64] sm:$0xf] }
  0x9f   : > { %2040 = vmatpush.bf16.msra.mxu2 %v3673_v44  ;;  %v4014_v44 = vld [vmem:[%s6622_s1 + $0x3f8] sm:$0xf0] }
  0xa0   : > { %2053 = vmatpush.bf16.msra.mxu3 %v3737_v48  ;;  %v3953_v48 = vor.u32 %v4540_v38, %v3950_v40  ;;  %v4017_v52 = vor.u32 %v4556_v43, %v4014_v44  ;;  %v4514_v38 = vld [vmem:[%s6622_s1 + $0x2a4] sm:$0xf]  ;;  %v3985_v40 = vor.u32 %v4548_v29, %v3982_v36  ;;  %v3910_v43 = vld [vmem:[%s6622_s1 + $0x328] sm:$0xf0] }
  0xa1   : > { %2015 = vmatpush.bf16.msra.mxu0 %v3537_v54  ;;  %v4538_v54 = vld [vmem:[%s6622_s1 + $0x364] sm:$0xf] }
  0xa2   : > { %2028 = vmatpush.bf16.msra.mxu1 %v3601_v55  ;;  %v3942_v55 = vld [vmem:[%s6622_s1 + $0x368] sm:$0xf0]  ;;  %v4546_v44 = vld [vmem:[%s6622_s1 + $0x3a4] sm:$0xf] }
  0xa3   : > { %2041 = vmatpush.bf16.msra.mxu2 %v3665_v56  ;;  %v4554_v56 = vld [vmem:[%s6622_s1 + $0x3e4] sm:$0xf] }
  0xa4   : > { %2054 = vmatpush.bf16.msra.mxu3 %v3729_v60  ;;  %v3945_v60 = vor.u32 %v4538_v54, %v3942_v55  ;;  %v4009_v0 = vor.u32 %v4554_v56, %v4006_v57  ;;  %v4528_v54 = vld [vmem:[%s6622_s1 + $0x314] sm:$0xf]  ;;  %v3902_v55 = vld [vmem:[%s6622_s1 + $0x318] sm:$0xf0] }
  0xa5   : > { %2016 = vmatpush.bf16.msra.mxu0 %v3529_v2  ;;  %v4536_v2 = vld [vmem:[%s6622_s1 + $0x354] sm:$0xf]  ;;  %v3966_v57 = vld [vmem:[%s6622_s1 + $0x398] sm:$0xf0] }
  0xa6   : > { %2029 = vmatpush.bf16.msra.mxu1 %v3593_v3  ;;  %v3934_v3 = vld [vmem:[%s6622_s1 + $0x358] sm:$0xf0]  ;;  %v4544_v56 = vld [vmem:[%s6622_s1 + $0x394] sm:$0xf] }
  0xa7   : > { %2042 = vmatpush.bf16.msra.mxu2 %v3657_v4  ;;  %v3998_v4 = vld [vmem:[%s6622_s1 + $0x3d8] sm:$0xf0]  ;;  %v3937_v8 = vor.u32 %v4536_v2, %v3934_v3  ;;  %v4526_v2 = vld [vmem:[%s6622_s1 + $0x304] sm:$0xf]  ;;  %v3894_v3 = vld [vmem:[%s6622_s1 + $0x308] sm:$0xf0] }
  0xa8   : > { %2055 = vmatpush.bf16.msra.mxu3 %v3721_v12  ;;  %v4518_v12 = vld [vmem:[%s6622_s1 + $0x2c4] sm:$0xf] }
  0xa9   : > { %2017 = vmatpush.bf16.msra.mxu0 %v3521_v22  ;;  %v3865_v23 = vor.u32 %v4518_v12, %v3862_v15 }
  0xaa   : > { %2030 = vmatpush.bf16.msra.mxu1 %v3585_v25  ;;  %v4500_v25 = vld [vmem:[%s6622_s1 + $0x234] sm:$0xf] }
  0xab   : > { %2043 = vmatpush.bf16.msra.mxu2 %v3649_v26  ;;  %v3790_v26 = vld [vmem:[%s6622_s1 + $0x238] sm:$0xf0] }
  0xac   : > { %2056 = vmatpush.bf16.msra.mxu3 %v3713_v31  ;;  %v4532_v31 = vld [vmem:[%s6622_s1 + $0x334] sm:$0xf]  ;;  %v3793_v39 = vor.u32 %v4500_v25, %v3790_v26  ;;  %v4068_v25 = vld [vmem:[%s6597_s4 + $0x60] sm:$0xf]  ;;  %v4635_v26 = vld [vmem:[%s6597_s4 + $0x64] sm:$0xf0] }
  0xad   : > { %2018 = vmatpush.bf16.msra.mxu0 %v3513_v14  ;;  %v3921_v20 = vor.u32 %v4532_v31, %v3918_v34  ;;  %v4498_v14 = vld [vmem:[%s6622_s1 + $0x224] sm:$0xf]  ;;  %v4070_v31 = vld [vmem:[%s6597_s4 + $0x68] sm:$0xf0]  ;;  %v4069_v34 = vor.u32 %v4635_v26, %v4068_v25 }
  0xae   : > { %2031 = vmatpush.bf16.msra.mxu1 %v3577_v41  ;;  %v3846_v41 = vld [vmem:[%s6622_s1 + $0x2a8] sm:$0xf0]  ;;  %v4073_v36 = vor.u32 %v4634_v30, %v4070_v31 }
  0xaf   : > { %2044 = vmatpush.bf16.msra.mxu2 %v3641_v42  ;;  %v4530_v42 = vld [vmem:[%s6622_s1 + $0x324] sm:$0xf] }
  0xb0   : > { %2057 = vmatpush.bf16.msra.mxu3 %v3705_v45  ;;  %2019 = vmatmul.bf16.vlgmr.msra.gmra.mxu0 %v5498_v9  ;;  %v4552_v9 = vld [vmem:[%s6622_s1 + $0x3d4] sm:$0xf]  ;;  %v3974_v45 = vld [vmem:[%s6622_s1 + $0x3a8] sm:$0xf0] }
  0xb1   : > { %2063 = vmatpush.bf16.msrb.mxu0 %v3825_v46  ;;  %2032 = vmatmul.bf16.vlgmr.msra.gmra.mxu1 %v5515_v32  ;;  %v3798_v32 = vld [vmem:[%s6622_s1 + $0x248] sm:$0xf0]  ;;  %v3785_v46 = vor.u32 %v4498_v14, %v3782_v33  ;;  %v4632_v14 = vld [vmem:[%s6597_s4 + $0x54] sm:$0xf]  ;;  %v4062_v33 = vld [vmem:[%s6597_s4 + $0x58] sm:$0xf0] }
  0xb2   : > { %2076 = vmatpush.bf16.msrb.mxu1 %v3889_v47  ;;  %2045 = vmatmul.bf16.vlgmr.msra.gmra.mxu2 %v5511_v13  ;;  %v4502_v13 = vld [vmem:[%s6622_s1 + $0x244] sm:$0xf]  ;;  %v3849_v47 = vor.u32 %v4514_v38, %v3846_v41 }
  0xb3   : > { %2089 = vmatpush.bf16.msrb.mxu2 %v3953_v48  ;;  %2058 = vmatmul.bf16.vlgmr.msra.gmra.mxu3 %v5525_v35  ;;  %v4001_v35 = vor.u32 %v4552_v9, %v3998_v4  ;;  %v3801_v22 = vor.u32 %v4502_v13, %v3798_v32  ;;  %v3913_v48 = vor.u32 %v4530_v42, %v3910_v43  ;;  %v4542_v9 = vld [vmem:[%s6622_s1 + $0x384] sm:$0xf]  ;;  %v3958_v4 = vld [vmem:[%s6622_s1 + $0x388] sm:$0xf0] }
  0xb4   : > { %2102 = vmatpush.bf16.msrb.mxu3 %v4017_v52  ;;  %v3977_v52 = vor.u32 %v4546_v44, %v3974_v45  ;;  %v3961_v13 = vor.u32 %v4542_v9, %v3958_v4  ;;  %v4065_v43 = vor.u32 %v4632_v14, %v4062_v33  ;;  %v4052_v44 = vld [vmem:[%s6597_s4 + $0x40] sm:$0xf]  ;;  %v4631_v45 = vld [vmem:[%s6597_s4 + $0x44] sm:$0xf0] }
  0xb5   : > { %2064 = vmatpush.bf16.msrb.mxu0 %v3817_v58  ;;  %v3777_v58 = vor.u32 %v4496_v49, %v3774_v50  ;;  %v4053_v49 = vor.u32 %v4631_v45, %v4052_v44  ;;  %v4142_v44 = vld [vmem:[%s6597_s4 + $0xf8] sm:$0xf0] }
  0xb6   : > { %2077 = vmatpush.bf16.msrb.mxu1 %v3881_v59  ;;  %v3841_v59 = vor.u32 %v4512_v51, %v3838_v53 }
  0xb7   : > { %2090 = vmatpush.bf16.msrb.mxu2 %v3945_v60  ;;  %v3905_v60 = vor.u32 %v4528_v54, %v3902_v55  ;;  %v4044_v54 = vld [vmem:[%s6597_s4 + $0x30] sm:$0xf]  ;;  %v4629_v55 = vld [vmem:[%s6597_s4 + $0x34] sm:$0xf0] }
  0xb8   : > { %2103 = vmatpush.bf16.msrb.mxu3 %v4009_v0  ;;  %v3969_v0 = vor.u32 %v4544_v56, %v3966_v57  ;;  %v4628_v56 = vld [vmem:[%s6597_s4 + $0x34] sm:$0xf] }
  0xb9   : > { %2065 = vmatpush.bf16.msrb.mxu0 %v3809_v6  ;;  %v3769_v6 = vor.u32 %v4494_v61, %v3766_v62  ;;  %v4036_v61 = vld [vmem:[%s6597_s4 + $0x20] sm:$0xf]  ;;  %v4627_v62 = vld [vmem:[%s6597_s4 + $0x24] sm:$0xf0] }
  0xba   : > { %2078 = vmatpush.bf16.msrb.mxu1 %v3873_v7  ;;  %v3833_v7 = vor.u32 %v4510_v63, %v3830_v1  ;;  %v4626_v63 = vld [vmem:[%s6597_s4 + $0x24] sm:$0xf]  ;;  %v4038_v1 = vld [vmem:[%s6597_s4 + $0x28] sm:$0xf0] }
  0xbb   : > { %2091 = vmatpush.bf16.msrb.mxu2 %v3937_v8  ;;  %v3897_v8 = vor.u32 %v4526_v2, %v3894_v3  ;;  %v6077_v32 = vpop.f32.mrf.mxu0  ;;  %v4041_v2 = vor.u32 %v4626_v63, %v4038_v1  ;;  %v4647_v1 = vld [vmem:[%s6597_s4 + $0xc4] sm:$0xf0] }
  0xbc   : > { %2104 = vmatpush.bf16.msrb.mxu3 %v4001_v35 }
  0xbd   : > { %2066 = vmatpush.bf16.msrb.mxu0 %v3801_v22  ;;  %v6079_v12 = vpop.f32.mrf.mxu1 }
  0xbe   : > { %2079 = vmatpush.bf16.msrb.mxu1 %v3865_v23  ;;  %v4076_v23 = vld [vmem:[%s6597_s4 + $0x70] sm:$0xf] }
  0xbf   : > { %2092 = vmatpush.bf16.msrb.mxu2 %v3929_v24  ;;  %v4078_v24 = vld [vmem:[%s6597_s4 + $0x78] sm:$0xf0] }
  0xc0   : > { %2105 = vmatpush.bf16.msrb.mxu3 %v3993_v28  ;;  %v6085_v35 = vpop.f32.mrf.mxu2 }
  0xc1   : > { %2067 = vmatpush.bf16.msrb.mxu0 %v3793_v39  ;;  %v4060_v39 = vld [vmem:[%s6597_s4 + $0x50] sm:$0xf] }
  0xc2   : > { %2080 = vmatpush.bf16.msrb.mxu1 %v3857_v37  ;;  %v6087_v15 = vpop.f32.mrf.mxu3  ;;  %v4633_v37 = vld [vmem:[%s6597_s4 + $0x54] sm:$0xf0] }
  0xc3   : > { %2093 = vmatpush.bf16.msrb.mxu2 %v3921_v20  ;;  %v1152_v17 = vpop.f32.mrf.mxu0 }
  0xc4   : > { %2106 = vmatpush.bf16.msrb.mxu3 %v3985_v40  ;;  %v4061_v40 = vor.u32 %v4633_v37, %v4060_v39  ;;  %v4624_v17 = vld [vmem:[%s6597_s4 + $0x14] sm:$0xf] }
  0xc5   : > { %2068 = vmatpush.bf16.msrb.mxu0 %v3785_v46  ;;  %v1165_v18 = vpop.f32.mrf.mxu1 }
  0xc6   : > { %2081 = vmatpush.bf16.msrb.mxu1 %v3849_v47  ;;  %v4630_v47 = vld [vmem:[%s6597_s4 + $0x44] sm:$0xf]  ;;  %v4030_v18 = vld [vmem:[%s6597_s4 + $0x18] sm:$0xf0] }
  0xc7   : > { %2094 = vmatpush.bf16.msrb.mxu2 %v3913_v48  ;;  %v4054_v48 = vld [vmem:[%s6597_s4 + $0x48] sm:$0xf0] }
  0xc8   : > { %2107 = vmatpush.bf16.msrb.mxu3 %v3977_v52  ;;  %v1178_v19 = vpop.f32.mrf.mxu2  ;;  %v4057_v51 = vor.u32 %v4630_v47, %v4054_v48  ;;  %v4132_v48 = vld [vmem:[%s6597_s4 + $0xe0] sm:$0xf] }
  0xc9   : > { %2069 = vmatpush.bf16.msrb.mxu0 %v3777_v58  ;;  %v4045_v58 = vor.u32 %v4629_v55, %v4044_v54  ;;  %v1164_v19 = vadd.f32 %v6079_v12, %v6077_v32  ;;  %v4022_v32 = vld [vmem:[%s6597_s4 + $0x8] sm:$0xf0]  ;;  %v4124_v54 = vld [vmem:[%s6597_s4 + $0xd0] sm:$0xf] }
  0xca   : > { %2082 = vmatpush.bf16.msrb.mxu1 %v3841_v59  ;;  %v1191_v21 = vpop.f32.mrf.mxu3  ;;  %v4046_v59 = vld [vmem:[%s6597_s4 + $0x38] sm:$0xf0] }
  0xcb   : > { %2095 = vmatpush.bf16.msrb.mxu2 %v3905_v60  ;;  %v4049_v60 = vor.u32 %v4628_v56, %v4046_v59  ;;  %v4033_v21 = vor.u32 %v4624_v17, %v4030_v18  ;;  %v1177_v12 = vadd.f32 %v6085_v35, %v1164_v19  ;;  %v4126_v59 = vld [vmem:[%s6597_s4 + $0xd8] sm:$0xf0] }
  0xcc   : > { %2108 = vmatpush.bf16.msrb.mxu3 %v3969_v0  ;;  %v4037_v0 = vor.u32 %v4627_v62, %v4036_v61  ;;  %v4110_v17 = vld [vmem:[%s6597_s4 + $0xb8] sm:$0xf0] }
  0xcd   : > { %2070 = vmatpush.bf16.msrb.mxu0 %v3769_v6  ;;  %v1202_v22 = vpop.f32.mrf.mxu0  ;;  %v4028_v6 = vld [vmem:[%s6597_s4 + $0x10] sm:$0xf]  ;;  %v1190_v25 = vadd.f32 %v6087_v15, %v1177_v12 }
  0xce   : > { %2083 = vmatpush.bf16.msrb.mxu1 %v3833_v7  ;;  %v4625_v7 = vld [vmem:[%s6597_s4 + $0x14] sm:$0xf0]  ;;  %v4140_v15 = vld [vmem:[%s6597_s4 + $0xf0] sm:$0xf] }
  0xcf   : > { %2096 = vmatpush.bf16.msrb.mxu2 %v3897_v8 }
  0xd0   : > { %2109 = vmatpush.bf16.msrb.mxu3 %v3961_v13  ;;  %2071 = vmatmul.bf16.vlgmr.msrb.gmra.mxu0 %v5710_v5  ;;  %v4637_v5 = vld [vmem:[%s6597_s4 + $0x74] sm:$0xf0]  ;;  %v4029_v13 = vor.u32 %v4625_v7, %v4028_v6  ;;  %v4108_v6 = vld [vmem:[%s6597_s4 + $0xb0] sm:$0xf] }
  0xd1   : > { %2084 = vmatmul.bf16.vlgmr.msrb.gmra.mxu1 %v5723_v11  ;;  %v1215_v11 = vpop.f32.mrf.mxu1  ;;  %v4645_v7 = vld [vmem:[%s6597_s4 + $0xb4] sm:$0xf0] }
  0xd2   : > { %2097 = vmatmul.bf16.vlgmr.msrb.gmra.mxu2 %v5721_v10  ;;  %v4636_v10 = vld [vmem:[%s6597_s4 + $0x74] sm:$0xf]  ;;  %v1216_v27 = vadd.f32 %v1215_v11, %v1202_v22  ;;  %v4020_v22 = vld [vmem:[%s6597_s4] sm:$0xf] }
  0xd3   : > { %2110 = vmatmul.bf16.vlgmr.msrb.gmra.mxu3 %v5731_v16  ;;  %v4077_v16 = vor.u32 %v4637_v5, %v4076_v23  ;;  %v4081_v28 = vor.u32 %v4636_v10, %v4078_v24  ;;  %v4623_v23 = vld [vmem:[%s6597_s4 + $0x4] sm:$0xf0]  ;;  %v4622_v5 = vld [vmem:[%s6597_s4 + $0x4] sm:$0xf] }
  0xd4   : > { %v4021_v10 = vor.u32 %v4623_v23, %v4020_v22  ;;  %v4025_v11 = vor.u32 %v4622_v5, %v4022_v32  ;;  %v4100_v22 = vld [vmem:[%s6597_s4 + $0xa0] sm:$0xf]  ;;  %v4643_v23 = vld [vmem:[%s6597_s4 + $0xa4] sm:$0xf0]  ;;  %v4642_v5 = vld [vmem:[%s6597_s4 + $0xa4] sm:$0xf] }
  0xd5   : > { %2325 = vmatpush.bf16.msra.mxu0 %v4077_v16  ;;  %v1228_v29 = vpop.f32.mrf.mxu2  ;;  %2351 = vmatpush.bf16.msra.mxu2 %v4081_v28  ;;  %v1204_v41 = vpop.f32.mrf.mxu0  ;;  %v4102_v32 = vld [vmem:[%s6597_s4 + $0xa8] sm:$0xf0] }
  0xd6   : > { %v1229_v20 = vadd.f32 %v1228_v29, %v1216_v27  ;;  %v1241_v38 = vpop.f32.mrf.mxu3  ;;  %v4105_v12 = vor.u32 %v4642_v5, %v4102_v32 }
  0xd8   : > { %v6125_v42 = vadd.f32 %v1241_v38, %v1229_v20  ;;  %v4653_v38 = vld [vmem:[%s6597_s4 + $0xf4] sm:$0xf0] }
  0xd9   : > { %2326 = vmatpush.bf16.msra.mxu0 %v4069_v34  ;;  %2352 = vmatpush.bf16.msra.mxu2 %v4073_v36  ;;  %v1217_v46 = vpop.f32.mrf.mxu1  ;;  %v6194_v36 = vld [vmem:[%s6596_s3] sm:$0x3] }
  0xda   : > { %v2117_v37 = vperm.slane %v6194_v36, 0 }
  0xdd   : > { %2327 = vmatpush.bf16.msra.mxu0 %v4061_v40  ;;  %v1230_v50 = vpop.f32.mrf.mxu2  ;;  %2353 = vmatpush.bf16.msra.mxu2 %v4065_v43  ;;  %v4652_v40 = vld [vmem:[%s6597_s4 + $0xf4] sm:$0xf]  ;;  %v4141_v43 = vor.u32 %v4653_v38, %v4140_v15 }
  0xde   : > { %v1243_v52 = vpop.f32.mrf.mxu3  ;;  %v4145_v46 = vor.u32 %v4652_v40, %v4142_v44  ;;  %v4650_v50 = vld [vmem:[%s6597_s4 + $0xe4] sm:$0xf] }
  0xdf   : > { %2338 = vmatpush.bf16.msra.mxu1 %v4141_v43 }
  0xe0   : > { %2364 = vmatpush.bf16.msra.mxu3 %v4145_v46 }
  0xe1   : > { %2328 = vmatpush.bf16.msra.mxu0 %v4053_v49  ;;  %2354 = vmatpush.bf16.msra.mxu2 %v4057_v51  ;;  %v4651_v49 = vld [vmem:[%s6597_s4 + $0xe4] sm:$0xf0] }
  0xe2   : > { %v4133_v52 = vor.u32 %v4651_v49, %v4132_v48 }
  0xe4   : > { %2339 = vmatpush.bf16.msra.mxu1 %v4133_v52 }
  0xe5   : > { %2329 = vmatpush.bf16.msra.mxu0 %v4045_v58  ;;  %2355 = vmatpush.bf16.msra.mxu2 %v4049_v60  ;;  %v4648_v58 = vld [vmem:[%s6597_s4 + $0xd4] sm:$0xf] }
  0xe6   : > { %v4129_v63 = vor.u32 %v4648_v58, %v4126_v59  ;;  %v4661_v59 = vld [vmem:[%s6599_s6 + $0x38] sm:$0xff] }
  0xe9   : > { %2330 = vmatpush.bf16.msra.mxu0 %v4037_v0  ;;  %2356 = vmatpush.bf16.msra.mxu2 %v4041_v2  ;;  %v4116_v0 = vld [vmem:[%s6597_s4 + $0xc0] sm:$0xf]  ;;  %v4646_v2 = vld [vmem:[%s6597_s4 + $0xc4] sm:$0xf] }
  0xed   : > { %v1916_v53 = vpop.f32.mrf.mxu0  ;;  %2331 = vmatpush.bf16.msra.mxu0 %v4029_v13  ;;  %2357 = vmatpush.bf16.msra.mxu2 %v4033_v21  ;;  %v4109_v13 = vor.u32 %v4645_v7, %v4108_v6 }
  0xee   : > { %v1929_v57 = vpop.f32.mrf.mxu1  ;;  %v1917_v26 = vadd.f32 %v1916_v53, %v1190_v25  ;;  %v4134_v53 = vld [vmem:[%s6597_s4 + $0xe8] sm:$0xf0] }
  0xef   : > { %v4137_v56 = vor.u32 %v4650_v50, %v4134_v53 }
  0xf0   : > { %v1930_v27 = vadd.f32 %v1929_v57, %v1917_v26  ;;  %v4649_v57 = vld [vmem:[%s6597_s4 + $0xd4] sm:$0xf0] }
  0xf1   : > { %2332 = vmatpush.bf16.msra.mxu0 %v4021_v10  ;;  %2358 = vmatpush.bf16.msra.mxu2 %v4025_v11  ;;  %v4125_v62 = vor.u32 %v4649_v57, %v4124_v54  ;;  %v4101_v10 = vor.u32 %v4643_v23, %v4100_v22  ;;  %v4092_v11 = vld [vmem:[%s6597_s4 + $0x90] sm:$0xf]  ;;  %v2159_v22 = vld [vmem:[%s6598_s5] sm:$0x3] }
  0xf2   : > { %2365 = vmatpush.bf16.msra.mxu3 %v4137_v56  ;;  %v2161_v23 = vperm.slane %v2159_v22, 0  ;;  %v2162_v32 = vperm.slane %v2159_v22, 1  ;;  %v4691_v22 = vld [vmem:[%s6603_s10 + $0x28] sm:$0xff] }
  0xf3   : > { %2340 = vmatpush.bf16.msra.mxu1 %v4125_v62  ;;  %v4659_v62 = vld [vmem:[%s6599_s6 + $0x28] sm:$0xff] }
  0xf5   : > { %v1942_v3 = vpop.f32.mrf.mxu2  ;;  %v1918_v4 = vpop.f32.mrf.mxu0  ;;  %2513 = vmatpush.bf16.msrb.mxu0 %v4661_v59 }
  0xf6   : > { %v1955_v9 = vpop.f32.mrf.mxu3  ;;  %v1931_v8 = vpop.f32.mrf.mxu1  ;;  %v1943_v28 = vadd.f32 %v1942_v3, %v1930_v27  ;;  %v4118_v3 = vld [vmem:[%s6597_s4 + $0xc8] sm:$0xf0]  ;;  %2366 = vmatpush.bf16.msra.mxu3 %v4129_v63  ;;  %v4094_v27 = vld [vmem:[%s6597_s4 + $0x98] sm:$0xf0] }
  0xf7   : > { %v4121_v4 = vor.u32 %v4646_v2, %v4118_v3  ;;  %v4644_v8 = vld [vmem:[%s6597_s4 + $0xb4] sm:$0xf]  ;;  %v4667_v63 = vld [vmem:[%s6599_s6 + $0x68] sm:$0xff]  ;;  %v4657_v2 = vld [vmem:[%s6599_s6 + $0x18] sm:$0xff] }
  0xf8   : > { %v1956_v30 = vadd.f32 %v1955_v9, %v1943_v28  ;;  %v4117_v9 = vor.u32 %v4647_v1, %v4116_v0  ;;  %v4113_v19 = vor.u32 %v4644_v8, %v4110_v17  ;;  %v4658_v0 = vld [vmem:[%s6599_s6 + $0x20] sm:$0xff]  ;;  %v4665_v3 = vld [vmem:[%s6599_s6 + $0x58] sm:$0xff]  ;;  %v4664_v17 = vld [vmem:[%s6599_s6 + $0x50] sm:$0xff] }
  0xf9   : > { %v4666_v1 = vld [vmem:[%s6599_s6 + $0x60] sm:$0xff] }
  0xfa   : > { %2341 = vmatpush.bf16.msra.mxu1 %v4117_v9  ;;  %2367 = vmatpush.bf16.msra.mxu3 %v4121_v4  ;;  %v4656_v4 = vld [vmem:[%s6599_s6 + $0x10] sm:$0xff] }
  0xfd   : > { %v1944_v16 = vpop.f32.mrf.mxu2 }
  0xfe   : > { %v1957_v24 = vpop.f32.mrf.mxu3  ;;  %2342 = vmatpush.bf16.msra.mxu1 %v4109_v13  ;;  %2368 = vmatpush.bf16.msra.mxu3 %v4113_v19  ;;  %v4641_v16 = vld [vmem:[%s6597_s4 + $0x94] sm:$0xf0]  ;;  %v4655_v13 = vld [vmem:[%s6599_s6 + $0x8] sm:$0xff] }
  0xff   : > { %v4640_v24 = vld [vmem:[%s6597_s4 + $0x94] sm:$0xf]  ;;  %v4093_v26 = vor.u32 %v4641_v16, %v4092_v11  ;;  %v4663_v19 = vld [vmem:[%s6599_s6 + $0x48] sm:$0xff] }
 0x102   : > { %2343 = vmatpush.bf16.msra.mxu1 %v4101_v10  ;;  %2369 = vmatpush.bf16.msra.mxu3 %v4105_v12 }
 0x106   : > { %2344 = vmatpush.bf16.msra.mxu1 %v4093_v26 }
 0x10d   : > { %v1968_v31 = vpop.f32.mrf.mxu0 }
 0x10e   : > { %v1981_v34 = vpop.f32.mrf.mxu1  ;;  %v1969_v29 = vadd.f32 %v1968_v31, %v1956_v30  ;;  %v4097_v31 = vor.u32 %v4640_v24, %v4094_v27 }
 0x110   : > { %v1982_v35 = vadd.f32 %v1981_v34, %v1969_v29  ;;  %2370 = vmatpush.bf16.msra.mxu3 %v4097_v31  ;;  %v4084_v29 = vld [vmem:[%s6597_s4 + $0x80] sm:$0xf] }
 0x115   : > { %v1994_v39 = vpop.f32.mrf.mxu2  ;;  %v1970_v33 = vpop.f32.mrf.mxu0 }
 0x116   : > { %v1995_v20 = vadd.f32 %v1994_v39, %v1982_v35  ;;  %v2007_v14 = vpop.f32.mrf.mxu3  ;;  %v1983_v41 = vpop.f32.mrf.mxu1  ;;  %v4639_v35 = vld [vmem:[%s6597_s4 + $0x84] sm:$0xf0]  ;;  %v4638_v39 = vld [vmem:[%s6597_s4 + $0x84] sm:$0xf] }
 0x118   : > { %v2008_v45 = vadd.f32 %v2007_v14, %v1995_v20  ;;  %v4086_v20 = vld [vmem:[%s6597_s4 + $0x88] sm:$0xf0] }
 0x119   : > { %v4089_v14 = vor.u32 %v4638_v39, %v4086_v20  ;;  %v4670_v39 = vld [vmem:[%s6601_s8] sm:$0xff]  ;;  %v4681_v20 = vld [vmem:[%s6601_s8 + $0x58] sm:$0xff] }
 0x11a   : > { %v2121_v47 = vadd.f32 %v2117_v37, %v2008_v45  ;;  %v4085_v37 = vor.u32 %v4639_v35, %v4084_v29  ;;  %v4671_v29 = vld [vmem:[%s6601_s8 + $0x8] sm:$0xff] }
 0x11b   : > { %2371 = vmatpush.bf16.msra.mxu3 %v4089_v14  ;;  %v4679_v35 = vld [vmem:[%s6601_s8 + $0x48] sm:$0xff]  ;;  %v4678_v14 = vld [vmem:[%s6601_s8 + $0x40] sm:$0xff] }
 0x11c   : > { %v2123_v51 = vmax.f32 %v2121_v47, 0.0  ;;  %2345 = vmatpush.bf16.msra.mxu1 %v4085_v37  ;;  %v4672_v37 = vld [vmem:[%s6601_s8 + $0x10] sm:$0xff] }
 0x11d   : > { %v1996_v55 = vpop.f32.mrf.mxu2 }
 0x11e   : > { %v2125_v60 = vpack.c.bf16 %v2123_v51, %v2123_v51  ;;  %v2009_v61 = vpop.f32.mrf.mxu3  ;;  %v2118_v51 = vperm.slane %v6194_v36, 1  ;;  %v4660_v36 = vld [vmem:[%s6599_s6 + $0x30] sm:$0xff] }
 0x11f   : > { %v4668_v61 = vld [vmem:[%s6599_s6 + $0x70] sm:$0xff]  ;;  %2514 = vmatpush.bf16.msrb.mxu0 %v4660_v36  ;;  %2608 = vmatpush.bf16.msrb.mxu3 %v4671_v29  ;;  %v4683_v36 = vld [vmem:[%s6601_s8 + $0x68] sm:$0xff] }
 0x120   : > { %2333 = vmatmul.bf16.vlgmr.msra.gmra.mxu0 %v2125_v60  ;;  %2359 = vmatmul.bf16.vlgmr.msra.gmra.mxu2 %v2125_v60  ;;  %v4669_v60 = vld [vmem:[%s6599_s6 + $0x78] sm:$0xff]  ;;  %v4696_v29 = vld [vmem:[%s6605_s12 + $0x10] sm:$0xff] }
 0x121   : > { %2526 = vmatpush.bf16.msrb.mxu1 %v4669_v60 }
 0x123   : > { %2515 = vmatpush.bf16.msrb.mxu0 %v4659_v62  ;;  %2609 = vmatpush.bf16.msrb.mxu3 %v4670_v39 }
 0x125   : > { %2527 = vmatpush.bf16.msrb.mxu1 %v4668_v61 }
 0x127   : > { %2516 = vmatpush.bf16.msrb.mxu0 %v4658_v0 }
 0x129   : > { %2528 = vmatpush.bf16.msrb.mxu1 %v4667_v63 }
 0x12b   : > { %2517 = vmatpush.bf16.msrb.mxu0 %v4657_v2  ;;  %v4682_v2 = vld [vmem:[%s6601_s8 + $0x60] sm:$0xff] }
 0x12d   : > { %v2020_v18 = vpop.f32.mrf.mxu0  ;;  %2529 = vmatpush.bf16.msrb.mxu1 %v4666_v1 }
 0x12e   : > { %v2033_v21 = vpop.f32.mrf.mxu1  ;;  %v2021_v38 = vadd.f32 %v2020_v18, %v6125_v42  ;;  %v4654_v18 = vld [vmem:[%s6599_s6] sm:$0xff] }
 0x12f   : > { %2518 = vmatpush.bf16.msrb.mxu0 %v4656_v4 }
 0x130   : > { %v2034_v40 = vadd.f32 %v2033_v21, %v2021_v38  ;;  %v4662_v21 = vld [vmem:[%s6599_s6 + $0x40] sm:$0xff]  ;;  %v4677_v38 = vld [vmem:[%s6601_s8 + $0x38] sm:$0xff] }
 0x131   : > { %2530 = vmatpush.bf16.msrb.mxu1 %v4665_v3 }
 0x133   : > { %2519 = vmatpush.bf16.msrb.mxu0 %v4655_v13 }
 0x135   : > { %v2046_v25 = vpop.f32.mrf.mxu2  ;;  %v2022_v30 = vpop.f32.mrf.mxu0  ;;  %2531 = vmatpush.bf16.msrb.mxu1 %v4664_v17 }
 0x136   : > { %v2059_v28 = vpop.f32.mrf.mxu3  ;;  %v2035_v34 = vpop.f32.mrf.mxu1  ;;  %v2047_v41 = vadd.f32 %v2046_v25, %v2034_v40  ;;  %v4676_v40 = vld [vmem:[%s6601_s8 + $0x30] sm:$0xff] }
 0x137   : > { %2520 = vmatpush.bf16.msrb.mxu0 %v4654_v18  ;;  %v4673_v34 = vld [vmem:[%s6601_s8 + $0x18] sm:$0xff] }
 0x138   : > { %v2060_v43 = vadd.f32 %v2059_v28, %v2047_v41  ;;  %2580 = vmatpush.bf16.msrb.mxu2 %v4673_v34  ;;  %v4674_v41 = vld [vmem:[%s6601_s8 + $0x20] sm:$0xff]  ;;  %v4697_v34 = vld [vmem:[%s6605_s12 + $0x18] sm:$0xff] }
 0x139   : > { %2532 = vmatpush.bf16.msrb.mxu1 %v4663_v19  ;;  %v4693_v19 = vld [vmem:[%s6603_s10 + $0x38] sm:$0xff] }
 0x13b   : > { %2720 = vmatpush.bf16.msra.mxu0 %v4679_v35 }
 0x13c   : > { %2581 = vmatpush.bf16.msrb.mxu2 %v4672_v37  ;;  %v4695_v37 = vld [vmem:[%s6605_s12 + $0x8] sm:$0xff] }
 0x13d   : > { %v2048_v33 = vpop.f32.mrf.mxu2  ;;  %2533 = vmatpush.bf16.msrb.mxu1 %v4662_v21  ;;  %v4692_v21 = vld [vmem:[%s6603_s10 + $0x30] sm:$0xff] }
 0x13e   : > { %v2061_v15 = vpop.f32.mrf.mxu3  ;;  %v4680_v33 = vld [vmem:[%s6601_s8 + $0x50] sm:$0xff] }
 0x13f   : > { %2721 = vmatpush.bf16.msra.mxu0 %v4678_v14  ;;  %v4675_v15 = vld [vmem:[%s6601_s8 + $0x28] sm:$0xff] }
 0x140   : > { %2645 = vmatpush.bf16.msra.mxu2 %v4675_v15 }
 0x144   : > { %2646 = vmatpush.bf16.msra.mxu2 %v4674_v41 }
 0x14d   : > { %v2072_v44 = vpop.f32.mrf.mxu0 }
 0x14e   : > { %v2085_v45 = vpop.f32.mrf.mxu1  ;;  %v2073_v46 = vadd.f32 %v2072_v44, %v2060_v43  ;;  %v4731_v44 = vld [vmem:[%s6600_s7] ss:$0 sm:$0xff] }
 0x150   : > { %v2086_v47 = vadd.f32 %v2085_v45, %v2073_v46 }
 0x155   : > { %v2098_v48 = vpop.f32.mrf.mxu2  ;;  %v2074_v52 = vpop.f32.mrf.mxu0 }
 0x156   : > { %v2099_v49 = vadd.f32 %v2098_v48, %v2086_v47  ;;  %v2111_v50 = vpop.f32.mrf.mxu3  ;;  %v2087_v53 = vpop.f32.mrf.mxu1  ;;  %v4685_v52 = vld [vmem:[%s6601_s8 + $0x78] sm:$0xff] }
 0x158   : > { %v2112_v54 = vadd.f32 %v2111_v50, %v2099_v49 }
 0x15a   : > { %v2122_v55 = vadd.f32 %v2118_v51, %v2112_v54 }
 0x15c   : > { %v2124_v56 = vmax.f32 %v2122_v55, 0.0 }
 0x15d   : > { %v2100_v57 = vpop.f32.mrf.mxu2 }
 0x15e   : > { %v2126_v58 = vpack.c.bf16 %v2124_v56, %v2124_v56  ;;  %v2113_v42 = vpop.f32.mrf.mxu3 }
 0x160   : > { %2346 = vmatmul.bf16.vlgmr.msra.gmra.mxu1 %v2126_v58  ;;  %2372 = vmatmul.bf16.vlgmr.msra.gmra.mxu3 %v2126_v58  ;;  %v4684_v58 = vld [vmem:[%s6601_s8 + $0x70] sm:$0xff] }
 0x161   : > { %2757 = vmatpush.bf16.msra.mxu1 %v4681_v20  ;;  %2682 = vmatpush.bf16.msra.mxu3 %v4677_v38 }
 0x165   : > { %2758 = vmatpush.bf16.msra.mxu1 %v4680_v33  ;;  %2683 = vmatpush.bf16.msra.mxu3 %v4676_v40 }
 0x19d   : > { %v2334_v9 = vpop.f32.mrf.mxu0 }
 0x19e   : > { %v2335_v5 = vadd.f32 %v2334_v9, %v2161_v23  ;;  %v4690_v23 = vld [vmem:[%s6603_s10 + $0x20] sm:$0xff] }
 0x1a3   : > { %v2360_v6 = vpop.f32.mrf.mxu2 }
 0x1a4   : > { %v2361_v16 = vadd.f32 %v2360_v6, %v2162_v32  ;;  %v4689_v32 = vld [vmem:[%s6603_s10 + $0x18] sm:$0xff] }
 0x1a5   : > { %v2336_v7 = vpop.f32.mrf.mxu0 }
 0x1ab   : > { %v2362_v8 = vpop.f32.mrf.mxu2 }
 0x1dd   : > { %v2347_v10 = vpop.f32.mrf.mxu1 }
 0x1de   : > { %v2348_v12 = vadd.f32 %v2347_v10, %v2335_v5 }
 0x1e0   : > { %v2377_v11 = vmax.f32 %v2348_v12, 0.0 }
 0x1e2   : > { %v2379_v24 = vpack.c.bf16 %v2377_v11, %v2377_v11  ;;  %v4688_v11 = vld [vmem:[%s6603_s10 + $0x10] sm:$0xff] }
 0x1e3   : > { %v2373_v25 = vpop.f32.mrf.mxu3 }
 0x1e4   : > { %v2374_v26 = vadd.f32 %v2373_v25, %v2361_v16  ;;  %2521 = vmatmul.bf16.vlgmr.msrb.gmra.mxu0 %v2379_v24 }
 0x1e5   : > { %v2349_v27 = vpop.f32.mrf.mxu1  ;;  %2909 = vmatpush.bf16.msrb.mxu0 %v4693_v19  ;;  %v4705_v19 = vld [vmem:[%s6607_s14 + $0x34] sm:$0xf0] }
 0x1e6   : > { %v2378_v28 = vmax.f32 %v2374_v26, 0.0  ;;  %v4687_v26 = vld [vmem:[%s6603_s10 + $0x8] sm:$0xff] }
 0x1e8   : > { %v2380_v30 = vpack.c.bf16 %v2378_v28, %v2378_v28  ;;  %v4686_v28 = vld [vmem:[%s6603_s10] sm:$0xff] }
 0x1e9   : > { %2910 = vmatpush.bf16.msrb.mxu0 %v4692_v21  ;;  %v4704_v21 = vld [vmem:[%s6607_s14 + $0x34] sm:$0xf] }
 0x1ea   : > { %2534 = vmatmul.bf16.vlgmr.msrb.gmra.mxu1 %v2380_v30 }
 0x1eb   : > { %v2375_v31 = vpop.f32.mrf.mxu3  ;;  %2965 = vmatpush.bf16.msrb.mxu1 %v4697_v34 }
 0x1ed   : > { %2911 = vmatpush.bf16.msrb.mxu0 %v4691_v22  ;;  %v4359_v22 = vld [vmem:[%s6607_s14 + $0x38] sm:$0xf0] }
 0x1ef   : > { %2966 = vmatpush.bf16.msrb.mxu1 %v4696_v29 }
 0x1f1   : > { %2912 = vmatpush.bf16.msrb.mxu0 %v4690_v23 }
 0x1f3   : > { %2967 = vmatpush.bf16.msrb.mxu1 %v4695_v37 }
 0x1f5   : > { %2913 = vmatpush.bf16.msrb.mxu0 %v4689_v32  ;;  %v4703_v32 = vld [vmem:[%s6607_s14 + $0x24] sm:$0xf0] }
 0x1f9   : > { %2914 = vmatpush.bf16.msrb.mxu0 %v4688_v11  ;;  %v4351_v11 = vld [vmem:[%s6607_s14 + $0x28] sm:$0xf0] }
 0x1fd   : > { %2915 = vmatpush.bf16.msrb.mxu0 %v4687_v26  ;;  %v4701_v26 = vld [vmem:[%s6607_s14 + $0x14] sm:$0xf0] }
 0x201   : > { %2916 = vmatpush.bf16.msrb.mxu0 %v4686_v28  ;;  %v4343_v28 = vld [vmem:[%s6607_s14 + $0x18] sm:$0xf0] }
 0x261   : > { %v2522_v43 = vpop.f32.mrf.mxu0 }
 0x262   : > { %v2523_v45 = vadd.f32 %v4731_v44, %v2522_v43 }
 0x267   : > { %v2535_v46 = vpop.f32.mrf.mxu1 }
 0x268   : > { %v2536_v47 = vadd.f32 %v2535_v46, %v2523_v45  ;;  %v2840_v45 = vld [vmem:[%s6602_s9] sm:$0x1] }
 0x269   : > { %v2524_v48 = vpop.f32.mrf.mxu0 }
 0x26a   : > { %v2539_v49 = vmax.f32 %v2536_v47, 0.0 }
 0x26c   : > { %v2540_v50 = vpack.c.bf16 %v2539_v49, %v2539_v49 }
 0x26e   : > { %2542 = vst.msk [vmem:[#allocation2] sm:$0xf] %vm2541_vm0, %v2540_v50 }
 0x26f   : > { %v2537_v51 = vpop.f32.mrf.mxu1 }
 0x275   : > { %v2543_v53 = vld [vmem:[#allocation2] sm:$0x1]  ;;  %v2690_v54 = vld [vmem:[#allocation2] sm:$0x4]  ;;  %v2615_v55 = vld [vmem:[#allocation2] sm:$0x2] }
 0x276   : > { %v2553_v56 = vunpack.c.l.b16 %v2543_v53  ;;  %4227 = vmatmul.msk.bf16.vlgmr.msrb.gmra.mxu3 %vm2570_vm1, %v2543_v53  ;;  %v2696_v57 = vunpack.c.l.b16 %v2690_v54  ;;  %v2621_v60 = vunpack.c.l.b16 %v2615_v55  ;;  %v2765_v4 = vld [vmem:[#allocation2] sm:$0x8]  ;;  %v4389_v53 = vld [vmem:[%s6607_s14 + $0x70] sm:$0xf]  ;;  %v4713_v54 = vld [vmem:[%s6607_s14 + $0x74] sm:$0xf0] }
 0x277   : > { %2832 = vmatpush.bf16.msrb.mxu3 %v4685_v52  ;;  %v2771_v6 = vunpack.c.l.b16 %v2765_v4  ;;  %v4694_v52 = vld [vmem:[%s6605_s12] sm:$0xff]  ;;  %v4712_v55 = vld [vmem:[%s6607_s14 + $0x74] sm:$0xf] }
 0x278   : > { %v2554_v42 = vpack.c.b16 %v2553_v56, %v2553_v56  ;;  %v2697_v59 = vpack.c.b16 %v2696_v57, %v2696_v57  ;;  %v2622_v1 = vpack.c.b16 %v2621_v60, %v2621_v60  ;;  %2968 = vmatpush.bf16.msrb.mxu1 %v4694_v52  ;;  %v4390_v56 = vor.u32 %v4713_v54, %v4389_v53  ;;  %v4391_v57 = vld [vmem:[%s6607_s14 + $0x78] sm:$0xf0]  ;;  %v4710_v60 = vld [vmem:[%s6607_s14 + $0x64] sm:$0xf]  ;;  %v4365_v4 = vld [vmem:[%s6607_s14 + $0x40] sm:$0xf] }
 0x279   : > { %v2772_v8 = vpack.c.b16 %v2771_v6, %v2771_v6  ;;  %v4707_v6 = vld [vmem:[%s6607_s14 + $0x44] sm:$0xf0] }
 0x27a   : > { %v2556_v61 = vshrl.u32 %v2554_v42, 16  ;;  %v2698_v62 = vrot.slane %v2697_v59, 2  ;;  %v2733_v63 = vshrl.u32 %v2697_v59, 16  ;;  %v2658_v3 = vshrl.u32 %v2622_v1, 16  ;;  %v4711_v42 = vld [vmem:[%s6607_s14 + $0x64] sm:$0xf0] }
 0x27b   : > { %2833 = vmatpush.bf16.msrb.mxu3 %v4684_v58  ;;  %v2623_v7 = vrot.slane %v2622_v1, 1  ;;  %v2808_v13 = vshrl.u32 %v2772_v8, 16  ;;  %v2773_v18 = vrot.slane %v2772_v8, 3  ;;  %v4381_v58 = vld [vmem:[%s6607_s14 + $0x60] sm:$0xf]  ;;  %v4394_v59 = vor.u32 %v4712_v55, %v4391_v57 }
 0x27c   : > { %4218 = vmatmul.msk.bf16.vlgmr.msrb.gmra.mxu2 %vm2570_vm1, %v2556_v61  ;;  %4254 = vmatmul.msk.bf16.vlgmr.msra.gmra.mxu0 %vm2570_vm1, %v2698_v62  ;;  %v2735_v0 = vrot.slane %v2733_v63, 2  ;;  %v2660_v9 = vrot.slane %v2658_v3, 1  ;;  %v4382_v61 = vor.u32 %v4711_v42, %v4381_v58  ;;  %v4373_v63 = vld [vmem:[%s6607_s14 + $0x50] sm:$0xf]  ;;  %v4708_v1 = vld [vmem:[%s6607_s14 + $0x54] sm:$0xf] }
 0x27d   : > { %2795 = vmatpush.bf16.msrb.mxu2 %v4683_v36  ;;  %v2810_v17 = vrot.slane %v2808_v13, 3  ;;  %v4383_v36 = vld [vmem:[%s6607_s14 + $0x68] sm:$0xf0]  ;;  %v4366_v13 = vor.u32 %v4707_v6, %v4365_v4  ;;  %v4714_v57 = vld [vmem:[%s6609_s16] sm:$0xff] }
 0x27e   : > { %4263 = vmatmul.msk.bf16.vlgmr.msra.gmra.mxu1 %vm2570_vm1, %v2735_v0  ;;  %v4386_v62 = vor.u32 %v4710_v60, %v4383_v36  ;;  %v4709_v0 = vld [vmem:[%s6607_s14 + $0x54] sm:$0xf0]  ;;  %v4367_v8 = vld [vmem:[%s6607_s14 + $0x48] sm:$0xf0]  ;;  %v2991_v58 = vld [vmem:[%s6608_s15] sm:$0x3] }
 0x27f   : > { %v4374_v3 = vor.u32 %v4709_v0, %v4373_v63  ;;  %v3073_v42 = vperm.slane %v2991_v58, 0 }
 0x281   : > { %2796 = vmatpush.bf16.msrb.mxu2 %v4682_v2  ;;  %v4375_v2 = vld [vmem:[%s6607_s14 + $0x58] sm:$0xf0] }
 0x286   : > { %4245 = vmatmul.msk.bf16.vlgmr.msra.gmra.mxu3 %vm2570_vm1, %v2660_v9  ;;  %v4378_v9 = vor.u32 %v4708_v1, %v4375_v2 }
 0x287   : > { %3090 = vmatpush.bf16.msra.mxu3 %v4394_v59  ;;  %v3074_v59 = vperm.slane %v2991_v58, 1 }
 0x28b   : > { %3091 = vmatpush.bf16.msra.mxu3 %v4386_v62 }
 0x28c   : > { %4236 = vmatmul.msk.bf16.vlgmr.msra.gmra.mxu2 %vm2570_vm1, %v2623_v7  ;;  %v4706_v7 = vld [vmem:[%s6607_s14 + $0x44] sm:$0xf] }
 0x28d   : > { %3077 = vmatpush.bf16.msra.mxu2 %v4390_v56  ;;  %v4715_v56 = vld [vmem:[%s6609_s16 + $0x8] sm:$0xff] }
 0x28f   : > { %3092 = vmatpush.bf16.msra.mxu3 %v4378_v9 }
 0x291   : > { %3078 = vmatpush.bf16.msra.mxu2 %v4382_v61 }
 0x295   : > { %3079 = vmatpush.bf16.msra.mxu2 %v4374_v3  ;;  %v3121_v3 = vld [vmem:[%s6610_s17] sm:$0x1] }
 0x296   : > { %4281 = vmatmul.msk.bf16.vlgmr.msrb.gmra.mxu3 %vm2570_vm1, %v2810_v17  ;;  %v4370_v17 = vor.u32 %v4706_v7, %v4367_v8 }
 0x298   : > { %3093 = vmatpush.bf16.msra.mxu3 %v4370_v17 }
 0x299   : > { %3080 = vmatpush.bf16.msra.mxu2 %v4366_v13 }
 0x29c   : > { %4272 = vmatmul.msk.bf16.vlgmr.msrb.gmra.mxu2 %vm2570_vm1, %v2773_v18  ;;  %v4357_v18 = vld [vmem:[%s6607_s14 + $0x30] sm:$0xf] }
 0x29d   : > { %v4358_v23 = vor.u32 %v4705_v19, %v4357_v18 }
 0x29f   : > { %3081 = vmatpush.bf16.msra.mxu2 %v4358_v23 }
 0x2f9   : > { %v2611_v5 = vpop.f32.mrf.mxu3  ;;  %v2723_v10 = vpop.f32.mrf.mxu0 }
 0x2fb   : > { %v2760_v12 = vpop.f32.mrf.mxu1 }
 0x2ff   : > { %v2583_v16 = vpop.f32.mrf.mxu2 }
 0x300   : > { %v2612_v39 = vadd.f32 %v2611_v5, %v2583_v16  ;;  %v4362_v5 = vor.u32 %v4704_v21, %v4359_v22 }
 0x301   : > { %v2613_v24 = vpop.f32.mrf.mxu3  ;;  %v2725_v25 = vpop.f32.mrf.mxu0 }
 0x302   : > { %3094 = vmatpush.bf16.msra.mxu3 %v4362_v5  ;;  %v4341_v25 = vld [vmem:[%s6607_s14 + $0x10] sm:$0xf] }
 0x303   : > { %v2762_v27 = vpop.f32.mrf.mxu1 }
 0x304   : > { %v4700_v27 = vld [vmem:[%s6607_s14 + $0x14] sm:$0xf] }
 0x305   : > { %v4346_v29 = vor.u32 %v4700_v27, %v4343_v28 }
 0x307   : > { %v2585_v30 = vpop.f32.mrf.mxu2 }
 0x308   : > { %v2860_v30 = vld [vmem:[%s6604_s11] sm:$0x1] }
 0x309   : > { %v2685_v31 = vpop.f32.mrf.mxu3 }
 0x30f   : > { %v2648_v35 = vpop.f32.mrf.mxu2 }
 0x310   : > { %v2652_v14 = vadd.f32 %v2648_v35, %v2612_v39 }
 0x311   : > { %v2687_v20 = vpop.f32.mrf.mxu3 }
 0x312   : > { %v2689_v33 = vadd.f32 %v2685_v31, %v2652_v14  ;;  %v4342_v31 = vor.u32 %v4701_v26, %v4341_v25  ;;  %v4333_v14 = vld [vmem:[%s6607_s14] sm:$0xf] }
 0x314   : > { %v2727_v40 = vadd.f32 %v2723_v10, %v2689_v33  ;;  %v4349_v10 = vld [vmem:[%s6607_s14 + $0x20] sm:$0xf]  ;;  %v4699_v33 = vld [vmem:[%s6607_s14 + $0x4] sm:$0xf0] }
 0x315   : > { %v4350_v16 = vor.u32 %v4703_v32, %v4349_v10 }
 0x316   : > { %v2764_v41 = vadd.f32 %v2760_v12, %v2727_v40  ;;  %v4702_v12 = vld [vmem:[%s6607_s14 + $0x24] sm:$0xf]  ;;  %v4335_v40 = vld [vmem:[%s6607_s14 + $0x8] sm:$0xf0] }
 0x317   : > { %v2650_v15 = vpop.f32.mrf.mxu2  ;;  %v4354_v24 = vor.u32 %v4702_v12, %v4351_v11  ;;  %3082 = vmatpush.bf16.msra.mxu2 %v4350_v16 }
 0x318   : > { %v4698_v15 = vld [vmem:[%s6607_s14 + $0x4] sm:$0xf] }
 0x319   : > { %v2835_v38 = vpop.f32.mrf.mxu3  ;;  %3095 = vmatpush.bf16.msra.mxu3 %v4354_v24 }
 0x31b   : > { %3083 = vmatpush.bf16.msra.mxu2 %v4342_v31 }
 0x31d   : > { %3096 = vmatpush.bf16.msra.mxu3 %v4346_v29 }
 0x31f   : > { %v2798_v43 = vpop.f32.mrf.mxu2 }
 0x320   : > { %v2802_v44 = vadd.f32 %v2798_v43, %v2764_v41  ;;  %v4338_v41 = vor.u32 %v4698_v15, %v4335_v40  ;;  %v4721_v43 = vld [vmem:[%s6609_s16 + $0x38] sm:$0xff] }
 0x321   : > { %v2837_v46 = vpop.f32.mrf.mxu3  ;;  %3170 = vmatpush.bf16.msra.mxu1 %v4721_v43 }
 0x322   : > { %v2839_v47 = vadd.f32 %v2835_v38, %v2802_v44  ;;  %v4334_v38 = vor.u32 %v4699_v33, %v4333_v14  ;;  %3097 = vmatpush.bf16.msra.mxu3 %v4338_v41  ;;  %v4720_v44 = vld [vmem:[%s6609_s16 + $0x30] sm:$0xff]  ;;  %v4718_v46 = vld [vmem:[%s6609_s16 + $0x20] sm:$0xff] }
 0x324   : > { %v2841_v48 = vadd.f32 %v2840_v45, %v2839_v47  ;;  %3084 = vmatpush.bf16.msra.mxu2 %v4334_v38  ;;  %v4719_v45 = vld [vmem:[%s6609_s16 + $0x28] sm:$0xff]  ;;  %v4717_v47 = vld [vmem:[%s6609_s16 + $0x18] sm:$0xff] }
 0x325   : > { %3171 = vmatpush.bf16.msra.mxu1 %v4720_v44 }
 0x326   : > { %v2842_v49 = vmax.f32 %v2841_v48, 0.0  ;;  %v4716_v48 = vld [vmem:[%s6609_s16 + $0x10] sm:$0xff] }
 0x327   : > { %v2800_v50 = vpop.f32.mrf.mxu2 }
 0x328   : > { %v2843_v51 = vpack.c.bf16 %v2842_v49, %v2842_v49  ;;  %v3183_v49 = vlaneseq  ;;  %v2932_v50 = vld [vmem:[%s6606_s13] sm:$0x1] }
 0x329   : > { %3172 = vmatpush.bf16.msra.mxu1 %v4719_v45 }
 0x32a   : > { %2917 = vmatmul.bf16.vlgmr.msrb.gmra.mxu0 %v2843_v51  ;;  %vm6568_vm3 = vcmp.lt.s32.totalorder %v3183_v49, 128 }
 0x32d   : > { %3173 = vmatpush.bf16.msra.mxu1 %v4718_v46 }
 0x331   : > { %3174 = vmatpush.bf16.msra.mxu1 %v4717_v47 }
 0x335   : > { %3175 = vmatpush.bf16.msra.mxu1 %v4716_v48 }
 0x339   : > { %3176 = vmatpush.bf16.msra.mxu1 %v4715_v56 }
 0x33d   : > { %3177 = vmatpush.bf16.msra.mxu1 %v4714_v57 }
 0x3a7   : > { %v2918_v34 = vpop.f32.mrf.mxu0 }
 0x3a8   : > { %v2919_v35 = vadd.f32 %v2918_v34, %v2860_v30 }
 0x3aa   : > { %v2922_v39 = vmax.f32 %v2919_v35, 0.0 }
 0x3ac   : > { %v2923_v37 = vpack.c.bf16 %v2922_v39, %v2922_v39 }
 0x3ae   : > { %4330 = vmatmul.msk.bf16.vlgmr.msrb.gmra.mxu1 %vm2957_vm2, %v2923_v37 }
 0x3af   : > { %v2920_v20 = vpop.f32.mrf.mxu0 }
 0x42b   : > { %v2970_v51 = vpop.f32.mrf.mxu1 }
 0x42c   : > { %v2971_v53 = vadd.f32 %v2970_v51, %v2932_v50 }
 0x42e   : > { %v2974_v54 = vpack.c.bf16 %v2971_v53, %v2971_v53  ;;  %3187 = vst.msk [vmem:[%s573_s27] sm:$0x1] %vm6568_vm3, %v2971_v53 }
 0x430   : > { %3085 = vmatmul.bf16.vlgmr.msra.gmra.mxu2 %v2974_v54  ;;  %3098 = vmatmul.bf16.vlgmr.msra.gmra.mxu3 %v2974_v54 }
 0x433   : > { %v2972_v55 = vpop.f32.mrf.mxu1 }
 0x4b3   : > { %v3086_v60 = vpop.f32.mrf.mxu2  ;;  %v3099_v36 = vpop.f32.mrf.mxu3 }
 0x4b4   : > { %v3087_v61 = vadd.f32 %v3086_v60, %v3073_v42  ;;  %v3100_v62 = vadd.f32 %v3099_v36, %v3074_v59 }
 0x4b6   : > { %v3103_v63 = vmax.f32 %v3087_v61, 0.0  ;;  %3189 = vst.msk [vmem:[%s573_s27 + $0x2] sm:$0x1] %vm6568_vm3, %v3100_v62 }
 0x4b8   : > { %v3104_v0 = vpack.c.bf16 %v3103_v63, %v3103_v63 }
 0x4ba   : > { %3178 = vmatmul.bf16.vlgmr.msra.gmra.mxu1 %v3104_v0 }
 0x4bb   : > { %v3088_v1 = vpop.f32.mrf.mxu2  ;;  %v3101_v2 = vpop.f32.mrf.mxu3 }
 0x537   : > { %v3179_v9 = vpop.f32.mrf.mxu1 }
 0x538   : > { %v3180_v4 = vadd.f32 %v3179_v9, %v3121_v3 }
 0x53a   : > { %3188 = vst.msk [vmem:[%s573_s27 + $0x1] sm:$0x1] %vm6568_vm3, %v3180_v4 }
 0x53f   : > { %v3181_v6 = vpop.f32.mrf.mxu1 }
 0x540 PF: > { %s6625_s21 = sld [smem:[#allocation3_spill]] }
 0x546   : > { %s28_s27 = sadd.s32 1, %s6625_s21  }
 0x547   : > { %p25_p4 = scmp.ge.s32.totalorder %s28_s27, 4  }
 0x549   :  { %27 = sbr.rel (!%p25_p4) target bundleno = 4 (0x4), region = 122 }

</bundles_post_ra>
